<compile_context>
chip_gen: v7x
topology: tpu7x:2x2x1
jax: 0.10.0
libtpu: 0.0.40
codegen_flags: <defaults>
</compile_context>

<pallas_src>
import numpy as np
import jax
import jax.numpy as jnp
from jax import lax
from jax.experimental import pallas as pl
from jax.experimental.pallas import tpu as pltpu


def _round_up(x, m):
    return ((x + m - 1) // m) * m


# ---------------------------------------------------------------------------
# Pooling epilogue: 2x2x2 max-pool (stride 2) + bias + ReLU.
# z: (N*D*H, 2*hc) conv output whose columns are ordered [all even w | all odd w]
# (each w carries its C channels contiguously), so the W pool is an aligned
# half-lane split. Bias/ReLU commute with max-pool and run on the pooled tensor.
# ---------------------------------------------------------------------------
def _pool_bias_relu(z, bias_row, N, D, H, hc):
    z = jnp.maximum(z[:, :hc], z[:, hc:])              # pool W (128-aligned halves)
    z = z.reshape(N * D * (H // 2), 2, hc)
    z = jnp.maximum(z[:, 0, :], z[:, 1, :])            # pool H (adjacent row pairs)
    z = z.reshape(N * (D // 2), 2, H // 2, hc)
    z = jnp.maximum(z[:, 0], z[:, 1])                  # pool D
    z = z.reshape(N * (D // 2) * (H // 2), hc)
    return jnp.maximum(z + bias_row, 0.0)              # bias + ReLU (f32, VPU)


# ---------------------------------------------------------------------------
# Fused forward kernel: conv1+pool -> conv2+pool -> fc1+ReLU -> fc2.
# Batch folded into the matmul M dimension; single invocation (no grid).
# ---------------------------------------------------------------------------
def fused_forward_kernel(x_ref, w1_ref, b1_ref, w2_ref, b2_ref,
                         fc1w_ref, fc1b_ref, fc2w_ref, fc2b_ref,
                         out_ref, pad1_ref, pad2_ref):
    N, D, H, W = x_ref.shape
    D2, H2 = D // 2, H // 2
    D3, H3 = D // 4, H // 4
    hc1 = b1_ref.shape[-1]            # (W//2) * C1
    hc2 = b2_ref.shape[-1]            # (W//4) * C2
    bf16 = jnp.bfloat16

    # ---- conv1 (banded block-Toeplitz) + bias + ReLU + 2x2x2 max-pool --------
    pad1_ref[...] = jnp.zeros_like(pad1_ref)            # halo shell + lane padding
    pad1_ref[:, 1:D + 1, 1:H + 1, 0:W] = x_ref[...]     # data at lane offset 0 (no rotate)
    # 9 halo slabs, each 128-lane wide and stored at 128-multiple offsets in the
    # concat -> aligned copies, one deep-K MXU matmul (accumulation stays in the MXU).
    # TODO(synk): on v7x the MRB would allow 9 accumulating K=128 matmuls instead of
    # the concat; kept the single-matmul form which is right for v5e/v6e.
    lhs1 = jnp.concatenate(
        [pad1_ref[:, kd:kd + D, kh:kh + H, :].reshape(N * D * H, -1).astype(bf16)
         for kd in range(3) for kh in range(3)],
        axis=-1)                                                       # (N*D*H, 9*128)
    z1 = jnp.dot(lhs1, w1_ref[...], preferred_element_type=jnp.float32)  # (N*D*H, W*C1)
    y1 = _pool_bias_relu(z1, b1_ref[...], N, D, H, hc1)                  # (N*D2*H2, hc1)

    # ---- conv2 (banded, (w, cin) fused on lanes) + bias + ReLU + pool --------
    pad2_ref[...] = jnp.zeros_like(pad2_ref)
    pad2_ref[:, 1:D2 + 1, 1:H2 + 1, 0:hc1] = y1.reshape(N, D2, H2, hc1)
    patches = jnp.concatenate(
        [pad2_ref[:, kd:kd + D2, kh:kh + H2, :].reshape(N * D2 * H2, -1).astype(bf16)
         for kd in range(3) for kh in range(3)],
        axis=-1)                                                       # (N*D2*H2, 9*384)
    z2 = jnp.dot(patches, w2_ref[...], preferred_element_type=jnp.float32)  # (., W2*C2)
    y2 = _pool_bias_relu(z2, b2_ref[...], N, D2, H2, hc2)                   # (N*D3*H3, hc2)

    # ---- classifier head: relu(feat @ W1 + b1) @ W2 + b2 ---------------------
    # NDHWC flatten via lane-aligned concatenation of the per-(d,h) rows; fc1 rows
    # were pre-permuted on the host to consume exactly this order.
    y2r = y2.reshape(N, D3 * H3, hc2)
    feat = jnp.concatenate([y2r[:, j, :] for j in range(D3 * H3)], axis=-1).astype(bf16)
    h = jnp.dot(feat, fc1w_ref[...], preferred_element_type=jnp.float32)
    h = jnp.maximum(h + fc1b_ref[...], 0.0)
    logits = jnp.dot(h.astype(bf16), fc2w_ref[...], preferred_element_type=jnp.float32)
    out_ref[...] = (logits + fc2b_ref[...]).astype(out_ref.dtype)


def simple3dcnn_forward(x_ncdhw, kp):
    # x_ncdhw: (N, 1, D, H, W) float32 -> logits (N, num_classes) float32.
    N, _, D, H, W = x_ncdhw.shape
    D2, H2 = D // 2, H // 2
    num_classes = kp["fc2_w"].shape[1]
    kp1_lanes = kp["conv1_band"].shape[0] // 9          # padded slab lane width (conv1)
    kp2_lanes = kp["conv2_band"].shape[0] // 9          # padded slab lane width (conv2)

    x = x_ncdhw[:, 0]                                   # squeeze Cin=1; W stays on lanes
    vmem = pl.BlockSpec(memory_space=pltpu.MemorySpace.VMEM)

    # TODO(synk): for large N, switch to grid=(N_blocks,) with dimension_semantics=
    # ("parallel",) so v7x's two TensorCores split the batch; for large volumes, tile
    # the D axis with halo'd slabs and block fc1_w over K.
    # TODO(synk): bn1/bn2 and dropout are constructed in the module's __init__ but are
    # never called in forward(), so they are intentionally not implemented here.
    return pl.pallas_call(
        fused_forward_kernel,
        out_shape=jax.ShapeDtypeStruct((N, num_classes), jnp.float32),
        in_specs=[vmem] * 9,
        out_specs=vmem,
        scratch_shapes=[
            pltpu.VMEM((N, D + 2, H + 2, kp1_lanes), jnp.float32),
            pltpu.VMEM((N, D2 + 2, H2 + 2, kp2_lanes), jnp.float32),
        ],
        compiler_params=pltpu.CompilerParams(vmem_limit_bytes=32 * 1024 * 1024),
    )(x, kp["conv1_band"], kp["conv1_bias"], kp["conv2_band"], kp["conv2_bias"],
      kp["fc1_w"], kp["fc1_b"], kp["fc2_w"], kp["fc2_b"])


# ---------------------------------------------------------------------------
# One-time host-side parameter preparation: PyTorch layouts -> kernel layouts.
# ---------------------------------------------------------------------------
def _banded_conv_rhs(w, w_out, kp_w):
    """Block-Toeplitz RHS realizing a 3x3x3 'same' conv as one matmul over 9 slabs.

    w: (3, 3, 3, Cin, Cout). The LHS slab for (kd, kh) is the padded activation plane
    at D/H offsets (kd, kh) with the (w, cin) pair fused on the lane axis, data at
    lane offset 0 and kp_w*Cin lanes total (kp_w >= w_out + 2). Output columns are
    permuted [even w | odd w] so the W max-pool becomes an aligned half-lane split.
    Returns (9 * kp_w * Cin, w_out * Cout) float32.
    """
    cin, cout = w.shape[3], w.shape[4]
    band = np.zeros((9, kp_w, cin, w_out, cout), np.float32)
    for kd in range(3):
        for kh in range(3):
            blk = band[kd * 3 + kh]
            for kw in range(3):
                for wo in range(w_out):
                    u = wo + kw - 1              # input w position (data at lane offset 0)
                    if 0 <= u < kp_w:            # u == -1 is the (dropped) zero halo term
                        blk[u, :, wo, :] += w[kd, kh, kw]
    perm = np.concatenate([np.arange(0, w_out, 2), np.arange(1, w_out, 2)])
    band = band[:, :, :, perm, :]
    return band.reshape(9 * kp_w * cin, w_out * cout)


def prepare_params(tp, D, H, W):
    """Convert torch-layout params (conv: (Cout,Cin,3,3,3), fc: (out,in)) once."""
    C1 = int(tp["conv1_b"].shape[0])
    C2 = int(tp["conv2_b"].shape[0])
    assert D % 4 == 0 and H % 4 == 0 and W % 4 == 0
    assert 128 % C1 == 0, "conv2 lane layout needs Cin | 128"
    W2, W3 = W // 2, W // 4
    D3, H3 = D // 4, H // 4

    w1 = np.transpose(np.asarray(tp["conv1_w"]), (2, 3, 4, 1, 0))    # (3,3,3,1,C1)
    w2 = np.transpose(np.asarray(tp["conv2_w"]), (2, 3, 4, 1, 0))    # (3,3,3,C1,C2)

    kp1_w = _round_up(W + 2, 128)                       # conv1 slab lane width (Cin=1)
    kp2_w = _round_up((W2 + 2) * C1, 128) // C1         # conv2 slab width in w units

    # fc1 rows re-permuted so the kernel's NDHWC flatten maps onto torch's NCDHW flatten.
    perm = np.transpose(
        np.arange(C2 * D3 * H3 * W3).reshape(C2, D3, H3, W3), (1, 2, 3, 0)).reshape(-1)
    fc1_w = np.transpose(np.asarray(tp["fc1_w"]))[perm]              # (flat_dim, 256)

    return {
        "conv1_band": jnp.asarray(_banded_conv_rhs(w1, W, kp1_w), jnp.bfloat16),
        "conv1_bias": jnp.asarray(np.tile(np.asarray(tp["conv1_b"]), W2)[None, :]),
        "conv2_band": jnp.asarray(_banded_conv_rhs(w2, W2, kp2_w), jnp.bfloat16),
        "conv2_bias": jnp.asarray(np.tile(np.asarray(tp["conv2_b"]), W3)[None, :]),
        "fc1_w": jnp.asarray(fc1_w, jnp.bfloat16),
        "fc1_b": jnp.asarray(np.asarray(tp["fc1_b"])[None, :]),
        "fc2_w": jnp.asarray(np.transpose(np.asarray(tp["fc2_w"])), jnp.bfloat16),
        "fc2_b": jnp.asarray(np.asarray(tp["fc2_b"])[None, :]),
    }


# ---------------------------------------------------------------------------
# Pure-JAX f32 reference (same math as the PyTorch module's forward()).
# ---------------------------------------------------------------------------
def _reference_forward(x, tp):
    def conv3d(a, w, b):
        dn = lax.conv_dimension_numbers(a.shape, w.shape, ("NCDHW", "OIDHW", "NCDHW"))
        y = lax.conv_general_dilated(a, w, (1, 1, 1), [(1, 1)] * 3, dimension_numbers=dn)
        return y + b.reshape(1, -1, 1, 1, 1)

    def pool(a):
        return lax.reduce_window(a, -jnp.inf, lax.max,
                                 (1, 1, 2, 2, 2), (1, 1, 2, 2, 2), "VALID")

    y = pool(jax.nn.relu(conv3d(x, tp["conv1_w"], tp["conv1_b"])))
    y = pool(jax.nn.relu(conv3d(y, tp["conv2_w"], tp["conv2_b"])))
    feat = y.reshape(y.shape[0], -1)
    h = jax.nn.relu(feat @ tp["fc1_w"].T + tp["fc1_b"])
    return h @ tp["fc2_w"].T + tp["fc2_b"]


if __name__ == "__main__":
    # Small shapes consistent with the module: (N, 1, D, H, W); two pool(2) stages
    # -> flat_dim = 64 * (D//4) * (H//4) * (W//4).
    N, D, H, W = 2, 8, 16, 16
    num_classes = 10
    C1, C2 = 32, 64
    flat_dim = C2 * (D // 4) * (H // 4) * (W // 4)       # 2048

    key = jax.random.PRNGKey(0)
    kx, *kw = jax.random.split(key, 9)
    s = 0.05
    torch_params = {
        "conv1_w": s * jax.random.normal(kw[0], (C1, 1, 3, 3, 3), jnp.float32),
        "conv1_b": s * jax.random.normal(kw[1], (C1,), jnp.float32),
        "conv2_w": s * jax.random.normal(kw[2], (C2, C1, 3, 3, 3), jnp.float32),
        "conv2_b": s * jax.random.normal(kw[3], (C2,), jnp.float32),
        "fc1_w":   s * jax.random.normal(kw[4], (256, flat_dim), jnp.float32),
        "fc1_b":   s * jax.random.normal(kw[5], (256,), jnp.float32),
        "fc2_w":   s * jax.random.normal(kw[6], (num_classes, 256), jnp.float32),
        "fc2_b":   s * jax.random.normal(kw[7], (num_classes,), jnp.float32),
    }
    x = jax.random.normal(kx, (N, 1, D, H, W), jnp.float32)

    params = prepare_params(torch_params, D, H, W)       # one-time layout conversion
    out = jax.jit(simple3dcnn_forward)(x, params)
    jax.block_until_ready(out)
    assert out.shape == (N, num_classes) and out.dtype == jnp.float32

    # Numerical sanity check against the f32 reference (kernel uses bf16 weights,
    # f32 accumulation -> loose tolerance).
    ref = jax.jit(_reference_forward)(x, torch_params)
    err = float(jnp.max(jnp.abs(out - ref)))
    assert err < 6e-2, f"max |err| vs reference = {err}"
    print("KERNEL_OK")
</pallas_src>

<mosaic_0001>
module attributes {stable_mosaic.version = 11 : i64} {
  func.func @fused_forward_kernel(%arg0: memref<2x8x16x16xf32, #tpu.memory_space<vmem>>, %arg1: memref<1152x512xbf16, #tpu.memory_space<vmem>>, %arg2: memref<1x256xf32, #tpu.memory_space<vmem>>, %arg3: memref<3456x512xbf16, #tpu.memory_space<vmem>>, %arg4: memref<1x256xf32, #tpu.memory_space<vmem>>, %arg5: memref<2048x256xbf16, #tpu.memory_space<vmem>>, %arg6: memref<1x256xf32, #tpu.memory_space<vmem>>, %arg7: memref<256x10xbf16, #tpu.memory_space<vmem>>, %arg8: memref<1x10xf32, #tpu.memory_space<vmem>>, %arg9: memref<2x10xf32, #tpu.memory_space<vmem>>, %arg10: memref<2x10x18x128xf32, #tpu.memory_space<vmem>>, %arg11: memref<2x6x10x384xf32, #tpu.memory_space<vmem>>) attributes {dimension_semantics = [], scalar_prefetch = 0 : i64, scratch_operands = 2 : i64, tpu.core_type = #tpu.core_type<tc>} {
    %cst = arith.constant 0.000000e+00 : f32
    %0 = vector.broadcast %cst : f32 to vector<2x10x18x128xf32>
    %c0 = arith.constant 0 : index
    %c0_0 = arith.constant 0 : index
    %c0_1 = arith.constant 0 : index
    %c0_2 = arith.constant 0 : index
    %1 = vector.load %arg10[%c0, %c0_0, %c0_1, %c0_2] : memref<2x10x18x128xf32, #tpu.memory_space<vmem>>, vector<2x10x18x128xf32>
    tpu.vector_store %arg10[%c0, %c0_0, %c0_1, %c0_2], %0 {strides = array<i32>} : memref<2x10x18x128xf32, #tpu.memory_space<vmem>>, vector<2x10x18x128xf32>,
    %c0_3 = arith.constant 0 : index
    %c0_4 = arith.constant 0 : index
    %c0_5 = arith.constant 0 : index
    %c0_6 = arith.constant 0 : index
    %2 = vector.load %arg0[%c0_3, %c0_4, %c0_5, %c0_6] : memref<2x8x16x16xf32, #tpu.memory_space<vmem>>, vector<2x8x16x16xf32>
    %c0_7 = arith.constant 0 : index
    %c1 = arith.constant 1 : index
    %c1_8 = arith.constant 1 : index
    %c0_9 = arith.constant 0 : index
    %3 = vector.load %arg10[%c0_7, %c1, %c1_8, %c0_9] : memref<2x10x18x128xf32, #tpu.memory_space<vmem>>, vector<2x8x16x16xf32>
    tpu.vector_store %arg10[%c0_7, %c1, %c1_8, %c0_9], %2 {strides = array<i32>} : memref<2x10x18x128xf32, #tpu.memory_space<vmem>>, vector<2x8x16x16xf32>,
    %c0_10 = arith.constant 0 : index
    %c0_11 = arith.constant 0 : index
    %c0_12 = arith.constant 0 : index
    %c0_13 = arith.constant 0 : index
    %4 = vector.load %arg10[%c0_10, %c0_11, %c0_12, %c0_13] : memref<2x10x18x128xf32, #tpu.memory_space<vmem>>, vector<2x8x16x128xf32>
    %5 = vector.shape_cast %4 : vector<2x8x16x128xf32> to vector<256x128xf32>
    %6 = arith.truncf %5 : vector<256x128xf32> to vector<256x128xbf16>
    %c0_14 = arith.constant 0 : index
    %c0_15 = arith.constant 0 : index
    %c1_16 = arith.constant 1 : index
    %c0_17 = arith.constant 0 : index
    %7 = vector.load %arg10[%c0_14, %c0_15, %c1_16, %c0_17] : memref<2x10x18x128xf32, #tpu.memory_space<vmem>>, vector<2x8x16x128xf32>
    %8 = vector.shape_cast %7 : vector<2x8x16x128xf32> to vector<256x128xf32>
    %9 = arith.truncf %8 : vector<256x128xf32> to vector<256x128xbf16>
    %c0_18 = arith.constant 0 : index
    %c0_19 = arith.constant 0 : index
    %c2 = arith.constant 2 : index
    %c0_20 = arith.constant 0 : index
    %10 = vector.load %arg10[%c0_18, %c0_19, %c2, %c0_20] : memref<2x10x18x128xf32, #tpu.memory_space<vmem>>, vector<2x8x16x128xf32>
    %11 = vector.shape_cast %10 : vector<2x8x16x128xf32> to vector<256x128xf32>
    %12 = arith.truncf %11 : vector<256x128xf32> to vector<256x128xbf16>
    %c0_21 = arith.constant 0 : index
    %c1_22 = arith.constant 1 : index
    %c0_23 = arith.constant 0 : index
    %c0_24 = arith.constant 0 : index
    %13 = vector.load %arg10[%c0_21, %c1_22, %c0_23, %c0_24] : memref<2x10x18x128xf32, #tpu.memory_space<vmem>>, vector<2x8x16x128xf32>
    %14 = vector.shape_cast %13 : vector<2x8x16x128xf32> to vector<256x128xf32>
    %15 = arith.truncf %14 : vector<256x128xf32> to vector<256x128xbf16>
    %c0_25 = arith.constant 0 : index
    %c1_26 = arith.constant 1 : index
    %c1_27 = arith.constant 1 : index
    %c0_28 = arith.constant 0 : index
    %16 = vector.load %arg10[%c0_25, %c1_26, %c1_27, %c0_28] : memref<2x10x18x128xf32, #tpu.memory_space<vmem>>, vector<2x8x16x128xf32>
    %17 = vector.shape_cast %16 : vector<2x8x16x128xf32> to vector<256x128xf32>
    %18 = arith.truncf %17 : vector<256x128xf32> to vector<256x128xbf16>
    %c0_29 = arith.constant 0 : index
    %c1_30 = arith.constant 1 : index
    %c2_31 = arith.constant 2 : index
    %c0_32 = arith.constant 0 : index
    %19 = vector.load %arg10[%c0_29, %c1_30, %c2_31, %c0_32] : memref<2x10x18x128xf32, #tpu.memory_space<vmem>>, vector<2x8x16x128xf32>
    %20 = vector.shape_cast %19 : vector<2x8x16x128xf32> to vector<256x128xf32>
    %21 = arith.truncf %20 : vector<256x128xf32> to vector<256x128xbf16>
    %c0_33 = arith.constant 0 : index
    %c2_34 = arith.constant 2 : index
    %c0_35 = arith.constant 0 : index
    %c0_36 = arith.constant 0 : index
    %22 = vector.load %arg10[%c0_33, %c2_34, %c0_35, %c0_36] : memref<2x10x18x128xf32, #tpu.memory_space<vmem>>, vector<2x8x16x128xf32>
    %23 = vector.shape_cast %22 : vector<2x8x16x128xf32> to vector<256x128xf32>
    %24 = arith.truncf %23 : vector<256x128xf32> to vector<256x128xbf16>
    %c0_37 = arith.constant 0 : index
    %c2_38 = arith.constant 2 : index
    %c1_39 = arith.constant 1 : index
    %c0_40 = arith.constant 0 : index
    %25 = vector.load %arg10[%c0_37, %c2_38, %c1_39, %c0_40] : memref<2x10x18x128xf32, #tpu.memory_space<vmem>>, vector<2x8x16x128xf32>
    %26 = vector.shape_cast %25 : vector<2x8x16x128xf32> to vector<256x128xf32>
    %27 = arith.truncf %26 : vector<256x128xf32> to vector<256x128xbf16>
    %c0_41 = arith.constant 0 : index
    %c2_42 = arith.constant 2 : index
    %c2_43 = arith.constant 2 : index
    %c0_44 = arith.constant 0 : index
    %28 = vector.load %arg10[%c0_41, %c2_42, %c2_43, %c0_44] : memref<2x10x18x128xf32, #tpu.memory_space<vmem>>, vector<2x8x16x128xf32>
    %29 = vector.shape_cast %28 : vector<2x8x16x128xf32> to vector<256x128xf32>
    %30 = arith.truncf %29 : vector<256x128xf32> to vector<256x128xbf16>
    %31 = tpu.concatenate %6, %9, %12, %15, %18, %21, %24, %27, %30 in 1 : vector<256x128xbf16>, vector<256x128xbf16>, vector<256x128xbf16>, vector<256x128xbf16>, vector<256x128xbf16>, vector<256x128xbf16>, vector<256x128xbf16>, vector<256x128xbf16>, vector<256x128xbf16> -> vector<256x1152xbf16>
    %c0_45 = arith.constant 0 : index
    %c0_46 = arith.constant 0 : index
    %32 = vector.load %arg1[%c0_45, %c0_46] : memref<1152x512xbf16, #tpu.memory_space<vmem>>, vector<1152x512xbf16>
    %cst_47 = arith.constant dense<0.000000e+00> : vector<256x512xf32>
    %33 = tpu.matmul %31, %32, %cst_47 {dimension_numbers = #tpu.dot_dimension_numbers<[1], [0], [0], [1], [0, 0, 1, 1], [], []>} : vector<256x1152xbf16>, vector<1152x512xbf16>, vector<256x512xf32> -> vector<256x512xf32>
    %c0_48 = arith.constant 0 : index
    %c0_49 = arith.constant 0 : index
    %34 = vector.load %arg2[%c0_48, %c0_49] : memref<1x256xf32, #tpu.memory_space<vmem>>, vector<1x256xf32>
    %35 = vector.extract_strided_slice %33 {offsets = [0, 0], sizes = [256, 256], strides = [1, 1]} : vector<256x512xf32> to vector<256x256xf32>
    %36 = vector.extract_strided_slice %33 {offsets = [0, 256], sizes = [256, 256], strides = [1, 1]} : vector<256x512xf32> to vector<256x256xf32>
    %37 = arith.maximumf %35, %36 : vector<256x256xf32>
    %38 = vector.shape_cast %37 : vector<256x256xf32> to vector<128x2x256xf32>
    %39 = vector.extract_strided_slice %38 {offsets = [0, 0, 0], sizes = [128, 1, 256], strides = [1, 1, 1]} : vector<128x2x256xf32> to vector<128x1x256xf32>
    %40 = vector.shape_cast %39 : vector<128x1x256xf32> to vector<128x256xf32>
    %41 = vector.extract_strided_slice %38 {offsets = [0, 1, 0], sizes = [128, 1, 256], strides = [1, 1, 1]} : vector<128x2x256xf32> to vector<128x1x256xf32>
    %42 = vector.shape_cast %41 : vector<128x1x256xf32> to vector<128x256xf32>
    %43 = arith.maximumf %40, %42 : vector<128x256xf32>
    %44 = vector.shape_cast %43 : vector<128x256xf32> to vector<8x2x8x256xf32>
    %45 = vector.extract_strided_slice %44 {offsets = [0, 0, 0, 0], sizes = [8, 1, 8, 256], strides = [1, 1, 1, 1]} : vector<8x2x8x256xf32> to vector<8x1x8x256xf32>
    %46 = vector.shape_cast %45 : vector<8x1x8x256xf32> to vector<8x8x256xf32>
    %47 = vector.extract_strided_slice %44 {offsets = [0, 1, 0, 0], sizes = [8, 1, 8, 256], strides = [1, 1, 1, 1]} : vector<8x2x8x256xf32> to vector<8x1x8x256xf32>
    %48 = vector.shape_cast %47 : vector<8x1x8x256xf32> to vector<8x8x256xf32>
    %49 = arith.maximumf %46, %48 : vector<8x8x256xf32>
    %50 = vector.shape_cast %49 : vector<8x8x256xf32> to vector<64x256xf32>
    %51 = vector.broadcast %34 : vector<1x256xf32> to vector<64x256xf32>
    %52 = arith.addf %50, %51 : vector<64x256xf32>
    %cst_50 = arith.constant 0.000000e+00 : f32
    %53 = vector.broadcast %cst_50 : f32 to vector<64x256xf32>
    %54 = arith.maximumf %52, %53 : vector<64x256xf32>
    %cst_51 = arith.constant 0.000000e+00 : f32
    %55 = vector.broadcast %cst_51 : f32 to vector<2x6x10x384xf32>
    %c0_52 = arith.constant 0 : index
    %c0_53 = arith.constant 0 : index
    %c0_54 = arith.constant 0 : index
    %c0_55 = arith.constant 0 : index
    %56 = vector.load %arg11[%c0_52, %c0_53, %c0_54, %c0_55] : memref<2x6x10x384xf32, #tpu.memory_space<vmem>>, vector<2x6x10x384xf32>
    tpu.vector_store %arg11[%c0_52, %c0_53, %c0_54, %c0_55], %55 {strides = array<i32>} : memref<2x6x10x384xf32, #tpu.memory_space<vmem>>, vector<2x6x10x384xf32>,
    %57 = vector.shape_cast %54 : vector<64x256xf32> to vector<2x4x8x256xf32>
    %c0_56 = arith.constant 0 : index
    %c1_57 = arith.constant 1 : index
    %c1_58 = arith.constant 1 : index
    %c0_59 = arith.constant 0 : index
    %58 = vector.load %arg11[%c0_56, %c1_57, %c1_58, %c0_59] : memref<2x6x10x384xf32, #tpu.memory_space<vmem>>, vector<2x4x8x256xf32>
    tpu.vector_store %arg11[%c0_56, %c1_57, %c1_58, %c0_59], %57 {strides = array<i32>} : memref<2x6x10x384xf32, #tpu.memory_space<vmem>>, vector<2x4x8x256xf32>,
    %c0_60 = arith.constant 0 : index
    %c0_61 = arith.constant 0 : index
    %c0_62 = arith.constant 0 : index
    %c0_63 = arith.constant 0 : index
    %59 = vector.load %arg11[%c0_60, %c0_61, %c0_62, %c0_63] : memref<2x6x10x384xf32, #tpu.memory_space<vmem>>, vector<2x4x8x384xf32>
    %60 = vector.shape_cast %59 : vector<2x4x8x384xf32> to vector<64x384xf32>
    %61 = arith.truncf %60 : vector<64x384xf32> to vector<64x384xbf16>
    %c0_64 = arith.constant 0 : index
    %c0_65 = arith.constant 0 : index
    %c1_66 = arith.constant 1 : index
    %c0_67 = arith.constant 0 : index
    %62 = vector.load %arg11[%c0_64, %c0_65, %c1_66, %c0_67] : memref<2x6x10x384xf32, #tpu.memory_space<vmem>>, vector<2x4x8x384xf32>
    %63 = vector.shape_cast %62 : vector<2x4x8x384xf32> to vector<64x384xf32>
    %64 = arith.truncf %63 : vector<64x384xf32> to vector<64x384xbf16>
    %c0_68 = arith.constant 0 : index
    %c0_69 = arith.constant 0 : index
    %c2_70 = arith.constant 2 : index
    %c0_71 = arith.constant 0 : index
    %65 = vector.load %arg11[%c0_68, %c0_69, %c2_70, %c0_71] : memref<2x6x10x384xf32, #tpu.memory_space<vmem>>, vector<2x4x8x384xf32>
    %66 = vector.shape_cast %65 : vector<2x4x8x384xf32> to vector<64x384xf32>
    %67 = arith.truncf %66 : vector<64x384xf32> to vector<64x384xbf16>
    %c0_72 = arith.constant 0 : index
    %c1_73 = arith.constant 1 : index
    %c0_74 = arith.constant 0 : index
    %c0_75 = arith.constant 0 : index
    %68 = vector.load %arg11[%c0_72, %c1_73, %c0_74, %c0_75] : memref<2x6x10x384xf32, #tpu.memory_space<vmem>>, vector<2x4x8x384xf32>
    %69 = vector.shape_cast %68 : vector<2x4x8x384xf32> to vector<64x384xf32>
    %70 = arith.truncf %69 : vector<64x384xf32> to vector<64x384xbf16>
    %c0_76 = arith.constant 0 : index
    %c1_77 = arith.constant 1 : index
    %c1_78 = arith.constant 1 : index
    %c0_79 = arith.constant 0 : index
    %71 = vector.load %arg11[%c0_76, %c1_77, %c1_78, %c0_79] : memref<2x6x10x384xf32, #tpu.memory_space<vmem>>, vector<2x4x8x384xf32>
    %72 = vector.shape_cast %71 : vector<2x4x8x384xf32> to vector<64x384xf32>
    %73 = arith.truncf %72 : vector<64x384xf32> to vector<64x384xbf16>
    %c0_80 = arith.constant 0 : index
    %c1_81 = arith.constant 1 : index
    %c2_82 = arith.constant 2 : index
    %c0_83 = arith.constant 0 : index
    %74 = vector.load %arg11[%c0_80, %c1_81, %c2_82, %c0_83] : memref<2x6x10x384xf32, #tpu.memory_space<vmem>>, vector<2x4x8x384xf32>
    %75 = vector.shape_cast %74 : vector<2x4x8x384xf32> to vector<64x384xf32>
    %76 = arith.truncf %75 : vector<64x384xf32> to vector<64x384xbf16>
    %c0_84 = arith.constant 0 : index
    %c2_85 = arith.constant 2 : index
    %c0_86 = arith.constant 0 : index
    %c0_87 = arith.constant 0 : index
    %77 = vector.load %arg11[%c0_84, %c2_85, %c0_86, %c0_87] : memref<2x6x10x384xf32, #tpu.memory_space<vmem>>, vector<2x4x8x384xf32>
    %78 = vector.shape_cast %77 : vector<2x4x8x384xf32> to vector<64x384xf32>
    %79 = arith.truncf %78 : vector<64x384xf32> to vector<64x384xbf16>
    %c0_88 = arith.constant 0 : index
    %c2_89 = arith.constant 2 : index
    %c1_90 = arith.constant 1 : index
    %c0_91 = arith.constant 0 : index
    %80 = vector.load %arg11[%c0_88, %c2_89, %c1_90, %c0_91] : memref<2x6x10x384xf32, #tpu.memory_space<vmem>>, vector<2x4x8x384xf32>
    %81 = vector.shape_cast %80 : vector<2x4x8x384xf32> to vector<64x384xf32>
    %82 = arith.truncf %81 : vector<64x384xf32> to vector<64x384xbf16>
    %c0_92 = arith.constant 0 : index
    %c2_93 = arith.constant 2 : index
    %c2_94 = arith.constant 2 : index
    %c0_95 = arith.constant 0 : index
    %83 = vector.load %arg11[%c0_92, %c2_93, %c2_94, %c0_95] : memref<2x6x10x384xf32, #tpu.memory_space<vmem>>, vector<2x4x8x384xf32>
    %84 = vector.shape_cast %83 : vector<2x4x8x384xf32> to vector<64x384xf32>
    %85 = arith.truncf %84 : vector<64x384xf32> to vector<64x384xbf16>
    %86 = tpu.concatenate %61, %64, %67, %70, %73, %76, %79, %82, %85 in 1 : vector<64x384xbf16>, vector<64x384xbf16>, vector<64x384xbf16>, vector<64x384xbf16>, vector<64x384xbf16>, vector<64x384xbf16>, vector<64x384xbf16>, vector<64x384xbf16>, vector<64x384xbf16> -> vector<64x3456xbf16>
    %c0_96 = arith.constant 0 : index
    %c0_97 = arith.constant 0 : index
    %87 = vector.load %arg3[%c0_96, %c0_97] : memref<3456x512xbf16, #tpu.memory_space<vmem>>, vector<3456x512xbf16>
    %cst_98 = arith.constant dense<0.000000e+00> : vector<64x512xf32>
    %88 = tpu.matmul %86, %87, %cst_98 {dimension_numbers = #tpu.dot_dimension_numbers<[1], [0], [0], [1], [0, 0, 1, 1], [], []>} : vector<64x3456xbf16>, vector<3456x512xbf16>, vector<64x512xf32> -> vector<64x512xf32>
    %c0_99 = arith.constant 0 : index
    %c0_100 = arith.constant 0 : index
    %89 = vector.load %arg4[%c0_99, %c0_100] : memref<1x256xf32, #tpu.memory_space<vmem>>, vector<1x256xf32>
    %90 = vector.extract_strided_slice %88 {offsets = [0, 0], sizes = [64, 256], strides = [1, 1]} : vector<64x512xf32> to vector<64x256xf32>
    %91 = vector.extract_strided_slice %88 {offsets = [0, 256], sizes = [64, 256], strides = [1, 1]} : vector<64x512xf32> to vector<64x256xf32>
    %92 = arith.maximumf %90, %91 : vector<64x256xf32>
    %93 = vector.shape_cast %92 : vector<64x256xf32> to vector<32x2x256xf32>
    %94 = vector.extract_strided_slice %93 {offsets = [0, 0, 0], sizes = [32, 1, 256], strides = [1, 1, 1]} : vector<32x2x256xf32> to vector<32x1x256xf32>
    %95 = vector.shape_cast %94 : vector<32x1x256xf32> to vector<32x256xf32>
    %96 = vector.extract_strided_slice %93 {offsets = [0, 1, 0], sizes = [32, 1, 256], strides = [1, 1, 1]} : vector<32x2x256xf32> to vector<32x1x256xf32>
    %97 = vector.shape_cast %96 : vector<32x1x256xf32> to vector<32x256xf32>
    %98 = arith.maximumf %95, %97 : vector<32x256xf32>
    %99 = vector.shape_cast %98 : vector<32x256xf32> to vector<4x2x4x256xf32>
    %100 = vector.extract_strided_slice %99 {offsets = [0, 0, 0, 0], sizes = [4, 1, 4, 256], strides = [1, 1, 1, 1]} : vector<4x2x4x256xf32> to vector<4x1x4x256xf32>
    %101 = vector.shape_cast %100 : vector<4x1x4x256xf32> to vector<4x4x256xf32>
    %102 = vector.extract_strided_slice %99 {offsets = [0, 1, 0, 0], sizes = [4, 1, 4, 256], strides = [1, 1, 1, 1]} : vector<4x2x4x256xf32> to vector<4x1x4x256xf32>
    %103 = vector.shape_cast %102 : vector<4x1x4x256xf32> to vector<4x4x256xf32>
    %104 = arith.maximumf %101, %103 : vector<4x4x256xf32>
    %105 = vector.shape_cast %104 : vector<4x4x256xf32> to vector<16x256xf32>
    %106 = vector.broadcast %89 : vector<1x256xf32> to vector<16x256xf32>
    %107 = arith.addf %105, %106 : vector<16x256xf32>
    %cst_101 = arith.constant 0.000000e+00 : f32
    %108 = vector.broadcast %cst_101 : f32 to vector<16x256xf32>
    %109 = arith.maximumf %107, %108 : vector<16x256xf32>
    %110 = vector.shape_cast %109 : vector<16x256xf32> to vector<2x8x256xf32>
    %111 = vector.extract_strided_slice %110 {offsets = [0, 0, 0], sizes = [2, 1, 256], strides = [1, 1, 1]} : vector<2x8x256xf32> to vector<2x1x256xf32>
    %112 = vector.shape_cast %111 : vector<2x1x256xf32> to vector<2x256xf32>
    %113 = vector.extract_strided_slice %110 {offsets = [0, 1, 0], sizes = [2, 1, 256], strides = [1, 1, 1]} : vector<2x8x256xf32> to vector<2x1x256xf32>
    %114 = vector.shape_cast %113 : vector<2x1x256xf32> to vector<2x256xf32>
    %115 = vector.extract_strided_slice %110 {offsets = [0, 2, 0], sizes = [2, 1, 256], strides = [1, 1, 1]} : vector<2x8x256xf32> to vector<2x1x256xf32>
    %116 = vector.shape_cast %115 : vector<2x1x256xf32> to vector<2x256xf32>
    %117 = vector.extract_strided_slice %110 {offsets = [0, 3, 0], sizes = [2, 1, 256], strides = [1, 1, 1]} : vector<2x8x256xf32> to vector<2x1x256xf32>
    %118 = vector.shape_cast %117 : vector<2x1x256xf32> to vector<2x256xf32>
    %119 = vector.extract_strided_slice %110 {offsets = [0, 4, 0], sizes = [2, 1, 256], strides = [1, 1, 1]} : vector<2x8x256xf32> to vector<2x1x256xf32>
    %120 = vector.shape_cast %119 : vector<2x1x256xf32> to vector<2x256xf32>
    %121 = vector.extract_strided_slice %110 {offsets = [0, 5, 0], sizes = [2, 1, 256], strides = [1, 1, 1]} : vector<2x8x256xf32> to vector<2x1x256xf32>
    %122 = vector.shape_cast %121 : vector<2x1x256xf32> to vector<2x256xf32>
    %123 = vector.extract_strided_slice %110 {offsets = [0, 6, 0], sizes = [2, 1, 256], strides = [1, 1, 1]} : vector<2x8x256xf32> to vector<2x1x256xf32>
    %124 = vector.shape_cast %123 : vector<2x1x256xf32> to vector<2x256xf32>
    %125 = vector.extract_strided_slice %110 {offsets = [0, 7, 0], sizes = [2, 1, 256], strides = [1, 1, 1]} : vector<2x8x256xf32> to vector<2x1x256xf32>
    %126 = vector.shape_cast %125 : vector<2x1x256xf32> to vector<2x256xf32>
    %127 = tpu.concatenate %112, %114, %116, %118, %120, %122, %124, %126 in 1 : vector<2x256xf32>, vector<2x256xf32>, vector<2x256xf32>, vector<2x256xf32>, vector<2x256xf32>, vector<2x256xf32>, vector<2x256xf32>, vector<2x256xf32> -> vector<2x2048xf32>
    %128 = arith.truncf %127 : vector<2x2048xf32> to vector<2x2048xbf16>
    %c0_102 = arith.constant 0 : index
    %c0_103 = arith.constant 0 : index
    %129 = vector.load %arg5[%c0_102, %c0_103] : memref<2048x256xbf16, #tpu.memory_space<vmem>>, vector<2048x256xbf16>
    %cst_104 = arith.constant dense<0.000000e+00> : vector<2x256xf32>
    %130 = tpu.matmul %128, %129, %cst_104 {dimension_numbers = #tpu.dot_dimension_numbers<[1], [0], [0], [1], [0, 0, 1, 1], [], []>} : vector<2x2048xbf16>, vector<2048x256xbf16>, vector<2x256xf32> -> vector<2x256xf32>
    %c0_105 = arith.constant 0 : index
    %c0_106 = arith.constant 0 : index
    %131 = vector.load %arg6[%c0_105, %c0_106] : memref<1x256xf32, #tpu.memory_space<vmem>>, vector<1x256xf32>
    %132 = vector.broadcast %131 : vector<1x256xf32> to vector<2x256xf32>
    %133 = arith.addf %130, %132 : vector<2x256xf32>
    %cst_107 = arith.constant 0.000000e+00 : f32
    %134 = vector.broadcast %cst_107 : f32 to vector<2x256xf32>
    %135 = arith.maximumf %133, %134 : vector<2x256xf32>
    %136 = arith.truncf %135 : vector<2x256xf32> to vector<2x256xbf16>
    %c0_108 = arith.constant 0 : index
    %c0_109 = arith.constant 0 : index
    %137 = vector.load %arg7[%c0_108, %c0_109] : memref<256x10xbf16, #tpu.memory_space<vmem>>, vector<256x10xbf16>
    %cst_110 = arith.constant dense<0.000000e+00> : vector<2x10xf32>
    %138 = tpu.matmul %136, %137, %cst_110 {dimension_numbers = #tpu.dot_dimension_numbers<[1], [0], [0], [1], [0, 0, 1, 1], [], []>} : vector<2x256xbf16>, vector<256x10xbf16>, vector<2x10xf32> -> vector<2x10xf32>
    %c0_111 = arith.constant 0 : index
    %c0_112 = arith.constant 0 : index
    %139 = vector.load %arg8[%c0_111, %c0_112] : memref<1x10xf32, #tpu.memory_space<vmem>>, vector<1x10xf32>
    %140 = vector.broadcast %139 : vector<1x10xf32> to vector<2x10xf32>
    %141 = arith.addf %138, %140 : vector<2x10xf32>
    %c0_113 = arith.constant 0 : index
    %c0_114 = arith.constant 0 : index
    %142 = vector.load %arg9[%c0_113, %c0_114] : memref<2x10xf32, #tpu.memory_space<vmem>>, vector<2x10xf32>
    tpu.vector_store %arg9[%c0_113, %c0_114], %141 {strides = array<i32>} : memref<2x10xf32, #tpu.memory_space<vmem>>, vector<2x10xf32>,
    return
  }
}

</mosaic_0001>

<bundles_post_ra>
// kernel: simple3dcnn_forward.1
= control target key start
LH: loop header
LB: loop body
LE: loop exit
PB: predicated region body
PF: predicated region fallthrough
CT: control target
= control target key end

     0   :  { %14 = vsyncpa [#allocation5], 0  ;;  %s25336_s0 = inlined_call_operand.hbm [shape: f32[2,8,16,16], index: 0, kind: input, shape index: {}]   ;;  %s25337_s1 = inlined_call_operand.hbm [shape: bf16[1152,512], index: 1, kind: input, shape index: {}]   ;;  %s25338_s2 = inlined_call_operand.hbm [shape: f32[1,256], index: 2, kind: input, shape index: {}]   ;;  %s25339_s3 = inlined_call_operand.hbm [shape: bf16[3456,512], index: 3, kind: input, shape index: {}]   ;;  %s25340_s4 = inlined_call_operand.hbm [shape: f32[1,256], index: 4, kind: input, shape index: {}]   ;;  %s25341_s5 = inlined_call_operand.hbm [shape: bf16[2048,256], index: 5, kind: input, shape index: {}]   ;;  %s25342_s6 = inlined_call_operand.hbm [shape: f32[1,256], index: 6, kind: input, shape index: {}]   ;;  %s25343_s7 = inlined_call_operand.vmem [shape: bf16[256,10], index: 7, kind: input, shape index: {}]   ;;  %s25344_s8 = inlined_call_operand.hbm [shape: f32[1,10], index: 8, kind: input, shape index: {}]   ;;  %s25345_s9 = inlined_call_operand.hbm [shape: f32[2,10], index: 9, kind: output, shape index: {}]  }
   0x1   :  { %15 = vsyncpa [#allocation8], 0 }
   0x2   :  { %16 = vsyncpa [#allocation11], 0 }
   0x3   :  { %17 = vsyncpa [#allocation14], 0 }
   0x4   :  { %18 = vsyncpa [#allocation17], 0 }
   0x5   :  { %19 = vsyncpa [#allocation6], 0  ;;  %s22923_s30 = smov [#allocation7]   ;;  %s22713_s13 = scalar_lea.hbm %s25337_s1, 36864 }
   0x6   :  { %s37_s10 = sshll.u32 %s22923_s30, 4  ;;  %p22714_p0 = scmp.ne.s32.totalorder %s25337_s1, %s22713_s13  ;;  %s38_s10 = int_to_ptr.vmem [resolvable:$true] %s37_s10 }
   0x7   :  { %p22717_p1 = scmp.lt.u32.totalorder %s22713_s13, %s25337_s1 }
   0x9   :  { %p22719_p2 = pnand %p22717_p1, %p22714_p0 }
   0xb   :  { %22722 = shalt.err (!%p22719_p2)
}
   0xc   :  { %s22723_s18 = scalar_lea.vmem %s38_s10, 36864  ;;  %p22728_p4 = scmp.lt.s32.totalorder %s38_s10, %s38_s10 }
   0xd   :  { %p22724_p3 = scmp.ne.s32.totalorder %s38_s10, %s22723_s18  ;;  %p22729_p5 = scmp.lt.s32.totalorder %s22723_s18, %s22723_s18 }
   0xf   :  { %p22730_p6 = por %p22729_p5, %p22728_p4 }
  0x11   :  { %p22731_p7 = pnand %p22730_p6, %p22724_p3 }
  0x13   :  { %22734 = shalt.err (!%p22731_p7)
}
  0x14   :  { %s22924_s19 = smov 256   ;;  %s22925_s20 = smov 16  }
  0x15   :  { %43 = dma.hbm_to_vmem [thread:$0]  %s25337_s1, 36864, %s38_s10, [#allocation8], %s22924_s19, %s22924_s19, %s22925_s20  }
  0x16   :  { %s22926_s23 = smov [#allocation10]   ;;  %s22735_s27 = scalar_lea.hbm %s25339_s3, 110592 }
  0x17   :  { %s59_s24 = sshll.u32 %s22926_s23, 4  ;;  %p22736_p8 = scmp.ne.s32.totalorder %s25339_s3, %s22735_s27  ;;  %s60_s24 = int_to_ptr.vmem [resolvable:$true] %s59_s24 }
  0x18   :  { %p22739_p9 = scmp.lt.u32.totalorder %s22735_s27, %s25339_s3 }
  0x1a   :  { %p22741_p10 = pnand %p22739_p9, %p22736_p8 }
  0x1c   :  { %22744 = shalt.err (!%p22741_p10)
}
  0x1d   :  { %s22745_s12 = scalar_lea.vmem %s60_s24, 110592  ;;  %p22750_p12 = scmp.lt.s32.totalorder %s60_s24, %s60_s24 }
  0x1e   :  { %p22746_p11 = scmp.ne.s32.totalorder %s60_s24, %s22745_s12  ;;  %p22751_p13 = scmp.lt.s32.totalorder %s22745_s12, %s22745_s12 }
  0x20   :  { %p22752_p0 = por %p22751_p13, %p22750_p12 }
  0x22   :  { %p22753_p1 = pnand %p22752_p0, %p22746_p11 }
  0x24   :  { %22756 = shalt.err (!%p22753_p1)
}
  0x25   :  { %65 = dma.hbm_to_vmem [thread:$0]  %s25339_s3, 110592, %s60_s24, [#allocation11], %s22924_s19, %s22924_s19, %s22925_s20  }
  0x26   :  { %s22927_s13 = smov [#allocation13]   ;;  %s22928_s15 = smov [#allocation4]  }
  0x27   :  { %s81_s14 = sshll.u32 %s22927_s13, 4  ;;  %s25_s16 = sshll.u32 %s22928_s15, 4  ;;  %s82_s14 = int_to_ptr.vmem [resolvable:$true] %s81_s14  ;;  %s23014_s16 = int_to_ptr.vmem [resolvable:$true] %s25_s16 }
  0x28   :  { %s22757_s21 = scalar_lea.hbm %s25341_s5, 32768 }
  0x29   :  { %p22758_p2 = scmp.ne.s32.totalorder %s25341_s5, %s22757_s21  ;;  %p22761_p3 = scmp.lt.u32.totalorder %s22757_s21, %s25341_s5 }
  0x2b   :  { %p22763_p4 = pnand %p22761_p3, %p22758_p2 }
  0x2d   :  { %22766 = shalt.err (!%p22763_p4)
}
  0x2e   :  { %s22767_s3 = scalar_lea.vmem %s82_s14, 32768  ;;  %p22772_p6 = scmp.lt.s32.totalorder %s82_s14, %s82_s14 }
  0x2f   :  { %p22768_p5 = scmp.ne.s32.totalorder %s82_s14, %s22767_s3  ;;  %p22773_p7 = scmp.lt.s32.totalorder %s22767_s3, %s22767_s3 }
  0x31   :  { %p22774_p8 = por %p22773_p7, %p22772_p6 }
  0x33   :  { %p22775_p9 = pnand %p22774_p8, %p22768_p5 }
  0x35   :  { %22778 = shalt.err (!%p22775_p9)
}
  0x36   :  { %s22929_s19 = smov 128   ;;  %s22930_s20 = smov 8  }
  0x37   :  { %87 = dma.hbm_to_vmem [thread:$0]  %s25341_s5, 32768, %s82_s14, [#allocation14], %s22929_s19, %s22929_s19, %s22930_s20  }
  0x38   :  { %s22779_s30 = scalar_lea.hbm %s25336_s0, 4096 }
  0x39   :  { %p22780_p10 = scmp.ne.s32.totalorder %s25336_s0, %s22779_s30  ;;  %p22783_p11 = scmp.lt.u32.totalorder %s22779_s30, %s25336_s0 }
  0x3b   :  { %p22785_p12 = pnand %p22783_p11, %p22780_p10 }
  0x3d   :  { %22788 = shalt.err (!%p22785_p12)
}
  0x3e   :  { %s22789_s13 = scalar_lea.vmem %s23014_s16, 4096  ;;  %p22794_p0 = scmp.lt.s32.totalorder %s23014_s16, %s23014_s16 }
  0x3f   :  { %p22790_p13 = scmp.ne.s32.totalorder %s23014_s16, %s22789_s13  ;;  %p22795_p1 = scmp.lt.s32.totalorder %s22789_s13, %s22789_s13 }
  0x41   :  { %p22796_p2 = por %p22795_p1, %p22794_p0 }
  0x43   :  { %p22797_p3 = pnand %p22796_p2, %p22790_p13 }
  0x45   :  { %22800 = shalt.err (!%p22797_p3)
}
  0x46   :  { %31 = dma.hbm_to_vmem [thread:$0]  %s25336_s0, 4096, %s23014_s16, [#allocation5], %s22929_s19, %s22929_s19, %s22930_s20  }
  0x47   :  { %s22931_s15 = smov [#allocation9]   ;;  %s22932_s18 = smov [#allocation12]  }
  0x48   :  { %s50_s17 = sshll.u32 %s22931_s15, 4  ;;  %s72_s21 = sshll.u32 %s22932_s18, 4  ;;  %s51_s17 = int_to_ptr.vmem [resolvable:$true] %s50_s17  ;;  %s73_s21 = int_to_ptr.vmem [resolvable:$true] %s72_s21 }
  0x49   :  { %s22801_s25 = scalar_lea.hbm %s25338_s2, 32 }
  0x4a   :  { %p22802_p4 = scmp.ne.s32.totalorder %s25338_s2, %s22801_s25  ;;  %p22805_p5 = scmp.lt.u32.totalorder %s22801_s25, %s25338_s2 }
  0x4c   :  { %p22807_p6 = pnand %p22805_p5, %p22802_p4 }
  0x4e   :  { %22810 = shalt.err (!%p22807_p6)
}
  0x4f   :  { %s22811_s0 = scalar_lea.vmem %s51_s17, 32  ;;  %p22816_p8 = scmp.lt.s32.totalorder %s51_s17, %s51_s17 }
  0x50   :  { %p22812_p7 = scmp.ne.s32.totalorder %s51_s17, %s22811_s0  ;;  %p22817_p9 = scmp.lt.s32.totalorder %s22811_s0, %s22811_s0 }
  0x52   :  { %p22818_p10 = por %p22817_p9, %p22816_p8 }
  0x54   :  { %p22819_p11 = pnand %p22818_p10, %p22812_p7 }
  0x56   :  { %22822 = shalt.err (!%p22819_p11)
}
  0x57   :  { %53 = dma.hbm_to_vmem [thread:$0]  %s25338_s2, 32, %s51_s17, [#allocation8]  }
  0x58   :  { %s22823_s29 = scalar_lea.hbm %s25340_s4, 32 }
  0x59   :  { %p22824_p12 = scmp.ne.s32.totalorder %s25340_s4, %s22823_s29  ;;  %p22827_p13 = scmp.lt.u32.totalorder %s22823_s29, %s25340_s4 }
  0x5b   :  { %p22829_p0 = pnand %p22827_p13, %p22824_p12 }
  0x5d   :  { %22832 = shalt.err (!%p22829_p0)
}
  0x5e   :  { %s22833_s10 = scalar_lea.vmem %s73_s21, 32  ;;  %p22838_p2 = scmp.lt.s32.totalorder %s73_s21, %s73_s21 }
  0x5f   :  { %p22834_p1 = scmp.ne.s32.totalorder %s73_s21, %s22833_s10  ;;  %p22839_p3 = scmp.lt.s32.totalorder %s22833_s10, %s22833_s10 }
  0x61   :  { %p22840_p4 = por %p22839_p3, %p22838_p2 }
  0x63   :  { %p22841_p5 = pnand %p22840_p4, %p22834_p1 }
  0x65   :  { %22844 = shalt.err (!%p22841_p5)
}
  0x66   :  { %75 = dma.hbm_to_vmem [thread:$0]  %s25340_s4, 32, %s73_s21, [#allocation11]  }
  0x67   :  { %s22933_s5 = smov [#allocation15]   ;;  %s22934_s15 = smov [#allocation16]  }
  0x68   :  { %s94_s14 = sshll.u32 %s22933_s5, 4  ;;  %s106_s17 = sshll.u32 %s22934_s15, 4  ;;  %s95_s14 = int_to_ptr.vmem [resolvable:$true] %s94_s14  ;;  %s107_s17 = int_to_ptr.vmem [resolvable:$true] %s106_s17 }
  0x69   :  { %s22845_s23 = scalar_lea.hbm %s25342_s6, 32 }
  0x6a   :  { %p22846_p6 = scmp.ne.s32.totalorder %s25342_s6, %s22845_s23  ;;  %p22849_p7 = scmp.lt.u32.totalorder %s22845_s23, %s25342_s6 }
  0x6c   :  { %p22851_p8 = pnand %p22849_p7, %p22846_p6 }
  0x6e   :  { %22854 = shalt.err (!%p22851_p8)
}
  0x6f   :  { %s22855_s4 = scalar_lea.vmem %s95_s14, 32  ;;  %p22860_p10 = scmp.lt.s32.totalorder %s95_s14, %s95_s14 }
  0x70   :  { %p22856_p9 = scmp.ne.s32.totalorder %s95_s14, %s22855_s4  ;;  %p22861_p11 = scmp.lt.s32.totalorder %s22855_s4, %s22855_s4 }
  0x72   :  { %p22862_p12 = por %p22861_p11, %p22860_p10 }
  0x74   :  { %p22863_p13 = pnand %p22862_p12, %p22856_p9 }
  0x76   :  { %22866 = shalt.err (!%p22863_p13)
}
  0x77   :  { %97 = dma.hbm_to_vmem [thread:$0]  %s25342_s6, 32, %s95_s14, [#allocation14]  }
  0x78   :  { %s22867_s19 = scalar_lea.hbm %s25344_s8, 16 }
  0x79   :  { %p22868_p0 = scmp.ne.s32.totalorder %s25344_s8, %s22867_s19  ;;  %p22871_p1 = scmp.lt.u32.totalorder %s22867_s19, %s25344_s8 }
  0x7b   :  { %p22873_p2 = pnand %p22871_p1, %p22868_p0 }
  0x7d   :  { %22876 = shalt.err (!%p22873_p2)
}
  0x7e   :  { %s22877_s11 = scalar_lea.vmem %s107_s17, 16  ;;  %s22881_s12 = scalar_lea.vmem %s107_s17, 32 }
  0x7f   :  { %p22878_p3 = scmp.ne.s32.totalorder %s107_s17, %s22877_s11  ;;  %p22882_p4 = scmp.lt.s32.totalorder %s107_s17, %s107_s17 }
  0x80   :  { %p22883_p5 = scmp.lt.s32.totalorder %s22881_s12, %s22877_s11 }
  0x82   :  { %p22884_p6 = por %p22883_p5, %p22882_p4 }
  0x84   :  { %p22885_p7 = pnand %p22884_p6, %p22878_p3 }
  0x86   :  { %22888 = shalt.err (!%p22885_p7)
}
  0x87   :  { %109 = dma.hbm_to_vmem [thread:$0]  %s25344_s8, 16, %s107_s17, [#allocation17]  }
  0x88   :  { %22911 = dma.done.wait [#allocation5], 4096  }
  0x89   :  { %22912 = vsyncadd [#allocation5], 4294963200 }
  0x8a   :  { %22913 = dma.done.wait [#allocation8], 36896  }
  0x8b   :  { %22914 = vsyncadd [#allocation8], 4294930400 }
  0x8c   :  { %22915 = dma.done.wait [#allocation11], 110624  }
  0x8d   :  { %22916 = vsyncadd [#allocation11], 4294856672 }
  0x8e   :  { %22917 = dma.done.wait [#allocation14], 32800  }
  0x8f   :  { %22918 = vsyncadd [#allocation14], 4294934496 }
  0x90   :  { %22919 = dma.done.wait [#allocation17], 16  }
  0x91   :  { %22920 = vsyncadd [#allocation17], 4294967280  ;;  %v22935_v0 = vmov 0.0   ;;  %v20580_v1 = vld [vmem:[#allocation7 + $0x4] ss:$16 sps:$4 sm:$0xff]   ;;  %vm228_vm0 = vcmask 130048  }
  0x92   :  { %135 = vst [vmem:[#allocation2] sm:$0xff] %v22935_v0  ;;  %136 = vst [vmem:[#allocation2 + $0x8] sm:$0xff] %v22935_v0  ;;  %v20582_v2 = vld [vmem:[#allocation7 + $0x404] ss:$16 sps:$4 sm:$0xff]   ;;  %2422 = vmatprep.subr.bf16.mxu1 %v20580_v1  ;;  %v20584_v3 = vld [vmem:[#allocation7] ss:$16 sps:$4 sm:$0xff]  }
  0x93   :  { %137 = vst [vmem:[#allocation2 + $0x10] sm:$0x3] %v22935_v0  ;;  %138 = vst [vmem:[#allocation2 + $0x18] sm:$0xff] %v22935_v0  ;;  %v20585_v4 = vld [vmem:[#allocation7 + $0x400] ss:$16 sps:$4 sm:$0xff]   ;;  %2808 = vmatprep.subr.bf16.mxu0 %v20582_v2  ;;  %2423 = vmatpush1.bf16.msra.mxu1 %v20584_v3  ;;  %v196_v52 = vld [vmem:[#allocation4 + $0x8] sm:$0xff] }
  0x94   :  { %139 = vst [vmem:[#allocation2 + $0x20] sm:$0xff] %v22935_v0  ;;  %140 = vst [vmem:[#allocation2 + $0x28] sm:$0x3] %v22935_v0  ;;  %v20586_v5 = vld [vmem:[#allocation7 + $0x24] ss:$16 sps:$4 sm:$0xff]   ;;  %2809 = vmatpush1.bf16.msra.mxu0 %v20585_v4  ;;  %v198_v57 = vld [vmem:[#allocation4 + $0x18] sm:$0xff] }
  0x95   :  { %141 = vst [vmem:[#allocation2 + $0x30] sm:$0xff] %v22935_v0  ;;  %142 = vst [vmem:[#allocation2 + $0x38] sm:$0xff] %v22935_v0  ;;  %v20588_v6 = vld [vmem:[#allocation7 + $0x424] ss:$16 sps:$4 sm:$0xff]   ;;  %v20590_v7 = vld [vmem:[#allocation7 + $0x20] ss:$16 sps:$4 sm:$0xff]   ;;  %2424 = vmatprep.subr.bf16.mxu1 %v20586_v5 }
  0x96   :  { %143 = vst [vmem:[#allocation2 + $0x40] sm:$0x3] %v22935_v0  ;;  %144 = vst [vmem:[#allocation2 + $0x48] sm:$0xff] %v22935_v0  ;;  %v20591_v8 = vld [vmem:[#allocation7 + $0x420] ss:$16 sps:$4 sm:$0xff]   ;;  %2810 = vmatprep.subr.bf16.mxu0 %v20588_v6  ;;  %v200_v61 = vld [vmem:[#allocation4 + $0x28] sm:$0xff] }
  0x97   :  { %145 = vst [vmem:[#allocation2 + $0x50] sm:$0xff] %v22935_v0  ;;  %146 = vst [vmem:[#allocation2 + $0x58] sm:$0x3] %v22935_v0  ;;  %v20592_v9 = vld [vmem:[#allocation7 + $0x44] ss:$16 sps:$4 sm:$0xff]   ;;  %2425 = vmatpush1.bf16.msra.mxu1 %v20590_v7  ;;  %v202_v1 = vld [vmem:[#allocation4 + $0x38] sm:$0xff] }
  0x98   :  { %147 = vst [vmem:[#allocation2 + $0x60] sm:$0xff] %v22935_v0  ;;  %148 = vst [vmem:[#allocation2 + $0x68] sm:$0xff] %v22935_v0  ;;  %v20594_v10 = vld [vmem:[#allocation7 + $0x444] ss:$16 sps:$4 sm:$0xff]   ;;  %v20596_v11 = vld [vmem:[#allocation7 + $0x40] ss:$16 sps:$4 sm:$0xff]   ;;  %2811 = vmatpush1.bf16.msra.mxu0 %v20591_v8  ;;  %2426 = vmatprep.subr.bf16.mxu1 %v20592_v9 }
  0x99   :  { %149 = vst [vmem:[#allocation2 + $0x70] sm:$0x3] %v22935_v0  ;;  %150 = vst [vmem:[#allocation2 + $0x78] sm:$0xff] %v22935_v0  ;;  %v20597_v12 = vld [vmem:[#allocation7 + $0x440] ss:$16 sps:$4 sm:$0xff]   ;;  %2812 = vmatprep.subr.bf16.mxu0 %v20594_v10  ;;  %vm6576_vm1 = vcmask 1042434  }
  0x9a   :  { %151 = vst [vmem:[#allocation2 + $0x80] sm:$0xff] %v22935_v0  ;;  %152 = vst [vmem:[#allocation2 + $0x88] sm:$0x3] %v22935_v0  ;;  %v20598_v13 = vld [vmem:[#allocation7 + $0x64] ss:$16 sps:$4 sm:$0xff]   ;;  %v310_v50 = vld [vmem:[#allocation2 + $0x9] sm:$0xff] }
  0x9b   :  { %153 = vst [vmem:[#allocation2 + $0x90] sm:$0xff] %v22935_v0  ;;  %154 = vst [vmem:[#allocation2 + $0x98] sm:$0xff] %v22935_v0  ;;  %v20600_v14 = vld [vmem:[#allocation7 + $0x464] ss:$16 sps:$4 sm:$0xff]   ;;  %v20602_v15 = vld [vmem:[#allocation7 + $0x60] ss:$16 sps:$4 sm:$0xff]   ;;  %2427 = vmatpush1.bf16.msra.mxu1 %v20596_v11 }
  0x9c   :  { %155 = vst [vmem:[#allocation2 + $0xa0] sm:$0x3] %v22935_v0  ;;  %156 = vst [vmem:[#allocation2 + $0xa8] sm:$0xff] %v22935_v0  ;;  %2813 = vmatpush1.bf16.msra.mxu0 %v20597_v12  ;;  %v20603_v16 = vld [vmem:[#allocation7 + $0x460] ss:$16 sps:$4 sm:$0xff]   ;;  %2428 = vmatprep.subr.bf16.mxu1 %v20598_v13  ;;  %vm6578_vm2 = vcmask 1043459  }
  0x9d   :  { %157 = vst [vmem:[#allocation2 + $0xb0] sm:$0xff] %v22935_v0  ;;  %158 = vst [vmem:[#allocation2 + $0xb8] sm:$0x3] %v22935_v0  ;;  %v20604_v17 = vld [vmem:[#allocation7 + $0x84] ss:$16 sps:$4 sm:$0xff]   ;;  %2814 = vmatprep.subr.bf16.mxu0 %v20600_v14  ;;  %vm6580_vm3 = vcmask 1044484  }
  0x9e   :  { %159 = vst [vmem:[#allocation2 + $0xc0] sm:$0xff] %v22935_v0  ;;  %160 = vst [vmem:[#allocation2 + $0xc8] sm:$0xff] %v22935_v0  ;;  %v20606_v18 = vld [vmem:[#allocation7 + $0x484] ss:$16 sps:$4 sm:$0xff]   ;;  %v20608_v19 = vld [vmem:[#allocation7 + $0x80] ss:$16 sps:$4 sm:$0xff]  }
  0x9f   :  { %161 = vst [vmem:[#allocation2 + $0xd0] sm:$0x3] %v22935_v0  ;;  %162 = vst [vmem:[#allocation2 + $0xd8] sm:$0xff] %v22935_v0  ;;  %v20609_v20 = vld [vmem:[#allocation7 + $0x480] ss:$16 sps:$4 sm:$0xff]   ;;  %2429 = vmatpush1.bf16.msra.mxu1 %v20602_v15  ;;  %vm6582_vm4 = vcmask 1045509  }
  0xa0   :  { %163 = vst [vmem:[#allocation2 + $0xe0] sm:$0xff] %v22935_v0  ;;  %164 = vst [vmem:[#allocation2 + $0xe8] sm:$0x3] %v22935_v0  ;;  %2815 = vmatpush1.bf16.msra.mxu0 %v20603_v16  ;;  %v20610_v21 = vld [vmem:[#allocation7 + $0xa4] ss:$16 sps:$4 sm:$0xff]   ;;  %2430 = vmatprep.subr.bf16.mxu1 %v20604_v17  ;;  %vm6584_vm5 = vcmask 1046534  }
  0xa1   :  { %165 = vst [vmem:[#allocation2 + $0xf0] sm:$0xff] %v22935_v0  ;;  %166 = vst [vmem:[#allocation2 + $0xf8] sm:$0xff] %v22935_v0  ;;  %2816 = vmatprep.subr.bf16.mxu0 %v20606_v18  ;;  %v20612_v22 = vld [vmem:[#allocation7 + $0x4a4] ss:$16 sps:$4 sm:$0xff]   ;;  %v20614_v23 = vld [vmem:[#allocation7 + $0xa0] ss:$16 sps:$4 sm:$0xff]  }
  0xa2   :  { %167 = vst [vmem:[#allocation2 + $0x100] sm:$0x3] %v22935_v0  ;;  %168 = vst [vmem:[#allocation2 + $0x108] sm:$0xff] %v22935_v0  ;;  %v20615_v24 = vld [vmem:[#allocation7 + $0x4a0] ss:$16 sps:$4 sm:$0xff]   ;;  %v204_v18 = vld [vmem:[#allocation4 + $0x48] sm:$0xff] }
  0xa3   :  { %169 = vst [vmem:[#allocation2 + $0x110] sm:$0xff] %v22935_v0  ;;  %170 = vst [vmem:[#allocation2 + $0x118] sm:$0x3] %v22935_v0  ;;  %2431 = vmatpush1.bf16.msra.mxu1 %v20608_v19  ;;  %v20616_v25 = vld [vmem:[#allocation7 + $0xc4] ss:$16 sps:$4 sm:$0xff]   ;;  %vm6586_vm6 = vcmask 1047559  }
  0xa4   :  { %171 = vst [vmem:[#allocation2 + $0x120] sm:$0xff] %v22935_v0  ;;  %172 = vst [vmem:[#allocation2 + $0x128] sm:$0xff] %v22935_v0  ;;  %2817 = vmatpush1.bf16.msra.mxu0 %v20609_v20  ;;  %2432 = vmatprep.subr.bf16.mxu1 %v20610_v21  ;;  %v20618_v26 = vld [vmem:[#allocation7 + $0x4c4] ss:$16 sps:$4 sm:$0xff]   ;;  %v20620_v27 = vld [vmem:[#allocation7 + $0xc0] ss:$16 sps:$4 sm:$0xff]  }
  0xa5   :  { %173 = vst [vmem:[#allocation2 + $0x130] sm:$0x3] %v22935_v0  ;;  %174 = vst [vmem:[#allocation2 + $0x138] sm:$0xff] %v22935_v0  ;;  %2818 = vmatprep.subr.bf16.mxu0 %v20612_v22  ;;  %v20621_v28 = vld [vmem:[#allocation7 + $0x4c0] ss:$16 sps:$4 sm:$0xff]   ;;  %v206_v22 = vld [vmem:[#allocation4 + $0x58] sm:$0xff] }
  0xa6   :  { %175 = vst [vmem:[#allocation2 + $0x140] sm:$0xff] %v22935_v0  ;;  %176 = vst [vmem:[#allocation2 + $0x148] sm:$0x3] %v22935_v0  ;;  %v20622_v29 = vld [vmem:[#allocation7 + $0xe4] ss:$16 sps:$4 sm:$0xff]   ;;  %vm6875_vm7 = vcmask 1046528  }
  0xa7   :  { %177 = vst [vmem:[#allocation2 + $0x150] sm:$0xff] %v22935_v0  ;;  %178 = vst [vmem:[#allocation2 + $0x158] sm:$0xff] %v22935_v0  ;;  %2433 = vmatpush1.bf16.msra.mxu1 %v20614_v23  ;;  %v20624_v30 = vld [vmem:[#allocation7 + $0x4e4] ss:$16 sps:$4 sm:$0xff]   ;;  %v20626_v31 = vld [vmem:[#allocation7 + $0xe0] ss:$16 sps:$4 sm:$0xff]  }
  0xa8   :  { %179 = vst [vmem:[#allocation2 + $0x160] sm:$0x3] %v22935_v0  ;;  %180 = vst [vmem:[#allocation2 + $0x168] sm:$0xff] %v22935_v0  ;;  %2819 = vmatpush1.bf16.msra.mxu0 %v20615_v24  ;;  %2434 = vmatprep.subr.bf16.mxu1 %v20616_v25  ;;  %v20627_v32 = vld [vmem:[#allocation7 + $0x4e0] ss:$16 sps:$4 sm:$0xff]   ;;  %vm7080_vm8 = vcmask 1045504  }
  0xa9   :  { %181 = vst [vmem:[#allocation2 + $0x170] sm:$0xff] %v22935_v0  ;;  %182 = vst [vmem:[#allocation2 + $0x178] sm:$0x3] %v22935_v0  ;;  %2820 = vmatprep.subr.bf16.mxu0 %v20618_v26  ;;  %v20628_v33 = vld [vmem:[#allocation7 + $0x104] ss:$16 sps:$4 sm:$0xff]   ;;  %v208_v26 = vld [vmem:[#allocation4 + $0x68] sm:$0xff] }
  0xaa   :  { %183 = vst [vmem:[#allocation2 + $0x180] sm:$0xff] %v22935_v0  ;;  %184 = vst [vmem:[#allocation2 + $0x188] sm:$0xff] %v22935_v0  ;;  %v20630_v34 = vld [vmem:[#allocation7 + $0x504] ss:$16 sps:$4 sm:$0xff]   ;;  %v20632_v35 = vld [vmem:[#allocation7 + $0x100] ss:$16 sps:$4 sm:$0xff]  }
  0xab   :  { %185 = vst [vmem:[#allocation2 + $0x190] sm:$0x3] %v22935_v0  ;;  %186 = vst [vmem:[#allocation2 + $0x198] sm:$0xff] %v22935_v0  ;;  %2435 = vmatpush1.bf16.msra.mxu1 %v20620_v27  ;;  %v20633_v36 = vld [vmem:[#allocation7 + $0x500] ss:$16 sps:$4 sm:$0xff]   ;;  %vm15748_vm9 = vcmask 1041409  }
  0xac   :  { %187 = vst [vmem:[#allocation2 + $0x1a0] sm:$0xff] %v22935_v0  ;;  %188 = vst [vmem:[#allocation2 + $0x1a8] sm:$0x3] %v22935_v0  ;;  %2821 = vmatpush1.bf16.msra.mxu0 %v20621_v28  ;;  %2436 = vmatprep.subr.bf16.mxu1 %v20622_v29  ;;  %v20634_v37 = vld [vmem:[#allocation7 + $0x124] ss:$16 sps:$4 sm:$0xff]   ;;  %vm17978_vm10 = vcmask 74752  }
  0xad   :  { %189 = vst [vmem:[#allocation2 + $0x1b0] sm:$0xff] %v22935_v0  ;;  %190 = vst [vmem:[#allocation2 + $0x1b8] sm:$0xff] %v22935_v0  ;;  %2822 = vmatprep.subr.bf16.mxu0 %v20624_v30  ;;  %v20636_v38 = vld [vmem:[#allocation7 + $0x524] ss:$16 sps:$4 sm:$0xff]   ;;  %v20638_v39 = vld [vmem:[#allocation7 + $0x120] ss:$16 sps:$4 sm:$0xff]  }
  0xae   :  { %191 = vst [vmem:[#allocation2 + $0x1c0] sm:$0x3] %v22935_v0  ;;  %192 = vst [vmem:[#allocation2 + $0x1c8] sm:$0xff] %v22935_v0  ;;  %v20639_v40 = vld [vmem:[#allocation7 + $0x520] ss:$16 sps:$4 sm:$0xff]  }
  0xaf   :  { %193 = vst [vmem:[#allocation2 + $0x1d0] sm:$0xff] %v22935_v0  ;;  %194 = vst [vmem:[#allocation2 + $0x1d8] sm:$0x3] %v22935_v0  ;;  %2437 = vmatpush1.bf16.msra.mxu1 %v20626_v31  ;;  %v20640_v41 = vld [vmem:[#allocation7 + $0x144] ss:$16 sps:$4 sm:$0xff]   ;;  %v210_v31 = vld [vmem:[#allocation4 + $0x78] sm:$0xff] }
  0xb0   :  { %5928 = vst [vmem:[#allocation3] sm:$0xff] %v22935_v0  ;;  %5929 = vst [vmem:[#allocation3 + $0x8] sm:$0xff] %v22935_v0  ;;  %2823 = vmatpush1.bf16.msra.mxu0 %v20627_v32  ;;  %2438 = vmatprep.subr.bf16.mxu1 %v20628_v33  ;;  %v20642_v42 = vld [vmem:[#allocation7 + $0x544] ss:$16 sps:$4 sm:$0xff]   ;;  %v20644_v43 = vld [vmem:[#allocation7 + $0x140] ss:$16 sps:$4 sm:$0xff]  }
  0xb1   :  { %5930 = vst [vmem:[#allocation3 + $0x10] sm:$0xff] %v22935_v0  ;;  %5931 = vst [vmem:[#allocation3 + $0x18] sm:$0x3] %v22935_v0  ;;  %2824 = vmatprep.subr.bf16.mxu0 %v20630_v34  ;;  %v20645_v44 = vld [vmem:[#allocation7 + $0x540] ss:$16 sps:$4 sm:$0xff]   ;;  %v25346_v32 = vmov 0.0|0.0  }
  0xb2   :  { %5932 = vst [vmem:[#allocation3 + $0x20] sm:$0x3] %v22935_v0  ;;  %5933 = vst [vmem:[#allocation3 + $0x28] sm:$0x3] %v22935_v0  ;;  %v20646_v45 = vld [vmem:[#allocation7 + $0x164] ss:$16 sps:$4 sm:$0xff]  }
  0xb3   :  { %5934 = vst [vmem:[#allocation3 + $0x30] sm:$0xff] %v22935_v0  ;;  %5935 = vst [vmem:[#allocation3 + $0x38] sm:$0xff] %v22935_v0  ;;  %2439 = vmatpush1.bf16.msra.mxu1 %v20632_v35  ;;  %v20648_v46 = vld [vmem:[#allocation7 + $0x564] ss:$16 sps:$4 sm:$0xff]   ;;  %v20650_v47 = vld [vmem:[#allocation7 + $0x160] ss:$16 sps:$4 sm:$0xff]  }
  0xb4   :  { %5936 = vst [vmem:[#allocation3 + $0x40] sm:$0xff] %v22935_v0  ;;  %5937 = vst [vmem:[#allocation3 + $0x48] sm:$0x3] %v22935_v0  ;;  %2825 = vmatpush1.bf16.msra.mxu0 %v20633_v36  ;;  %2440 = vmatprep.subr.bf16.mxu1 %v20634_v37  ;;  %v20651_v48 = vld [vmem:[#allocation7 + $0x560] ss:$16 sps:$4 sm:$0xff]  }
  0xb5   :  { %5938 = vst [vmem:[#allocation3 + $0x50] sm:$0x3] %v22935_v0  ;;  %5939 = vst [vmem:[#allocation3 + $0x58] sm:$0x3] %v22935_v0  ;;  %2826 = vmatprep.subr.bf16.mxu0 %v20636_v38  ;;  %v309_v49 = vld [vmem:[#allocation2 + $0x1] sm:$0xff]  ;;  %v197_v56 = vld [vmem:[#allocation4 + $0x10] sm:$0xff] }
  0xb6   :  { %5940 = vst [vmem:[#allocation3 + $0x60] sm:$0xff] %v22935_v0  ;;  %5941 = vst [vmem:[#allocation3 + $0x68] sm:$0xff] %v22935_v0  ;;  %v195_v51 = vld [vmem:[#allocation4] sm:$0xff]  ;;  %v23225_v54 = vpack.c.bf16 %v310_v50, %v309_v49  ;;  %v205_v21 = vld [vmem:[#allocation4 + $0x50] sm:$0xff] }
  0xb7   :  { %5942 = vst [vmem:[#allocation3 + $0x70] sm:$0xff] %v22935_v0  ;;  %5943 = vst [vmem:[#allocation3 + $0x78] sm:$0x3] %v22935_v0  ;;  %2441 = vmatpush1.bf16.msra.mxu1 %v20638_v39  ;;  %v20652_v53 = vld [vmem:[#allocation7 + $0x184] ss:$16 sps:$4 sm:$0xff]  }
  0xb8   :  { %5944 = vst [vmem:[#allocation3 + $0x80] sm:$0x3] %v22935_v0  ;;  %5945 = vst [vmem:[#allocation3 + $0x88] sm:$0x3] %v22935_v0  ;;  %2827 = vmatpush1.bf16.msra.mxu0 %v20639_v40  ;;  %2442 = vmatprep.subr.bf16.mxu1 %v20640_v41  ;;  %v20654_v55 = vld [vmem:[#allocation7 + $0x584] ss:$16 sps:$4 sm:$0xff]  }
  0xb9   :  { %5946 = vst [vmem:[#allocation3 + $0x90] sm:$0xff] %v22935_v0  ;;  %5947 = vst [vmem:[#allocation3 + $0x98] sm:$0xff] %v22935_v0  ;;  %2828 = vmatprep.subr.bf16.mxu0 %v20642_v42  ;;  %v20656_v58 = vld [vmem:[#allocation7 + $0x180] ss:$16 sps:$4 sm:$0xff]   ;;  %2454 = vmatprep.mubr.bf16.mxu1 %v23225_v54  ;;  %v20658_v62 = vld [vmem:[#allocation7 + $0x1a4] ss:$16 sps:$4 sm:$0xff]  }
  0xba   :  { %5948 = vst [vmem:[#allocation3 + $0xa0] sm:$0xff] %v22935_v0  ;;  %5949 = vst [vmem:[#allocation3 + $0xa8] sm:$0x3] %v22935_v0  ;;  %v20657_v59 = vld [vmem:[#allocation7 + $0x580] ss:$16 sps:$4 sm:$0xff]  }
  0xbb   :  { %5950 = vst [vmem:[#allocation3 + $0xb0] sm:$0x3] %v22935_v0  ;;  %5951 = vst [vmem:[#allocation3 + $0xb8] sm:$0x3] %v22935_v0  ;;  %2443 = vmatpush1.bf16.msra.mxu1 %v20644_v43  ;;  %v199_v60 = vld [vmem:[#allocation4 + $0x20] sm:$0xff]  ;;  %v209_v30 = vld [vmem:[#allocation4 + $0x70] sm:$0xff] }
  0xbc   :  { %5952 = vst [vmem:[#allocation3 + $0xc0] sm:$0xff] %v22935_v0  ;;  %5953 = vst [vmem:[#allocation3 + $0xc8] sm:$0xff] %v22935_v0  ;;  %2829 = vmatpush1.bf16.msra.mxu0 %v20645_v44  ;;  %2444 = vmatprep.subr.bf16.mxu1 %v20646_v45  ;;  %v20660_v63 = vld [vmem:[#allocation7 + $0x5a4] ss:$16 sps:$4 sm:$0xff]   ;;  %v20662_v4 = vld [vmem:[#allocation7 + $0x1a0] ss:$16 sps:$4 sm:$0xff]  }
  0xbd   :  { %5954 = vst [vmem:[#allocation3 + $0xd0] sm:$0xff] %v22935_v0  ;;  %5955 = vst [vmem:[#allocation3 + $0xd8] sm:$0x3] %v22935_v0  ;;  %2830 = vmatprep.subr.bf16.mxu0 %v20648_v46  ;;  %v20663_v5 = vld [vmem:[#allocation7 + $0x5a0] ss:$16 sps:$4 sm:$0xff]  }
  0xbe   :  { %5956 = vst [vmem:[#allocation3 + $0xe0] sm:$0x3] %v22935_v0  ;;  %5957 = vst [vmem:[#allocation3 + $0xe8] sm:$0x3] %v22935_v0  ;;  %v20664_v7 = vld [vmem:[#allocation7 + $0x1c4] ss:$16 sps:$4 sm:$0xff]  }
  0xbf   :  { %5958 = vst [vmem:[#allocation3 + $0xf0] sm:$0xff] %v22935_v0  ;;  %5959 = vst [vmem:[#allocation3 + $0xf8] sm:$0xff] %v22935_v0  ;;  %2445 = vmatpush1.bf16.msra.mxu1 %v20650_v47  ;;  %v20666_v8 = vld [vmem:[#allocation7 + $0x5c4] ss:$16 sps:$4 sm:$0xff]   ;;  %v20668_v9 = vld [vmem:[#allocation7 + $0x1c0] ss:$16 sps:$4 sm:$0xff]  }
  0xc0   :  { %5960 = vst [vmem:[#allocation3 + $0x100] sm:$0xff] %v22935_v0  ;;  %5961 = vst [vmem:[#allocation3 + $0x108] sm:$0x3] %v22935_v0  ;;  %2831 = vmatpush1.bf16.msra.mxu0 %v20651_v48  ;;  %2446 = vmatprep.subr.bf16.mxu1 %v20652_v53  ;;  %v20669_v10 = vld [vmem:[#allocation7 + $0x5c0] ss:$16 sps:$4 sm:$0xff]   ;;  %v212_v53 = vld [vmem:[#allocation4 + $0x88] sm:$0xff] }
  0xc1   :  { %5962 = vst [vmem:[#allocation3 + $0x110] sm:$0x3] %v22935_v0  ;;  %5963 = vst [vmem:[#allocation3 + $0x118] sm:$0x3] %v22935_v0  ;;  %2832 = vmatprep.subr.bf16.mxu0 %v20654_v55  ;;  %v20670_v11 = vld [vmem:[#allocation7 + $0x1e4] ss:$16 sps:$4 sm:$0xff]  }
  0xc2   :  { %5964 = vst [vmem:[#allocation3 + $0x120] sm:$0xff] %v22935_v0  ;;  %5965 = vst [vmem:[#allocation3 + $0x128] sm:$0xff] %v22935_v0  ;;  %v20672_v12 = vld [vmem:[#allocation7 + $0x5e4] ss:$16 sps:$4 sm:$0xff]   ;;  %v20674_v13 = vld [vmem:[#allocation7 + $0x1e0] ss:$16 sps:$4 sm:$0xff]  }
  0xc3   :  { %5966 = vst [vmem:[#allocation3 + $0x130] sm:$0xff] %v22935_v0  ;;  %5967 = vst [vmem:[#allocation3 + $0x138] sm:$0x3] %v22935_v0  ;;  %2447 = vmatpush1.bf16.msra.mxu1 %v20656_v58  ;;  %v20675_v14 = vld [vmem:[#allocation7 + $0x5e0] ss:$16 sps:$4 sm:$0xff]  }
  0xc4   :  { %5968 = vst [vmem:[#allocation3 + $0x140] sm:$0x3] %v22935_v0  ;;  %5969 = vst [vmem:[#allocation3 + $0x148] sm:$0x3] %v22935_v0  ;;  %2833 = vmatpush1.bf16.msra.mxu0 %v20657_v59  ;;  %2448 = vmatprep.subr.bf16.mxu1 %v20658_v62  ;;  %v203_v15 = vld [vmem:[#allocation4 + $0x40] sm:$0xff] }
  0xc5   :  { %5970 = vst [vmem:[#allocation3 + $0x150] sm:$0xff] %v22935_v0  ;;  %5971 = vst [vmem:[#allocation3 + $0x158] sm:$0xff] %v22935_v0  ;;  %2834 = vmatprep.subr.bf16.mxu0 %v20660_v63  ;;  %v20678_v16 = vld [vmem:[#allocation7 + $0x204] ss:$16 sps:$4 sm:$0xff]   ;;  %v20676_v27 = vld [vmem:[#allocation7 + $0x200] ss:$16 sps:$4 sm:$0xff]  }
  0xc6   :  { %5972 = vst [vmem:[#allocation3 + $0x160] sm:$0xff] %v22935_v0  ;;  %5973 = vst [vmem:[#allocation3 + $0x168] sm:$0x3] %v22935_v0  ;;  %v207_v25 = vld [vmem:[#allocation4 + $0x60] sm:$0xff]  ;;  %v213_v63 = vld [vmem:[#allocation4 + $0x90] sm:$0xff] }
  0xc7   :  { %5974 = vst [vmem:[#allocation3 + $0x170] sm:$0x3] %v22935_v0  ;;  %5975 = vst [vmem:[#allocation3 + $0x178] sm:$0x3] %v22935_v0  ;;  %2449 = vmatpush1.bf16.msra.mxu1 %v20662_v4  ;;  %v20681_v29 = vld [vmem:[#allocation7 + $0x224] ss:$16 sps:$4 sm:$0xff]  }
  0xc8   :  { %5976 = vst [vmem:[#allocation3 + $0x180] sm:$0xff] %v22935_v0  ;;  %5977 = vst [vmem:[#allocation3 + $0x188] sm:$0xff] %v22935_v0  ;;  %2835 = vmatpush1.bf16.msra.mxu0 %v20663_v5  ;;  %2450 = vmatprep.subr.bf16.mxu1 %v20664_v7  ;;  %v20679_v35 = vld [vmem:[#allocation7 + $0x220] ss:$16 sps:$4 sm:$0xff]   ;;  %v20684_v40 = vld [vmem:[#allocation7 + $0x244] ss:$16 sps:$4 sm:$0xff]  }
  0xc9   :  { %5978 = vst [vmem:[#allocation3 + $0x190] sm:$0xff] %v22935_v0  ;;  %5979 = vst [vmem:[#allocation3 + $0x198] sm:$0x3] %v22935_v0  ;;  %2836 = vmatprep.subr.bf16.mxu0 %v20666_v8  ;;  %v20682_v44 = vld [vmem:[#allocation7 + $0x240] ss:$16 sps:$4 sm:$0xff]  }
  0xca   :  { %5980 = vst [vmem:[#allocation3 + $0x1a0] sm:$0x3] %v22935_v0  ;;  %5981 = vst [vmem:[#allocation3 + $0x1a8] sm:$0x3] %v22935_v0  ;;  %v20687_v49 = vld [vmem:[#allocation7 + $0x264] ss:$16 sps:$4 sm:$0xff]  }
  0xcb   :  { %5982 = vst [vmem:[#allocation3 + $0x1b0] sm:$0xff] %v22935_v0  ;;  %5983 = vst [vmem:[#allocation3 + $0x1b8] sm:$0xff] %v22935_v0  ;;  %2451 = vmatpush1.bf16.msra.mxu1 %v20668_v9  ;;  %v20705_v58 = vld [vmem:[#allocation7 + $0x604] ss:$16 sps:$4 sm:$0xff]   ;;  %v20691_v9 = vld [vmem:[#allocation7 + $0x2a0] ss:$16 sps:$4 sm:$0xff]  }
  0xcc   :  { %5984 = vst [vmem:[#allocation3 + $0x1c0] sm:$0xff] %v22935_v0  ;;  %5985 = vst [vmem:[#allocation3 + $0x1c8] sm:$0x3] %v22935_v0  ;;  %2837 = vmatpush1.bf16.msra.mxu0 %v20669_v10  ;;  %2452 = vmatprep.subr.bf16.mxu1 %v20670_v11  ;;  %v20693_v5 = vld [vmem:[#allocation7 + $0x2a4] ss:$16 sps:$4 sm:$0xff]  }
  0xcd   :  { %5986 = vst [vmem:[#allocation3 + $0x1d0] sm:$0x3] %v22935_v0  ;;  %5987 = vst [vmem:[#allocation3 + $0x1d8] sm:$0x3] %v22935_v0  ;;  %2838 = vmatprep.subr.bf16.mxu0 %v20672_v12  ;;  %v20712_v12 = vld [vmem:[#allocation7 + $0x640] ss:$16 sps:$4 sm:$0xff]  }
  0xce   :  { %5988 = vst [vmem:[#allocation3 + $0x1e0] sm:$0xff] %v22935_v0  ;;  %5989 = vst [vmem:[#allocation3 + $0x1e8] sm:$0xff] %v22935_v0 }
  0xcf   :  { %5990 = vst [vmem:[#allocation3 + $0x1f0] sm:$0xff] %v22935_v0  ;;  %5991 = vst [vmem:[#allocation3 + $0x1f8] sm:$0x3] %v22935_v0  ;;  %2453 = vmatpush1.bf16.msra.mxu1 %v20674_v13  ;;  %v20714_v13 = vld [vmem:[#allocation7 + $0x644] ss:$16 sps:$4 sm:$0xff]  }
  0xd0   :  { %5992 = vst [vmem:[#allocation3 + $0x200] sm:$0x3] %v22935_v0  ;;  %5993 = vst [vmem:[#allocation3 + $0x208] sm:$0x3] %v22935_v0  ;;  %2839 = vmatpush1.bf16.msra.mxu0 %v20675_v14  ;;  %2615 = vmatprep.subr.bf16.mxu1 %v20678_v16  ;;  %v20696_v14 = vld [vmem:[#allocation7 + $0x2c4] ss:$16 sps:$4 sm:$0xff]  }
  0xd1   :  { %5994 = vst [vmem:[#allocation3 + $0x210] sm:$0xff] %v22935_v0  ;;  %5995 = vst [vmem:[#allocation3 + $0x218] sm:$0xff] %v22935_v0  ;;  %3001 = vmatprep.subr.bf16.mxu0 %v20705_v58  ;;  %v215_v16 = vld [vmem:[#allocation4 + $0xa0] sm:$0xff] }
  0xd2   :  { %5996 = vst [vmem:[#allocation3 + $0x220] sm:$0xff] %v22935_v0  ;;  %5997 = vst [vmem:[#allocation3 + $0x228] sm:$0x3] %v22935_v0  ;;  %2455 = vmatmul.mubr.bf16.vlgmr.msra.gmra.mrb[0].mxu1 %v25346_v32 }
  0xd3   :  { %5998 = vst [vmem:[#allocation3 + $0x230] sm:$0x3] %v22935_v0  ;;  %5999 = vst [vmem:[#allocation3 + $0x238] sm:$0x3] %v22935_v0  ;;  %v201_v0 = vld [vmem:[#allocation4 + $0x30] sm:$0xff]  ;;  %2616 = vmatpush1.bf16.msra.mxu1 %v20676_v27 }
  0xd4   :  { %229 = vst.msk [vmem:[#allocation2 + $0x19] sm:$0xff] %vm228_vm0, %v195_v51  ;;  %230 = vst.msk [vmem:[#allocation2 + $0x21] sm:$0xff] %vm228_vm0, %v196_v52  ;;  %2617 = vmatprep.subr.bf16.mxu1 %v20681_v29  ;;  %v20685_v51 = vld [vmem:[#allocation7 + $0x260] ss:$16 sps:$4 sm:$0xff]   ;;  %v20699_v29 = vld [vmem:[#allocation7 + $0x2e4] ss:$16 sps:$4 sm:$0xff]  }
  0xd5   :  { %231 = vst.msk [vmem:[#allocation2 + $0x31] sm:$0xff] %vm228_vm0, %v197_v56  ;;  %232 = vst.msk [vmem:[#allocation2 + $0x39] sm:$0xff] %vm228_vm0, %v198_v57  ;;  %v211_v52 = vld [vmem:[#allocation4 + $0x80] sm:$0xff] }
  0xd6   :  { %233 = vst.msk [vmem:[#allocation2 + $0x49] sm:$0xff] %vm228_vm0, %v199_v60  ;;  %234 = vst.msk [vmem:[#allocation2 + $0x51] sm:$0xff] %vm228_vm0, %v200_v61  ;;  %v20690_v56 = vld [vmem:[#allocation7 + $0x284] ss:$16 sps:$4 sm:$0xff]   ;;  %v20703_v57 = vld [vmem:[#allocation7 + $0x600] ss:$16 sps:$4 sm:$0xff]  }
  0xd7   :  { %235 = vst.msk [vmem:[#allocation2 + $0x61] sm:$0xff] %vm228_vm0, %v201_v0  ;;  %236 = vst.msk [vmem:[#allocation2 + $0x69] sm:$0xff] %vm228_vm0, %v202_v1  ;;  %2618 = vmatpush1.bf16.msra.mxu1 %v20679_v35  ;;  %v20708_v61 = vld [vmem:[#allocation7 + $0x624] ss:$16 sps:$4 sm:$0xff]   ;;  %v214_v0 = vld [vmem:[#allocation4 + $0x98] sm:$0xff] }
  0xd8   :  { %237 = vst.msk [vmem:[#allocation2 + $0x79] sm:$0xff] %vm228_vm0, %v203_v15  ;;  %238 = vst.msk [vmem:[#allocation2 + $0x81] sm:$0xff] %vm228_vm0, %v204_v18  ;;  %2619 = vmatprep.subr.bf16.mxu1 %v20684_v40  ;;  %v20688_v1 = vld [vmem:[#allocation7 + $0x280] ss:$16 sps:$4 sm:$0xff]   ;;  %v20717_v15 = vld [vmem:[#allocation7 + $0x664] ss:$16 sps:$4 sm:$0xff]  }
  0xd9   :  { %239 = vst.msk [vmem:[#allocation2 + $0x91] sm:$0xff] %vm228_vm0, %v205_v21  ;;  %240 = vst.msk [vmem:[#allocation2 + $0x99] sm:$0xff] %vm228_vm0, %v206_v22  ;;  %v20694_v21 = vld [vmem:[#allocation7 + $0x2c0] ss:$16 sps:$4 sm:$0xff]  }
  0xda   :  { %241 = vst.msk [vmem:[#allocation2 + $0xa9] sm:$0xff] %vm228_vm0, %v207_v25  ;;  %242 = vst.msk [vmem:[#allocation2 + $0xb1] sm:$0xff] %vm228_vm0, %v208_v26  ;;  %v20715_v22 = vld [vmem:[#allocation7 + $0x660] ss:$16 sps:$4 sm:$0xff]  }
  0xdb   :  { %v501_v2 = vld [vmem:[#allocation2 + $0x1a] sm:$0xff]  ;;  %v502_v3 = vld [vmem:[#allocation2 + $0x22] sm:$0xff]  ;;  %243 = vst.msk [vmem:[#allocation2 + $0xc1] sm:$0xff] %vm228_vm0, %v209_v30  ;;  %244 = vst.msk [vmem:[#allocation2 + $0xc9] sm:$0xff] %vm228_vm0, %v210_v31  ;;  %2620 = vmatpush1.bf16.msra.mxu1 %v20682_v44 }
  0xdc   :  { %v23236_v6 = vpack.c.bf16 %v502_v3, %v501_v2  ;;  %v453_v17 = vld [vmem:[#allocation2 + $0x19] sm:$0xff]  ;;  %v454_v19 = vld [vmem:[#allocation2 + $0x21] sm:$0xff]  ;;  %v455_v36 = vld [vmem:[#allocation2 + $0x31] sm:$0xff]  ;;  %245 = vst.msk [vmem:[#allocation2 + $0x109] sm:$0xff] %vm228_vm0, %v211_v52  ;;  %2621 = vmatprep.subr.bf16.mxu1 %v20687_v49 }
  0xdd   :  { %v503_v20 = vld [vmem:[#allocation2 + $0x32] sm:$0xff]  ;;  %v504_v23 = vld [vmem:[#allocation2 + $0x3a] sm:$0xff]  ;;  %v23243_v24 = vpack.c.bf16 %v454_v19, %v453_v17  ;;  %v505_v38 = vld [vmem:[#allocation2 + $0x4a] sm:$0xff]  ;;  %246 = vst.msk [vmem:[#allocation2 + $0x111] sm:$0xff] %vm228_vm0, %v212_v53 }
  0xde   :  { %2840 = vmatprep.mubr.bf16.mxu0 %v23236_v6  ;;  %v23247_v28 = vpack.c.bf16 %v504_v23, %v503_v20  ;;  %v263_v33 = vld [vmem:[#allocation2 + $0x18] sm:$0xff]  ;;  %v264_v34 = vld [vmem:[#allocation2 + $0x20] sm:$0xff]  ;;  %v265_v45 = vld [vmem:[#allocation2 + $0x30] sm:$0xff]  ;;  %247 = vst.msk [vmem:[#allocation2 + $0x121] sm:$0xff] %vm228_vm0, %v213_v63 }
  0xdf   :  { %25422 = vst [vmem:[#allocation25_spill] sm:$0xff] %v23243_v24  ;;  %2841 = vmatmul.mubr.bf16.vlgmr.msra.gmra.mrb[0].mxu0 %v23243_v24  ;;  %2464 = vmatprep.mubr.bf16.mxu1 %v23243_v24  ;;  %v456_v37 = vld [vmem:[#allocation2 + $0x39] sm:$0xff]  ;;  %v23255_v41 = vpack.c.bf16 %v264_v34, %v263_v33  ;;  %v457_v47 = vld [vmem:[#allocation2 + $0x49] sm:$0xff]  ;;  %v458_v48 = vld [vmem:[#allocation2 + $0x51] sm:$0xff] }
  0xe0   :  { %25423 = vst [vmem:[#allocation26_spill] sm:$0xff] %v23247_v28  ;;  %2850 = vmatprep.mubr.bf16.mxu0 %v23247_v28  ;;  %v506_v39 = vld [vmem:[#allocation2 + $0x52] sm:$0xff]  ;;  %v23257_v42 = vpack.c.bf16 %v456_v37, %v455_v36  ;;  %v507_v50 = vld [vmem:[#allocation2 + $0x62] sm:$0xff]  ;;  %v508_v55 = vld [vmem:[#allocation2 + $0x6a] sm:$0xff]  ;;  %v23269_v60 = vpack.c.bf16 %v458_v48, %v457_v47  ;;  %2622 = vmatpush1.bf16.msra.mxu1 %v20685_v51 }
  0xe1   :  { %v23259_v43 = vpack.c.bf16 %v506_v39, %v505_v38  ;;  %v266_v46 = vld [vmem:[#allocation2 + $0x38] sm:$0xff]  ;;  %2465 = vmatmul.mubr.bf16.gmra.mrb[4].mxu1 %v23255_v41  ;;  %v23271_v62 = vpack.c.bf16 %v508_v55, %v507_v50  ;;  %3002 = vmatpush1.bf16.msra.mxu0 %v20703_v57  ;;  %v20706_v2 = vld [vmem:[#allocation7 + $0x620] ss:$16 sps:$4 sm:$0xff]   ;;  %248 = vst.msk [vmem:[#allocation2 + $0x129] sm:$0xff] %vm228_vm0, %v214_v0  ;;  %v267_v3 = vld [vmem:[#allocation2 + $0x48] sm:$0xff] }
  0xe2   :  { %25424 = vst [vmem:[#allocation27_spill] sm:$0xff] %v23257_v42  ;;  %2474 = vmatprep.mubr.bf16.mxu1 %v23257_v42  ;;  %v23267_v59 = vpack.c.bf16 %v266_v46, %v265_v45  ;;  %25427 = vst [vmem:[#allocation30_spill] sm:$0xff] %v23269_v60  ;;  %v268_v4 = vld [vmem:[#allocation2 + $0x50] sm:$0xff]  ;;  %2623 = vmatprep.subr.bf16.mxu1 %v20690_v56  ;;  %v459_v7 = vld [vmem:[#allocation2 + $0x61] sm:$0xff] }
  0xe3   :  { %25425 = vst [vmem:[#allocation28_spill] sm:$0xff] %v23259_v43  ;;  %25428 = vst [vmem:[#allocation31_spill] sm:$0xff] %v23271_v62  ;;  %3003 = vmatprep.subr.bf16.mxu0 %v20708_v61  ;;  %v460_v8 = vld [vmem:[#allocation2 + $0x69] sm:$0xff]  ;;  %v509_v10 = vld [vmem:[#allocation2 + $0x7a] sm:$0xff]  ;;  %v23279_v17 = vpack.c.bf16 %v268_v4, %v267_v3 }
  0xe4   :  { %25426 = vst [vmem:[#allocation29_spill] sm:$0xff] %v23267_v59  ;;  %v510_v11 = vld [vmem:[#allocation2 + $0x82] sm:$0xff]  ;;  %2624 = vmatpush1.bf16.msra.mxu1 %v20688_v1  ;;  %v23281_v18 = vpack.c.bf16 %v460_v8, %v459_v7  ;;  %249 = vst.msk [vmem:[#allocation2 + $0x139] sm:$0xff] %vm228_vm0, %v215_v16  ;;  %v461_v26 = vld [vmem:[#allocation2 + $0x79] sm:$0xff] }
  0xe5   :  { %3004 = vmatpush1.bf16.msra.mxu0 %v20706_v2  ;;  %2625 = vmatprep.subr.bf16.mxu1 %v20693_v5  ;;  %25429 = vst [vmem:[#allocation32_spill] sm:$0xff] %v23279_v17  ;;  %v216_v19 = vld [vmem:[#allocation4 + $0xa8] sm:$0xff]  ;;  %v23284_v20 = vpack.c.bf16 %v510_v11, %v509_v10  ;;  %v269_v23 = vld [vmem:[#allocation2 + $0x60] sm:$0xff]  ;;  %v511_v30 = vld [vmem:[#allocation2 + $0x92] sm:$0xff] }
  0xe6   :  { %25430 = vst [vmem:[#allocation33_spill] sm:$0xff] %v23281_v18  ;;  %3005 = vmatprep.subr.bf16.mxu0 %v20714_v13  ;;  %250 = vst.msk [vmem:[#allocation2 + $0x141] sm:$0xff] %vm228_vm0, %v216_v19  ;;  %v270_v25 = vld [vmem:[#allocation2 + $0x68] sm:$0xff]  ;;  %v20697_v31 = vld [vmem:[#allocation7 + $0x2e0] ss:$16 sps:$4 sm:$0xff]  }
  0xe7   :  { %2851 = vmatmul.mubr.bf16.gmra.mrb[4].mxu0 %v23257_v42  ;;  %25431 = vst [vmem:[#allocation34_spill] sm:$0xff] %v23284_v20  ;;  %v462_v27 = vld [vmem:[#allocation2 + $0x81] sm:$0xff]  ;;  %v217_v36 = vld [vmem:[#allocation4 + $0xb0] sm:$0xff]  ;;  %v218_v37 = vld [vmem:[#allocation4 + $0xb8] sm:$0xff]  ;;  %v23293_v40 = vpack.c.bf16 %v270_v25, %v269_v23 }
  0xe8   :  { %2860 = vmatprep.mubr.bf16.mxu0 %v23259_v43  ;;  %2626 = vmatpush1.bf16.msra.mxu1 %v20691_v9  ;;  %v20723_v33 = vld [vmem:[#allocation7 + $0x684] ss:$16 sps:$4 sm:$0xff]   ;;  %v512_v34 = vld [vmem:[#allocation2 + $0x9a] sm:$0xff]  ;;  %251 = vst.msk [vmem:[#allocation2 + $0x151] sm:$0xff] %vm228_vm0, %v217_v36  ;;  %252 = vst.msk [vmem:[#allocation2 + $0x159] sm:$0xff] %vm228_vm0, %v218_v37  ;;  %v23295_v44 = vpack.c.bf16 %v462_v27, %v461_v26 }
  0xe9   :  { %2475 = vmatmul.mubr.bf16.gmra.mrb[8].mxu1 %v23267_v59  ;;  %3006 = vmatpush1.bf16.msra.mxu0 %v20712_v12  ;;  %v20721_v35 = vld [vmem:[#allocation7 + $0x680] ss:$16 sps:$4 sm:$0xff]   ;;  %v20702_v38 = vld [vmem:[#allocation7 + $0x304] ss:$16 sps:$4 sm:$0xff]   ;;  %25432 = vst [vmem:[#allocation35_spill] sm:$0xff] %v23293_v40  ;;  %v23297_v45 = vpack.c.bf16 %v512_v34, %v511_v30  ;;  %v271_v48 = vld [vmem:[#allocation2 + $0x78] sm:$0xff] }
  0xea   :  { %2484 = vmatprep.mubr.bf16.mxu1 %v23269_v60  ;;  %2627 = vmatprep.subr.bf16.mxu1 %v20696_v14  ;;  %v20726_v39 = vld [vmem:[#allocation7 + $0x6a4] ss:$16 sps:$4 sm:$0xff]   ;;  %25433 = vst [vmem:[#allocation36_spill] sm:$0xff] %v23295_v44  ;;  %v20700_v46 = vld [vmem:[#allocation7 + $0x300] ss:$16 sps:$4 sm:$0xff]   ;;  %v220_v57 = vld [vmem:[#allocation4 + $0xc8] sm:$0xff] }
  0xeb   :  { %3007 = vmatprep.subr.bf16.mxu0 %v20717_v15  ;;  %25434 = vst [vmem:[#allocation37_spill] sm:$0xff] %v23297_v45  ;;  %v20724_v47 = vld [vmem:[#allocation7 + $0x6a0] ss:$16 sps:$4 sm:$0xff]   ;;  %v20711_v51 = vld [vmem:[#allocation7 + $0x324] ss:$16 sps:$4 sm:$0xff]   ;;  %254 = vst.msk [vmem:[#allocation2 + $0x171] sm:$0xff] %vm228_vm0, %v220_v57 }
  0xec   :  { %2628 = vmatpush1.bf16.msra.mxu1 %v20694_v21  ;;  %v272_v49 = vld [vmem:[#allocation2 + $0x80] sm:$0xff]  ;;  %v463_v50 = vld [vmem:[#allocation2 + $0x91] sm:$0xff]  ;;  %v465_v14 = vld [vmem:[#allocation2 + $0xa9] sm:$0xff] }
  0xed   :  { %3008 = vmatpush1.bf16.msra.mxu0 %v20715_v22  ;;  %2629 = vmatprep.subr.bf16.mxu1 %v20699_v29  ;;  %v20732_v52 = vld [vmem:[#allocation7 + $0x6c4] ss:$16 sps:$4 sm:$0xff]   ;;  %v464_v53 = vld [vmem:[#allocation2 + $0x99] sm:$0xff]  ;;  %v513_v55 = vld [vmem:[#allocation2 + $0xaa] sm:$0xff]  ;;  %v23305_v2 = vpack.c.bf16 %v272_v49, %v271_v48 }
  0xee   :  { %3009 = vmatprep.subr.bf16.mxu0 %v20723_v33  ;;  %v219_v56 = vld [vmem:[#allocation4 + $0xc0] sm:$0xff]  ;;  %v514_v58 = vld [vmem:[#allocation2 + $0xb2] sm:$0xff]  ;;  %v23307_v3 = vpack.c.bf16 %v464_v53, %v463_v50  ;;  %v516_v19 = vld [vmem:[#allocation2 + $0xca] sm:$0xff] }
  0xef   :  { %2861 = vmatmul.mubr.bf16.gmra.mrb[8].mxu0 %v23269_v60  ;;  %v20709_v61 = vld [vmem:[#allocation7 + $0x320] ss:$16 sps:$4 sm:$0xff]   ;;  %253 = vst.msk [vmem:[#allocation2 + $0x169] sm:$0xff] %vm228_vm0, %v219_v56  ;;  %v20720_v0 = vld [vmem:[#allocation7 + $0x344] ss:$16 sps:$4 sm:$0xff]   ;;  %25435 = vst [vmem:[#allocation38_spill] sm:$0xff] %v23305_v2  ;;  %v23309_v4 = vpack.c.bf16 %v514_v58, %v513_v55 }
  0xf0   :  { %2870 = vmatprep.mubr.bf16.mxu0 %v23271_v62  ;;  %2630 = vmatpush1.bf16.msra.mxu1 %v20697_v31  ;;  %v20730_v63 = vld [vmem:[#allocation7 + $0x6c0] ss:$16 sps:$4 sm:$0xff]   ;;  %v20735_v1 = vld [vmem:[#allocation7 + $0x6e4] ss:$16 sps:$4 sm:$0xff]   ;;  %25436 = vst [vmem:[#allocation39_spill] sm:$0xff] %v23307_v3  ;;  %v274_v9 = vld [vmem:[#allocation2 + $0x98] sm:$0xff] }
  0xf1   :  { %2485 = vmatmul.mubr.bf16.gmra.mrb[12].mxu1 %v23279_v17  ;;  %3010 = vmatpush1.bf16.msra.mxu0 %v20721_v35  ;;  %v20718_v5 = vld [vmem:[#allocation7 + $0x340] ss:$16 sps:$4 sm:$0xff]   ;;  %v20729_v10 = vld [vmem:[#allocation7 + $0x364] ss:$16 sps:$4 sm:$0xff]   ;;  %v222_v13 = vld [vmem:[#allocation4 + $0xd8] sm:$0xff] }
  0xf2   :  { %2494 = vmatprep.mubr.bf16.mxu1 %v23281_v18  ;;  %2631 = vmatprep.subr.bf16.mxu1 %v20702_v38  ;;  %v20733_v7 = vld [vmem:[#allocation7 + $0x6e0] ss:$16 sps:$4 sm:$0xff]   ;;  %v20741_v11 = vld [vmem:[#allocation7 + $0x704] ss:$16 sps:$4 sm:$0xff]   ;;  %256 = vst.msk [vmem:[#allocation2 + $0x189] sm:$0xff] %vm228_vm0, %v222_v13  ;;  %v224_v34 = vld [vmem:[#allocation4 + $0xe8] sm:$0xff] }
  0xf3   :  { %3011 = vmatprep.subr.bf16.mxu0 %v20726_v39  ;;  %v273_v8 = vld [vmem:[#allocation2 + $0x90] sm:$0xff]  ;;  %v515_v16 = vld [vmem:[#allocation2 + $0xc2] sm:$0xff]  ;;  %258 = vst.msk [vmem:[#allocation2 + $0x1a1] sm:$0xff] %vm228_vm0, %v224_v34  ;;  %v326_v48 = vld [vmem:[#allocation2 + $0xf9] sm:$0xff] }
  0xf4   :  { %2632 = vmatpush1.bf16.msra.mxu1 %v20700_v46  ;;  %v221_v12 = vld [vmem:[#allocation4 + $0xd0] sm:$0xff]  ;;  %v23317_v26 = vpack.c.bf16 %v274_v9, %v273_v8  ;;  %v23321_v29 = vpack.c.bf16 %v516_v19, %v515_v16  ;;  %v223_v33 = vld [vmem:[#allocation4 + $0xe0] sm:$0xff]  ;;  %v275_v35 = vld [vmem:[#allocation2 + $0xa8] sm:$0xff] }
  0xf5   :  { %3012 = vmatpush1.bf16.msra.mxu0 %v20724_v47  ;;  %2633 = vmatprep.subr.bf16.mxu1 %v20711_v51  ;;  %255 = vst.msk [vmem:[#allocation2 + $0x181] sm:$0xff] %vm228_vm0, %v221_v12  ;;  %v466_v15 = vld [vmem:[#allocation2 + $0xb1] sm:$0xff]  ;;  %v467_v37 = vld [vmem:[#allocation2 + $0xc1] sm:$0xff]  ;;  %v468_v38 = vld [vmem:[#allocation2 + $0xc9] sm:$0xff] }
  0xf6   :  { %3013 = vmatprep.subr.bf16.mxu0 %v20732_v52  ;;  %v20727_v21 = vld [vmem:[#allocation7 + $0x360] ss:$16 sps:$4 sm:$0xff]   ;;  %v20738_v23 = vld [vmem:[#allocation7 + $0x384] ss:$16 sps:$4 sm:$0xff]   ;;  %25437 = vst [vmem:[#allocation40_spill] sm:$0xff] %v23317_v26  ;;  %v23319_v27 = vpack.c.bf16 %v466_v15, %v465_v14  ;;  %25439 = vst [vmem:[#allocation42_spill] sm:$0xff] %v23321_v29  ;;  %v23331_v57 = vpack.c.bf16 %v468_v38, %v467_v37 }
  0xf7   :  { %2871 = vmatmul.mubr.bf16.gmra.mrb[12].mxu0 %v23281_v18  ;;  %v20739_v22 = vld [vmem:[#allocation7 + $0x700] ss:$16 sps:$4 sm:$0xff]   ;;  %v20744_v25 = vld [vmem:[#allocation7 + $0x724] ss:$16 sps:$4 sm:$0xff]   ;;  %257 = vst.msk [vmem:[#allocation2 + $0x199] sm:$0xff] %vm228_vm0, %v223_v33 }
  0xf8   :  { %2880 = vmatprep.mubr.bf16.mxu0 %v23284_v20  ;;  %2634 = vmatpush1.bf16.msra.mxu1 %v20709_v61  ;;  %25438 = vst [vmem:[#allocation41_spill] sm:$0xff] %v23319_v27  ;;  %v20736_v30 = vld [vmem:[#allocation7 + $0x380] ss:$16 sps:$4 sm:$0xff]   ;;  %v20747_v39 = vld [vmem:[#allocation7 + $0x3a4] ss:$16 sps:$4 sm:$0xff]   ;;  %25441 = vst [vmem:[#allocation44_spill] sm:$0xff] %v23331_v57 }
  0xf9   :  { %2495 = vmatmul.mubr.bf16.gmra.mrb[16].mxu1 %v23293_v40  ;;  %3014 = vmatpush1.bf16.msra.mxu0 %v20730_v63  ;;  %v20742_v31 = vld [vmem:[#allocation7 + $0x720] ss:$16 sps:$4 sm:$0xff]   ;;  %v20750_v46 = vld [vmem:[#allocation7 + $0x744] ss:$16 sps:$4 sm:$0xff]   ;;  %v20822_v62 = vld [vmem:[#allocation7 + $0x1ac] ss:$16 sps:$4 sm:$0xff]  }
  0xfa   :  { %2504 = vmatprep.mubr.bf16.mxu1 %v23295_v44  ;;  %2635 = vmatprep.subr.bf16.mxu1 %v20720_v0  ;;  %v276_v36 = vld [vmem:[#allocation2 + $0xb0] sm:$0xff]  ;;  %v226_v0 = vld [vmem:[#allocation4 + $0xf8] sm:$0xff] }
  0xfb   :  { %3015 = vmatprep.subr.bf16.mxu0 %v20735_v1  ;;  %v325_v47 = vld [vmem:[#allocation2 + $0xf1] sm:$0xff]  ;;  %v23329_v56 = vpack.c.bf16 %v276_v36, %v275_v35  ;;  %260 = vst.msk [vmem:[#allocation2 + $0x1b9] sm:$0xff] %vm228_vm0, %v226_v0  ;;  %v472_v33 = vld [vmem:[#allocation2 + $0x129] sm:$0xff]  ;;  %v521_v34 = vld [vmem:[#allocation2 + $0x13a] sm:$0xff] }
  0xfc   :  { %2636 = vmatpush1.bf16.msra.mxu1 %v20718_v5  ;;  %v517_v49 = vld [vmem:[#allocation2 + $0x10a] sm:$0xff]  ;;  %v518_v50 = vld [vmem:[#allocation2 + $0x112] sm:$0xff]  ;;  %v23333_v58 = vpack.c.bf16 %v326_v48, %v325_v47  ;;  %v522_v35 = vld [vmem:[#allocation2 + $0x142] sm:$0xff] }
  0xfd   :  { %3016 = vmatpush1.bf16.msra.mxu0 %v20733_v7  ;;  %2637 = vmatprep.subr.bf16.mxu1 %v20729_v10  ;;  %v20745_v51 = vld [vmem:[#allocation7 + $0x3a0] ss:$16 sps:$4 sm:$0xff]   ;;  %v20753_v53 = vld [vmem:[#allocation7 + $0x764] ss:$16 sps:$4 sm:$0xff]   ;;  %25440 = vst [vmem:[#allocation43_spill] sm:$0xff] %v23329_v56  ;;  %v23335_v61 = vpack.c.bf16 %v518_v50, %v517_v49  ;;  %v282_v49 = vld [vmem:[#allocation2 + $0x128] sm:$0xff] }
  0xfe   :  { %3017 = vmatprep.subr.bf16.mxu0 %v20741_v11  ;;  %v20748_v52 = vld [vmem:[#allocation7 + $0x740] ss:$16 sps:$4 sm:$0xff]   ;;  %v20756_v55 = vld [vmem:[#allocation7 + $0x3c4] ss:$16 sps:$4 sm:$0xff]  }
  0xff   :  { %2881 = vmatmul.mubr.bf16.gmra.mrb[16].mxu0 %v23295_v44  ;;  %v225_v63 = vld [vmem:[#allocation4 + $0xf0] sm:$0xff]  ;;  %v519_v10 = vld [vmem:[#allocation2 + $0x122] sm:$0xff]  ;;  %v473_v50 = vld [vmem:[#allocation2 + $0x139] sm:$0xff] }
 0x100   :  { %2890 = vmatprep.mubr.bf16.mxu0 %v23297_v45  ;;  %2638 = vmatpush1.bf16.msra.mxu1 %v20727_v21  ;;  %v20751_v1 = vld [vmem:[#allocation7 + $0x760] ss:$16 sps:$4 sm:$0xff]   ;;  %259 = vst.msk [vmem:[#allocation2 + $0x1b1] sm:$0xff] %vm228_vm0, %v225_v63  ;;  %v20759_v9 = vld [vmem:[#allocation7 + $0x784] ss:$16 sps:$4 sm:$0xff]  }
 0x101   :  { %2505 = vmatmul.mubr.bf16.gmra.mrb[20].mxu1 %v23305_v2  ;;  %3018 = vmatpush1.bf16.msra.mxu0 %v20739_v22  ;;  %v20754_v5 = vld [vmem:[#allocation7 + $0x3c0] ss:$16 sps:$4 sm:$0xff]   ;;  %v20765_v12 = vld [vmem:[#allocation7 + $0x3e4] ss:$16 sps:$4 sm:$0xff]   ;;  %v20774_v22 = vld [vmem:[#allocation7 + $0xc] ss:$16 sps:$4 sm:$0xff]  }
 0x102   :  { %2514 = vmatprep.mubr.bf16.mxu1 %v23307_v3  ;;  %2639 = vmatprep.subr.bf16.mxu1 %v20738_v23  ;;  %v469_v7 = vld [vmem:[#allocation2 + $0x109] sm:$0xff]  ;;  %v470_v8 = vld [vmem:[#allocation2 + $0x111] sm:$0xff]  ;;  %v281_v48 = vld [vmem:[#allocation2 + $0x120] sm:$0xff] }
 0x103   :  { %3019 = vmatprep.subr.bf16.mxu0 %v20744_v25  ;;  %v520_v11 = vld [vmem:[#allocation2 + $0x12a] sm:$0xff]  ;;  %v20762_v15 = vld [vmem:[#allocation7 + $0x7a4] ss:$16 sps:$4 sm:$0xff]   ;;  %v23343_v16 = vpack.c.bf16 %v470_v8, %v469_v7  ;;  %v476_v8 = vld [vmem:[#allocation2 + $0x159] sm:$0xff] }
 0x104   :  { %2640 = vmatpush1.bf16.msra.mxu1 %v20736_v30  ;;  %v20757_v13 = vld [vmem:[#allocation7 + $0x780] ss:$16 sps:$4 sm:$0xff]   ;;  %v23345_v19 = vpack.c.bf16 %v520_v11, %v519_v10  ;;  %v279_v23 = vld [vmem:[#allocation2 + $0x108] sm:$0xff]  ;;  %v20768_v25 = vld [vmem:[#allocation7 + $0x7c4] ss:$16 sps:$4 sm:$0xff]  }
 0x105   :  { %3020 = vmatpush1.bf16.msra.mxu0 %v20742_v31  ;;  %2641 = vmatprep.subr.bf16.mxu1 %v20747_v39  ;;  %v20763_v14 = vld [vmem:[#allocation7 + $0x3e0] ss:$16 sps:$4 sm:$0xff]   ;;  %25442 = vst [vmem:[#allocation45_spill] sm:$0xff] %v23343_v16  ;;  %v20771_v37 = vld [vmem:[#allocation7 + $0x7e4] ss:$16 sps:$4 sm:$0xff]  }
 0x106   :  { %3021 = vmatprep.subr.bf16.mxu0 %v20750_v46  ;;  %v20760_v21 = vld [vmem:[#allocation7 + $0x7a0] ss:$16 sps:$4 sm:$0xff]   ;;  %v23355_v46 = vpack.c.bf16 %v522_v35, %v521_v34  ;;  %v20810_v34 = vld [vmem:[#allocation7 + $0x804] ss:$16 sps:$4 sm:$0xff]   ;;  %v287_v35 = vld [vmem:[#allocation2 + $0x168] sm:$0xff] }
 0x107   :  { %2891 = vmatmul.mubr.bf16.gmra.mrb[20].mxu0 %v23307_v3  ;;  %v280_v30 = vld [vmem:[#allocation2 + $0x110] sm:$0xff]  ;;  %v471_v31 = vld [vmem:[#allocation2 + $0x121] sm:$0xff] }
 0x108   :  { %2900 = vmatprep.mubr.bf16.mxu0 %v23309_v4  ;;  %2642 = vmatpush1.bf16.msra.mxu1 %v20745_v51  ;;  %v20766_v36 = vld [vmem:[#allocation7 + $0x7c0] ss:$16 sps:$4 sm:$0xff]   ;;  %v23351_v38 = vpack.c.bf16 %v280_v30, %v279_v23  ;;  %v23353_v39 = vpack.c.bf16 %v472_v33, %v471_v31 }
 0x109   :  { %2515 = vmatmul.mubr.bf16.gmra.mrb[24].mxu1 %v23317_v26  ;;  %3022 = vmatpush1.bf16.msra.mxu0 %v20748_v52  ;;  %v20769_v47 = vld [vmem:[#allocation7 + $0x7e0] ss:$16 sps:$4 sm:$0xff]  }
 0x10a   :  { %2524 = vmatprep.mubr.bf16.mxu1 %v23319_v27  ;;  %3023 = vmatprep.subr.bf16.mxu0 %v20753_v53  ;;  %25443 = vst [vmem:[#allocation46_spill] sm:$0xff] %v23353_v39  ;;  %v474_v51 = vld [vmem:[#allocation2 + $0x141] sm:$0xff]  ;;  %v523_v52 = vld [vmem:[#allocation2 + $0x152] sm:$0xff]  ;;  %v366_v20 = vld [vmem:[#allocation2 + $0x6a] sm:$0xff] }
 0x10b   :  { %2643 = vmatprep.subr.bf16.mxu1 %v20756_v55  ;;  %v524_v53 = vld [vmem:[#allocation2 + $0x15a] sm:$0xff]  ;;  %v23361_v55 = vpack.c.bf16 %v282_v49, %v281_v48  ;;  %v23363_v63 = vpack.c.bf16 %v474_v51, %v473_v50  ;;  %v475_v7 = vld [vmem:[#allocation2 + $0x151] sm:$0xff]  ;;  %v527_v23 = vld [vmem:[#allocation2 + $0x182] sm:$0xff] }
 0x10c   :  { %2644 = vmatpush1.bf16.msra.mxu1 %v20754_v5  ;;  %v23365_v0 = vpack.c.bf16 %v524_v53, %v523_v52  ;;  %v284_v5 = vld [vmem:[#allocation2 + $0x140] sm:$0xff]  ;;  %v526_v10 = vld [vmem:[#allocation2 + $0x172] sm:$0xff] }
 0x10d   :  { %3024 = vmatpush1.bf16.msra.mxu0 %v20751_v1  ;;  %2645 = vmatprep.subr.bf16.mxu1 %v20765_v12  ;;  %25444 = vst [vmem:[#allocation47_spill] sm:$0xff] %v23361_v55  ;;  %25445 = vst [vmem:[#allocation48_spill] sm:$0xff] %v23363_v63  ;;  %v283_v1 = vld [vmem:[#allocation2 + $0x138] sm:$0xff]  ;;  %v23373_v12 = vpack.c.bf16 %v476_v8, %v475_v7  ;;  %v530_v49 = vld [vmem:[#allocation2 + $0x1a2] sm:$0xff] }
 0x10e   :  { %3025 = vmatprep.subr.bf16.mxu0 %v20759_v9  ;;  %v525_v9 = vld [vmem:[#allocation2 + $0x16a] sm:$0xff]  ;;  %v23371_v11 = vpack.c.bf16 %v284_v5, %v283_v1  ;;  %v529_v48 = vld [vmem:[#allocation2 + $0x19a] sm:$0xff]  ;;  %v531_v8 = vld [vmem:[#allocation2 + $0x1b2] sm:$0xff] }
 0x10f   :  { %2901 = vmatmul.mubr.bf16.gmra.mrb[24].mxu0 %v23319_v27  ;;  %25447 = vst [vmem:[#allocation50_spill] sm:$0xff] %v23373_v12  ;;  %v23395_v52 = vpack.c.bf16 %v530_v49, %v529_v48  ;;  %v289_v53 = vld [vmem:[#allocation2 + $0x180] sm:$0xff]  ;;  %v290_v1 = vld [vmem:[#allocation2 + $0x188] sm:$0xff]  ;;  %v364_v45 = vld [vmem:[#allocation2 + $0x52] sm:$0xff] }
 0x110   :  { %2910 = vmatprep.mubr.bf16.mxu0 %v23321_v29  ;;  %2646 = vmatpush1.bf16.msra.mxu1 %v20763_v14  ;;  %25446 = vst [vmem:[#allocation49_spill] sm:$0xff] %v23371_v11  ;;  %v285_v14 = vld [vmem:[#allocation2 + $0x150] sm:$0xff]  ;;  %v481_v5 = vld [vmem:[#allocation2 + $0x199] sm:$0xff]  ;;  %v482_v7 = vld [vmem:[#allocation2 + $0x1a1] sm:$0xff] }
 0x111   :  { %2525 = vmatmul.mubr.bf16.gmra.mrb[28].mxu1 %v23329_v56  ;;  %3026 = vmatpush1.bf16.msra.mxu0 %v20757_v13  ;;  %v23375_v13 = vpack.c.bf16 %v526_v10, %v525_v9  ;;  %v532_v9 = vld [vmem:[#allocation2 + $0x1ba] sm:$0xff]  ;;  %v23401_v10 = vpack.c.bf16 %v290_v1, %v289_v53  ;;  %v20825_v29 = vld [vmem:[#allocation7 + $0x864] ss:$16 sps:$4 sm:$0xff]  }
 0x112   :  { %2534 = vmatprep.mubr.bf16.mxu1 %v23333_v58  ;;  %3027 = vmatprep.subr.bf16.mxu0 %v20762_v15  ;;  %v286_v15 = vld [vmem:[#allocation2 + $0x158] sm:$0xff]  ;;  %v20808_v53 = vld [vmem:[#allocation7 + $0x800] ss:$16 sps:$4 sm:$0xff]  }
 0x113   :  { %3387 = vmatprep.subr.bf16.mxu1 %v20774_v22  ;;  %v478_v22 = vld [vmem:[#allocation2 + $0x171] sm:$0xff]  ;;  %v23381_v30 = vpack.c.bf16 %v286_v15, %v285_v14  ;;  %v23403_v14 = vpack.c.bf16 %v482_v7, %v481_v5  ;;  %v23405_v15 = vpack.c.bf16 %v532_v9, %v531_v8  ;;  %v20777_v49 = vld [vmem:[#allocation7 + $0x2c] ss:$16 sps:$4 sm:$0xff]   ;;  %v360_v5 = vld [vmem:[#allocation2 + $0x22] sm:$0xff] }
 0x114   :  { %v359_v1 = vld [vmem:[#allocation2 + $0x1a] sm:$0xff]  ;;  %v20816_v9 = vld [vmem:[#allocation7 + $0x824] ss:$16 sps:$4 sm:$0xff]  }
 0x115   :  { %3028 = vmatpush1.bf16.msra.mxu0 %v20760_v21  ;;  %v477_v21 = vld [vmem:[#allocation2 + $0x169] sm:$0xff]  ;;  %25448 = vst [vmem:[#allocation51_spill] sm:$0xff] %v23381_v30  ;;  %25451 = vst [vmem:[#allocation54_spill] sm:$0xff] %v23403_v14 }
 0x116   :  { %3029 = vmatprep.subr.bf16.mxu0 %v20768_v25  ;;  %v528_v25 = vld [vmem:[#allocation2 + $0x18a] sm:$0xff]  ;;  %v23383_v31 = vpack.c.bf16 %v478_v22, %v477_v21  ;;  %25452 = vst [vmem:[#allocation55_spill] sm:$0xff] %v23405_v15  ;;  %v291_v21 = vld [vmem:[#allocation2 + $0x198] sm:$0xff]  ;;  %v292_v22 = vld [vmem:[#allocation2 + $0x1a0] sm:$0xff] }
 0x117   :  { %2911 = vmatmul.mubr.bf16.gmra.mrb[28].mxu0 %v23331_v57  ;;  %v23385_v33 = vpack.c.bf16 %v528_v25, %v527_v23  ;;  %v483_v23 = vld [vmem:[#allocation2 + $0x1b1] sm:$0xff]  ;;  %v484_v25 = vld [vmem:[#allocation2 + $0x1b9] sm:$0xff] }
 0x118   :  { %2920 = vmatprep.mubr.bf16.mxu0 %v23335_v61  ;;  %25449 = vst [vmem:[#allocation52_spill] sm:$0xff] %v23383_v31  ;;  %v20775_v7 = vld [vmem:[#allocation7 + $0x28] ss:$16 sps:$4 sm:$0xff]   ;;  %v20780_v8 = vld [vmem:[#allocation7 + $0x4c] ss:$16 sps:$4 sm:$0xff]  }
 0x119   :  { %2535 = vmatmul.mubr.bf16.gmra.mrb[32].mxu1 %v25346_v32  ;;  %3030 = vmatpush1.bf16.msra.mxu0 %v20766_v36  ;;  %v288_v36 = vld [vmem:[#allocation2 + $0x170] sm:$0xff] }
 0x11a   :  { %2544 = vmatprep.mubr.bf16.mxu1 %v23343_v16  ;;  %3031 = vmatprep.subr.bf16.mxu0 %v20771_v37  ;;  %v479_v37 = vld [vmem:[#allocation2 + $0x181] sm:$0xff]  ;;  %v23391_v50 = vpack.c.bf16 %v288_v36, %v287_v35  ;;  %v23413_v35 = vpack.c.bf16 %v484_v25, %v483_v23  ;;  %v361_v32 = vld [vmem:[#allocation2 + $0x32] sm:$0xff] }
 0x11b   :  { %v357_v36 = vld [vmem:[#allocation2 + $0x2] sm:$0xff] }
 0x11c   :  { %25453 = vst [vmem:[#allocation56_spill] sm:$0xff] %v23413_v35  ;;  %v20778_v23 = vld [vmem:[#allocation7 + $0x48] ss:$16 sps:$4 sm:$0xff]   ;;  %v20819_v25 = vld [vmem:[#allocation7 + $0x844] ss:$16 sps:$4 sm:$0xff]  }
 0x11d   :  { %3032 = vmatpush1.bf16.msra.mxu0 %v20769_v47  ;;  %v480_v47 = vld [vmem:[#allocation2 + $0x189] sm:$0xff] }
 0x11e   :  { %3194 = vmatprep.subr.bf16.mxu0 %v20810_v34  ;;  %v23393_v51 = vpack.c.bf16 %v480_v47, %v479_v37  ;;  %v23411_v34 = vpack.c.bf16 %v292_v22, %v291_v21  ;;  %v358_v37 = vld [vmem:[#allocation2 + $0xa] sm:$0xff]  ;;  %v23425_v22 = vpack.c.bf16 %v360_v5, %v359_v1 }
 0x11f   :  { %2921 = vmatmul.mubr.bf16.gmra.mrb[32].mxu0 %v23343_v16  ;;  %v20772_v47 = vld [vmem:[#allocation7 + $0x8] ss:$16 sps:$4 sm:$0xff]   ;;  %v23419_v48 = vpack.c.bf16 %v358_v37, %v357_v36  ;;  %v20814_v21 = vld [vmem:[#allocation7 + $0x820] ss:$16 sps:$4 sm:$0xff]   ;;  %v20783_v36 = vld [vmem:[#allocation7 + $0x6c] ss:$16 sps:$4 sm:$0xff]  }
 0x120   :  { %2930 = vmatprep.mubr.bf16.mxu0 %v23345_v19  ;;  %25450 = vst [vmem:[#allocation53_spill] sm:$0xff] %v23393_v51  ;;  %v20817_v37 = vld [vmem:[#allocation7 + $0x840] ss:$16 sps:$4 sm:$0xff]   ;;  %v20784_v5 = vld [vmem:[#allocation7 + $0x88] ss:$16 sps:$4 sm:$0xff]  }
 0x121   :  { %2545 = vmatmul.mubr.bf16.gmra.mrb[36].mxu1 %v23351_v38 }
 0x122   :  { %2554 = vmatprep.mubr.bf16.mxu1 %v23353_v39 }
 0x127   :  { %2931 = vmatmul.mubr.bf16.gmra.mrb[36].mxu0 %v23353_v39 }
 0x128   :  { %2940 = vmatprep.mubr.bf16.mxu0 %v23355_v46 }
 0x129   :  { %2555 = vmatmul.mubr.bf16.gmra.mrb[40].mxu1 %v23361_v55 }
 0x12a   :  { %2564 = vmatprep.mubr.bf16.mxu1 %v23363_v63 }
 0x12f   :  { %2941 = vmatmul.mubr.bf16.gmra.mrb[40].mxu0 %v23363_v63 }
 0x130   :  { %2950 = vmatprep.mubr.bf16.mxu0 %v23365_v0 }
 0x131   :  { %2565 = vmatmul.mubr.bf16.gmra.mrb[44].mxu1 %v23371_v11 }
 0x132   :  { %2574 = vmatprep.mubr.bf16.mxu1 %v23373_v12 }
 0x137   :  { %2951 = vmatmul.mubr.bf16.gmra.mrb[44].mxu0 %v23373_v12 }
 0x138   :  { %2960 = vmatprep.mubr.bf16.mxu0 %v23375_v13 }
 0x139   :  { %2575 = vmatmul.mubr.bf16.gmra.mrb[48].mxu1 %v23381_v30 }
 0x13a   :  { %2584 = vmatprep.mubr.bf16.mxu1 %v23383_v31 }
 0x13f   :  { %2961 = vmatmul.mubr.bf16.gmra.mrb[48].mxu0 %v23383_v31 }
 0x140   :  { %2970 = vmatprep.mubr.bf16.mxu0 %v23385_v33 }
 0x141   :  { %2585 = vmatmul.mubr.bf16.gmra.mrb[52].mxu1 %v23391_v50 }
 0x142   :  { %2594 = vmatprep.mubr.bf16.mxu1 %v23393_v51 }
 0x147   :  { %2971 = vmatmul.mubr.bf16.gmra.mrb[52].mxu0 %v23393_v51 }
 0x148   :  { %2980 = vmatprep.mubr.bf16.mxu0 %v23395_v52 }
 0x149   :  { %2595 = vmatmul.mubr.bf16.gmra.mrb[56].mxu1 %v23401_v10 }
 0x14a   :  { %2604 = vmatprep.mubr.bf16.mxu1 %v23403_v14 }
 0x14f   :  { %2981 = vmatmul.mubr.bf16.gmra.mrb[56].mxu0 %v23403_v14 }
 0x150   :  { %2990 = vmatprep.mubr.bf16.mxu0 %v23405_v15  ;;  %v362_v15 = vld [vmem:[#allocation2 + $0x3a] sm:$0xff] }
 0x151   :  { %2605 = vmatmul.mubr.bf16.gmra.mrb[60].mxu1 %v23411_v34  ;;  %v23431_v1 = vpack.c.bf16 %v362_v15, %v361_v32  ;;  %v20792_v32 = vld [vmem:[#allocation7 + $0xcc] ss:$16 sps:$4 sm:$0xff]  }
 0x152   :  { %2647 = vmatprep.mubr.bf16.mxu1 %v23255_v41 }
 0x153   :  { %25454 = vst [vmem:[#allocation57_spill] sm:$0xff] %v23431_v1 }
 0x157   :  { %2991 = vmatmul.mubr.bf16.gmra.mrb[60].mxu0 %v23413_v35 }
 0x158   :  { %3033 = vmatprep.mubr.bf16.mxu0 %v23257_v42 }
 0x159   :  { %2648 = vmatmul.mubr.bf16.vlgmr.msra.gmra.mrb[0].mxu1 %v23419_v48 }
 0x15a   :  { %3388 = vmatpush1.bf16.msra.mxu1 %v20772_v47  ;;  %2657 = vmatprep.mubr.bf16.mxu1 %v23267_v59  ;;  %v20781_v47 = vld [vmem:[#allocation7 + $0x68] ss:$16 sps:$4 sm:$0xff]  }
 0x15b   :  { %3389 = vmatprep.subr.bf16.mxu1 %v20777_v49  ;;  %v20786_v49 = vld [vmem:[#allocation7 + $0x8c] ss:$16 sps:$4 sm:$0xff]  }
 0x15e   :  { %3390 = vmatpush1.bf16.msra.mxu1 %v20775_v7  ;;  %v20828_v7 = vld [vmem:[#allocation7 + $0x884] ss:$16 sps:$4 sm:$0xff]  }
 0x15f   :  { %3034 = vmatmul.mubr.bf16.vlgmr.msra.gmra.mrb[0].mxu0 %v23267_v59  ;;  %3391 = vmatprep.subr.bf16.mxu1 %v20780_v8  ;;  %v20789_v8 = vld [vmem:[#allocation7 + $0xac] ss:$16 sps:$4 sm:$0xff]  }
 0x160   :  { %3043 = vmatprep.mubr.bf16.mxu0 %v23269_v60  ;;  %3195 = vmatpush1.bf16.msra.mxu0 %v20808_v53  ;;  %v20823_v53 = vld [vmem:[#allocation7 + $0x860] ss:$16 sps:$4 sm:$0xff]  }
 0x161   :  { %3196 = vmatprep.subr.bf16.mxu0 %v20816_v9  ;;  %2658 = vmatmul.mubr.bf16.gmra.mrb[4].mxu1 %v23425_v22  ;;  %v20826_v9 = vld [vmem:[#allocation7 + $0x880] ss:$16 sps:$4 sm:$0xff]  }
 0x162   :  { %2667 = vmatprep.mubr.bf16.mxu1 %v23279_v17  ;;  %3392 = vmatpush1.bf16.msra.mxu1 %v20778_v23  ;;  %v20787_v23 = vld [vmem:[#allocation7 + $0xa8] ss:$16 sps:$4 sm:$0xff]  }
 0x163   :  { %3393 = vmatprep.subr.bf16.mxu1 %v20783_v36  ;;  %v20790_v36 = vld [vmem:[#allocation7 + $0xc8] ss:$16 sps:$4 sm:$0xff]  }
 0x164   :  { %3197 = vmatpush1.bf16.msra.mxu0 %v20814_v21  ;;  %v363_v21 = vld [vmem:[#allocation2 + $0x4a] sm:$0xff] }
 0x165   :  { %3198 = vmatprep.subr.bf16.mxu0 %v20819_v25  ;;  %v20834_v25 = vld [vmem:[#allocation7 + $0x8a4] ss:$16 sps:$4 sm:$0xff]   ;;  %v23437_v15 = vpack.c.bf16 %v364_v45, %v363_v21  ;;  %v20798_v45 = vld [vmem:[#allocation7 + $0x10c] ss:$16 sps:$4 sm:$0xff]   ;;  %v20796_v21 = vld [vmem:[#allocation7 + $0x108] ss:$16 sps:$4 sm:$0xff]  }
 0x166   :  { %3394 = vmatpush1.bf16.msra.mxu1 %v20781_v47  ;;  %v20795_v47 = vld [vmem:[#allocation7 + $0xec] ss:$16 sps:$4 sm:$0xff]  }
 0x167   :  { %3044 = vmatmul.mubr.bf16.gmra.mrb[4].mxu0 %v23279_v17  ;;  %3395 = vmatprep.subr.bf16.mxu1 %v20786_v49  ;;  %25455 = vst [vmem:[#allocation58_spill] sm:$0xff] %v23437_v15  ;;  %v20835_v49 = vld [vmem:[#allocation7 + $0x8c0] ss:$16 sps:$4 sm:$0xff]  }
 0x168   :  { %3053 = vmatprep.mubr.bf16.mxu0 %v23281_v18  ;;  %3199 = vmatpush1.bf16.msra.mxu0 %v20817_v37  ;;  %v20837_v37 = vld [vmem:[#allocation7 + $0x8c4] ss:$16 sps:$4 sm:$0xff]  }
 0x169   :  { %3200 = vmatprep.subr.bf16.mxu0 %v20825_v29  ;;  %2668 = vmatmul.mubr.bf16.gmra.mrb[8].mxu1 %v23431_v1  ;;  %v20832_v29 = vld [vmem:[#allocation7 + $0x8a0] ss:$16 sps:$4 sm:$0xff]  }
 0x16a   :  { %2677 = vmatprep.mubr.bf16.mxu1 %v23293_v40  ;;  %3396 = vmatpush1.bf16.msra.mxu1 %v20784_v5  ;;  %v20793_v5 = vld [vmem:[#allocation7 + $0xe8] ss:$16 sps:$4 sm:$0xff]  }
 0x16b   :  { %3397 = vmatprep.subr.bf16.mxu1 %v20789_v8  ;;  %v20841_v8 = vld [vmem:[#allocation7 + $0x8e0] ss:$16 sps:$4 sm:$0xff]  }
 0x16c   :  { %3201 = vmatpush1.bf16.msra.mxu0 %v20823_v53  ;;  %v365_v53 = vld [vmem:[#allocation2 + $0x62] sm:$0xff] }
 0x16d   :  { %3202 = vmatprep.subr.bf16.mxu0 %v20828_v7  ;;  %v20843_v7 = vld [vmem:[#allocation7 + $0x8e4] ss:$16 sps:$4 sm:$0xff]  }
 0x16e   :  { %3398 = vmatpush1.bf16.msra.mxu1 %v20787_v23  ;;  %v20801_v23 = vld [vmem:[#allocation7 + $0x12c] ss:$16 sps:$4 sm:$0xff]  }
 0x16f   :  { %3054 = vmatmul.mubr.bf16.gmra.mrb[8].mxu0 %v23293_v40  ;;  %3399 = vmatprep.subr.bf16.mxu1 %v20792_v32  ;;  %v368_v32 = vld [vmem:[#allocation2 + $0x82] sm:$0xff] }
 0x170   :  { %3063 = vmatprep.mubr.bf16.mxu0 %v23295_v44  ;;  %3203 = vmatpush1.bf16.msra.mxu0 %v20826_v9  ;;  %v23443_v9 = vpack.c.bf16 %v366_v20, %v365_v53  ;;  %v370_v53 = vld [vmem:[#allocation2 + $0x9a] sm:$0xff] }
 0x171   :  { %3204 = vmatprep.subr.bf16.mxu0 %v20834_v25  ;;  %2678 = vmatmul.mubr.bf16.gmra.mrb[12].mxu1 %v23437_v15  ;;  %v367_v25 = vld [vmem:[#allocation2 + $0x7a] sm:$0xff] }
 0x172   :  { %2687 = vmatprep.mubr.bf16.mxu1 %v23305_v2  ;;  %3400 = vmatpush1.bf16.msra.mxu1 %v20790_v36  ;;  %25456 = vst [vmem:[#allocation59_spill] sm:$0xff] %v23443_v9  ;;  %v20804_v36 = vld [vmem:[#allocation7 + $0x14c] ss:$16 sps:$4 sm:$0xff]   ;;  %v23449_v20 = vpack.c.bf16 %v368_v32, %v367_v25 }
 0x173   :  { %3401 = vmatprep.subr.bf16.mxu1 %v20795_v47  ;;  %v20807_v47 = vld [vmem:[#allocation7 + $0x16c] ss:$16 sps:$4 sm:$0xff]  }
 0x174   :  { %3205 = vmatpush1.bf16.msra.mxu0 %v20832_v29  ;;  %v20799_v29 = vld [vmem:[#allocation7 + $0x128] ss:$16 sps:$4 sm:$0xff]   ;;  %25457 = vst [vmem:[#allocation60_spill] sm:$0xff] %v23449_v20 }
 0x175   :  { %3206 = vmatprep.subr.bf16.mxu0 %v20837_v37  ;;  %v20802_v37 = vld [vmem:[#allocation7 + $0x148] ss:$16 sps:$4 sm:$0xff]  }
 0x176   :  { %3402 = vmatpush1.bf16.msra.mxu1 %v20793_v5  ;;  %v562_v5 = vld [vmem:[#allocation2 + $0xc0] sm:$0xff] }
 0x177   :  { %3064 = vmatmul.mubr.bf16.gmra.mrb[12].mxu0 %v23305_v2  ;;  %3403 = vmatprep.subr.bf16.mxu1 %v20798_v45  ;;  %v612_v45 = vld [vmem:[#allocation2 + $0xd9] sm:$0xff] }
 0x178   :  { %3073 = vmatprep.mubr.bf16.mxu0 %v23307_v3  ;;  %3207 = vmatpush1.bf16.msra.mxu0 %v20835_v49  ;;  %v369_v49 = vld [vmem:[#allocation2 + $0x92] sm:$0xff] }
 0x179   :  { %3208 = vmatprep.subr.bf16.mxu0 %v20843_v7  ;;  %2688 = vmatmul.mubr.bf16.gmra.mrb[16].mxu1 %v23443_v9  ;;  %v563_v7 = vld [vmem:[#allocation2 + $0xc8] sm:$0xff]  ;;  %v23455_v25 = vpack.c.bf16 %v370_v53, %v369_v49  ;;  %v22708_v49 = vld [vmem:[#allocation2] sm:$0xff] }
 0x17a   :  { %2697 = vmatprep.mubr.bf16.mxu1 %v23317_v26  ;;  %3404 = vmatpush1.bf16.msra.mxu1 %v20796_v21  ;;  %v20805_v21 = vld [vmem:[#allocation7 + $0x168] ss:$16 sps:$4 sm:$0xff]   ;;  %v23457_v32 = vpack.c.bf16 %v563_v7, %v562_v5  ;;  %v23465_v53 = vpack.c.bf16 %v22708_v49, %v22708_v49  ;;  %v20840_v7 = vld [vmem:[#allocation7 + $0x1ec] ss:$16 sps:$4 sm:$0xff]  }
 0x17b   :  { %3405 = vmatprep.subr.bf16.mxu1 %v20801_v23  ;;  %v20813_v23 = vld [vmem:[#allocation7 + $0x18c] ss:$16 sps:$4 sm:$0xff]   ;;  %25458 = vst [vmem:[#allocation61_spill] sm:$0xff] %v23455_v25  ;;  %v20829_v5 = vld [vmem:[#allocation7 + $0x1c8] ss:$16 sps:$4 sm:$0xff]  }
 0x17c   :  { %3209 = vmatpush1.bf16.msra.mxu0 %v20841_v8  ;;  %v613_v8 = vld [vmem:[#allocation2 + $0xe1] sm:$0xff]  ;;  %25459 = vst [vmem:[#allocation62_spill] sm:$0xff] %v23457_v32  ;;  %25461 = vst [vmem:[#allocation64_spill] sm:$0xff] %v23465_v53  ;;  %v629_v49 = vld [vmem:[#allocation2 + $0x1d1] sm:$0xff] }
 0x17e   :  { %3406 = vmatpush1.bf16.msra.mxu1 %v20799_v29  ;;  %v20811_v29 = vld [vmem:[#allocation7 + $0x188] ss:$16 sps:$4 sm:$0xff]  }
 0x17f   :  { %3074 = vmatmul.mubr.bf16.gmra.mrb[16].mxu0 %v23317_v26  ;;  %3407 = vmatprep.subr.bf16.mxu1 %v20804_v36  ;;  %v23459_v36 = vpack.c.bf16 %v613_v8, %v612_v45  ;;  %v373_v45 = vld [vmem:[#allocation2 + $0xf2] sm:$0xff]  ;;  %v374_v8 = vld [vmem:[#allocation2 + $0xfa] sm:$0xff] }
 0x180   :  { %3083 = vmatprep.mubr.bf16.mxu0 %v23319_v27 }
 0x181   :  { %2698 = vmatmul.mubr.bf16.gmra.mrb[20].mxu1 %v23449_v20  ;;  %25460 = vst [vmem:[#allocation63_spill] sm:$0xff] %v23459_v36 }
 0x182   :  { %2707 = vmatprep.mubr.bf16.mxu1 %v23329_v56  ;;  %3408 = vmatpush1.bf16.msra.mxu1 %v20802_v37  ;;  %v20820_v37 = vld [vmem:[#allocation7 + $0x1a8] ss:$16 sps:$4 sm:$0xff]  }
 0x183   :  { %3409 = vmatprep.subr.bf16.mxu1 %v20807_v47  ;;  %v20831_v47 = vld [vmem:[#allocation7 + $0x1cc] ss:$16 sps:$4 sm:$0xff]  }
 0x186   :  { %3410 = vmatpush1.bf16.msra.mxu1 %v20805_v21  ;;  %v20838_v21 = vld [vmem:[#allocation7 + $0x1e8] ss:$16 sps:$4 sm:$0xff]  }
 0x187   :  { %3084 = vmatmul.mubr.bf16.gmra.mrb[20].mxu0 %v23329_v56  ;;  %3411 = vmatprep.subr.bf16.mxu1 %v20813_v23  ;;  %v20846_v23 = vld [vmem:[#allocation7 + $0x20c] ss:$16 sps:$4 sm:$0xff]  }
 0x188   :  { %3093 = vmatprep.mubr.bf16.mxu0 %v23331_v57  ;;  %v20877_v57 = vld [vmem:[#allocation7 + $0x368] ss:$16 sps:$4 sm:$0xff]  }
 0x189   :  { %2708 = vmatmul.mubr.bf16.gmra.mrb[24].mxu1 %v23455_v25 }
 0x18a   :  { %2717 = vmatprep.mubr.bf16.mxu1 %v23457_v32  ;;  %3412 = vmatpush1.bf16.msra.mxu1 %v20811_v29  ;;  %v578_v29 = vld [vmem:[#allocation2 + $0x1b0] sm:$0xff] }
 0x18b   :  { %3413 = vmatprep.subr.bf16.mxu1 %v20822_v62  ;;  %v23471_v62 = vpack.c.bf16 %v374_v8, %v373_v45  ;;  %v25390_v45 = vmov 0   ;;  %v20844_v8 = vld [vmem:[#allocation7 + $0x208] ss:$16 sps:$4 sm:$0xff]  }
 0x18e   :  { %3414 = vmatpush1.bf16.msra.mxu1 %v20820_v37  ;;  %v579_v37 = vld [vmem:[#allocation2 + $0x1b8] sm:$0xff] }
 0x18f   :  { %3094 = vmatmul.mubr.bf16.gmra.mrb[24].mxu0 %v23457_v32  ;;  %3415 = vmatprep.subr.bf16.mxu1 %v20831_v47  ;;  %v628_v47 = vld [vmem:[#allocation2 + $0x1c9] sm:$0xff] }
 0x190   :  { %3103 = vmatprep.mubr.bf16.mxu0 %v23459_v36  ;;  %v20867_v36 = vld [vmem:[#allocation7 + $0x2ec] ss:$16 sps:$4 sm:$0xff]  }
 0x191   :  { %2718 = vmatmul.mubr.bf16.gmra.mrb[28].mxu1 %v23309_v4 }
 0x192   :  { %2727 = vmatprep.mubr.bf16.mxu1 %v23351_v38  ;;  %3416 = vmatpush1.bf16.msra.mxu1 %v20829_v5  ;;  %v23497_v5 = vpack.c.bf16 %v579_v37, %v578_v29  ;;  %v20847_v29 = vld [vmem:[#allocation7 + $0x228] ss:$16 sps:$4 sm:$0xff]   ;;  %v20852_v37 = vld [vmem:[#allocation7 + $0x24c] ss:$16 sps:$4 sm:$0xff]  }
 0x193   :  { %3417 = vmatprep.subr.bf16.mxu1 %v20840_v7  ;;  %v23499_v7 = vpack.c.bf16 %v629_v49, %v628_v47  ;;  %v20850_v47 = vld [vmem:[#allocation7 + $0x248] ss:$16 sps:$4 sm:$0xff]   ;;  %v20855_v49 = vld [vmem:[#allocation7 + $0x26c] ss:$16 sps:$4 sm:$0xff]  }
 0x195   :  { %25462 = vst [vmem:[#allocation65_spill] sm:$0xff] %v23499_v7 }
 0x196   :  { %3418 = vmatpush1.bf16.msra.mxu1 %v20838_v21  ;;  %v20849_v21 = vld [vmem:[#allocation7 + $0x22c] ss:$16 sps:$4 sm:$0xff]  }
 0x197   :  { %3104 = vmatmul.mubr.bf16.gmra.mrb[28].mxu0 %v23465_v53  ;;  %3580 = vmatprep.subr.bf16.mxu1 %v20846_v23  ;;  %v25463_v23 = vmov 0.0|0.0  }
 0x198   :  { %3113 = vmatprep.mubr.bf16.mxu0 %v23353_v39 }
 0x199   :  { %2728 = vmatmul.mubr.bf16.gmra.mrb[32].mxu1 %v23471_v62 }
 0x19a   :  { %2737 = vmatprep.mubr.bf16.mxu1 %v23361_v55 }
 0x19f   :  { %3114 = vmatmul.mubr.bf16.gmra.mrb[32].mxu0 %v23361_v55 }
 0x1a0   :  { %3123 = vmatprep.mubr.bf16.mxu0 %v23363_v63 }
 0x1a1   :  { %2738 = vmatmul.mubr.bf16.gmra.mrb[36].mxu1 %v23335_v61 }
 0x1a2   :  { %2747 = vmatprep.mubr.bf16.mxu1 %v23371_v11 }
 0x1a7   :  { %3124 = vmatmul.mubr.bf16.gmra.mrb[36].mxu0 %v23371_v11 }
 0x1a8   :  { %3133 = vmatprep.mubr.bf16.mxu0 %v23373_v12 }
 0x1a9   :  { %2748 = vmatmul.mubr.bf16.gmra.mrb[40].mxu1 %v23345_v19 }
 0x1aa   :  { %2757 = vmatprep.mubr.bf16.mxu1 %v23381_v30 }
 0x1af   :  { %3134 = vmatmul.mubr.bf16.gmra.mrb[40].mxu0 %v23381_v30 }
 0x1b0   :  { %3143 = vmatprep.mubr.bf16.mxu0 %v23383_v31 }
 0x1b1   :  { %2758 = vmatmul.mubr.bf16.gmra.mrb[44].mxu1 %v23355_v46 }
 0x1b2   :  { %2767 = vmatprep.mubr.bf16.mxu1 %v23391_v50 }
 0x1b7   :  { %3144 = vmatmul.mubr.bf16.gmra.mrb[44].mxu0 %v23391_v50 }
 0x1b8   :  { %3153 = vmatprep.mubr.bf16.mxu0 %v23393_v51 }
 0x1b9   :  { %2768 = vmatmul.mubr.bf16.gmra.mrb[48].mxu1 %v23365_v0 }
 0x1ba   :  { %2777 = vmatprep.mubr.bf16.mxu1 %v23401_v10 }
 0x1bf   :  { %3154 = vmatmul.mubr.bf16.gmra.mrb[48].mxu0 %v23401_v10 }
 0x1c0   :  { %3163 = vmatprep.mubr.bf16.mxu0 %v23403_v14 }
 0x1c1   :  { %2778 = vmatmul.mubr.bf16.gmra.mrb[52].mxu1 %v23375_v13 }
 0x1c2   :  { %2787 = vmatprep.mubr.bf16.mxu1 %v23411_v34 }
 0x1c7   :  { %3164 = vmatmul.mubr.bf16.gmra.mrb[52].mxu0 %v23411_v34 }
 0x1c8   :  { %3173 = vmatprep.mubr.bf16.mxu0 %v23413_v35  ;;  %v20879_v35 = vld [vmem:[#allocation7 + $0x36c] ss:$16 sps:$4 sm:$0xff]  }
 0x1c9   :  { %2788 = vmatmul.mubr.bf16.gmra.mrb[56].mxu1 %v23385_v33 }
 0x1ca   :  { %2797 = vmatprep.mubr.bf16.mxu1 %v23497_v5 }
 0x1cf   :  { %3174 = vmatmul.mubr.bf16.gmra.mrb[56].mxu0 %v23497_v5 }
 0x1d0   :  { %3183 = vmatprep.mubr.bf16.mxu0 %v23499_v7  ;;  %v20858_v7 = vld [vmem:[#allocation7 + $0x28c] ss:$16 sps:$4 sm:$0xff]  }
 0x1d1   :  { %2798 = vmatmul.mubr.bf16.gmra.mrb[60].mxu1 %v23395_v52 }
 0x1d2   :  { %3419 = vmatprep.mubr.bf16.mxu1 %v23225_v54  ;;  %v20853_v54 = vld [vmem:[#allocation7 + $0x268] ss:$16 sps:$4 sm:$0xff]  }
 0x1d7   :  { %3184 = vmatmul.mubr.bf16.gmra.mrb[60].mxu0 %v23465_v53  ;;  %v20861_v53 = vld [vmem:[#allocation7 + $0x2ac] ss:$16 sps:$4 sm:$0xff]  }
 0x1d8   :  { %3226 = vmatprep.mubr.bf16.mxu0 %v25390_v45 }
 0x1d9   :  { %3420 = vmatmul.mubr.bf16.vlgmr.msra.gmra.mrb[64].mxu1 %v25463_v23 }
 0x1da   :  { %3581 = vmatpush1.bf16.msra.mxu1 %v20844_v8  ;;  %3429 = vmatprep.mubr.bf16.mxu1 %v23243_v24  ;;  %v20856_v8 = vld [vmem:[#allocation7 + $0x288] ss:$16 sps:$4 sm:$0xff]   ;;  %v20903_v24 = vld [vmem:[#allocation7 + $0x46c] ss:$16 sps:$4 sm:$0xff]  }
 0x1db   :  { %3582 = vmatprep.subr.bf16.mxu1 %v20849_v21  ;;  %v20859_v21 = vld [vmem:[#allocation7 + $0x2a8] ss:$16 sps:$4 sm:$0xff]  }
 0x1de   :  { %3583 = vmatpush1.bf16.msra.mxu1 %v20847_v29  ;;  %v20864_v29 = vld [vmem:[#allocation7 + $0x2cc] ss:$16 sps:$4 sm:$0xff]  }
 0x1df   :  { %3227 = vmatmul.mubr.bf16.vlgmr.msra.gmra.mrb[0].mxu0 %v23431_v1  ;;  %3584 = vmatprep.subr.bf16.mxu1 %v20852_v37  ;;  %v20862_v37 = vld [vmem:[#allocation7 + $0x2c8] ss:$16 sps:$4 sm:$0xff]  }
 0x1e0   :  { %3236 = vmatprep.mubr.bf16.mxu0 %v25390_v45 }
 0x1e1   :  { %3430 = vmatmul.mubr.bf16.gmra.mrb[68].mxu1 %v23255_v41 }
 0x1e2   :  { %3439 = vmatprep.mubr.bf16.mxu1 %v23257_v42  ;;  %3585 = vmatpush1.bf16.msra.mxu1 %v20850_v47  ;;  %v20870_v47 = vld [vmem:[#allocation7 + $0x30c] ss:$16 sps:$4 sm:$0xff]  }
 0x1e3   :  { %3586 = vmatprep.subr.bf16.mxu1 %v20855_v49  ;;  %v20868_v49 = vld [vmem:[#allocation7 + $0x308] ss:$16 sps:$4 sm:$0xff]   ;;  %v20900_v42 = vld [vmem:[#allocation7 + $0x44c] ss:$16 sps:$4 sm:$0xff]  }
 0x1e6   :  { %3587 = vmatpush1.bf16.msra.mxu1 %v20853_v54  ;;  %v20873_v54 = vld [vmem:[#allocation7 + $0x32c] ss:$16 sps:$4 sm:$0xff]  }
 0x1e7   :  { %3237 = vmatmul.mubr.bf16.gmra.mrb[4].mxu0 %v23437_v15  ;;  %3588 = vmatprep.subr.bf16.mxu1 %v20858_v7  ;;  %v20865_v7 = vld [vmem:[#allocation7 + $0x2e8] ss:$16 sps:$4 sm:$0xff]  }
 0x1e8   :  { %3246 = vmatprep.mubr.bf16.mxu0 %v25390_v45 }
 0x1e9   :  { %3440 = vmatmul.mubr.bf16.gmra.mrb[72].mxu1 %v23267_v59 }
 0x1ea   :  { %3449 = vmatprep.mubr.bf16.mxu1 %v23269_v60  ;;  %3589 = vmatpush1.bf16.msra.mxu1 %v20856_v8  ;;  %v657_v8 = vld [vmem:[#allocation2 + $0xb2] sm:$0xff]  ;;  %v20897_v60 = vld [vmem:[#allocation7 + $0x42c] ss:$16 sps:$4 sm:$0xff]  }
 0x1eb   :  { %3590 = vmatprep.subr.bf16.mxu1 %v20861_v53  ;;  %v656_v53 = vld [vmem:[#allocation2 + $0xaa] sm:$0xff] }
 0x1ee   :  { %3591 = vmatpush1.bf16.msra.mxu1 %v20859_v21  ;;  %v20871_v21 = vld [vmem:[#allocation7 + $0x328] ss:$16 sps:$4 sm:$0xff]  }
 0x1ef   :  { %3247 = vmatmul.mubr.bf16.gmra.mrb[8].mxu0 %v23443_v9  ;;  %3592 = vmatprep.subr.bf16.mxu1 %v20864_v29  ;;  %v20876_v29 = vld [vmem:[#allocation7 + $0x34c] ss:$16 sps:$4 sm:$0xff]  }
 0x1f0   :  { %3256 = vmatprep.mubr.bf16.mxu0 %v25390_v45 }
 0x1f1   :  { %3450 = vmatmul.mubr.bf16.gmra.mrb[76].mxu1 %v23279_v17 }
 0x1f2   :  { %3459 = vmatprep.mubr.bf16.mxu1 %v23281_v18  ;;  %3593 = vmatpush1.bf16.msra.mxu1 %v20862_v37  ;;  %v23529_v37 = vpack.c.bf16 %v657_v8, %v656_v53  ;;  %v20885_v53 = vld [vmem:[#allocation7 + $0x3ac] ss:$16 sps:$4 sm:$0xff]  }
 0x1f3   :  { %3594 = vmatprep.subr.bf16.mxu1 %v20867_v36  ;;  %v20874_v36 = vld [vmem:[#allocation7 + $0x348] ss:$16 sps:$4 sm:$0xff]  }
 0x1f4   :  { %25464 = vst [vmem:[#allocation66_spill] sm:$0xff] %v23529_v37  ;;  %v660_v8 = vld [vmem:[#allocation2 + $0xda] sm:$0xff] }
 0x1f6   :  { %3595 = vmatpush1.bf16.msra.mxu1 %v20865_v7  ;;  %v658_v7 = vld [vmem:[#allocation2 + $0xc2] sm:$0xff] }
 0x1f7   :  { %3257 = vmatmul.mubr.bf16.gmra.mrb[12].mxu0 %v23449_v20  ;;  %3596 = vmatprep.subr.bf16.mxu1 %v20870_v47  ;;  %v659_v47 = vld [vmem:[#allocation2 + $0xca] sm:$0xff] }
 0x1f8   :  { %3266 = vmatprep.mubr.bf16.mxu0 %v25390_v45 }
 0x1f9   :  { %3460 = vmatmul.mubr.bf16.gmra.mrb[80].mxu1 %v23293_v40 }
 0x1fa   :  { %3469 = vmatprep.mubr.bf16.mxu1 %v23295_v44  ;;  %3597 = vmatpush1.bf16.msra.mxu1 %v20868_v49  ;;  %v20882_v44 = vld [vmem:[#allocation7 + $0x38c] ss:$16 sps:$4 sm:$0xff]   ;;  %v23535_v49 = vpack.c.bf16 %v659_v47, %v658_v7  ;;  %v20889_v47 = vld [vmem:[#allocation7 + $0x3e8] ss:$16 sps:$4 sm:$0xff]  }
 0x1fb   :  { %3598 = vmatprep.subr.bf16.mxu1 %v20873_v54  ;;  %v20880_v54 = vld [vmem:[#allocation7 + $0x388] ss:$16 sps:$4 sm:$0xff]   ;;  %v20891_v7 = vld [vmem:[#allocation7 + $0x3ec] ss:$16 sps:$4 sm:$0xff]  }
 0x1fc   :  { %25465 = vst [vmem:[#allocation67_spill] sm:$0xff] %v23535_v49 }
 0x1fe   :  { %3599 = vmatpush1.bf16.msra.mxu1 %v20871_v21  ;;  %v661_v21 = vld [vmem:[#allocation2 + $0xe2] sm:$0xff] }
 0x1ff   :  { %3267 = vmatmul.mubr.bf16.gmra.mrb[16].mxu0 %v23455_v25  ;;  %3600 = vmatprep.subr.bf16.mxu1 %v20876_v29  ;;  %v20883_v29 = vld [vmem:[#allocation7 + $0x3a8] ss:$16 sps:$4 sm:$0xff]  }
 0x200   :  { %3276 = vmatprep.mubr.bf16.mxu0 %v25390_v45 }
 0x201   :  { %3470 = vmatmul.mubr.bf16.gmra.mrb[84].mxu1 %v23305_v2 }
 0x202   :  { %3479 = vmatprep.mubr.bf16.mxu1 %v23307_v3  ;;  %3601 = vmatpush1.bf16.msra.mxu1 %v20874_v36  ;;  %v20886_v36 = vld [vmem:[#allocation7 + $0x3c8] ss:$16 sps:$4 sm:$0xff]  }
 0x203   :  { %3602 = vmatprep.subr.bf16.mxu1 %v20879_v35  ;;  %v23541_v35 = vpack.c.bf16 %v661_v21, %v660_v8  ;;  %v667_v21 = vld [vmem:[#allocation2 + $0x15a] sm:$0xff] }
 0x205   :  { %25466 = vst [vmem:[#allocation68_spill] sm:$0xff] %v23541_v35 }
 0x206   :  { %3603 = vmatpush1.bf16.msra.mxu1 %v20877_v57  ;;  %v662_v57 = vld [vmem:[#allocation2 + $0x122] sm:$0xff] }
 0x207   :  { %3277 = vmatmul.mubr.bf16.gmra.mrb[20].mxu0 %v23529_v37  ;;  %3604 = vmatprep.subr.bf16.mxu1 %v20882_v44  ;;  %v20888_v37 = vld [vmem:[#allocation7 + $0x3cc] ss:$16 sps:$4 sm:$0xff]  }
 0x208   :  { %3286 = vmatprep.mubr.bf16.mxu0 %v25390_v45  ;;  %v663_v44 = vld [vmem:[#allocation2 + $0x12a] sm:$0xff] }
 0x209   :  { %3480 = vmatmul.mubr.bf16.gmra.mrb[88].mxu1 %v23317_v26 }
 0x20a   :  { %3489 = vmatprep.mubr.bf16.mxu1 %v23319_v27  ;;  %3605 = vmatpush1.bf16.msra.mxu1 %v20880_v54  ;;  %v23547_v54 = vpack.c.bf16 %v663_v44, %v662_v57  ;;  %v677_v27 = vld [vmem:[#allocation2 + $0x1d2] sm:$0xff] }
 0x20b   :  { %3606 = vmatprep.subr.bf16.mxu1 %v20885_v53  ;;  %v665_v53 = vld [vmem:[#allocation2 + $0x142] sm:$0xff] }
 0x20c   :  { %25467 = vst [vmem:[#allocation69_spill] sm:$0xff] %v23547_v54 }
 0x20e   :  { %3607 = vmatpush1.bf16.msra.mxu1 %v20883_v29  ;;  %v669_v29 = vld [vmem:[#allocation2 + $0x172] sm:$0xff] }
 0x20f   :  { %3287 = vmatmul.mubr.bf16.gmra.mrb[24].mxu0 %v23535_v49  ;;  %3608 = vmatprep.subr.bf16.mxu1 %v20888_v37  ;;  %v20894_v49 = vld [vmem:[#allocation7 + $0x40c] ss:$16 sps:$4 sm:$0xff]  }
 0x210   :  { %3296 = vmatprep.mubr.bf16.mxu0 %v25390_v45  ;;  %v664_v37 = vld [vmem:[#allocation2 + $0x13a] sm:$0xff] }
 0x211   :  { %3490 = vmatmul.mubr.bf16.gmra.mrb[92].mxu1 %v23329_v56  ;;  %v23553_v8 = vpack.c.bf16 %v665_v53, %v664_v37  ;;  %v670_v37 = vld [vmem:[#allocation2 + $0x182] sm:$0xff]  ;;  %v671_v53 = vld [vmem:[#allocation2 + $0x18a] sm:$0xff] }
 0x212   :  { %3499 = vmatprep.mubr.bf16.mxu1 %v23333_v58  ;;  %3609 = vmatpush1.bf16.msra.mxu1 %v20886_v36  ;;  %v666_v58 = vld [vmem:[#allocation2 + $0x152] sm:$0xff] }
 0x213   :  { %3610 = vmatprep.subr.bf16.mxu1 %v20891_v7  ;;  %25468 = vst [vmem:[#allocation70_spill] sm:$0xff] %v23553_v8 }
 0x216   :  { %3611 = vmatpush1.bf16.msra.mxu1 %v20889_v47 }
 0x217   :  { %3297 = vmatmul.mubr.bf16.gmra.mrb[28].mxu0 %v23541_v35  ;;  %3773 = vmatprep.subr.bf16.mxu1 %v20894_v49  ;;  %v23559_v49 = vpack.c.bf16 %v667_v21, %v666_v58 }
 0x218   :  { %3306 = vmatprep.mubr.bf16.mxu0 %v25390_v45 }
 0x219   :  { %3500 = vmatmul.mubr.bf16.gmra.mrb[96].mxu1 %v25463_v23  ;;  %25469 = vst [vmem:[#allocation71_spill] sm:$0xff] %v23559_v49  ;;  %v668_v23 = vld [vmem:[#allocation2 + $0x16a] sm:$0xff] }
 0x21a   :  { %3509 = vmatprep.mubr.bf16.mxu1 %v23343_v16  ;;  %v23569_v57 = vpack.c.bf16 %v669_v29, %v668_v23  ;;  %v23583_v23 = vpack.c.bf16 %v671_v53, %v670_v37 }
 0x21c   :  { %25470 = vst [vmem:[#allocation72_spill] sm:$0xff] %v23569_v57  ;;  %25471 = vst [vmem:[#allocation73_spill] sm:$0xff] %v23583_v23 }
 0x21f   :  { %3307 = vmatmul.mubr.bf16.gmra.mrb[32].mxu0 %v23547_v54 }
 0x220   :  { %3316 = vmatprep.mubr.bf16.mxu0 %v25390_v45 }
 0x221   :  { %3510 = vmatmul.mubr.bf16.gmra.mrb[100].mxu1 %v23351_v38 }
 0x222   :  { %3519 = vmatprep.mubr.bf16.mxu1 %v23353_v39 }
 0x227   :  { %3317 = vmatmul.mubr.bf16.gmra.mrb[36].mxu0 %v23553_v8  ;;  %v673_v8 = vld [vmem:[#allocation2 + $0x1a2] sm:$0xff] }
 0x228   :  { %3326 = vmatprep.mubr.bf16.mxu0 %v25390_v45 }
 0x229   :  { %3520 = vmatmul.mubr.bf16.gmra.mrb[104].mxu1 %v23361_v55 }
 0x22a   :  { %3529 = vmatprep.mubr.bf16.mxu1 %v23363_v63  ;;  %v675_v63 = vld [vmem:[#allocation2 + $0x1ba] sm:$0xff] }
 0x22c   :  { %v23565_v36 = vpop.f32.mrb[0].mxu1 }
 0x22d   :  { %v23567_v7 = vpop.f32.mrb[1].mxu1 }
 0x22e   :  { %v23571_v44 = vpop.f32.mrb[2].mxu1 }
 0x22f   :  { %3327 = vmatmul.mubr.bf16.gmra.mrb[40].mxu0 %v23559_v49  ;;  %v23573_v47 = vpop.f32.mrb[3].mxu1 }
 0x230   :  { %3336 = vmatprep.mubr.bf16.mxu0 %v25390_v45 }
 0x231   :  { %3530 = vmatmul.mubr.bf16.gmra.mrb[108].mxu1 %v23371_v11 }
 0x232   :  { %3539 = vmatprep.mubr.bf16.mxu1 %v23373_v12 }
 0x234   :  { %v23579_v58 = vpop.f32.mrb[4].mxu1 }
 0x235   :  { %v23581_v21 = vpop.f32.mrb[5].mxu1 }
 0x236   :  { %v23585_v29 = vpop.f32.mrb[6].mxu1 }
 0x237   :  { %3337 = vmatmul.mubr.bf16.gmra.mrb[44].mxu0 %v23569_v57  ;;  %v23587_v49 = vpop.f32.mrb[7].mxu1  ;;  %v672_v57 = vld [vmem:[#allocation2 + $0x19a] sm:$0xff] }
 0x238   :  { %3346 = vmatprep.mubr.bf16.mxu0 %v25390_v45  ;;  %v23597_v37 = vpack.c.bf16 %v673_v8, %v672_v57 }
 0x239   :  { %3540 = vmatmul.mubr.bf16.gmra.mrb[112].mxu1 %v23381_v30 }
 0x23a   :  { %3549 = vmatprep.mubr.bf16.mxu1 %v23383_v31  ;;  %25472 = vst [vmem:[#allocation74_spill] sm:$0xff] %v23597_v37 }
 0x23c   :  { %v23593_v54 = vpop.f32.mrb[8].mxu1 }
 0x23d   :  { %v23595_v35 = vpop.f32.mrb[9].mxu1 }
 0x23e   :  { %v23599_v53 = vpop.f32.mrb[10].mxu1 }
 0x23f   :  { %3347 = vmatmul.mubr.bf16.gmra.mrb[48].mxu0 %v23583_v23  ;;  %v23601_v12 = vpop.f32.mrb[11].mxu1  ;;  %v674_v23 = vld [vmem:[#allocation2 + $0x1b2] sm:$0xff] }
 0x240   :  { %3356 = vmatprep.mubr.bf16.mxu0 %v25390_v45  ;;  %v23611_v8 = vpack.c.bf16 %v675_v63, %v674_v23 }
 0x241   :  { %3550 = vmatmul.mubr.bf16.gmra.mrb[116].mxu1 %v23391_v50 }
 0x242   :  { %3559 = vmatprep.mubr.bf16.mxu1 %v23393_v51  ;;  %25473 = vst [vmem:[#allocation75_spill] sm:$0xff] %v23611_v8 }
 0x244   :  { %v23607_v31 = vpop.f32.mrb[12].mxu1 }
 0x245   :  { %v23609_v39 = vpop.f32.mrb[13].mxu1 }
 0x246   :  { %v23613_v57 = vpop.f32.mrb[14].mxu1 }
 0x247   :  { %3357 = vmatmul.mubr.bf16.gmra.mrb[52].mxu0 %v23597_v37  ;;  %v23615_v16 = vpop.f32.mrb[15].mxu1  ;;  %v676_v37 = vld [vmem:[#allocation2 + $0x1ca] sm:$0xff] }
 0x248   :  { %3366 = vmatprep.mubr.bf16.mxu0 %v25390_v45  ;;  %v23625_v63 = vpack.c.bf16 %v677_v27, %v676_v37  ;;  %v20895_v37 = vld [vmem:[#allocation7 + $0x428] ss:$16 sps:$4 sm:$0xff]  }
 0x249   :  { %3560 = vmatmul.mubr.bf16.gmra.mrb[120].mxu1 %v23401_v10 }
 0x24a   :  { %3569 = vmatprep.mubr.bf16.mxu1 %v23403_v14  ;;  %25474 = vst [vmem:[#allocation76_spill] sm:$0xff] %v23625_v63 }
 0x24c   :  { %v23621_v51 = vpop.f32.mrb[16].mxu1 }
 0x24d   :  { %v23623_v3 = vpop.f32.mrb[17].mxu1 }
 0x24e   :  { %v23627_v23 = vpop.f32.mrb[18].mxu1 }
 0x24f   :  { %3367 = vmatmul.mubr.bf16.gmra.mrb[56].mxu0 %v23611_v8  ;;  %v23629_v18 = vpop.f32.mrb[19].mxu1 }
 0x250   :  { %3376 = vmatprep.mubr.bf16.mxu0 %v25390_v45  ;;  %v20892_v45 = vld [vmem:[#allocation7 + $0x408] ss:$16 sps:$4 sm:$0xff]  }
 0x251   :  { %3570 = vmatmul.mubr.bf16.gmra.mrb[124].mxu1 %v23411_v34 }
 0x252   :  { %3612 = vmatprep.mubr.bf16.mxu1 %v23255_v41  ;;  %v20898_v41 = vld [vmem:[#allocation7 + $0x448] ss:$16 sps:$4 sm:$0xff]  }
 0x254   :  { %v23634_v8 = vpop.f32.mrb[20].mxu1 }
 0x255   :  { %v23636_v14 = vpop.f32.mrb[21].mxu1 }
 0x256   :  { %25475 = vst [vmem:[#allocation77_spill] sm:$0xff] %v23636_v14  ;;  %v23638_v43 = vpop.f32.mrb[22].mxu1 }
 0x257   :  { %3377 = vmatmul.mubr.bf16.gmra.mrb[60].mxu0 %v23625_v63  ;;  %25476 = vst [vmem:[#allocation78_spill] sm:$0xff] %v23638_v43  ;;  %v23640_v27 = vpop.f32.mrb[23].mxu1 }
 0x258   :  { %25477 = vst [vmem:[#allocation79_spill] sm:$0xff] %v23640_v27  ;;  %v20906_v27 = vld [vmem:[#allocation7 + $0x48c] ss:$16 sps:$4 sm:$0xff]  }
 0x259   :  { %3613 = vmatmul.mubr.bf16.vlgmr.msra.gmra.mrb[64].mxu1 %v23419_v48  ;;  %v20901_v48 = vld [vmem:[#allocation7 + $0x468] ss:$16 sps:$4 sm:$0xff]  }
 0x25a   :  { %3774 = vmatpush1.bf16.msra.mxu1 %v20892_v45  ;;  %3622 = vmatprep.mubr.bf16.mxu1 %v23267_v59  ;;  %v20904_v45 = vld [vmem:[#allocation7 + $0x488] ss:$16 sps:$4 sm:$0xff]  }
 0x25b   :  { %3775 = vmatprep.subr.bf16.mxu1 %v20897_v60 }
 0x25c   :  { %v23644_v63 = vpop.f32.mrb[24].mxu1 }
 0x25d   :  { %25478 = vst [vmem:[#allocation80_spill] sm:$0xff] %v23644_v63  ;;  %v23646_v28 = vpop.f32.mrb[25].mxu1 }
 0x25e   :  { %25479 = vst [vmem:[#allocation81_spill] sm:$0xff] %v23646_v28  ;;  %v23648_v14 = vpop.f32.mrb[26].mxu1  ;;  %3776 = vmatpush1.bf16.msra.mxu1 %v20895_v37  ;;  %v20909_v28 = vld [vmem:[#allocation7 + $0x4ac] ss:$16 sps:$4 sm:$0xff]  }
 0x25f   :  { %v23650_v43 = vpop.f32.mrb[27].mxu1  ;;  %3777 = vmatprep.subr.bf16.mxu1 %v20900_v42  ;;  %v20907_v42 = vld [vmem:[#allocation7 + $0x4a8] ss:$16 sps:$4 sm:$0xff]  }
 0x261   :  { %3623 = vmatmul.mubr.bf16.gmra.mrb[68].mxu1 %v23425_v22  ;;  %v20912_v22 = vld [vmem:[#allocation7 + $0x4cc] ss:$16 sps:$4 sm:$0xff]  }
 0x262   :  { %3632 = vmatprep.mubr.bf16.mxu1 %v23279_v17  ;;  %3778 = vmatpush1.bf16.msra.mxu1 %v20898_v41  ;;  %v20910_v41 = vld [vmem:[#allocation7 + $0x4c8] ss:$16 sps:$4 sm:$0xff]  }
 0x263   :  { %3779 = vmatprep.subr.bf16.mxu1 %v20903_v24 }
 0x264   :  { %v23654_v60 = vpop.f32.mrb[28].mxu1 }
 0x265   :  { %25480 = vst [vmem:[#allocation82_spill] sm:$0xff] %v23654_v60  ;;  %v23656_v59 = vpop.f32.mrb[29].mxu1 }
 0x266   :  { %25481 = vst [vmem:[#allocation83_spill] sm:$0xff] %v23656_v59  ;;  %v23658_v63 = vpop.f32.mrb[30].mxu1  ;;  %3780 = vmatpush1.bf16.msra.mxu1 %v20901_v48  ;;  %v20915_v59 = vld [vmem:[#allocation7 + $0x4ec] ss:$16 sps:$4 sm:$0xff]  }
 0x267   :  { %v23660_v37 = vpop.f32.mrb[31].mxu1  ;;  %3781 = vmatprep.subr.bf16.mxu1 %v20906_v27  ;;  %v20913_v27 = vld [vmem:[#allocation7 + $0x4e8] ss:$16 sps:$4 sm:$0xff]  }
 0x269   :  { %3633 = vmatmul.mubr.bf16.gmra.mrb[72].mxu1 %v23431_v1  ;;  %v20918_v1 = vld [vmem:[#allocation7 + $0x50c] ss:$16 sps:$4 sm:$0xff]  }
 0x26a   :  { %3642 = vmatprep.mubr.bf16.mxu1 %v23293_v40  ;;  %3782 = vmatpush1.bf16.msra.mxu1 %v20904_v45  ;;  %v20916_v45 = vld [vmem:[#allocation7 + $0x508] ss:$16 sps:$4 sm:$0xff]  }
 0x26b   :  { %3783 = vmatprep.subr.bf16.mxu1 %v20909_v28 }
 0x26c   :  { %v23664_v24 = vpop.f32.mrb[32].mxu1 }
 0x26d   :  { %25482 = vst [vmem:[#allocation84_spill] sm:$0xff] %v23664_v24  ;;  %v23666_v17 = vpop.f32.mrb[33].mxu1 }
 0x26e   :  { %25483 = vst [vmem:[#allocation85_spill] sm:$0xff] %v23666_v17  ;;  %v23668_v60 = vpop.f32.mrb[34].mxu1  ;;  %3784 = vmatpush1.bf16.msra.mxu1 %v20907_v42  ;;  %v20921_v17 = vld [vmem:[#allocation7 + $0x52c] ss:$16 sps:$4 sm:$0xff]  }
 0x26f   :  { %v23670_v48 = vpop.f32.mrb[35].mxu1  ;;  %3785 = vmatprep.subr.bf16.mxu1 %v20912_v22  ;;  %v20919_v22 = vld [vmem:[#allocation7 + $0x528] ss:$16 sps:$4 sm:$0xff]  }
 0x271   :  { %3643 = vmatmul.mubr.bf16.gmra.mrb[76].mxu1 %v23437_v15  ;;  %v20924_v15 = vld [vmem:[#allocation7 + $0x54c] ss:$16 sps:$4 sm:$0xff]  }
 0x272   :  { %3652 = vmatprep.mubr.bf16.mxu1 %v23305_v2  ;;  %3786 = vmatpush1.bf16.msra.mxu1 %v20910_v41  ;;  %v20922_v41 = vld [vmem:[#allocation7 + $0x548] ss:$16 sps:$4 sm:$0xff]  }
 0x273   :  { %3787 = vmatprep.subr.bf16.mxu1 %v20915_v59 }
 0x274   :  { %v23674_v28 = vpop.f32.mrb[36].mxu1 }
 0x275   :  { %25484 = vst [vmem:[#allocation86_spill] sm:$0xff] %v23674_v28  ;;  %v23676_v40 = vpop.f32.mrb[37].mxu1 }
 0x276   :  { %25485 = vst [vmem:[#allocation87_spill] sm:$0xff] %v23676_v40  ;;  %v23678_v24 = vpop.f32.mrb[38].mxu1  ;;  %3788 = vmatpush1.bf16.msra.mxu1 %v20913_v27  ;;  %v20927_v40 = vld [vmem:[#allocation7 + $0x56c] ss:$16 sps:$4 sm:$0xff]  }
 0x277   :  { %v23680_v42 = vpop.f32.mrb[39].mxu1  ;;  %3789 = vmatprep.subr.bf16.mxu1 %v20918_v1  ;;  %v20925_v1 = vld [vmem:[#allocation7 + $0x568] ss:$16 sps:$4 sm:$0xff]  }
 0x279   :  { %3653 = vmatmul.mubr.bf16.gmra.mrb[80].mxu1 %v23443_v9  ;;  %v20930_v9 = vld [vmem:[#allocation7 + $0x58c] ss:$16 sps:$4 sm:$0xff]  }
 0x27a   :  { %3662 = vmatprep.mubr.bf16.mxu1 %v23317_v26  ;;  %3790 = vmatpush1.bf16.msra.mxu1 %v20916_v45  ;;  %v20928_v45 = vld [vmem:[#allocation7 + $0x588] ss:$16 sps:$4 sm:$0xff]  }
 0x27b   :  { %3791 = vmatprep.subr.bf16.mxu1 %v20921_v17 }
 0x27c   :  { %v23684_v59 = vpop.f32.mrb[40].mxu1 }
 0x27d   :  { %25486 = vst [vmem:[#allocation88_spill] sm:$0xff] %v23684_v59  ;;  %v23686_v2 = vpop.f32.mrb[41].mxu1 }
 0x27e   :  { %25487 = vst [vmem:[#allocation89_spill] sm:$0xff] %v23686_v2  ;;  %v23688_v28 = vpop.f32.mrb[42].mxu1  ;;  %3792 = vmatpush1.bf16.msra.mxu1 %v20919_v22  ;;  %v20933_v2 = vld [vmem:[#allocation7 + $0x5ac] ss:$16 sps:$4 sm:$0xff]  }
 0x27f   :  { %v23690_v27 = vpop.f32.mrb[43].mxu1  ;;  %3793 = vmatprep.subr.bf16.mxu1 %v20924_v15  ;;  %v20931_v15 = vld [vmem:[#allocation7 + $0x5a8] ss:$16 sps:$4 sm:$0xff]  }
 0x281   :  { %3663 = vmatmul.mubr.bf16.gmra.mrb[84].mxu1 %v23449_v20  ;;  %v20936_v20 = vld [vmem:[#allocation7 + $0x5cc] ss:$16 sps:$4 sm:$0xff]  }
 0x282   :  { %3672 = vmatprep.mubr.bf16.mxu1 %v23329_v56  ;;  %3794 = vmatpush1.bf16.msra.mxu1 %v20922_v41  ;;  %v20934_v41 = vld [vmem:[#allocation7 + $0x5c8] ss:$16 sps:$4 sm:$0xff]  }
 0x283   :  { %3795 = vmatprep.subr.bf16.mxu1 %v20927_v40 }
 0x284   :  { %v23694_v17 = vpop.f32.mrb[44].mxu1 }
 0x285   :  { %25488 = vst [vmem:[#allocation90_spill] sm:$0xff] %v23694_v17  ;;  %v23696_v26 = vpop.f32.mrb[45].mxu1 }
 0x286   :  { %25489 = vst [vmem:[#allocation91_spill] sm:$0xff] %v23696_v26  ;;  %v23698_v59 = vpop.f32.mrb[46].mxu1  ;;  %3796 = vmatpush1.bf16.msra.mxu1 %v20925_v1  ;;  %v20939_v26 = vld [vmem:[#allocation7 + $0x5ec] ss:$16 sps:$4 sm:$0xff]  }
 0x287   :  { %v23700_v22 = vpop.f32.mrb[47].mxu1  ;;  %3797 = vmatprep.subr.bf16.mxu1 %v20930_v9  ;;  %v20937_v9 = vld [vmem:[#allocation7 + $0x5e8] ss:$16 sps:$4 sm:$0xff]  }
 0x289   :  { %3673 = vmatmul.mubr.bf16.gmra.mrb[88].mxu1 %v23455_v25  ;;  %v20942_v25 = vld [vmem:[#allocation7 + $0x60c] ss:$16 sps:$4 sm:$0xff]  }
 0x28a   :  { %3682 = vmatprep.mubr.bf16.mxu1 %v23457_v32  ;;  %3798 = vmatpush1.bf16.msra.mxu1 %v20928_v45 }
 0x28b   :  { %3799 = vmatprep.subr.bf16.mxu1 %v20933_v2 }
 0x28c   :  { %v23704_v40 = vpop.f32.mrb[48].mxu1 }
 0x28d   :  { %v23706_v56 = vpop.f32.mrb[49].mxu1 }
 0x28e   :  { %v23708_v17 = vpop.f32.mrb[50].mxu1  ;;  %3800 = vmatpush1.bf16.msra.mxu1 %v20931_v15 }
 0x28f   :  { %25490 = vst [vmem:[#allocation92_spill] sm:$0xff] %v23708_v17  ;;  %v23710_v1 = vpop.f32.mrb[51].mxu1  ;;  %3801 = vmatprep.subr.bf16.mxu1 %v20936_v20 }
 0x291   :  { %3683 = vmatmul.mubr.bf16.gmra.mrb[92].mxu1 %v23309_v4 }
 0x292   :  { %3692 = vmatprep.mubr.bf16.mxu1 %v23351_v38  ;;  %3802 = vmatpush1.bf16.msra.mxu1 %v20934_v41 }
 0x293   :  { %3803 = vmatprep.subr.bf16.mxu1 %v20939_v26 }
 0x294   :  { %v23714_v2 = vpop.f32.mrb[52].mxu1 }
 0x295   :  { %v23716_v45 = vpop.f32.mrb[53].mxu1 }
 0x296   :  { %v23718_v32 = vpop.f32.mrb[54].mxu1  ;;  %3804 = vmatpush1.bf16.msra.mxu1 %v20937_v9 }
 0x297   :  { %v23720_v17 = vpop.f32.mrb[55].mxu1  ;;  %3966 = vmatprep.subr.bf16.mxu1 %v20942_v25 }
 0x299   :  { %3693 = vmatmul.mubr.bf16.gmra.mrb[96].mxu1 %v23471_v62 }
 0x29a   :  { %3702 = vmatprep.mubr.bf16.mxu1 %v23361_v55 }
 0x29c   :  { %v23724_v20 = vpop.f32.mrb[56].mxu1 }
 0x29d   :  { %v23726_v15 = vpop.f32.mrb[57].mxu1 }
 0x29e   :  { %25491 = vst [vmem:[#allocation93_spill] sm:$0xff] %v23726_v15  ;;  %v23728_v38 = vpop.f32.mrb[58].mxu1 }
 0x29f   :  { %25492 = vst [vmem:[#allocation94_spill] sm:$0xff] %v23728_v38  ;;  %v23730_v26 = vpop.f32.mrb[59].mxu1 }
 0x2a0   :  { %25493 = vst [vmem:[#allocation95_spill] sm:$0xff] %v23730_v26 }
 0x2a1   :  { %3703 = vmatmul.mubr.bf16.gmra.mrb[100].mxu1 %v23335_v61 }
 0x2a2   :  { %3712 = vmatprep.mubr.bf16.mxu1 %v23371_v11 }
 0x2a4   :  { %v23734_v41 = vpop.f32.mrb[60].mxu1 }
 0x2a5   :  { %25494 = vst [vmem:[#allocation96_spill] sm:$0xff] %v23734_v41  ;;  %v23736_v9 = vpop.f32.mrb[61].mxu1 }
 0x2a6   :  { %25495 = vst [vmem:[#allocation97_spill] sm:$0xff] %v23736_v9  ;;  %v23738_v25 = vpop.f32.mrb[62].mxu1 }
 0x2a7   :  { %25496 = vst [vmem:[#allocation98_spill] sm:$0xff] %v23738_v25  ;;  %v23740_v62 = vpop.f32.mrb[63].mxu1 }
 0x2a9   :  { %3713 = vmatmul.mubr.bf16.gmra.mrb[104].mxu1 %v23345_v19 }
 0x2aa   :  { %3722 = vmatprep.mubr.bf16.mxu1 %v23381_v30 }
 0x2b1   :  { %3723 = vmatmul.mubr.bf16.gmra.mrb[108].mxu1 %v23355_v46 }
 0x2b2   :  { %v3228_v55 = vpop.f32.mrb[0].mxu0  ;;  %3732 = vmatprep.mubr.bf16.mxu1 %v23391_v50 }
 0x2b3   :  { %v23745_v38 = vadd.f32 %v3228_v55, %v23565_v36  ;;  %v3230_v26 = vpop.f32.mrb[1].mxu0 }
 0x2b4   :  { %v23748_v15 = vadd.f32 %v3230_v26, %v23567_v7  ;;  %v3232_v11 = vpop.f32.mrb[2].mxu0 }
 0x2b5   :  { %v23751_v41 = vadd.f32 %v3232_v11, %v23571_v44  ;;  %v3234_v9 = vpop.f32.mrb[3].mxu0 }
 0x2b6   :  { %v23754_v25 = vadd.f32 %v3234_v9, %v23573_v47 }
 0x2b9   :  { %3733 = vmatmul.mubr.bf16.gmra.mrb[112].mxu1 %v23365_v0 }
 0x2ba   :  { %v3238_v30 = vpop.f32.mrb[4].mxu0  ;;  %3742 = vmatprep.mubr.bf16.mxu1 %v23401_v10 }
 0x2bb   :  { %v23759_v55 = vadd.f32 %v3238_v30, %v23579_v58  ;;  %v3240_v36 = vpop.f32.mrb[5].mxu0 }
 0x2bc   :  { %v23762_v7 = vadd.f32 %v3240_v36, %v23581_v21  ;;  %v3242_v26 = vpop.f32.mrb[6].mxu0 }
 0x2bd   :  { %v23765_v11 = vadd.f32 %v3242_v26, %v23585_v29  ;;  %v3244_v44 = vpop.f32.mrb[7].mxu0 }
 0x2be   :  { %v23768_v47 = vadd.f32 %v3244_v44, %v23587_v49 }
 0x2c1   :  { %3743 = vmatmul.mubr.bf16.gmra.mrb[116].mxu1 %v23375_v13 }
 0x2c2   :  { %v3248_v9 = vpop.f32.mrb[8].mxu0  ;;  %3752 = vmatprep.mubr.bf16.mxu1 %v23411_v34 }
 0x2c3   :  { %v23773_v30 = vadd.f32 %v3248_v9, %v23593_v54  ;;  %v3250_v58 = vpop.f32.mrb[9].mxu0 }
 0x2c4   :  { %v23776_v21 = vadd.f32 %v3250_v58, %v23595_v35  ;;  %v3252_v36 = vpop.f32.mrb[10].mxu0 }
 0x2c5   :  { %v23779_v29 = vadd.f32 %v3252_v36, %v23599_v53  ;;  %v3254_v26 = vpop.f32.mrb[11].mxu0 }
 0x2c6   :  { %v23782_v49 = vadd.f32 %v3254_v26, %v23601_v12 }
 0x2c9   :  { %3753 = vmatmul.mubr.bf16.gmra.mrb[120].mxu1 %v23385_v33 }
 0x2ca   :  { %v3258_v44 = vpop.f32.mrb[12].mxu0  ;;  %3762 = vmatprep.mubr.bf16.mxu1 %v23497_v5 }
 0x2cb   :  { %v23787_v54 = vadd.f32 %v3258_v44, %v23607_v31  ;;  %v3260_v9 = vpop.f32.mrb[13].mxu0 }
 0x2cc   :  { %v23790_v35 = vadd.f32 %v3260_v9, %v23609_v39  ;;  %v3262_v58 = vpop.f32.mrb[14].mxu0 }
 0x2cd   :  { %v23793_v53 = vadd.f32 %v3262_v58, %v23613_v57  ;;  %v3264_v36 = vpop.f32.mrb[15].mxu0 }
 0x2ce   :  { %v23796_v12 = vadd.f32 %v3264_v36, %v23615_v16 }
 0x2cf   :  { %25497 = vst [vmem:[#allocation99_spill] sm:$0xff] %v23793_v53  ;;  %v20948_v53 = vld [vmem:[#allocation7 + $0x64c] ss:$16 sps:$4 sm:$0xff]  }
 0x2d0   :  { %25498 = vst [vmem:[#allocation100_spill] sm:$0xff] %v23796_v12  ;;  %v20940_v12 = vld [vmem:[#allocation7 + $0x608] ss:$16 sps:$4 sm:$0xff]  }
 0x2d1   :  { %3763 = vmatmul.mubr.bf16.gmra.mrb[124].mxu1 %v23395_v52 }
 0x2d2   :  { %v3268_v26 = vpop.f32.mrb[16].mxu0  ;;  %3805 = vmatprep.mubr.bf16.mxu1 %v23236_v6  ;;  %v20943_v6 = vld [vmem:[#allocation7 + $0x628] ss:$16 sps:$4 sm:$0xff]  }
 0x2d3   :  { %v23801_v31 = vadd.f32 %v3268_v26, %v23621_v51  ;;  %v3270_v44 = vpop.f32.mrb[17].mxu0 }
 0x2d4   :  { %v23804_v39 = vadd.f32 %v3270_v44, %v23623_v3  ;;  %v3272_v9 = vpop.f32.mrb[18].mxu0  ;;  %v20945_v3 = vld [vmem:[#allocation7 + $0x62c] ss:$16 sps:$4 sm:$0xff]  }
 0x2d5   :  { %25499 = vst [vmem:[#allocation101_spill] sm:$0xff] %v23801_v31  ;;  %v23807_v57 = vadd.f32 %v3272_v9, %v23627_v23  ;;  %v3274_v58 = vpop.f32.mrb[19].mxu0  ;;  %v25504_v44 = vld [vmem:[#allocation77_spill] sm:$0xff]  ;;  %v25506_v9 = vld [vmem:[#allocation78_spill] sm:$0xff] }
 0x2d6   :  { %25500 = vst [vmem:[#allocation102_spill] sm:$0xff] %v23804_v39  ;;  %v23810_v16 = vadd.f32 %v3274_v58, %v23629_v18  ;;  %v25508_v58 = vld [vmem:[#allocation79_spill] sm:$0xff]  ;;  %v25509_v31 = vld [vmem:[#allocation25_spill] sm:$0xff] }
 0x2d7   :  { %25501 = vst [vmem:[#allocation103_spill] sm:$0xff] %v23807_v57 }
 0x2d8   :  { %25502 = vst [vmem:[#allocation104_spill] sm:$0xff] %v23810_v16 }
 0x2d9   :  { %3806 = vmatmul.mubr.bf16.vlgmr.msra.gmra.mrb[64].mxu1 %v25509_v31 }
 0x2da   :  { %v3278_v36 = vpop.f32.mrb[20].mxu0  ;;  %3967 = vmatpush1.bf16.msra.mxu1 %v20940_v12 }
 0x2db   :  { %v23815_v51 = vadd.f32 %v3278_v36, %v23634_v8  ;;  %v3280_v26 = vpop.f32.mrb[21].mxu0  ;;  %v25510_v8 = vld [vmem:[#allocation26_spill] sm:$0xff]  ;;  %3968 = vmatprep.subr.bf16.mxu1 %v20945_v3 }
 0x2dc   :  { %v23818_v39 = vadd.f32 %v3280_v26, %v25504_v44  ;;  %v3282_v23 = vpop.f32.mrb[22].mxu0  ;;  %3815 = vmatprep.mubr.bf16.mxu1 %v25510_v8  ;;  %v25511_v26 = vld [vmem:[#allocation80_spill] sm:$0xff]  ;;  %v25516_v8 = vld [vmem:[#allocation27_spill] sm:$0xff] }
 0x2dd   :  { %25503 = vst [vmem:[#allocation105_spill] sm:$0xff] %v23815_v51  ;;  %v23821_v57 = vadd.f32 %v3282_v23, %v25506_v9  ;;  %v3284_v18 = vpop.f32.mrb[23].mxu0  ;;  %v20946_v51 = vld [vmem:[#allocation7 + $0x648] ss:$16 sps:$4 sm:$0xff]   ;;  %v20951_v23 = vld [vmem:[#allocation7 + $0x66c] ss:$16 sps:$4 sm:$0xff]  }
 0x2de   :  { %25505 = vst [vmem:[#allocation77_spill] sm:$0xff] %v23818_v39  ;;  %v23824_v16 = vadd.f32 %v3284_v18, %v25508_v58  ;;  %v25512_v9 = vld [vmem:[#allocation81_spill] sm:$0xff]  ;;  %3969 = vmatpush1.bf16.msra.mxu1 %v20943_v6 }
 0x2df   :  { %25507 = vst [vmem:[#allocation78_spill] sm:$0xff] %v23821_v57  ;;  %3970 = vmatprep.subr.bf16.mxu1 %v20948_v53  ;;  %v20949_v3 = vld [vmem:[#allocation7 + $0x668] ss:$16 sps:$4 sm:$0xff]  }
 0x2e1   :  { %3816 = vmatmul.mubr.bf16.gmra.mrb[68].mxu1 %v25516_v8 }
 0x2e2   :  { %v3288_v36 = vpop.f32.mrb[24].mxu0  ;;  %3971 = vmatpush1.bf16.msra.mxu1 %v20946_v51 }
 0x2e3   :  { %v23829_v44 = vadd.f32 %v3288_v36, %v25511_v26  ;;  %v3290_v39 = vpop.f32.mrb[25].mxu0  ;;  %v20954_v36 = vld [vmem:[#allocation7 + $0x68c] ss:$16 sps:$4 sm:$0xff]   ;;  %v25517_v26 = vld [vmem:[#allocation28_spill] sm:$0xff]  ;;  %3972 = vmatprep.subr.bf16.mxu1 %v20951_v23  ;;  %v25523_v23 = vld [vmem:[#allocation30_spill] sm:$0xff] }
 0x2e4   :  { %v23832_v57 = vadd.f32 %v3290_v39, %v25512_v9  ;;  %v3292_v18 = vpop.f32.mrb[26].mxu0  ;;  %3825 = vmatprep.mubr.bf16.mxu1 %v25517_v26  ;;  %v20952_v9 = vld [vmem:[#allocation7 + $0x688] ss:$16 sps:$4 sm:$0xff]  }
 0x2e5   :  { %v23835_v31 = vadd.f32 %v3292_v18, %v23648_v14  ;;  %v3294_v58 = vpop.f32.mrb[27].mxu0  ;;  %v20957_v18 = vld [vmem:[#allocation7 + $0x6ac] ss:$16 sps:$4 sm:$0xff]   ;;  %v20955_v26 = vld [vmem:[#allocation7 + $0x6a8] ss:$16 sps:$4 sm:$0xff]  }
 0x2e6   :  { %25513 = vst [vmem:[#allocation79_spill] sm:$0xff] %v23832_v57  ;;  %v23838_v12 = vadd.f32 %v3294_v58, %v23650_v43  ;;  %v25518_v57 = vld [vmem:[#allocation82_spill] sm:$0xff]  ;;  %3973 = vmatpush1.bf16.msra.mxu1 %v20949_v3 }
 0x2e7   :  { %25514 = vst [vmem:[#allocation25_spill] sm:$0xff] %v23835_v31  ;;  %v25519_v31 = vld [vmem:[#allocation83_spill] sm:$0xff]  ;;  %3974 = vmatprep.subr.bf16.mxu1 %v20954_v36 }
 0x2e8   :  { %25515 = vst [vmem:[#allocation26_spill] sm:$0xff] %v23838_v12 }
 0x2e9   :  { %3826 = vmatmul.mubr.bf16.gmra.mrb[72].mxu1 %v25523_v23 }
 0x2ea   :  { %v3298_v39 = vpop.f32.mrb[28].mxu0  ;;  %3975 = vmatpush1.bf16.msra.mxu1 %v20952_v9 }
 0x2eb   :  { %v23843_v6 = vadd.f32 %v3298_v39, %v25518_v57  ;;  %v3300_v14 = vpop.f32.mrb[29].mxu0  ;;  %v20960_v57 = vld [vmem:[#allocation7 + $0x6cc] ss:$16 sps:$4 sm:$0xff]   ;;  %3976 = vmatprep.subr.bf16.mxu1 %v20957_v18  ;;  %v20961_v18 = vld [vmem:[#allocation7 + $0x6e8] ss:$16 sps:$4 sm:$0xff]  }
 0x2ec   :  { %v23846_v53 = vadd.f32 %v3300_v14, %v25519_v31  ;;  %v3302_v43 = vpop.f32.mrb[30].mxu0  ;;  %v25524_v39 = vld [vmem:[#allocation31_spill] sm:$0xff] }
 0x2ed   :  { %v23849_v58 = vadd.f32 %v3302_v43, %v23658_v63  ;;  %v3304_v12 = vpop.f32.mrb[31].mxu0  ;;  %3835 = vmatprep.mubr.bf16.mxu1 %v25524_v39  ;;  %v20958_v14 = vld [vmem:[#allocation7 + $0x6c8] ss:$16 sps:$4 sm:$0xff]   ;;  %v20963_v43 = vld [vmem:[#allocation7 + $0x6ec] ss:$16 sps:$4 sm:$0xff]  }
 0x2ee   :  { %25520 = vst [vmem:[#allocation80_spill] sm:$0xff] %v23846_v53  ;;  %v23852_v51 = vadd.f32 %v3304_v12, %v23660_v37  ;;  %v25525_v53 = vld [vmem:[#allocation84_spill] sm:$0xff]  ;;  %3977 = vmatpush1.bf16.msra.mxu1 %v20955_v26  ;;  %v25530_v39 = vld [vmem:[#allocation33_spill] sm:$0xff] }
 0x2ef   :  { %25521 = vst [vmem:[#allocation81_spill] sm:$0xff] %v23849_v58  ;;  %v25526_v58 = vld [vmem:[#allocation85_spill] sm:$0xff]  ;;  %3978 = vmatprep.subr.bf16.mxu1 %v20960_v57 }
 0x2f0   :  { %25522 = vst [vmem:[#allocation27_spill] sm:$0xff] %v23852_v51 }
 0x2f1   :  { %3836 = vmatmul.mubr.bf16.gmra.mrb[76].mxu1 %v25530_v39 }
 0x2f2   :  { %v3308_v31 = vpop.f32.mrb[32].mxu0  ;;  %3979 = vmatpush1.bf16.msra.mxu1 %v20958_v14 }
 0x2f3   :  { %v23857_v3 = vadd.f32 %v3308_v31, %v25525_v53  ;;  %v3310_v63 = vpop.f32.mrb[33].mxu0  ;;  %v20966_v53 = vld [vmem:[#allocation7 + $0x70c] ss:$16 sps:$4 sm:$0xff]   ;;  %v25531_v31 = vld [vmem:[#allocation34_spill] sm:$0xff]  ;;  %3980 = vmatprep.subr.bf16.mxu1 %v20963_v43  ;;  %v25537_v43 = vld [vmem:[#allocation36_spill] sm:$0xff] }
 0x2f4   :  { %v23860_v36 = vadd.f32 %v3310_v63, %v25526_v58  ;;  %v3312_v37 = vpop.f32.mrb[34].mxu0  ;;  %3845 = vmatprep.mubr.bf16.mxu1 %v25531_v31  ;;  %v20964_v63 = vld [vmem:[#allocation7 + $0x708] ss:$16 sps:$4 sm:$0xff]  }
 0x2f5   :  { %v23863_v12 = vadd.f32 %v3312_v37, %v23668_v60  ;;  %v3314_v51 = vpop.f32.mrb[35].mxu0  ;;  %v20969_v37 = vld [vmem:[#allocation7 + $0x72c] ss:$16 sps:$4 sm:$0xff]   ;;  %v20967_v31 = vld [vmem:[#allocation7 + $0x728] ss:$16 sps:$4 sm:$0xff]  }
 0x2f6   :  { %25527 = vst [vmem:[#allocation28_spill] sm:$0xff] %v23860_v36  ;;  %v23866_v9 = vadd.f32 %v3314_v51, %v23670_v48  ;;  %v25532_v36 = vld [vmem:[#allocation86_spill] sm:$0xff]  ;;  %3981 = vmatpush1.bf16.msra.mxu1 %v20961_v18 }
 0x2f7   :  { %25528 = vst [vmem:[#allocation82_spill] sm:$0xff] %v23863_v12  ;;  %v25533_v12 = vld [vmem:[#allocation87_spill] sm:$0xff]  ;;  %3982 = vmatprep.subr.bf16.mxu1 %v20966_v53 }
 0x2f8   :  { %25529 = vst [vmem:[#allocation83_spill] sm:$0xff] %v23866_v9 }
 0x2f9   :  { %3846 = vmatmul.mubr.bf16.gmra.mrb[80].mxu1 %v25537_v43 }
 0x2fa   :  { %v3318_v58 = vpop.f32.mrb[36].mxu0  ;;  %3983 = vmatpush1.bf16.msra.mxu1 %v20964_v63 }
 0x2fb   :  { %v23871_v26 = vadd.f32 %v3318_v58, %v25532_v36  ;;  %v3320_v60 = vpop.f32.mrb[37].mxu0  ;;  %v20972_v36 = vld [vmem:[#allocation7 + $0x74c] ss:$16 sps:$4 sm:$0xff]   ;;  %3984 = vmatprep.subr.bf16.mxu1 %v20969_v37  ;;  %v20973_v37 = vld [vmem:[#allocation7 + $0x768] ss:$16 sps:$4 sm:$0xff]  }
 0x2fc   :  { %v23874_v57 = vadd.f32 %v3320_v60, %v25533_v12  ;;  %v3322_v48 = vpop.f32.mrb[38].mxu0  ;;  %v25538_v58 = vld [vmem:[#allocation37_spill] sm:$0xff] }
 0x2fd   :  { %v23877_v51 = vadd.f32 %v3322_v48, %v23678_v24  ;;  %v3324_v9 = vpop.f32.mrb[39].mxu0  ;;  %3855 = vmatprep.mubr.bf16.mxu1 %v25538_v58  ;;  %v20970_v60 = vld [vmem:[#allocation7 + $0x748] ss:$16 sps:$4 sm:$0xff]   ;;  %v20975_v48 = vld [vmem:[#allocation7 + $0x76c] ss:$16 sps:$4 sm:$0xff]  }
 0x2fe   :  { %25534 = vst [vmem:[#allocation30_spill] sm:$0xff] %v23874_v57  ;;  %v23880_v14 = vadd.f32 %v3324_v9, %v23680_v42  ;;  %v25539_v57 = vld [vmem:[#allocation88_spill] sm:$0xff]  ;;  %3985 = vmatpush1.bf16.msra.mxu1 %v20967_v31  ;;  %v25545_v58 = vld [vmem:[#allocation39_spill] sm:$0xff] }
 0x2ff   :  { %25535 = vst [vmem:[#allocation31_spill] sm:$0xff] %v23877_v51  ;;  %v25541_v51 = vld [vmem:[#allocation89_spill] sm:$0xff]  ;;  %3986 = vmatprep.subr.bf16.mxu1 %v20972_v36 }
 0x300   :  { %25536 = vst [vmem:[#allocation84_spill] sm:$0xff] %v23880_v14 }
 0x301   :  { %3856 = vmatmul.mubr.bf16.gmra.mrb[84].mxu1 %v25545_v58 }
 0x302   :  { %v3328_v12 = vpop.f32.mrb[40].mxu0  ;;  %3865 = vmatprep.mubr.bf16.mxu1 %v23309_v4  ;;  %3987 = vmatpush1.bf16.msra.mxu1 %v20970_v60  ;;  %v25552_v60 = vld [vmem:[#allocation41_spill] sm:$0xff] }
 0x303   :  { %v23885_v18 = vadd.f32 %v3328_v12, %v25539_v57  ;;  %v3330_v24 = vpop.f32.mrb[41].mxu0  ;;  %v20978_v57 = vld [vmem:[#allocation7 + $0x78c] ss:$16 sps:$4 sm:$0xff]   ;;  %3988 = vmatprep.subr.bf16.mxu1 %v20975_v48  ;;  %v20976_v12 = vld [vmem:[#allocation7 + $0x788] ss:$16 sps:$4 sm:$0xff]  }
 0x304   :  { %v23888_v53 = vadd.f32 %v3330_v24, %v25541_v51  ;;  %v3332_v42 = vpop.f32.mrb[42].mxu0  ;;  %v25546_v24 = vld [vmem:[#allocation90_spill] sm:$0xff] }
 0x305   :  { %25540 = vst [vmem:[#allocation85_spill] sm:$0xff] %v23885_v18  ;;  %v23891_v9 = vadd.f32 %v3332_v42, %v23688_v28  ;;  %v3334_v14 = vpop.f32.mrb[43].mxu0  ;;  %v20981_v42 = vld [vmem:[#allocation7 + $0x7ac] ss:$16 sps:$4 sm:$0xff]   ;;  %v20979_v48 = vld [vmem:[#allocation7 + $0x7a8] ss:$16 sps:$4 sm:$0xff]  }
 0x306   :  { %25542 = vst [vmem:[#allocation33_spill] sm:$0xff] %v23888_v53  ;;  %v23894_v63 = vadd.f32 %v3334_v14, %v23690_v27  ;;  %3989 = vmatpush1.bf16.msra.mxu1 %v20973_v37 }
 0x307   :  { %25543 = vst [vmem:[#allocation34_spill] sm:$0xff] %v23891_v9  ;;  %v25548_v9 = vld [vmem:[#allocation91_spill] sm:$0xff]  ;;  %3990 = vmatprep.subr.bf16.mxu1 %v20978_v57 }
 0x308   :  { %25544 = vst [vmem:[#allocation86_spill] sm:$0xff] %v23894_v63 }
 0x309   :  { %3866 = vmatmul.mubr.bf16.gmra.mrb[88].mxu1 %v25552_v60 }
 0x30a   :  { %v3338_v51 = vpop.f32.mrb[44].mxu0  ;;  %3991 = vmatpush1.bf16.msra.mxu1 %v20976_v12 }
 0x30b   :  { %v23899_v31 = vadd.f32 %v3338_v51, %v25546_v24  ;;  %v3340_v28 = vpop.f32.mrb[45].mxu0  ;;  %v20984_v51 = vld [vmem:[#allocation7 + $0x7cc] ss:$16 sps:$4 sm:$0xff]   ;;  %v25553_v24 = vld [vmem:[#allocation42_spill] sm:$0xff]  ;;  %3992 = vmatprep.subr.bf16.mxu1 %v20981_v42  ;;  %v25559_v42 = vld [vmem:[#allocation44_spill] sm:$0xff] }
 0x30c   :  { %v23902_v36 = vadd.f32 %v3340_v28, %v25548_v9  ;;  %v3342_v27 = vpop.f32.mrb[46].mxu0  ;;  %3875 = vmatprep.mubr.bf16.mxu1 %v25553_v24  ;;  %v20982_v28 = vld [vmem:[#allocation7 + $0x7c8] ss:$16 sps:$4 sm:$0xff]   ;;  %v20990_v24 = vld [vmem:[#allocation7 + $0x80c] ss:$16 sps:$4 sm:$0xff]  }
 0x30d   :  { %25547 = vst [vmem:[#allocation87_spill] sm:$0xff] %v23899_v31  ;;  %v23905_v14 = vadd.f32 %v3342_v27, %v23698_v59  ;;  %v3344_v63 = vpop.f32.mrb[47].mxu0  ;;  %v20987_v27 = vld [vmem:[#allocation7 + $0x7ec] ss:$16 sps:$4 sm:$0xff]  }
 0x30e   :  { %25549 = vst [vmem:[#allocation36_spill] sm:$0xff] %v23902_v36  ;;  %v23908_v4 = vadd.f32 %v3344_v63, %v23700_v22  ;;  %3993 = vmatpush1.bf16.msra.mxu1 %v20979_v48  ;;  %v25556_v63 = vld [vmem:[#allocation92_spill] sm:$0xff] }
 0x30f   :  { %25550 = vst [vmem:[#allocation37_spill] sm:$0xff] %v23905_v14  ;;  %3994 = vmatprep.subr.bf16.mxu1 %v20984_v51  ;;  %v21108_v36 = vld [vmem:[#allocation10 + $0x200] ss:$16 sps:$4 sm:$0xff]  }
 0x310   :  { %25551 = vst [vmem:[#allocation88_spill] sm:$0xff] %v23908_v4 }
 0x311   :  { %3876 = vmatmul.mubr.bf16.gmra.mrb[92].mxu1 %v25559_v42 }
 0x312   :  { %v3348_v9 = vpop.f32.mrb[48].mxu0  ;;  %3885 = vmatprep.mubr.bf16.mxu1 %v23335_v61  ;;  %3995 = vmatpush1.bf16.msra.mxu1 %v20982_v28  ;;  %v25564_v28 = vld [vmem:[#allocation45_spill] sm:$0xff] }
 0x313   :  { %v23913_v37 = vadd.f32 %v3348_v9, %v23704_v40  ;;  %v3350_v59 = vpop.f32.mrb[49].mxu0  ;;  %v20985_v40 = vld [vmem:[#allocation7 + $0x7e8] ss:$16 sps:$4 sm:$0xff]   ;;  %3996 = vmatprep.subr.bf16.mxu1 %v20987_v27 }
 0x314   :  { %v23916_v57 = vadd.f32 %v3350_v59, %v23706_v56  ;;  %v3352_v22 = vpop.f32.mrb[50].mxu0 }
 0x315   :  { %25554 = vst [vmem:[#allocation89_spill] sm:$0xff] %v23913_v37  ;;  %v23919_v4 = vadd.f32 %v3352_v22, %v25556_v63  ;;  %v3354_v14 = vpop.f32.mrb[51].mxu0  ;;  %v25566_v22 = vld [vmem:[#allocation93_spill] sm:$0xff] }
 0x316   :  { %25555 = vst [vmem:[#allocation39_spill] sm:$0xff] %v23916_v57  ;;  %v23922_v12 = vadd.f32 %v3354_v14, %v23710_v1  ;;  %3997 = vmatpush1.bf16.msra.mxu1 %v20985_v40 }
 0x317   :  { %25557 = vst [vmem:[#allocation90_spill] sm:$0xff] %v23919_v4  ;;  %4159 = vmatprep.subr.bf16.mxu1 %v20990_v24 }
 0x318   :  { %25558 = vst [vmem:[#allocation91_spill] sm:$0xff] %v23922_v12 }
 0x319   :  { %3886 = vmatmul.mubr.bf16.gmra.mrb[96].mxu1 %v25564_v28 }
 0x31a   :  { %v3358_v56 = vpop.f32.mrb[52].mxu0  ;;  %3895 = vmatprep.mubr.bf16.mxu1 %v23345_v19 }
 0x31b   :  { %v23927_v9 = vadd.f32 %v3358_v56, %v23714_v2  ;;  %v3360_v48 = vpop.f32.mrb[53].mxu0 }
 0x31c   :  { %v23930_v59 = vadd.f32 %v3360_v48, %v23716_v45  ;;  %v3362_v51 = vpop.f32.mrb[54].mxu0  ;;  %v25570_v48 = vld [vmem:[#allocation95_spill] sm:$0xff] }
 0x31d   :  { %25560 = vst [vmem:[#allocation41_spill] sm:$0xff] %v23927_v9  ;;  %v23933_v1 = vadd.f32 %v3362_v51, %v23718_v32  ;;  %v3364_v14 = vpop.f32.mrb[55].mxu0  ;;  %v25568_v32 = vld [vmem:[#allocation94_spill] sm:$0xff]  ;;  %v24091_v9 = vld [vmem:[#allocation3] sm:$0xfe] }
 0x31e   :  { %25561 = vst [vmem:[#allocation42_spill] sm:$0xff] %v23930_v59  ;;  %v23936_v61 = vadd.f32 %v3364_v14, %v23720_v17  ;;  %v25572_v51 = vld [vmem:[#allocation46_spill] sm:$0xff]  ;;  %v25573_v14 = vld [vmem:[#allocation96_spill] sm:$0xff] }
 0x31f   :  { %25562 = vst [vmem:[#allocation92_spill] sm:$0xff] %v23933_v1 }
 0x320   :  { %25563 = vst [vmem:[#allocation44_spill] sm:$0xff] %v23936_v61 }
 0x321   :  { %3896 = vmatmul.mubr.bf16.gmra.mrb[100].mxu1 %v25572_v51 }
 0x322   :  { %v3368_v2 = vpop.f32.mrb[56].mxu0  ;;  %3905 = vmatprep.mubr.bf16.mxu1 %v23355_v46  ;;  %v25581_v46 = vld [vmem:[#allocation50_spill] sm:$0xff] }
 0x323   :  { %v23941_v27 = vadd.f32 %v3368_v2, %v23724_v20  ;;  %v3370_v45 = vpop.f32.mrb[57].mxu0  ;;  %v25575_v2 = vld [vmem:[#allocation97_spill] sm:$0xff]  ;;  %25618 = vst [vmem:[#allocation50_spill] sm:$0xff] %v24091_v9 }
 0x324   :  { %v23944_v63 = vadd.f32 %v3370_v45, %v25566_v22  ;;  %v3372_v40 = vpop.f32.mrb[58].mxu0 }
 0x325   :  { %25565 = vst [vmem:[#allocation45_spill] sm:$0xff] %v23941_v27  ;;  %v23947_v56 = vadd.f32 %v3372_v40, %v25568_v32  ;;  %v3374_v24 = vpop.f32.mrb[59].mxu0 }
 0x326   :  { %25567 = vst [vmem:[#allocation93_spill] sm:$0xff] %v23944_v63  ;;  %v23950_v17 = vadd.f32 %v3374_v24, %v25570_v48  ;;  %v25577_v63 = vld [vmem:[#allocation98_spill] sm:$0xff]  ;;  %v25580_v48 = vld [vmem:[#allocation48_spill] sm:$0xff] }
 0x327   :  { %25569 = vst [vmem:[#allocation94_spill] sm:$0xff] %v23947_v56 }
 0x328   :  { %25571 = vst [vmem:[#allocation95_spill] sm:$0xff] %v23950_v17 }
 0x329   :  { %3906 = vmatmul.mubr.bf16.gmra.mrb[104].mxu1 %v25580_v48 }
 0x32a   :  { %v3378_v19 = vpop.f32.mrb[60].mxu0  ;;  %3915 = vmatprep.mubr.bf16.mxu1 %v23365_v0  ;;  %v20988_v0 = vld [vmem:[#allocation7 + $0x808] ss:$16 sps:$4 sm:$0xff]  }
 0x32b   :  { %v23955_v20 = vadd.f32 %v3378_v19, %v25573_v14  ;;  %v3380_v28 = vpop.f32.mrb[61].mxu0  ;;  %v25582_v19 = vld [vmem:[#allocation52_spill] sm:$0xff]  ;;  %v25583_v14 = vld [vmem:[#allocation53_spill] sm:$0xff] }
 0x32c   :  { %v23958_v45 = vadd.f32 %v3380_v28, %v25575_v2  ;;  %v3382_v22 = vpop.f32.mrb[62].mxu0  ;;  %v25586_v28 = vld [vmem:[#allocation56_spill] sm:$0xff]  ;;  %v20993_v2 = vld [vmem:[#allocation7 + $0x82c] ss:$16 sps:$4 sm:$0xff]  }
 0x32d   :  { %25574 = vst [vmem:[#allocation46_spill] sm:$0xff] %v23955_v20  ;;  %v23961_v40 = vadd.f32 %v3382_v22, %v25577_v63  ;;  %v3384_v32 = vpop.f32.mrb[63].mxu0  ;;  %v25584_v63 = vld [vmem:[#allocation54_spill] sm:$0xff]  ;;  %v25587_v22 = vld [vmem:[#allocation29_spill] sm:$0xff] }
 0x32e   :  { %25576 = vst [vmem:[#allocation96_spill] sm:$0xff] %v23958_v45  ;;  %v23964_v24 = vadd.f32 %v3384_v32, %v23740_v62  ;;  %v25585_v62 = vld [vmem:[#allocation55_spill] sm:$0xff] }
 0x32f   :  { %25578 = vst [vmem:[#allocation97_spill] sm:$0xff] %v23961_v40  ;;  %v20999_v32 = vld [vmem:[#allocation7 + $0x86c] ss:$16 sps:$4 sm:$0xff]  }
 0x330   :  { %25579 = vst [vmem:[#allocation98_spill] sm:$0xff] %v23964_v24  ;;  %v25588_v24 = vld [vmem:[#allocation32_spill] sm:$0xff] }
 0x331   :  { %3916 = vmatmul.mubr.bf16.gmra.mrb[108].mxu1 %v25581_v46 }
 0x332   :  { %3925 = vmatprep.mubr.bf16.mxu1 %v23375_v13  ;;  %v20991_v13 = vld [vmem:[#allocation7 + $0x828] ss:$16 sps:$4 sm:$0xff]  }
 0x339   :  { %3926 = vmatmul.mubr.bf16.gmra.mrb[112].mxu1 %v25582_v19 }
 0x33a   :  { %3935 = vmatprep.mubr.bf16.mxu1 %v23385_v33  ;;  %v20996_v33 = vld [vmem:[#allocation7 + $0x84c] ss:$16 sps:$4 sm:$0xff]  }
 0x341   :  { %3936 = vmatmul.mubr.bf16.gmra.mrb[116].mxu1 %v25583_v14 }
 0x342   :  { %3945 = vmatprep.mubr.bf16.mxu1 %v23395_v52  ;;  %v20994_v52 = vld [vmem:[#allocation7 + $0x848] ss:$16 sps:$4 sm:$0xff]  }
 0x349   :  { %3946 = vmatmul.mubr.bf16.gmra.mrb[120].mxu1 %v25584_v63 }
 0x34a   :  { %3955 = vmatprep.mubr.bf16.mxu1 %v25585_v62  ;;  %v21002_v62 = vld [vmem:[#allocation7 + $0x88c] ss:$16 sps:$4 sm:$0xff]  }
 0x351   :  { %3956 = vmatmul.mubr.bf16.gmra.mrb[124].mxu1 %v25586_v28 }
 0x352   :  { %3998 = vmatprep.mubr.bf16.mxu1 %v25516_v8  ;;  %v20997_v8 = vld [vmem:[#allocation7 + $0x868] ss:$16 sps:$4 sm:$0xff]  }
 0x359   :  { %3999 = vmatmul.mubr.bf16.vlgmr.msra.gmra.mrb[64].mxu1 %v25587_v22  ;;  %v21000_v22 = vld [vmem:[#allocation7 + $0x888] ss:$16 sps:$4 sm:$0xff]  }
 0x35a   :  { %4160 = vmatpush1.bf16.msra.mxu1 %v20988_v0  ;;  %4008 = vmatprep.mubr.bf16.mxu1 %v25523_v23  ;;  %v21005_v0 = vld [vmem:[#allocation7 + $0x8ac] ss:$16 sps:$4 sm:$0xff]  }
 0x35b   :  { %4161 = vmatprep.subr.bf16.mxu1 %v20993_v2  ;;  %v25589_v23 = vld [vmem:[#allocation35_spill] sm:$0xff] }
 0x35c   :  { %v21003_v2 = vld [vmem:[#allocation7 + $0x8a8] ss:$16 sps:$4 sm:$0xff]  }
 0x35e   :  { %4162 = vmatpush1.bf16.msra.mxu1 %v20991_v13  ;;  %v21008_v13 = vld [vmem:[#allocation7 + $0x8cc] ss:$16 sps:$4 sm:$0xff]  }
 0x35f   :  { %4163 = vmatprep.subr.bf16.mxu1 %v20996_v33  ;;  %v25590_v33 = vld [vmem:[#allocation38_spill] sm:$0xff] }
 0x361   :  { %4009 = vmatmul.mubr.bf16.gmra.mrb[68].mxu1 %v25588_v24  ;;  %v21006_v24 = vld [vmem:[#allocation7 + $0x8c8] ss:$16 sps:$4 sm:$0xff]  }
 0x362   :  { %4018 = vmatprep.mubr.bf16.mxu1 %v25530_v39  ;;  %4164 = vmatpush1.bf16.msra.mxu1 %v20994_v52  ;;  %v21011_v39 = vld [vmem:[#allocation7 + $0x8ec] ss:$16 sps:$4 sm:$0xff]   ;;  %v21009_v52 = vld [vmem:[#allocation7 + $0x8e8] ss:$16 sps:$4 sm:$0xff]  }
 0x363   :  { %4165 = vmatprep.subr.bf16.mxu1 %v20999_v32  ;;  %v25591_v32 = vld [vmem:[#allocation40_spill] sm:$0xff] }
 0x366   :  { %4166 = vmatpush1.bf16.msra.mxu1 %v20997_v8  ;;  %v25593_v8 = vld [vmem:[#allocation62_spill] sm:$0xff] }
 0x367   :  { %4167 = vmatprep.subr.bf16.mxu1 %v21002_v62  ;;  %v25594_v62 = vld [vmem:[#allocation63_spill] sm:$0xff] }
 0x369   :  { %4019 = vmatmul.mubr.bf16.gmra.mrb[72].mxu1 %v25589_v23  ;;  %v21032_v23 = vld [vmem:[#allocation10 + $0x64] ss:$16 sps:$4 sm:$0xff]  }
 0x36a   :  { %4028 = vmatprep.mubr.bf16.mxu1 %v25537_v43  ;;  %4168 = vmatpush1.bf16.msra.mxu1 %v21000_v22  ;;  %v25592_v43 = vld [vmem:[#allocation43_spill] sm:$0xff]  ;;  %v25595_v22 = vld [vmem:[#allocation64_spill] sm:$0xff] }
 0x36b   :  { %4169 = vmatprep.subr.bf16.mxu1 %v21005_v0  ;;  %v25597_v0 = vld [vmem:[#allocation49_spill] sm:$0xff] }
 0x36e   :  { %4170 = vmatpush1.bf16.msra.mxu1 %v21003_v2  ;;  %v21021_v2 = vld [vmem:[#allocation10 + $0x28] ss:$16 sps:$4 sm:$0xff]  }
 0x36f   :  { %4171 = vmatprep.subr.bf16.mxu1 %v21008_v13  ;;  %v21029_v13 = vld [vmem:[#allocation10 + $0x4c] ss:$16 sps:$4 sm:$0xff]  }
 0x371   :  { %4029 = vmatmul.mubr.bf16.gmra.mrb[76].mxu1 %v25590_v33  ;;  %v21027_v33 = vld [vmem:[#allocation10 + $0x48] ss:$16 sps:$4 sm:$0xff]  }
 0x372   :  { %4038 = vmatprep.mubr.bf16.mxu1 %v25545_v58  ;;  %4172 = vmatpush1.bf16.msra.mxu1 %v21006_v24  ;;  %v25596_v58 = vld [vmem:[#allocation47_spill] sm:$0xff]  ;;  %v21030_v24 = vld [vmem:[#allocation10 + $0x60] ss:$16 sps:$4 sm:$0xff]  }
 0x373   :  { %4173 = vmatprep.subr.bf16.mxu1 %v21011_v39  ;;  %v21038_v39 = vld [vmem:[#allocation10 + $0x84] ss:$16 sps:$4 sm:$0xff]  }
 0x376   :  { %4174 = vmatpush1.bf16.msra.mxu1 %v21009_v52  ;;  %v21035_v52 = vld [vmem:[#allocation10 + $0x6c] ss:$16 sps:$4 sm:$0xff]  }
 0x379   :  { %4039 = vmatmul.mubr.bf16.gmra.mrb[80].mxu1 %v25591_v32  ;;  %v21036_v32 = vld [vmem:[#allocation10 + $0x80] ss:$16 sps:$4 sm:$0xff]  }
 0x37a   :  { %4048 = vmatprep.mubr.bf16.mxu1 %v25552_v60  ;;  %v25598_v60 = vld [vmem:[#allocation51_spill] sm:$0xff] }
 0x381   :  { %4049 = vmatmul.mubr.bf16.gmra.mrb[84].mxu1 %v25592_v43  ;;  %v25602_v43 = vld [vmem:[#allocation58_spill] sm:$0xff] }
 0x382   :  { %4058 = vmatprep.mubr.bf16.mxu1 %v25559_v42  ;;  %v25599_v42 = vld [vmem:[#allocation65_spill] sm:$0xff] }
 0x389   :  { %4059 = vmatmul.mubr.bf16.gmra.mrb[88].mxu1 %v25593_v8  ;;  %v21044_v8 = vld [vmem:[#allocation10 + $0xa4] ss:$16 sps:$4 sm:$0xff]  }
 0x38a   :  { %4068 = vmatprep.mubr.bf16.mxu1 %v25594_v62  ;;  %v21033_v62 = vld [vmem:[#allocation10 + $0x68] ss:$16 sps:$4 sm:$0xff]  }
 0x391   :  { %4069 = vmatmul.mubr.bf16.gmra.mrb[92].mxu1 %v25595_v22 }
 0x392   :  { %4078 = vmatprep.mubr.bf16.mxu1 %v25572_v51  ;;  %v21012_v51 = vld [vmem:[#allocation10] ss:$16 sps:$4 sm:$0xff]  }
 0x399   :  { %4079 = vmatmul.mubr.bf16.gmra.mrb[96].mxu1 %v25596_v58  ;;  %v21042_v58 = vld [vmem:[#allocation10 + $0xa0] ss:$16 sps:$4 sm:$0xff]  }
 0x39a   :  { %4088 = vmatprep.mubr.bf16.mxu1 %v25580_v48  ;;  %v21014_v48 = vld [vmem:[#allocation10 + $0x4] ss:$16 sps:$4 sm:$0xff]  }
 0x39b   :  { %13262 = vmatprep.subr.bf16.mxu0 %v21014_v48  ;;  %v25604_v48 = vld [vmem:[#allocation60_spill] sm:$0xff] }
 0x39c   :  { %13263 = vmatpush1.bf16.msra.mxu0 %v21012_v51  ;;  %v21045_v51 = vld [vmem:[#allocation10 + $0xa8] ss:$16 sps:$4 sm:$0xff]  }
 0x3a1   :  { %4089 = vmatmul.mubr.bf16.gmra.mrb[100].mxu1 %v25597_v0  ;;  %v21039_v0 = vld [vmem:[#allocation10 + $0x88] ss:$16 sps:$4 sm:$0xff]  }
 0x3a2   :  { %4098 = vmatprep.mubr.bf16.mxu1 %v25581_v46  ;;  %v25600_v46 = vmov 0  }
 0x3a9   :  { %4099 = vmatmul.mubr.bf16.gmra.mrb[104].mxu1 %v25598_v60  ;;  %v21047_v60 = vld [vmem:[#allocation10 + $0xac] ss:$16 sps:$4 sm:$0xff]  }
 0x3aa   :  { %4108 = vmatprep.mubr.bf16.mxu1 %v25582_v19  ;;  %v21020_v19 = vld [vmem:[#allocation10 + $0x24] ss:$16 sps:$4 sm:$0xff]  }
 0x3ab   :  { %13264 = vmatprep.subr.bf16.mxu0 %v21020_v19  ;;  %v25606_v19 = vld [vmem:[#allocation66_spill] sm:$0xff] }
 0x3b1   :  { %4109 = vmatmul.mubr.bf16.gmra.mrb[108].mxu1 %v23391_v50  ;;  %v21017_v50 = vld [vmem:[#allocation10 + $0xc] ss:$16 sps:$4 sm:$0xff]  }
 0x3b2   :  { %4118 = vmatprep.mubr.bf16.mxu1 %v25583_v14  ;;  %14284 = vmatprep.subr.bf16.mxu1 %v21017_v50  ;;  %v21015_v14 = vld [vmem:[#allocation10 + $0x8] ss:$16 sps:$4 sm:$0xff]  }
 0x3b3   :  { %v25605_v50 = vld [vmem:[#allocation61_spill] sm:$0xff] }
 0x3b9   :  { %4119 = vmatmul.mubr.bf16.gmra.mrb[112].mxu1 %v23401_v10  ;;  %v21018_v10 = vld [vmem:[#allocation10 + $0x20] ss:$16 sps:$4 sm:$0xff]  }
 0x3ba   :  { %4128 = vmatprep.mubr.bf16.mxu1 %v25584_v63  ;;  %v21023_v63 = vld [vmem:[#allocation10 + $0x2c] ss:$16 sps:$4 sm:$0xff]   ;;  %13265 = vmatpush1.bf16.msra.mxu0 %v21018_v10 }
 0x3bb   :  { %v25607_v10 = vld [vmem:[#allocation67_spill] sm:$0xff] }
 0x3c1   :  { %4129 = vmatmul.mubr.bf16.gmra.mrb[116].mxu1 %v23411_v34  ;;  %v21026_v34 = vld [vmem:[#allocation10 + $0x44] ss:$16 sps:$4 sm:$0xff]  }
 0x3c2   :  { %4138 = vmatprep.mubr.bf16.mxu1 %v25586_v28  ;;  %v25601_v28 = vld [vmem:[#allocation57_spill] sm:$0xff]  ;;  %13266 = vmatprep.subr.bf16.mxu0 %v21026_v34  ;;  %v25608_v34 = vld [vmem:[#allocation68_spill] sm:$0xff] }
 0x3c9   :  { %4139 = vmatmul.mubr.bf16.gmra.mrb[120].mxu1 %v23497_v5  ;;  %v21024_v5 = vld [vmem:[#allocation10 + $0x40] ss:$16 sps:$4 sm:$0xff]  }
 0x3ca   :  { %4148 = vmatprep.mubr.bf16.mxu1 %v25599_v42  ;;  %13267 = vmatpush1.bf16.msra.mxu0 %v21024_v5  ;;  %v25603_v42 = vld [vmem:[#allocation59_spill] sm:$0xff] }
 0x3cb   :  { %13268 = vmatprep.subr.bf16.mxu0 %v21032_v23  ;;  %v25611_v5 = vld [vmem:[#allocation71_spill] sm:$0xff]  ;;  %v21050_v23 = vld [vmem:[#allocation10 + $0xc4] ss:$16 sps:$4 sm:$0xff]  }
 0x3ce   :  { %13269 = vmatpush1.bf16.msra.mxu0 %v21030_v24  ;;  %v21051_v24 = vld [vmem:[#allocation10 + $0xc8] ss:$16 sps:$4 sm:$0xff]  }
 0x3cf   :  { %13270 = vmatprep.subr.bf16.mxu0 %v21038_v39  ;;  %v25613_v39 = vld [vmem:[#allocation73_spill] sm:$0xff] }
 0x3d1   :  { %4149 = vmatmul.mubr.bf16.gmra.mrb[124].mxu1 %v25595_v22  ;;  %v21041_v22 = vld [vmem:[#allocation10 + $0x8c] ss:$16 sps:$4 sm:$0xff]  }
 0x3d2   :  { %4191 = vmatprep.mubr.bf16.mxu1 %v25600_v46  ;;  %13271 = vmatpush1.bf16.msra.mxu0 %v21036_v32  ;;  %v21054_v32 = vld [vmem:[#allocation10 + $0xe0] ss:$16 sps:$4 sm:$0xff]  }
 0x3d3   :  { %13272 = vmatprep.subr.bf16.mxu0 %v21044_v8  ;;  %v21062_v8 = vld [vmem:[#allocation10 + $0x104] ss:$16 sps:$4 sm:$0xff]  }
 0x3d6   :  { %13273 = vmatpush1.bf16.msra.mxu0 %v21042_v58  ;;  %v21060_v58 = vld [vmem:[#allocation10 + $0x100] ss:$16 sps:$4 sm:$0xff]  }
 0x3d7   :  { %13274 = vmatprep.subr.bf16.mxu0 %v21050_v23  ;;  %v21078_v23 = vld [vmem:[#allocation10 + $0x160] ss:$16 sps:$4 sm:$0xff]  }
 0x3d9   :  { %4192 = vmatmul.mubr.bf16.vlgmr.msra.gmra.mrb[64].mxu1 %v25601_v28  ;;  %v25612_v28 = vld [vmem:[#allocation72_spill] sm:$0xff] }
 0x3da   :  { %4201 = vmatprep.mubr.bf16.mxu1 %v25600_v46  ;;  %14285 = vmatpush1.bf16.msra.mxu1 %v21015_v14  ;;  %v25609_v14 = vld [vmem:[#allocation69_spill] sm:$0xff] }
 0x3db   :  { %14286 = vmatprep.subr.bf16.mxu1 %v21023_v63  ;;  %v25610_v63 = vld [vmem:[#allocation70_spill] sm:$0xff] }
 0x3de   :  { %14287 = vmatpush1.bf16.msra.mxu1 %v21021_v2  ;;  %v21053_v2 = vld [vmem:[#allocation10 + $0xcc] ss:$16 sps:$4 sm:$0xff]  }
 0x3df   :  { %14288 = vmatprep.subr.bf16.mxu1 %v21029_v13  ;;  %v21048_v13 = vld [vmem:[#allocation10 + $0xc0] ss:$16 sps:$4 sm:$0xff]  }
 0x3e0   :  { %13275 = vmatpush1.bf16.msra.mxu0 %v21048_v13  ;;  %v21086_v13 = vld [vmem:[#allocation10 + $0x184] ss:$16 sps:$4 sm:$0xff]  }
 0x3e1   :  { %4202 = vmatmul.mubr.bf16.gmra.mrb[68].mxu1 %v25602_v43  ;;  %v21057_v43 = vld [vmem:[#allocation10 + $0xe8] ss:$16 sps:$4 sm:$0xff]  }
 0x3e2   :  { %4211 = vmatprep.mubr.bf16.mxu1 %v25600_v46  ;;  %14289 = vmatpush1.bf16.msra.mxu1 %v21027_v33  ;;  %v21056_v33 = vld [vmem:[#allocation10 + $0xe4] ss:$16 sps:$4 sm:$0xff]  }
 0x3e3   :  { %14290 = vmatprep.subr.bf16.mxu1 %v21035_v52  ;;  %v21059_v52 = vld [vmem:[#allocation10 + $0xec] ss:$16 sps:$4 sm:$0xff]   ;;  %13276 = vmatprep.subr.bf16.mxu0 %v21056_v33  ;;  %v21087_v33 = vld [vmem:[#allocation10 + $0x188] ss:$16 sps:$4 sm:$0xff]  }
 0x3e4   :  { %13277 = vmatpush1.bf16.msra.mxu0 %v21054_v32  ;;  %v21095_v32 = vld [vmem:[#allocation10 + $0x1ac] ss:$16 sps:$4 sm:$0xff]  }
 0x3e5   :  { %13278 = vmatprep.subr.bf16.mxu0 %v21062_v8  ;;  %v21093_v8 = vld [vmem:[#allocation10 + $0x1a8] ss:$16 sps:$4 sm:$0xff]  }
 0x3e6   :  { %14291 = vmatpush1.bf16.msra.mxu1 %v21033_v62  ;;  %v21065_v62 = vld [vmem:[#allocation10 + $0x10c] ss:$16 sps:$4 sm:$0xff]  }
 0x3e7   :  { %14292 = vmatprep.subr.bf16.mxu1 %v21041_v22  ;;  %v25614_v22 = vld [vmem:[#allocation74_spill] sm:$0xff] }
 0x3e8   :  { %13279 = vmatpush1.bf16.msra.mxu0 %v21060_v58  ;;  %v21096_v58 = vld [vmem:[#allocation10 + $0x1c0] ss:$16 sps:$4 sm:$0xff]  }
 0x3e9   :  { %4212 = vmatmul.mubr.bf16.gmra.mrb[72].mxu1 %v25603_v42  ;;  %v21068_v42 = vld [vmem:[#allocation10 + $0x124] ss:$16 sps:$4 sm:$0xff]  }
 0x3ea   :  { %4221 = vmatprep.mubr.bf16.mxu1 %v25600_v46  ;;  %14293 = vmatpush1.bf16.msra.mxu1 %v21039_v0  ;;  %v21063_v0 = vld [vmem:[#allocation10 + $0x108] ss:$16 sps:$4 sm:$0xff]  }
 0x3eb   :  { %14294 = vmatprep.subr.bf16.mxu1 %v21047_v60  ;;  %v25615_v60 = vld [vmem:[#allocation75_spill] sm:$0xff]  ;;  %13280 = vmatprep.subr.bf16.mxu0 %v21068_v42 }
 0x3ec   :  { %v21107_v42 = vld [vmem:[#allocation10 + $0x1ec] ss:$16 sps:$4 sm:$0xff]  }
 0x3ee   :  { %14295 = vmatpush1.bf16.msra.mxu1 %v21045_v51  ;;  %v21071_v51 = vld [vmem:[#allocation10 + $0x12c] ss:$16 sps:$4 sm:$0xff]  }
 0x3ef   :  { %14296 = vmatprep.subr.bf16.mxu1 %v21053_v2  ;;  %v21081_v2 = vld [vmem:[#allocation10 + $0x168] ss:$16 sps:$4 sm:$0xff]  }
 0x3f1   :  { %4222 = vmatmul.mubr.bf16.gmra.mrb[76].mxu1 %v25604_v48  ;;  %v21066_v48 = vld [vmem:[#allocation10 + $0x120] ss:$16 sps:$4 sm:$0xff]  }
 0x3f2   :  { %4231 = vmatprep.mubr.bf16.mxu1 %v25600_v46  ;;  %14297 = vmatpush1.bf16.msra.mxu1 %v21051_v24  ;;  %v21089_v24 = vld [vmem:[#allocation10 + $0x18c] ss:$16 sps:$4 sm:$0xff]  }
 0x3f3   :  { %14298 = vmatprep.subr.bf16.mxu1 %v21059_v52  ;;  %13281 = vmatpush1.bf16.msra.mxu0 %v21066_v48  ;;  %v21092_v52 = vld [vmem:[#allocation10 + $0x1a4] ss:$16 sps:$4 sm:$0xff]   ;;  %v21105_v48 = vld [vmem:[#allocation10 + $0x1e8] ss:$16 sps:$4 sm:$0xff]  }
 0x3f6   :  { %14299 = vmatpush1.bf16.msra.mxu1 %v21057_v43  ;;  %v21090_v43 = vld [vmem:[#allocation10 + $0x1a0] ss:$16 sps:$4 sm:$0xff]  }
 0x3f7   :  { %14300 = vmatprep.subr.bf16.mxu1 %v21065_v62  ;;  %v21098_v62 = vld [vmem:[#allocation10 + $0x1c4] ss:$16 sps:$4 sm:$0xff]  }
 0x3f9   :  { %4232 = vmatmul.mubr.bf16.gmra.mrb[80].mxu1 %v25605_v50  ;;  %v21069_v50 = vld [vmem:[#allocation10 + $0x128] ss:$16 sps:$4 sm:$0xff]  }
 0x3fa   :  { %4241 = vmatprep.mubr.bf16.mxu1 %v25600_v46  ;;  %14301 = vmatpush1.bf16.msra.mxu1 %v21063_v0  ;;  %v21099_v0 = vld [vmem:[#allocation10 + $0x1c8] ss:$16 sps:$4 sm:$0xff]  }
 0x3fb   :  { %14302 = vmatprep.subr.bf16.mxu1 %v21071_v51  ;;  %v21102_v51 = vld [vmem:[#allocation10 + $0x1e0] ss:$16 sps:$4 sm:$0xff]  }
 0x3fe   :  { %14303 = vmatpush1.bf16.msra.mxu1 %v21069_v50  ;;  %v4486_v50 = vlaneseq }
 0x401   :  { %4242 = vmatmul.mubr.bf16.gmra.mrb[84].mxu1 %v25606_v19  ;;  %v25616_v19 = vld [vmem:[#allocation76_spill] sm:$0xff] }
 0x402   :  { %4251 = vmatprep.mubr.bf16.mxu1 %v25600_v46 }
 0x409   :  { %4252 = vmatmul.mubr.bf16.gmra.mrb[88].mxu1 %v25607_v10  ;;  %v21074_v10 = vld [vmem:[#allocation10 + $0x144] ss:$16 sps:$4 sm:$0xff]  }
 0x40a   :  { %4261 = vmatprep.mubr.bf16.mxu1 %v25600_v46  ;;  %13282 = vmatprep.subr.bf16.mxu0 %v21074_v10 }
 0x411   :  { %4262 = vmatmul.mubr.bf16.gmra.mrb[92].mxu1 %v25608_v34  ;;  %v21077_v34 = vld [vmem:[#allocation10 + $0x14c] ss:$16 sps:$4 sm:$0xff]  }
 0x412   :  { %4271 = vmatprep.mubr.bf16.mxu1 %v25600_v46  ;;  %14304 = vmatprep.subr.bf16.mxu1 %v21077_v34 }
 0x419   :  { %4272 = vmatmul.mubr.bf16.gmra.mrb[96].mxu1 %v25609_v14  ;;  %v21072_v14 = vld [vmem:[#allocation10 + $0x140] ss:$16 sps:$4 sm:$0xff]  }
 0x41a   :  { %4281 = vmatprep.mubr.bf16.mxu1 %v25600_v46  ;;  %13283 = vmatpush1.bf16.msra.mxu0 %v21072_v14  ;;  %v4352_v14 = vld [vmem:[#allocation9] sm:$0x3] }
 0x421   :  { %4282 = vmatmul.mubr.bf16.gmra.mrb[100].mxu1 %v25610_v63  ;;  %v21075_v63 = vld [vmem:[#allocation10 + $0x148] ss:$16 sps:$4 sm:$0xff]  }
 0x422   :  { %4291 = vmatprep.mubr.bf16.mxu1 %v25600_v46  ;;  %14305 = vmatpush1.bf16.msra.mxu1 %v21075_v63  ;;  %v22938_v63 = vmov 1983009808  }
 0x429   :  { %4292 = vmatmul.mubr.bf16.gmra.mrb[104].mxu1 %v25611_v5  ;;  %v21080_v5 = vld [vmem:[#allocation10 + $0x164] ss:$16 sps:$4 sm:$0xff]  }
 0x42a   :  { %4301 = vmatprep.mubr.bf16.mxu1 %v25600_v46  ;;  %13284 = vmatprep.subr.bf16.mxu0 %v21080_v5  ;;  %v4484_v5 = vunpack.c.l.s4 %v22938_v63 }
 0x42b   :  { %13285 = vmatpush1.bf16.msra.mxu0 %v21078_v23 }
 0x42c   :  { %13286 = vmatprep.subr.bf16.mxu0 %v21086_v13 }
 0x431   :  { %4302 = vmatmul.mubr.bf16.gmra.mrb[108].mxu1 %v25612_v28  ;;  %v21083_v28 = vld [vmem:[#allocation10 + $0x16c] ss:$16 sps:$4 sm:$0xff]  }
 0x432   :  { %4311 = vmatprep.mubr.bf16.mxu1 %v25600_v46  ;;  %14306 = vmatprep.subr.bf16.mxu1 %v21083_v28 }
 0x433   :  { %14307 = vmatpush1.bf16.msra.mxu1 %v21081_v2  ;;  %v4485_v2 = vunpack.c.0.s8 %v4484_v5 }
 0x434   :  { %14308 = vmatprep.subr.bf16.mxu1 %v21089_v24 }
 0x437   :  { %14309 = vmatpush1.bf16.msra.mxu1 %v21087_v33 }
 0x438   :  { %14310 = vmatprep.subr.bf16.mxu1 %v21095_v32 }
 0x439   :  { %4312 = vmatmul.mubr.bf16.gmra.mrb[112].mxu1 %v25613_v39  ;;  %v21084_v39 = vld [vmem:[#allocation10 + $0x180] ss:$16 sps:$4 sm:$0xff]  }
 0x43a   :  { %4321 = vmatprep.mubr.bf16.mxu1 %v25600_v46  ;;  %13287 = vmatpush1.bf16.msra.mxu0 %v21084_v39 }
 0x43b   :  { %13288 = vmatprep.subr.bf16.mxu0 %v21092_v52  ;;  %14311 = vmatpush1.bf16.msra.mxu1 %v21093_v8 }
 0x43e   :  { %13289 = vmatpush1.bf16.msra.mxu0 %v21090_v43 }
 0x43f   :  { %13290 = vmatprep.subr.bf16.mxu0 %v21098_v62 }
 0x441   :  { %4322 = vmatmul.mubr.bf16.gmra.mrb[116].mxu1 %v25614_v22  ;;  %v21101_v22 = vld [vmem:[#allocation10 + $0x1cc] ss:$16 sps:$4 sm:$0xff]  }
 0x442   :  { %4331 = vmatprep.mubr.bf16.mxu1 %v25600_v46  ;;  %14312 = vmatprep.subr.bf16.mxu1 %v21101_v22 }
 0x443   :  { %13291 = vmatpush1.bf16.msra.mxu0 %v21096_v58  ;;  %14313 = vmatpush1.bf16.msra.mxu1 %v21099_v0 }
 0x444   :  { %14314 = vmatprep.subr.bf16.mxu1 %v21107_v42 }
 0x447   :  { %14315 = vmatpush1.bf16.msra.mxu1 %v21105_v48 }
 0x449   :  { %4332 = vmatmul.mubr.bf16.gmra.mrb[120].mxu1 %v25615_v60  ;;  %v21104_v60 = vld [vmem:[#allocation10 + $0x1e4] ss:$16 sps:$4 sm:$0xff]  }
 0x44a   :  { %4341 = vmatprep.mubr.bf16.mxu1 %v25600_v46  ;;  %13292 = vmatprep.subr.bf16.mxu0 %v21104_v60 }
 0x44b   :  { %13293 = vmatpush1.bf16.msra.mxu0 %v21102_v51 }
 0x451   :  { %4342 = vmatmul.mubr.bf16.gmra.mrb[124].mxu1 %v25616_v19  ;;  %v4487_v19 = vshrl.u32 %v4486_v50, 7 }
 0x453   :  { %v24041_v10 = vsub.s32 0, %v4487_v19  ;;  %v24043_v34 = vsub.s32 1, %v4487_v19  ;;  %v24047_v24 = vsub.s32 %v4485_v2, %v4487_v19 }
 0x455   :  { %25617 = vst [vmem:[#allocation48_spill] sm:$0xff] %v24043_v34  ;;  %v5765_v28 = vrot.slane %v4352_v14, %v24041_v10  ;;  %v5769_v23 = vrot.slane %v4352_v14, %v24043_v34 }
 0x457   :  { %v5770_v13 = vcombine.low %v5765_v28, %v5769_v23  ;;  %v5771_v33 = vcombine.high %v5765_v28, %v5769_v23 }
 0x459   :  { %v24051_v43 = vrot.slane %v5770_v13, %v24047_v24  ;;  %v24057_v51 = vrot.slane %v5771_v33, %v24047_v24 }
 0x45b   :  { %v24066_v28 = vrot.slane %v24051_v43, 1 }
 0x4ac   :  { %v4193_v39 = vpop.f32.mrb[64].mxu1 }
 0x4ad   :  { %v4353_v52 = vmax.f32 %v23745_v38, %v4193_v39  ;;  %v4195_v32 = vpop.f32.mrb[65].mxu1  ;;  %v24061_v38 = vcombine.high %v24051_v43, %v24051_v43 }
 0x4ae   :  { %v4354_v8 = vmax.f32 %v23748_v15, %v4195_v32  ;;  %v4197_v62 = vpop.f32.mrb[66].mxu1 }
 0x4af   :  { %v4355_v22 = vmax.f32 %v23751_v41, %v4197_v62  ;;  %v4199_v58 = vpop.f32.mrb[67].mxu1  ;;  %v24076_v62 = vrot.slane %v24061_v38, 1 }
 0x4b0   :  { %v4481_v0 = vcombine.low %v4353_v52, %v4354_v8  ;;  %v4482_v60 = vcombine.high %v4353_v52, %v4354_v8  ;;  %v4356_v42 = vmax.f32 %v23754_v25, %v4199_v58  ;;  %v24070_v25 = vcombine.high %v24057_v51, %v24057_v51 }
 0x4b2   :  { %v4489_v48 = vrot.slane %v4481_v0, %v24047_v24  ;;  %v4496_v50 = vrot.slane %v4482_v60, %v24047_v24  ;;  %v4499_v15 = vcombine.low %v4355_v22, %v4356_v42  ;;  %v4500_v14 = vcombine.high %v4355_v22, %v4356_v42 }
 0x4b3   :  { %v24086_v20 = vrot.slane %v24070_v25, 1 }
 0x4b4   :  { %v4497_v63 = vcombine.high %v4489_v48, %v4489_v48  ;;  %v4498_v41 = vcombine.high %v4496_v50, %v4496_v50  ;;  %v4203_v5 = vpop.f32.mrb[68].mxu1  ;;  %v18287_v23 = vrot.slane %v4489_v48, 9  ;;  %v4507_v2 = vrot.slane %v4499_v15, %v24047_v24 }
 0x4b5   :  { %v4514_v13 = vrot.slane %v4500_v14, %v24047_v24  ;;  %v4357_v39 = vmax.f32 %v23759_v55, %v4203_v5  ;;  %v4205_v33 = vpop.f32.mrb[69].mxu1  ;;  %v18289_v32 = vrot.slane %v4496_v50, 9  ;;  %v24079_v15 = vsub.s32 2, %v4487_v19 }
 0x4b6   :  { %v18288_v52 = vrot.slane %v4497_v63, 9  ;;  %v18290_v8 = vrot.slane %v4498_v41, 9  ;;  %v4207_v22 = vpop.f32.mrb[70].mxu1  ;;  %v4515_v58 = vcombine.high %v4507_v2, %v4507_v2  ;;  %v18291_v60 = vrot.slane %v4507_v2, 9 }
 0x4b7   :  { %v4516_v0 = vcombine.high %v4514_v13, %v4514_v13  ;;  %v18293_v42 = vrot.slane %v4514_v13, 9  ;;  %v4209_v34 = vpop.f32.mrb[71].mxu1  ;;  %v4358_v46 = vmax.f32 %v23762_v7, %v4205_v33  ;;  %v4359_v14 = vmax.f32 %v23765_v11, %v4207_v22 }
 0x4b8   :  { %v24083_v55 = vrot.slane %v24057_v51, 1  ;;  %v5569_v5 = vmax.f32 %v4489_v48, %v18287_v23  ;;  %v18292_v40 = vrot.slane %v4515_v58, 9  ;;  %v5571_v17 = vmax.f32 %v4496_v50, %v18289_v32 }
 0x4b9   :  { %v18294_v45 = vrot.slane %v4516_v0, 9  ;;  %v4517_v56 = vcombine.low %v4357_v39, %v4358_v46  ;;  %v4518_v27 = vcombine.high %v4357_v39, %v4358_v46  ;;  %v4360_v61 = vmax.f32 %v23768_v47, %v4209_v34 }
 0x4ba   :  { %v5570_v1 = vmax.f32 %v4497_v63, %v18288_v52  ;;  %v5572_v7 = vmax.f32 %v4498_v41, %v18290_v8  ;;  %v5573_v19 = vmax.f32 %v4507_v2, %v18291_v60  ;;  %v5575_v33 = vmax.f32 %v4514_v13, %v18293_v42 }
 0x4bb   :  { %v4525_v11 = vrot.slane %v4517_v56, %v24047_v24  ;;  %v4532_v22 = vrot.slane %v4518_v27, %v24047_v24  ;;  %v4535_v59 = vcombine.low %v4359_v14, %v4360_v61  ;;  %v4536_v48 = vcombine.high %v4359_v14, %v4360_v61 }
 0x4bc   :  { %v4213_v23 = vpop.f32.mrb[72].mxu1  ;;  %v24093_v12 = vmax.f32 %v4515_v58, %v18292_v40  ;;  %v24095_v50 = vmax.f32 %v4516_v0, %v18294_v45 }
 0x4bd   :  { %v24098_v46 = vmax.f32 %v23773_v30, %v4213_v23  ;;  %v4215_v47 = vpop.f32.mrb[73].mxu1  ;;  %v4533_v63 = vcombine.high %v4525_v11, %v4525_v11  ;;  %v4534_v41 = vcombine.high %v4532_v22, %v4532_v22  ;;  %v18295_v56 = vrot.slane %v4525_v11, 9 }
 0x4be   :  { %v18297_v2 = vrot.slane %v4532_v22, 9  ;;  %v4217_v27 = vpop.f32.mrb[74].mxu1  ;;  %v4543_v61 = vrot.slane %v4535_v59, %v24047_v24  ;;  %v4550_v13 = vrot.slane %v4536_v48, %v24047_v24  ;;  %v24104_v40 = vmax.f32 %v23776_v21, %v4215_v47 }
 0x4bf   :  { %v24107_v45 = vmax.f32 %v23779_v29, %v4217_v27  ;;  %v24109_v30 = vpop.f32.mrb[75].mxu1  ;;  %v18296_v39 = vrot.slane %v4533_v63, 9  ;;  %v18298_v52 = vrot.slane %v4534_v41, 9  ;;  %v5577_v32 = vmax.f32 %v4525_v11, %v18295_v56 }
 0x4c0   :  { %v5579_v8 = vmax.f32 %v4532_v22, %v18297_v2  ;;  %v4551_v58 = vcombine.high %v4543_v61, %v4543_v61  ;;  %v4552_v0 = vcombine.high %v4550_v13, %v4550_v13  ;;  %v18299_v60 = vrot.slane %v4543_v61, 9 }
 0x4c1   :  { %v18301_v42 = vrot.slane %v4550_v13, 9  ;;  %v5578_v59 = vmax.f32 %v4533_v63, %v18296_v39  ;;  %v5580_v14 = vmax.f32 %v4534_v41, %v18298_v52  ;;  %v5697_v48 = vmax.f32 %v5569_v5, %v5577_v32 }
 0x4c2   :  { %v5699_v23 = vmax.f32 %v5571_v17, %v5579_v8  ;;  %v18300_v21 = vrot.slane %v4551_v58, 9  ;;  %v18302_v29 = vrot.slane %v4552_v0, 9  ;;  %v5581_v47 = vmax.f32 %v4543_v61, %v18299_v60 }
 0x4c3   :  { %v5583_v27 = vmax.f32 %v4550_v13, %v18301_v42  ;;  %v5698_v34 = vmax.f32 %v5570_v1, %v5578_v59  ;;  %v5700_v9 = vmax.f32 %v5572_v7, %v5580_v14  ;;  %v5800_v11 = vadd.f32 %v24051_v43, %v5697_v48  ;;  %v21113_v42 = vld [vmem:[#allocation10 + $0x20c] ss:$16 sps:$4 sm:$0xff]  }
 0x4c4   :  { %v5802_v22 = vadd.f32 %v24061_v38, %v5699_v23  ;;  %v24113_v56 = vpop.f32.mrb[76].mxu1  ;;  %v5582_v2 = vmax.f32 %v4551_v58, %v18300_v21  ;;  %v5584_v4 = vmax.f32 %v4552_v0, %v18302_v29  ;;  %v5701_v63 = vmax.f32 %v5573_v19, %v5581_v47  ;;  %14357 = vmatprep.subr.bf16.mxu1 %v21113_v42 }
 0x4c5   :  { %v5703_v41 = vmax.f32 %v5575_v33, %v5583_v27  ;;  %v24115_v17 = vpop.f32.mrb[77].mxu1  ;;  %v5801_v5 = vadd.f32 %v24066_v28, %v5698_v34  ;;  %v5803_v61 = vadd.f32 %v24076_v62, %v5700_v9  ;;  %v5864_v13 = vmax.f32 %v5800_v11, 0.0 }
 0x4c6   :  { %v5866_v1 = vmax.f32 %v5802_v22, 0.0  ;;  %v24119_v7 = vpop.f32.mrb[78].mxu1  ;;  %v5702_v39 = vmax.f32 %v24093_v12, %v5582_v2  ;;  %v5704_v52 = vmax.f32 %v24095_v50, %v5584_v4  ;;  %v5804_v32 = vadd.f32 %v24057_v51, %v5701_v63  ;;  %v21110_v50 = vld [vmem:[#allocation10 + $0x204] ss:$16 sps:$4 sm:$0xff]  }
 0x4c7   :  { %v5806_v19 = vadd.f32 %v24070_v25, %v5703_v41  ;;  %v24125_v33 = vpop.f32.mrb[79].mxu1  ;;  %v5865_v8 = vmax.f32 %v5801_v5, 0.0  ;;  %v5867_v34 = vmax.f32 %v5803_v61, 0.0  ;;  %v6067_v9 = vrot.slane %v5864_v13, %v24041_v10  ;;  %13335 = vmatprep.subr.bf16.mxu0 %v21110_v50 }
 0x4c8   :  { %v6071_v58 = vrot.slane %v5864_v13, %v24079_v15  ;;  %v6083_v0 = vrot.slane %v5866_v1, %v24041_v10  ;;  %v6087_v60 = vrot.slane %v5866_v1, %v24079_v15  ;;  %v5805_v12 = vadd.f32 %v24083_v55, %v5702_v39 }
 0x4c9   :  { %v5807_v4 = vadd.f32 %v24086_v20, %v5704_v52  ;;  %v6075_v59 = vrot.slane %v5865_v8, %v24041_v10  ;;  %v6079_v14 = vrot.slane %v5865_v8, %v24079_v15  ;;  %v6091_v48 = vrot.slane %v5867_v34, %v24041_v10 }
 0x4ca   :  { %v6095_v23 = vrot.slane %v5867_v34, %v24079_v15  ;;  %v5868_v21 = vmax.f32 %v5804_v32, 0.0  ;;  %v5869_v29 = vmax.f32 %v5805_v12, 0.0  ;;  %v5870_v47 = vmax.f32 %v5806_v19, 0.0 }
 0x4cb   :  { %v5871_v27 = vmax.f32 %v5807_v4, 0.0  ;;  %v6577_v11 = vsel %vm6576_vm1, %v6075_v59, %v6067_v9  ;;  %v6588_v22 = vsel %vm6576_vm1, %v6079_v14, %v6071_v58  ;;  %v4553_v2 = vcombine.low %v24098_v46, %v24104_v40 }
 0x4cc   :  { %v4554_v63 = vcombine.high %v24098_v46, %v24104_v40  ;;  %v4233_v41 = vpop.f32.mrb[80].mxu1  ;;  %v6579_v5 = vsel %vm6578_vm2, %v6083_v0, %v6577_v11  ;;  %v6589_v61 = vsel %vm6578_vm2, %v6087_v60, %v6588_v22  ;;  %v6099_v13 = vrot.slane %v5868_v21, %v24041_v10 }
 0x4cd   :  { %v6103_v1 = vrot.slane %v5868_v21, %v24079_v15  ;;  %v24147_v39 = vpop.f32.mrb[81].mxu1  ;;  %v6581_v52 = vsel %vm6580_vm3, %v6091_v48, %v6579_v5  ;;  %v6590_v32 = vsel %vm6580_vm3, %v6095_v23, %v6589_v61  ;;  %v6107_v19 = vrot.slane %v5869_v29, %v24041_v10 }
 0x4ce   :  { %v6111_v8 = vrot.slane %v5869_v29, %v24079_v15  ;;  %v24153_v46 = vpop.f32.mrb[82].mxu1  ;;  %v6115_v40 = vrot.slane %v5870_v47, %v24041_v10  ;;  %v6119_v34 = vrot.slane %v5870_v47, %v24079_v15  ;;  %v6123_v9 = vrot.slane %v5871_v27, %v24041_v10 }
 0x4cf   :  { %v6127_v58 = vrot.slane %v5871_v27, %v24079_v15  ;;  %v24159_v0 = vpop.f32.mrb[83].mxu1  ;;  %v6583_v60 = vsel %vm6582_vm4, %v6099_v13, %v6581_v52  ;;  %v6591_v12 = vsel %vm6582_vm4, %v6103_v1, %v6590_v32  ;;  %v4561_v4 = vrot.slane %v4553_v2, %v24047_v24 }
 0x4d0   :  { %v4568_v50 = vrot.slane %v4554_v63, %v24047_v24  ;;  %v6585_v42 = vsel %vm6584_vm5, %v6107_v19, %v6583_v60  ;;  %v6592_v59 = vsel %vm6584_vm5, %v6111_v8, %v6591_v12  ;;  %6713 = vst [vmem:[#allocation3 + $0x48] sm:$0x1] %v6123_v9  ;;  %v4364_v14 = vmax.f32 %v23782_v49, %v24109_v30 }
 0x4d1   :  { %6714 = vst [vmem:[#allocation3 + $0x50] sm:$0x1] %v6127_v58  ;;  %v4365_v48 = vmax.f32 %v23787_v54, %v24113_v56  ;;  %v6587_v23 = vsel %vm6586_vm6, %v6115_v40, %v6585_v42  ;;  %v6593_v21 = vsel %vm6586_vm6, %v6119_v34, %v6592_v59  ;;  %v4569_v29 = vcombine.high %v4561_v4, %v4561_v4  ;;  %v25619_v54 = vld [vmem:[#allocation99_spill] sm:$0xff]  ;;  %v25621_v42 = vld [vmem:[#allocation101_spill] sm:$0xff] }
 0x4d2   :  { %v4570_v47 = vcombine.high %v4568_v50, %v4568_v50  ;;  %6711 = vst [vmem:[#allocation3 + $0x30] sm:$0xfe] %v6587_v23  ;;  %6712 = vst [vmem:[#allocation3 + $0x38] sm:$0xfe] %v6593_v21  ;;  %v18303_v27 = vrot.slane %v4561_v4, 9  ;;  %v18305_v11 = vrot.slane %v4568_v50, 9  ;;  %v4571_v22 = vcombine.low %v24107_v45, %v4364_v14 }
 0x4d3   :  { %v4572_v2 = vcombine.high %v24107_v45, %v4364_v14  ;;  %v18304_v63 = vrot.slane %v4569_v29, 9  ;;  %v4366_v49 = vmax.f32 %v23790_v35, %v24115_v17  ;;  %v4367_v30 = vmax.f32 %v25619_v54, %v24119_v7 }
 0x4d4   :  { %v18306_v5 = vrot.slane %v4570_v47, 9  ;;  %v24179_v56 = vpop.f32.mrb[84].mxu1  ;;  %v5585_v61 = vmax.f32 %v4561_v4, %v18303_v27  ;;  %v5587_v13 = vmax.f32 %v4568_v50, %v18305_v11  ;;  %v4579_v1 = vrot.slane %v4571_v22, %v24047_v24  ;;  %v25620_v4 = vld [vmem:[#allocation100_spill] sm:$0xff] }
 0x4d5   :  { %v4586_v52 = vrot.slane %v4572_v2, %v24047_v24  ;;  %v24183_v32 = vpop.f32.mrb[85].mxu1  ;;  %v5586_v19 = vmax.f32 %v4569_v29, %v18304_v63  ;;  %v4589_v8 = vcombine.low %v4365_v48, %v4366_v49  ;;  %v4590_v40 = vcombine.high %v4365_v48, %v4366_v49 }
 0x4d6   :  { %v5588_v45 = vmax.f32 %v4570_v47, %v18306_v5  ;;  %v24185_v34 = vpop.f32.mrb[86].mxu1  ;;  %v4587_v35 = vcombine.high %v4579_v1, %v4579_v1  ;;  %v18307_v9 = vrot.slane %v4579_v1, 9  ;;  %v4368_v50 = vmax.f32 %v25620_v4, %v24125_v33 }
 0x4d7   :  { %v4588_v17 = vcombine.high %v4586_v52, %v4586_v52  ;;  %v18309_v7 = vrot.slane %v4586_v52, 9  ;;  %v24187_v58 = vpop.f32.mrb[87].mxu1  ;;  %v4597_v60 = vrot.slane %v4589_v8, %v24047_v24  ;;  %v4604_v12 = vrot.slane %v4590_v40, %v24047_v24 }
 0x4d8   :  { %v24194_v59 = vmax.f32 %v25621_v42, %v4233_v41  ;;  %v18308_v14 = vrot.slane %v4587_v35, 9  ;;  %v5589_v23 = vmax.f32 %v4579_v1, %v18307_v9  ;;  %v4607_v63 = vcombine.low %v4367_v30, %v4368_v50 }
 0x4d9   :  { %v18310_v48 = vrot.slane %v4588_v17, 9  ;;  %v24196_v21 = vmax.f32 %v4586_v52, %v18309_v7  ;;  %v4605_v29 = vcombine.high %v4597_v60, %v4597_v60  ;;  %v4606_v47 = vcombine.high %v4604_v12, %v4604_v12  ;;  %v25622_v52 = vld [vmem:[#allocation102_spill] sm:$0xff]  ;;  %v25623_v7 = vld [vmem:[#allocation103_spill] sm:$0xff] }
 0x4da   :  { %v18311_v27 = vrot.slane %v4597_v60, 9  ;;  %v18313_v11 = vrot.slane %v4604_v12, 9  ;;  %v5590_v22 = vmax.f32 %v4587_v35, %v18308_v14  ;;  %v4608_v5 = vcombine.high %v4367_v30, %v4368_v50 }
 0x4db   :  { %v5592_v2 = vmax.f32 %v4588_v17, %v18310_v48  ;;  %v18312_v49 = vrot.slane %v4605_v29, 9  ;;  %v18314_v54 = vrot.slane %v4606_v47, 9  ;;  %v4615_v41 = vrot.slane %v4607_v63, %v24047_v24 }
 0x4dc   :  { %v5593_v8 = vmax.f32 %v4597_v60, %v18311_v27  ;;  %v5595_v33 = vmax.f32 %v4604_v12, %v18313_v11  ;;  %v24198_v40 = vpop.f32.mrb[88].mxu1  ;;  %v4622_v1 = vrot.slane %v4608_v5, %v24047_v24  ;;  %v24204_v9 = vmax.f32 %v25622_v52, %v24147_v39 }
 0x4dd   :  { %v24208_v35 = vmax.f32 %v25623_v7, %v24153_v46  ;;  %v24210_v17 = vpop.f32.mrb[89].mxu1  ;;  %v5594_v30 = vmax.f32 %v4605_v29, %v18312_v49  ;;  %v5596_v4 = vmax.f32 %v4606_v47, %v18314_v54  ;;  %v4623_v42 = vcombine.high %v4615_v41, %v4615_v41 }
 0x4de   :  { %v5705_v60 = vmax.f32 %v5585_v61, %v5593_v8  ;;  %v5707_v12 = vmax.f32 %v5587_v13, %v5595_v33  ;;  %v24212_v50 = vpop.f32.mrb[90].mxu1  ;;  %v4624_v14 = vcombine.high %v4622_v1, %v4622_v1  ;;  %v18315_v48 = vrot.slane %v4615_v41, 9 }
 0x4df   :  { %v18317_v27 = vrot.slane %v4622_v1, 9  ;;  %v24214_v11 = vpop.f32.mrb[91].mxu1  ;;  %v5706_v39 = vmax.f32 %v5586_v19, %v5594_v30  ;;  %v5708_v63 = vmax.f32 %v5588_v45, %v5596_v4  ;;  %v18316_v52 = vrot.slane %v4623_v42, 9 }
 0x4e0   :  { %v5808_v5 = vadd.f32 %v24051_v43, %v5705_v60  ;;  %v5810_v46 = vadd.f32 %v24061_v38, %v5707_v12  ;;  %v18318_v7 = vrot.slane %v4624_v14, 9  ;;  %v5597_v29 = vmax.f32 %v4615_v41, %v18315_v48 }
 0x4e1   :  { %v5599_v47 = vmax.f32 %v4622_v1, %v18317_v27  ;;  %v5809_v61 = vadd.f32 %v24066_v28, %v5706_v39  ;;  %v5811_v13 = vadd.f32 %v24076_v62, %v5708_v63  ;;  %v5598_v8 = vmax.f32 %v4623_v42, %v18316_v52 }
 0x4e2   :  { %v5872_v49 = vmax.f32 %v5808_v5, 0.0  ;;  %v5874_v54 = vmax.f32 %v5810_v46, 0.0  ;;  %v5600_v33 = vmax.f32 %v4624_v14, %v18318_v7  ;;  %v5709_v57 = vmax.f32 %v5589_v23, %v5597_v29 }
 0x4e3   :  { %v5711_v19 = vmax.f32 %v24196_v21, %v5599_v47  ;;  %v5873_v45 = vmax.f32 %v5809_v61, 0.0  ;;  %v5875_v30 = vmax.f32 %v5811_v13, 0.0  ;;  %v5710_v48 = vmax.f32 %v5590_v22, %v5598_v8 }
 0x4e4   :  { %v6131_v4 = vrot.slane %v5872_v49, %v24041_v10  ;;  %v6135_v60 = vrot.slane %v5872_v49, %v24079_v15  ;;  %v24223_v12 = vpop.f32.mrb[92].mxu1  ;;  %v6147_v41 = vrot.slane %v5874_v54, %v24041_v10  ;;  %v6151_v1 = vrot.slane %v5874_v54, %v24079_v15 }
 0x4e5   :  { %v5712_v27 = vmax.f32 %v5592_v2, %v5600_v33  ;;  %v24227_v39 = vpop.f32.mrb[93].mxu1  ;;  %v6139_v23 = vrot.slane %v5873_v45, %v24041_v10  ;;  %v6143_v21 = vrot.slane %v5873_v45, %v24079_v15  ;;  %v6155_v42 = vrot.slane %v5875_v30, %v24041_v10 }
 0x4e6   :  { %v6159_v14 = vrot.slane %v5875_v30, %v24079_v15  ;;  %v24233_v63 = vpop.f32.mrb[94].mxu1  ;;  %v5812_v5 = vadd.f32 %v24057_v51, %v5709_v57  ;;  %v5813_v46 = vadd.f32 %v24083_v55, %v5710_v48  ;;  %v5814_v52 = vadd.f32 %v24070_v25, %v5711_v19 }
 0x4e7   :  { %v5815_v22 = vadd.f32 %v24086_v20, %v5712_v27  ;;  %v24239_v2 = vpop.f32.mrb[95].mxu1  ;;  %v6594_v7 = vsel %vm6576_vm1, %v6139_v23, %v6131_v4  ;;  %v6600_v29 = vsel %vm6576_vm1, %v6143_v21, %v6135_v60  ;;  %v4625_v47 = vcombine.low %v24194_v59, %v24204_v9 }
 0x4e8   :  { %v4626_v61 = vcombine.high %v24194_v59, %v24204_v9  ;;  %v6595_v57 = vsel %vm6578_vm2, %v6147_v41, %v6594_v7  ;;  %v6601_v13 = vsel %vm6578_vm2, %v6151_v1, %v6600_v29  ;;  %v5876_v49 = vmax.f32 %v5812_v5, 0.0  ;;  %v25625_v29 = vld [vmem:[#allocation105_spill] sm:$0xff] }
 0x4e9   :  { %v5877_v54 = vmax.f32 %v5813_v46, 0.0  ;;  %v6596_v8 = vsel %vm6580_vm3, %v6155_v42, %v6595_v57  ;;  %v6602_v33 = vsel %vm6580_vm3, %v6159_v14, %v6601_v13  ;;  %v5878_v19 = vmax.f32 %v5814_v52, 0.0 }
 0x4ea   :  { %v5879_v45 = vmax.f32 %v5815_v22, 0.0  ;;  %v6163_v30 = vrot.slane %v5876_v49, %v24041_v10  ;;  %v6167_v4 = vrot.slane %v5876_v49, %v24079_v15  ;;  %v4633_v42 = vrot.slane %v4625_v47, %v24047_v24  ;;  %v25624_v22 = vld [vmem:[#allocation104_spill] sm:$0xff] }
 0x4eb   :  { %v6171_v60 = vrot.slane %v5877_v54, %v24041_v10  ;;  %v6175_v59 = vrot.slane %v5877_v54, %v24079_v15  ;;  %v6179_v9 = vrot.slane %v5878_v19, %v24041_v10  ;;  %v6183_v41 = vrot.slane %v5878_v19, %v24079_v15 }
 0x4ec   :  { %v6187_v1 = vrot.slane %v5879_v45, %v24041_v10  ;;  %v6191_v48 = vrot.slane %v5879_v45, %v24079_v15  ;;  %v24259_v27 = vpop.f32.mrb[96].mxu1  ;;  %v6597_v23 = vsel %vm6582_vm4, %v6163_v30, %v6596_v8  ;;  %v6603_v21 = vsel %vm6582_vm4, %v6167_v4, %v6602_v33  ;;  %v25626_v4 = vld [vmem:[#allocation77_spill] sm:$0xff] }
 0x4ed   :  { %v4640_v14 = vrot.slane %v4626_v61, %v24047_v24  ;;  %v24265_v5 = vpop.f32.mrb[97].mxu1  ;;  %v6598_v46 = vsel %vm6584_vm5, %v6171_v60, %v6597_v23  ;;  %v6604_v52 = vsel %vm6584_vm5, %v6175_v59, %v6603_v21  ;;  %v4372_v7 = vmax.f32 %v25624_v22, %v24159_v0  ;;  %v25627_v59 = vld [vmem:[#allocation78_spill] sm:$0xff] }
 0x4ee   :  { %6717 = vst [vmem:[#allocation3 + $0x78] sm:$0x1] %v6187_v1  ;;  %6718 = vst [vmem:[#allocation3 + $0x80] sm:$0x1] %v6191_v48  ;;  %v4373_v57 = vmax.f32 %v25625_v29, %v24179_v56  ;;  %v24273_v13 = vpop.f32.mrb[98].mxu1  ;;  %v6599_v47 = vsel %vm6586_vm6, %v6179_v9, %v6598_v46  ;;  %v6605_v61 = vsel %vm6586_vm6, %v6183_v41, %v6604_v52  ;;  %v18319_v33 = vrot.slane %v4633_v42, 9 }
 0x4ef   :  { %v4641_v49 = vcombine.high %v4633_v42, %v4633_v42  ;;  %v4642_v54 = vcombine.high %v4640_v14, %v4640_v14  ;;  %v24277_v8 = vpop.f32.mrb[99].mxu1  ;;  %6715 = vst [vmem:[#allocation3 + $0x60] sm:$0xfe] %v6599_v47  ;;  %6716 = vst [vmem:[#allocation3 + $0x68] sm:$0xfe] %v6605_v61  ;;  %v18321_v19 = vrot.slane %v4640_v14, 9  ;;  %v4643_v45 = vcombine.low %v24208_v35, %v4372_v7 }
 0x4f0   :  { %v4644_v0 = vcombine.high %v24208_v35, %v4372_v7  ;;  %v4374_v60 = vmax.f32 %v25626_v4, %v24183_v32  ;;  %v4375_v9 = vmax.f32 %v25627_v59, %v24185_v34  ;;  %v24285_v41 = vmax.f32 %v4633_v42, %v18319_v33  ;;  %v6747_v21 = vld [vmem:[#allocation3 + $0x38] sm:$0xff]  ;;  %v22709_v33 = vld [vmem:[#allocation2] sm:$0xff] }
 0x4f1   :  { %v18320_v30 = vrot.slane %v4641_v49, 9  ;;  %v18322_v56 = vrot.slane %v4642_v54, 9  ;;  %v24287_v1 = vmax.f32 %v4640_v14, %v18321_v19  ;;  %v4651_v48 = vrot.slane %v4643_v45, %v24047_v24 }
 0x4f2   :  { %v4658_v23 = vrot.slane %v4644_v0, %v24047_v24  ;;  %v4661_v52 = vcombine.low %v4373_v57, %v4374_v60  ;;  %v4662_v22 = vcombine.high %v4373_v57, %v4374_v60  ;;  %v4376_v61 = vmax.f32 %v23824_v16, %v24187_v58 }
 0x4f3   :  { %v24291_v46 = vmax.f32 %v4641_v49, %v18320_v30  ;;  %v24293_v35 = vmax.f32 %v4642_v54, %v18322_v56  ;;  %v4659_v7 = vcombine.high %v4651_v48, %v4651_v48  ;;  %v18323_v29 = vrot.slane %v4651_v48, 9 }
 0x4f4   :  { %v4660_v32 = vcombine.high %v4658_v23, %v4658_v23  ;;  %v18325_v47 = vrot.slane %v4658_v23, 9  ;;  %v24295_v34 = vpop.f32.mrb[100].mxu1  ;;  %v4669_v42 = vrot.slane %v4661_v52, %v24047_v24  ;;  %v4676_v14 = vrot.slane %v4662_v22, %v24047_v24  ;;  %v6746_v52 = vld [vmem:[#allocation3 + $0x30] sm:$0xff] }
 0x4f5   :  { %v6768_v49 = vpack.c.bf16 %v6747_v21, %v22709_v33  ;;  %v24301_v19 = vpop.f32.mrb[101].mxu1  ;;  %v18324_v54 = vrot.slane %v4659_v7, 9  ;;  %v24303_v57 = vmax.f32 %v4651_v48, %v18323_v29  ;;  %v4679_v22 = vcombine.low %v4375_v9, %v4376_v61 }
 0x4f6   :  { %v18326_v45 = vrot.slane %v4660_v32, 9  ;;  %v24305_v0 = vmax.f32 %v4658_v23, %v18325_v47  ;;  %v24307_v30 = vpop.f32.mrb[102].mxu1  ;;  %v4677_v56 = vcombine.high %v4669_v42, %v4669_v42  ;;  %v4678_v4 = vcombine.high %v4676_v14, %v4676_v14 }
 0x4f7   :  { %v18327_v60 = vrot.slane %v4669_v42, 9  ;;  %v18329_v59 = vrot.slane %v4676_v14, 9  ;;  %13294 = vmatprep.mubr.bf16.mxu0 %v6768_v49  ;;  %14316 = vmatprep.mubr.bf16.mxu1 %v6768_v49  ;;  %v24309_v16 = vpop.f32.mrb[103].mxu1  ;;  %v24311_v58 = vmax.f32 %v4659_v7, %v18324_v54  ;;  %v4680_v48 = vcombine.high %v4375_v9, %v4376_v61  ;;  %v21111_v7 = vld [vmem:[#allocation10 + $0x208] ss:$16 sps:$4 sm:$0xff]  }
 0x4f8   :  { %v24313_v21 = vmax.f32 %v4660_v32, %v18326_v45  ;;  %v18328_v29 = vrot.slane %v4677_v56, 9  ;;  %v18330_v23 = vrot.slane %v4678_v4, 9  ;;  %v4687_v31 = vrot.slane %v4679_v22, %v24047_v24  ;;  %v21116_v54 = vld [vmem:[#allocation10 + $0x224] ss:$16 sps:$4 sm:$0xff]  }
 0x4f9   :  { %v5609_v47 = vmax.f32 %v4669_v42, %v18327_v60  ;;  %v5611_v37 = vmax.f32 %v4676_v14, %v18329_v59  ;;  %v4694_v53 = vrot.slane %v4680_v48, %v24047_v24  ;;  %v6767_v18 = vpack.c.bf16 %v6746_v52, %v22709_v33  ;;  %v21119_v42 = vld [vmem:[#allocation10 + $0x22c] ss:$16 sps:$4 sm:$0xff]  }
 0x4fa   :  { %v24319_v49 = vmax.f32 %v23829_v44, %v24198_v40  ;;  %v5610_v32 = vmax.f32 %v4677_v56, %v18328_v29  ;;  %v5612_v45 = vmax.f32 %v4678_v4, %v18330_v23  ;;  %v4695_v14 = vcombine.high %v4687_v31, %v4687_v31 }
 0x4fb   :  { %v5713_v9 = vmax.f32 %v24285_v41, %v5609_v47  ;;  %v5715_v61 = vmax.f32 %v24287_v1, %v5611_v37  ;;  %v4696_v60 = vcombine.high %v4694_v53, %v4694_v53  ;;  %v18331_v59 = vrot.slane %v4687_v31, 9  ;;  %13295 = vmatmul.mubr.bf16.vlgmr.msra.gmra.mrb[64].mxu0 %v6767_v18  ;;  %14317 = vmatmul.mubr.bf16.vlgmr.msra.gmra.mrb[128].mxu1 %v6767_v18  ;;  %v21114_v37 = vld [vmem:[#allocation10 + $0x220] ss:$16 sps:$4 sm:$0xff]   ;;  %v21117_v18 = vld [vmem:[#allocation10 + $0x228] ss:$16 sps:$4 sm:$0xff]  }
 0x4fc   :  { %v18333_v22 = vrot.slane %v4694_v53, 9  ;;  %v24323_v33 = vpop.f32.mrb[104].mxu1  ;;  %v5714_v44 = vmax.f32 %v24291_v46, %v5610_v32  ;;  %v5716_v40 = vmax.f32 %v24293_v35, %v5612_v45  ;;  %13336 = vmatpush1.bf16.msra.mxu0 %v21108_v36  ;;  %v18332_v1 = vrot.slane %v4695_v14, 9  ;;  %14358 = vmatpush1.bf16.msra.mxu1 %v21111_v7  ;;  %v21122_v36 = vld [vmem:[#allocation10 + $0x244] ss:$16 sps:$4 sm:$0xff]  }
 0x4fd   :  { %v5816_v56 = vadd.f32 %v24051_v43, %v5713_v9  ;;  %v5818_v4 = vadd.f32 %v24061_v38, %v5715_v61  ;;  %v24329_v41 = vpop.f32.mrb[105].mxu1  ;;  %v18334_v52 = vrot.slane %v4696_v60, 9  ;;  %v5613_v48 = vmax.f32 %v4687_v31, %v18331_v59  ;;  %13337 = vmatprep.subr.bf16.mxu0 %v21116_v54  ;;  %14359 = vmatprep.subr.bf16.mxu1 %v21119_v42  ;;  %v21125_v59 = vld [vmem:[#allocation10 + $0x24c] ss:$16 sps:$4 sm:$0xff]  }
 0x4fe   :  { %v5615_v29 = vmax.f32 %v4694_v53, %v18333_v22  ;;  %v24331_v23 = vpop.f32.mrb[106].mxu1  ;;  %v5817_v46 = vadd.f32 %v24066_v28, %v5714_v44  ;;  %v5819_v35 = vadd.f32 %v24076_v62, %v5716_v40  ;;  %v5614_v9 = vmax.f32 %v4695_v14, %v18332_v1  ;;  %v21120_v40 = vld [vmem:[#allocation10 + $0x240] ss:$16 sps:$4 sm:$0xff]  }
 0x4ff   :  { %v5880_v47 = vmax.f32 %v5816_v56, 0.0  ;;  %v5882_v32 = vmax.f32 %v5818_v4, 0.0  ;;  %v24335_v45 = vpop.f32.mrb[107].mxu1  ;;  %v5616_v61 = vmax.f32 %v4696_v60, %v18334_v52  ;;  %v5717_v31 = vmax.f32 %v24303_v57, %v5613_v48  ;;  %v21123_v57 = vld [vmem:[#allocation10 + $0x248] ss:$16 sps:$4 sm:$0xff]  }
 0x500   :  { %v5719_v53 = vmax.f32 %v24305_v0, %v5615_v29  ;;  %v5881_v7 = vmax.f32 %v5817_v46, 0.0  ;;  %v5883_v54 = vmax.f32 %v5819_v35, 0.0  ;;  %13338 = vmatpush1.bf16.msra.mxu0 %v21114_v37  ;;  %v5718_v14 = vmax.f32 %v24311_v58, %v5614_v9  ;;  %14360 = vmatpush1.bf16.msra.mxu1 %v21117_v18  ;;  %v21128_v0 = vld [vmem:[#allocation10 + $0x264] ss:$16 sps:$4 sm:$0xff]   ;;  %v21131_v48 = vld [vmem:[#allocation10 + $0x26c] ss:$16 sps:$4 sm:$0xff]  }
 0x501   :  { %v6195_v22 = vrot.slane %v5880_v47, %v24041_v10  ;;  %v6199_v44 = vrot.slane %v5880_v47, %v24079_v15  ;;  %v6211_v56 = vrot.slane %v5882_v32, %v24041_v10  ;;  %v6215_v42 = vrot.slane %v5882_v32, %v24079_v15  ;;  %13339 = vmatprep.subr.bf16.mxu0 %v21122_v36  ;;  %v25628_v32 = vld [vmem:[#allocation79_spill] sm:$0xff]  ;;  %v25629_v36 = vld [vmem:[#allocation25_spill] sm:$0xff] }
 0x502   :  { %v5720_v60 = vmax.f32 %v24313_v21, %v5616_v61  ;;  %v6203_v4 = vrot.slane %v5881_v7, %v24041_v10  ;;  %v6207_v1 = vrot.slane %v5881_v7, %v24079_v15  ;;  %v6219_v52 = vrot.slane %v5883_v54, %v24041_v10  ;;  %14361 = vmatprep.subr.bf16.mxu1 %v21125_v59 }
 0x503   :  { %v6223_v37 = vrot.slane %v5883_v54, %v24079_v15  ;;  %v5820_v29 = vadd.f32 %v24057_v51, %v5717_v31  ;;  %v5821_v46 = vadd.f32 %v24083_v55, %v5718_v14  ;;  %v5822_v58 = vadd.f32 %v24070_v25, %v5719_v53  ;;  %v21126_v53 = vld [vmem:[#allocation10 + $0x260] ss:$16 sps:$4 sm:$0xff]  }
 0x504   :  { %v5823_v21 = vadd.f32 %v24086_v20, %v5720_v60  ;;  %v24353_v18 = vpop.f32.mrb[108].mxu1  ;;  %v6606_v35 = vsel %vm6576_vm1, %v6203_v4, %v6195_v22  ;;  %v6612_v47 = vsel %vm6576_vm1, %v6207_v1, %v6199_v44  ;;  %v4378_v9 = vmax.f32 %v25628_v32, %v24210_v17  ;;  %13340 = vmatpush1.bf16.msra.mxu0 %v21120_v40  ;;  %v21129_v44 = vld [vmem:[#allocation10 + $0x268] ss:$16 sps:$4 sm:$0xff]   ;;  %v21134_v40 = vld [vmem:[#allocation10 + $0x284] ss:$16 sps:$4 sm:$0xff]  }
 0x505   :  { %v24361_v61 = vmax.f32 %v25629_v36, %v24212_v50  ;;  %v24363_v31 = vpop.f32.mrb[109].mxu1  ;;  %v6607_v7 = vsel %vm6578_vm2, %v6211_v56, %v6606_v35  ;;  %v6613_v54 = vsel %vm6578_vm2, %v6215_v42, %v6612_v47  ;;  %v5884_v59 = vmax.f32 %v5820_v29, 0.0  ;;  %14362 = vmatpush1.bf16.msra.mxu1 %v21123_v57  ;;  %13341 = vmatprep.subr.bf16.mxu0 %v21128_v0  ;;  %v21137_v0 = vld [vmem:[#allocation10 + $0x28c] ss:$16 sps:$4 sm:$0xff]   ;;  %v21135_v36 = vld [vmem:[#allocation10 + $0x288] ss:$16 sps:$4 sm:$0xff]  }
 0x506   :  { %v5885_v14 = vmax.f32 %v5821_v46, 0.0  ;;  %v24367_v22 = vpop.f32.mrb[110].mxu1  ;;  %v6608_v17 = vsel %vm6580_vm3, %v6219_v52, %v6607_v7  ;;  %v6614_v50 = vsel %vm6580_vm3, %v6223_v37, %v6613_v54  ;;  %v5886_v60 = vmax.f32 %v5822_v58, 0.0  ;;  %14363 = vmatprep.subr.bf16.mxu1 %v21131_v48  ;;  %v21132_v48 = vld [vmem:[#allocation10 + $0x280] ss:$16 sps:$4 sm:$0xff]  }
 0x507   :  { %v5887_v4 = vmax.f32 %v5823_v21, 0.0  ;;  %v24371_v1 = vpop.f32.mrb[111].mxu1  ;;  %v6227_v56 = vrot.slane %v5884_v59, %v24041_v10  ;;  %v6231_v42 = vrot.slane %v5884_v59, %v24079_v15  ;;  %v4697_v47 = vcombine.low %v24319_v49, %v4378_v9  ;;  %v21140_v7 = vld [vmem:[#allocation10 + $0x2a4] ss:$16 sps:$4 sm:$0xff]  }
 0x508   :  { %v6235_v29 = vrot.slane %v5885_v14, %v24041_v10  ;;  %v6239_v57 = vrot.slane %v5885_v14, %v24079_v15  ;;  %v6243_v46 = vrot.slane %v5886_v60, %v24041_v10  ;;  %v6247_v52 = vrot.slane %v5886_v60, %v24079_v15  ;;  %13342 = vmatpush1.bf16.msra.mxu0 %v21126_v53  ;;  %v25630_v53 = vld [vmem:[#allocation26_spill] sm:$0xff] }
 0x509   :  { %v6251_v37 = vrot.slane %v5887_v4, %v24041_v10  ;;  %v6255_v58 = vrot.slane %v5887_v4, %v24079_v15  ;;  %v6609_v21 = vsel %vm6582_vm4, %v6227_v56, %v6608_v17  ;;  %v6615_v35 = vsel %vm6582_vm4, %v6231_v42, %v6614_v50  ;;  %14364 = vmatpush1.bf16.msra.mxu1 %v21129_v44  ;;  %v21143_v50 = vld [vmem:[#allocation10 + $0x2ac] ss:$16 sps:$4 sm:$0xff]  }
 0x50a   :  { %v4698_v32 = vcombine.high %v24319_v49, %v4378_v9  ;;  %v6610_v54 = vsel %vm6584_vm5, %v6235_v29, %v6609_v21  ;;  %v6616_v59 = vsel %vm6584_vm5, %v6239_v57, %v6615_v35  ;;  %v4380_v14 = vmax.f32 %v25630_v53, %v24214_v11  ;;  %13343 = vmatprep.subr.bf16.mxu0 %v21134_v40  ;;  %v25632_v40 = vld [vmem:[#allocation81_spill] sm:$0xff]  ;;  %v21138_v57 = vld [vmem:[#allocation10 + $0x2a0] ss:$16 sps:$4 sm:$0xff]  }
 0x50b   :  { %6721 = vst [vmem:[#allocation3 + $0xa8] sm:$0x1] %v6251_v37  ;;  %6722 = vst [vmem:[#allocation3 + $0xb0] sm:$0x1] %v6255_v58  ;;  %v4381_v17 = vmax.f32 %v23843_v6, %v24223_v12  ;;  %v6611_v60 = vsel %vm6586_vm6, %v6243_v46, %v6610_v54  ;;  %v6617_v49 = vsel %vm6586_vm6, %v6247_v52, %v6616_v59  ;;  %14365 = vmatprep.subr.bf16.mxu1 %v21137_v0  ;;  %v25631_v6 = vld [vmem:[#allocation80_spill] sm:$0xff] }
 0x50c   :  { %v4705_v9 = vrot.slane %v4697_v47, %v24047_v24  ;;  %v4712_v44 = vrot.slane %v4698_v32, %v24047_v24  ;;  %v24395_v4 = vpop.f32.mrb[112].mxu1  ;;  %6719 = vst [vmem:[#allocation3 + $0x90] sm:$0xfe] %v6611_v60  ;;  %6720 = vst [vmem:[#allocation3 + $0x98] sm:$0xfe] %v6617_v49  ;;  %v4715_v11 = vcombine.low %v24361_v61, %v4380_v14  ;;  %13344 = vmatpush1.bf16.msra.mxu0 %v21132_v48 }
 0x50d   :  { %v4716_v56 = vcombine.high %v24361_v61, %v4380_v14  ;;  %v4382_v12 = vmax.f32 %v25631_v6, %v24227_v39  ;;  %v24403_v42 = vmax.f32 %v25632_v40, %v24233_v63  ;;  %v24405_v29 = vpop.f32.mrb[113].mxu1  ;;  %14366 = vmatpush1.bf16.msra.mxu1 %v21135_v36  ;;  %13345 = vmatprep.subr.bf16.mxu0 %v21140_v7  ;;  %v21141_v61 = vld [vmem:[#allocation10 + $0x2a8] ss:$16 sps:$4 sm:$0xff]   ;;  %v21146_v48 = vld [vmem:[#allocation10 + $0x2c4] ss:$16 sps:$4 sm:$0xff]  }
 0x50e   :  { %25633 = vst [vmem:[#allocation52_spill] sm:$0xff] %v24405_v29  ;;  %v4713_v46 = vcombine.high %v4705_v9, %v4705_v9  ;;  %v4714_v52 = vcombine.high %v4712_v44, %v4712_v44  ;;  %v18335_v0 = vrot.slane %v4705_v9, 9  ;;  %v18337_v37 = vrot.slane %v4712_v44, 9  ;;  %v24407_v58 = vpop.f32.mrb[114].mxu1  ;;  %14367 = vmatprep.subr.bf16.mxu1 %v21143_v50  ;;  %v21149_v32 = vld [vmem:[#allocation10 + $0x2cc] ss:$16 sps:$4 sm:$0xff]  }
 0x50f   :  { %25634 = vst [vmem:[#allocation53_spill] sm:$0xff] %v24407_v58  ;;  %v4723_v21 = vrot.slane %v4715_v11, %v24047_v24  ;;  %v4730_v39 = vrot.slane %v4716_v56, %v24047_v24  ;;  %v4733_v35 = vcombine.low %v4381_v17, %v4382_v12  ;;  %v4734_v63 = vcombine.high %v4381_v17, %v4382_v12  ;;  %v24411_v47 = vpop.f32.mrb[115].mxu1  ;;  %v21144_v11 = vld [vmem:[#allocation10 + $0x2c0] ss:$16 sps:$4 sm:$0xff]   ;;  %v21147_v12 = vld [vmem:[#allocation10 + $0x2c8] ss:$16 sps:$4 sm:$0xff]  }
 0x510   :  { %25635 = vst [vmem:[#allocation54_spill] sm:$0xff] %v24411_v47  ;;  %v18336_v54 = vrot.slane %v4713_v46, 9  ;;  %v18338_v59 = vrot.slane %v4714_v52, 9  ;;  %v24413_v53 = vmax.f32 %v4705_v9, %v18335_v0  ;;  %v24415_v14 = vmax.f32 %v4712_v44, %v18337_v37  ;;  %13346 = vmatpush1.bf16.msra.mxu0 %v21138_v57  ;;  %v21152_v9 = vld [vmem:[#allocation10 + $0x2e4] ss:$16 sps:$4 sm:$0xff]  }
 0x511   :  { %v4731_v36 = vcombine.high %v4723_v21, %v4723_v21  ;;  %v4732_v7 = vcombine.high %v4730_v39, %v4730_v39  ;;  %v18339_v60 = vrot.slane %v4723_v21, 9  ;;  %v18341_v49 = vrot.slane %v4730_v39, 9  ;;  %14368 = vmatpush1.bf16.msra.mxu1 %v21141_v61  ;;  %13347 = vmatprep.subr.bf16.mxu0 %v21146_v48  ;;  %v21155_v57 = vld [vmem:[#allocation10 + $0x2ec] ss:$16 sps:$4 sm:$0xff]   ;;  %v21150_v48 = vld [vmem:[#allocation10 + $0x2e0] ss:$16 sps:$4 sm:$0xff]  }
 0x512   :  { %v24417_v56 = vmax.f32 %v4713_v46, %v18336_v54  ;;  %v24419_v17 = vmax.f32 %v4714_v52, %v18338_v59  ;;  %v4741_v50 = vrot.slane %v4733_v35, %v24047_v24  ;;  %v4748_v6 = vrot.slane %v4734_v63, %v24047_v24  ;;  %14369 = vmatprep.subr.bf16.mxu1 %v21149_v32  ;;  %v25637_v63 = vld [vmem:[#allocation27_spill] sm:$0xff] }
 0x513   :  { %v18340_v40 = vrot.slane %v4731_v36, 9  ;;  %v18342_v44 = vrot.slane %v4732_v7, 9  ;;  %v24423_v0 = vmax.f32 %v4723_v21, %v18339_v60  ;;  %v24425_v37 = vmax.f32 %v4730_v39, %v18341_v49 }
 0x514   :  { %v4749_v46 = vcombine.high %v4741_v50, %v4741_v50  ;;  %v4750_v54 = vcombine.high %v4748_v6, %v4748_v6  ;;  %v18343_v52 = vrot.slane %v4741_v50, 9  ;;  %v18345_v59 = vrot.slane %v4748_v6, 9  ;;  %v24427_v47 = vpop.f32.mrb[116].mxu1  ;;  %13348 = vmatpush1.bf16.msra.mxu0 %v21144_v11  ;;  %v25639_v11 = vld [vmem:[#allocation82_spill] sm:$0xff] }
 0x515   :  { %25636 = vst [vmem:[#allocation55_spill] sm:$0xff] %v24427_v47  ;;  %v24429_v35 = vmax.f32 %v4731_v36, %v18340_v40  ;;  %v24431_v61 = vmax.f32 %v4732_v7, %v18342_v44  ;;  %v4384_v58 = vmax.f32 %v25637_v63, %v24239_v2  ;;  %v24437_v21 = vmax.f32 %v23857_v3, %v24259_v27  ;;  %v24439_v39 = vpop.f32.mrb[117].mxu1  ;;  %v21153_v36 = vld [vmem:[#allocation10 + $0x2e8] ss:$16 sps:$4 sm:$0xff]   ;;  %v25638_v3 = vld [vmem:[#allocation28_spill] sm:$0xff] }
 0x516   :  { %v18344_v32 = vrot.slane %v4749_v46, 9  ;;  %v18346_v60 = vrot.slane %v4750_v54, 9  ;;  %v5625_v49 = vmax.f32 %v4741_v50, %v18343_v52  ;;  %v5627_v29 = vmax.f32 %v4748_v6, %v18345_v59  ;;  %v24441_v47 = vpop.f32.mrb[118].mxu1  ;;  %14370 = vmatpush1.bf16.msra.mxu1 %v21147_v12  ;;  %13349 = vmatprep.subr.bf16.mxu0 %v21152_v9  ;;  %v21158_v50 = vld [vmem:[#allocation10 + $0x304] ss:$16 sps:$4 sm:$0xff]  }
 0x517   :  { %v4751_v7 = vcombine.low %v24403_v42, %v4384_v58  ;;  %v4752_v2 = vcombine.high %v24403_v42, %v4384_v58  ;;  %v24447_v27 = vmax.f32 %v25638_v3, %v24265_v5  ;;  %v24451_v40 = vmax.f32 %v25639_v11, %v24273_v13  ;;  %v24453_v44 = vpop.f32.mrb[119].mxu1  ;;  %14371 = vmatprep.subr.bf16.mxu1 %v21155_v57  ;;  %v21161_v6 = vld [vmem:[#allocation10 + $0x30c] ss:$16 sps:$4 sm:$0xff]   ;;  %v21156_v57 = vld [vmem:[#allocation10 + $0x300] ss:$16 sps:$4 sm:$0xff]  }
 0x518   :  { %25640 = vst [vmem:[#allocation56_spill] sm:$0xff] %v24453_v44  ;;  %v5626_v12 = vmax.f32 %v4749_v46, %v18344_v32  ;;  %v5628_v9 = vmax.f32 %v4750_v54, %v18346_v60  ;;  %v5721_v52 = vmax.f32 %v24413_v53, %v5625_v49  ;;  %v5723_v59 = vmax.f32 %v24415_v14, %v5627_v29  ;;  %v21159_v14 = vld [vmem:[#allocation10 + $0x308] ss:$16 sps:$4 sm:$0xff]   ;;  %v21164_v54 = vld [vmem:[#allocation10 + $0x324] ss:$16 sps:$4 sm:$0xff]  }
 0x519   :  { %v4759_v42 = vrot.slane %v4751_v7, %v24047_v24  ;;  %v4766_v5 = vrot.slane %v4752_v2, %v24047_v24  ;;  %v4769_v58 = vcombine.low %v24437_v21, %v24447_v27  ;;  %v4770_v13 = vcombine.high %v24437_v21, %v24447_v27  ;;  %13350 = vmatpush1.bf16.msra.mxu0 %v21150_v48  ;;  %v21167_v21 = vld [vmem:[#allocation10 + $0x32c] ss:$16 sps:$4 sm:$0xff]  }
 0x51a   :  { %v5722_v63 = vmax.f32 %v24417_v56, %v5626_v12  ;;  %v5724_v46 = vmax.f32 %v24419_v17, %v5628_v9  ;;  %v5824_v53 = vadd.f32 %v24051_v43, %v5721_v52  ;;  %v5826_v29 = vadd.f32 %v24061_v38, %v5723_v59  ;;  %14372 = vmatpush1.bf16.msra.mxu1 %v21153_v36  ;;  %v21162_v52 = vld [vmem:[#allocation10 + $0x320] ss:$16 sps:$4 sm:$0xff]  }
 0x51b   :  { %v4767_v32 = vcombine.high %v4759_v42, %v4759_v42  ;;  %v4768_v60 = vcombine.high %v4766_v5, %v4766_v5  ;;  %v18347_v49 = vrot.slane %v4759_v42, 9  ;;  %v18349_v7 = vrot.slane %v4766_v5, 9  ;;  %13351 = vmatprep.subr.bf16.mxu0 %v21158_v50  ;;  %14373 = vmatprep.subr.bf16.mxu1 %v21161_v6 }
 0x51c   :  { %v5825_v48 = vadd.f32 %v24066_v28, %v5722_v63  ;;  %v5827_v56 = vadd.f32 %v24076_v62, %v5724_v46  ;;  %v5888_v2 = vmax.f32 %v5824_v53, 0.0  ;;  %v5890_v17 = vmax.f32 %v5826_v29, 0.0  ;;  %v24469_v3 = vpop.f32.mrb[120].mxu1  ;;  %v21165_v46 = vld [vmem:[#allocation10 + $0x328] ss:$16 sps:$4 sm:$0xff]  }
 0x51d   :  { %v18348_v27 = vrot.slane %v4767_v32, 9  ;;  %v18350_v11 = vrot.slane %v4768_v60, 9  ;;  %v5629_v36 = vmax.f32 %v4759_v42, %v18347_v49  ;;  %v5631_v12 = vmax.f32 %v4766_v5, %v18349_v7  ;;  %v24471_v9 = vpop.f32.mrb[121].mxu1  ;;  %13352 = vmatpush1.bf16.msra.mxu0 %v21156_v57  ;;  %v21170_v57 = vld [vmem:[#allocation10 + $0x344] ss:$16 sps:$4 sm:$0xff]  }
 0x51e   :  { %v5889_v59 = vmax.f32 %v5825_v48, 0.0  ;;  %v5891_v50 = vmax.f32 %v5827_v56, 0.0  ;;  %v6259_v6 = vrot.slane %v5888_v2, %v24041_v10  ;;  %v6263_v63 = vrot.slane %v5888_v2, %v24079_v15  ;;  %v24475_v44 = vpop.f32.mrb[122].mxu1  ;;  %14374 = vmatpush1.bf16.msra.mxu1 %v21159_v14  ;;  %13353 = vmatprep.subr.bf16.mxu0 %v21164_v54  ;;  %v21173_v54 = vld [vmem:[#allocation10 + $0x34c] ss:$16 sps:$4 sm:$0xff]  }
 0x51f   :  { %25641 = vst [vmem:[#allocation29_spill] sm:$0xff] %v24475_v44  ;;  %v6275_v53 = vrot.slane %v5890_v17, %v24041_v10  ;;  %v6279_v42 = vrot.slane %v5890_v17, %v24079_v15  ;;  %v5630_v5 = vmax.f32 %v4767_v32, %v18348_v27  ;;  %v5632_v29 = vmax.f32 %v4768_v60, %v18350_v11  ;;  %v24479_v49 = vpop.f32.mrb[123].mxu1 }
 0x520   :  { %25642 = vst [vmem:[#allocation32_spill] sm:$0xff] %v24479_v49  ;;  %14375 = vmatprep.subr.bf16.mxu1 %v21167_v21  ;;  %v6267_v7 = vrot.slane %v5889_v59, %v24041_v10  ;;  %v6271_v48 = vrot.slane %v5889_v59, %v24079_v15  ;;  %v6283_v56 = vrot.slane %v5891_v50, %v24041_v10  ;;  %v21168_v21 = vld [vmem:[#allocation10 + $0x340] ss:$16 sps:$4 sm:$0xff]   ;;  %v21176_v49 = vld [vmem:[#allocation10 + $0x364] ss:$16 sps:$4 sm:$0xff]  }
 0x521   :  { %v6287_v14 = vrot.slane %v5891_v50, %v24079_v15  ;;  %v5725_v2 = vmax.f32 %v24423_v0, %v5629_v36  ;;  %v5726_v44 = vmax.f32 %v24429_v35, %v5630_v5  ;;  %v5727_v32 = vmax.f32 %v24425_v37, %v5631_v12  ;;  %13354 = vmatpush1.bf16.msra.mxu0 %v21162_v52  ;;  %v21171_v50 = vld [vmem:[#allocation10 + $0x348] ss:$16 sps:$4 sm:$0xff]   ;;  %v21179_v36 = vld [vmem:[#allocation10 + $0x36c] ss:$16 sps:$4 sm:$0xff]  }
 0x522   :  { %v5728_v60 = vmax.f32 %v24431_v61, %v5632_v29  ;;  %v6618_v17 = vsel %vm6576_vm1, %v6267_v7, %v6259_v6  ;;  %v6624_v27 = vsel %vm6576_vm1, %v6271_v48, %v6263_v63  ;;  %v4777_v11 = vrot.slane %v4769_v58, %v24047_v24  ;;  %14376 = vmatpush1.bf16.msra.mxu1 %v21165_v46  ;;  %v21174_v63 = vld [vmem:[#allocation10 + $0x360] ss:$16 sps:$4 sm:$0xff]  }
 0x523   :  { %v4784_v59 = vrot.slane %v4770_v13, %v24047_v24  ;;  %v6619_v0 = vsel %vm6578_vm2, %v6275_v53, %v6618_v17  ;;  %v6625_v35 = vsel %vm6578_vm2, %v6279_v42, %v6624_v27  ;;  %v5828_v37 = vadd.f32 %v24057_v51, %v5725_v2  ;;  %13355 = vmatprep.subr.bf16.mxu0 %v21170_v57 }
 0x524   :  { %v5829_v61 = vadd.f32 %v24083_v55, %v5726_v44  ;;  %v6620_v12 = vsel %vm6580_vm3, %v6283_v56, %v6619_v0  ;;  %v6626_v52 = vsel %vm6580_vm3, %v6287_v14, %v6625_v35  ;;  %v5830_v58 = vadd.f32 %v24070_v25, %v5727_v32  ;;  %v24501_v6 = vpop.f32.mrb[124].mxu1  ;;  %14377 = vmatprep.subr.bf16.mxu1 %v21173_v54  ;;  %v21177_v44 = vld [vmem:[#allocation10 + $0x368] ss:$16 sps:$4 sm:$0xff]  }
 0x525   :  { %v5831_v13 = vadd.f32 %v24086_v20, %v5728_v60  ;;  %v5892_v46 = vmax.f32 %v5828_v37, 0.0  ;;  %v4785_v42 = vcombine.high %v4777_v11, %v4777_v11  ;;  %v4786_v5 = vcombine.high %v4784_v59, %v4784_v59  ;;  %v24503_v29 = vpop.f32.mrb[125].mxu1  ;;  %13356 = vmatpush1.bf16.msra.mxu0 %v21168_v21  ;;  %v21182_v21 = vld [vmem:[#allocation10 + $0x384] ss:$16 sps:$4 sm:$0xff]  }
 0x526   :  { %v5893_v53 = vmax.f32 %v5829_v61, 0.0  ;;  %25643 = vst [vmem:[#allocation35_spill] sm:$0xff] %v24503_v29  ;;  %v5894_v57 = vmax.f32 %v5830_v58, 0.0  ;;  %v18351_v48 = vrot.slane %v4777_v11, 9  ;;  %v18353_v56 = vrot.slane %v4784_v59, 9  ;;  %v24505_v14 = vpop.f32.mrb[126].mxu1  ;;  %14378 = vmatpush1.bf16.msra.mxu1 %v21171_v50  ;;  %13357 = vmatprep.subr.bf16.mxu0 %v21176_v49 }
 0x527   :  { %v5895_v7 = vmax.f32 %v5831_v13, 0.0  ;;  %25644 = vst [vmem:[#allocation38_spill] sm:$0xff] %v24505_v14  ;;  %v6291_v2 = vrot.slane %v5892_v46, %v24041_v10  ;;  %v6295_v54 = vrot.slane %v5892_v46, %v24079_v15  ;;  %v24511_v17 = vpop.f32.mrb[127].mxu1  ;;  %14379 = vmatprep.subr.bf16.mxu1 %v21179_v36  ;;  %v21185_v50 = vld [vmem:[#allocation10 + $0x38c] ss:$16 sps:$4 sm:$0xff]   ;;  %v18352_v58 = vrot.slane %v4785_v42, 9 }
 0x528   :  { %v6299_v32 = vrot.slane %v5893_v53, %v24041_v10  ;;  %v6303_v60 = vrot.slane %v5893_v53, %v24079_v15  ;;  %25645 = vst [vmem:[#allocation40_spill] sm:$0xff] %v24511_v17  ;;  %v6307_v27 = vrot.slane %v5894_v57, %v24041_v10  ;;  %v6311_v0 = vrot.slane %v5894_v57, %v24079_v15  ;;  %v21180_v46 = vld [vmem:[#allocation10 + $0x380] ss:$16 sps:$4 sm:$0xff]  }
 0x529   :  { %v6315_v35 = vrot.slane %v5895_v7, %v24041_v10  ;;  %v6319_v49 = vrot.slane %v5895_v7, %v24079_v15  ;;  %v6621_v37 = vsel %vm6582_vm4, %v6291_v2, %v6620_v12  ;;  %v6627_v61 = vsel %vm6582_vm4, %v6295_v54, %v6626_v52  ;;  %13358 = vmatpush1.bf16.msra.mxu0 %v21174_v63  ;;  %v6753_v7 = vld [vmem:[#allocation3 + $0x98] sm:$0xff]  ;;  %v6752_v14 = vld [vmem:[#allocation3 + $0x90] sm:$0xff] }
 0x52a   :  { %v18354_v13 = vrot.slane %v4786_v5, 9  ;;  %v6622_v36 = vsel %vm6584_vm5, %v6299_v32, %v6621_v37  ;;  %v6628_v53 = vsel %vm6584_vm5, %v6303_v60, %v6627_v61  ;;  %v24521_v57 = vmax.f32 %v4777_v11, %v18351_v48  ;;  %14380 = vmatpush1.bf16.msra.mxu1 %v21177_v44  ;;  %v21183_v12 = vld [vmem:[#allocation10 + $0x388] ss:$16 sps:$4 sm:$0xff]   ;;  %13359 = vmatprep.subr.bf16.mxu0 %v21182_v21  ;;  %v25647_v44 = vld [vmem:[#allocation30_spill] sm:$0xff]  ;;  %v25650_v21 = vld [vmem:[#allocation84_spill] sm:$0xff] }
 0x52b   :  { %6725 = vst [vmem:[#allocation3 + $0xd8] sm:$0x1] %v6315_v35  ;;  %6726 = vst [vmem:[#allocation3 + $0xe0] sm:$0x1] %v6319_v49  ;;  %v24523_v17 = vmax.f32 %v4784_v59, %v18353_v56  ;;  %v6623_v52 = vsel %vm6586_vm6, %v6307_v27, %v6622_v36  ;;  %v6629_v2 = vsel %vm6586_vm6, %v6311_v0, %v6628_v53  ;;  %v25646_v11 = vld [vmem:[#allocation83_spill] sm:$0xff]  ;;  %v6750_v27 = vld [vmem:[#allocation3 + $0x68] sm:$0xff]  ;;  %14381 = vmatprep.subr.bf16.mxu1 %v21185_v50 }
 0x52c   :  { %v24527_v63 = vmax.f32 %v4785_v42, %v18352_v58  ;;  %v24529_v54 = vmax.f32 %v4786_v5, %v18354_v13  ;;  %6723 = vst [vmem:[#allocation3 + $0xc0] sm:$0xfe] %v6623_v52  ;;  %6724 = vst [vmem:[#allocation3 + $0xc8] sm:$0xfe] %v6629_v2  ;;  %v4388_v48 = vmax.f32 %v25646_v11, %v24277_v8  ;;  %v25648_v32 = vld [vmem:[#allocation31_spill] sm:$0xff]  ;;  %v25651_v8 = vld [vmem:[#allocation85_spill] sm:$0xff] }
 0x52d   :  { %v4389_v59 = vmax.f32 %v23871_v26, %v24295_v34  ;;  %v4390_v56 = vmax.f32 %v25647_v44, %v24301_v19  ;;  %v4391_v60 = vmax.f32 %v25648_v32, %v24307_v30  ;;  %v6749_v42 = vld [vmem:[#allocation3 + $0x60] sm:$0xff]  ;;  %v24539_v5 = vld [vmem:[#allocation3 + $0x18] sm:$0x1]  ;;  %v4392_v0 = vmax.f32 %v25650_v21, %v24309_v16  ;;  %13360 = vmatpush1.bf16.msra.mxu0 %v21180_v46  ;;  %v25652_v16 = vld [vmem:[#allocation33_spill] sm:$0xff] }
 0x52e   :  { %25649 = vst [vmem:[#allocation43_spill] sm:$0xff] %v24539_v5  ;;  %v6771_v35 = vpack.c.bf16 %v6753_v7, %v6750_v27  ;;  %v6770_v49 = vpack.c.bf16 %v6752_v14, %v6749_v42  ;;  %v24545_v37 = vmax.f32 %v25651_v8, %v24323_v33  ;;  %v4787_v26 = vcombine.low %v24451_v40, %v4388_v48  ;;  %v21188_v50 = vld [vmem:[#allocation10 + $0x3a4] ss:$16 sps:$4 sm:$0xff]   ;;  %v21191_v61 = vld [vmem:[#allocation10 + $0x3ac] ss:$16 sps:$4 sm:$0xff]  }
 0x52f   :  { %v4788_v34 = vcombine.high %v24451_v40, %v4388_v48  ;;  %v4805_v19 = vcombine.low %v4389_v59, %v4390_v56  ;;  %v4806_v30 = vcombine.high %v4389_v59, %v4390_v56  ;;  %14382 = vmatpush1.bf16.msra.mxu1 %v21183_v12  ;;  %v4823_v58 = vcombine.low %v4391_v60, %v4392_v0  ;;  %v21186_v33 = vld [vmem:[#allocation10 + $0x3a0] ss:$16 sps:$4 sm:$0xff]   ;;  %v21189_v36 = vld [vmem:[#allocation10 + $0x3a8] ss:$16 sps:$4 sm:$0xff]   ;;  %v21194_v52 = vld [vmem:[#allocation10 + $0x3c4] ss:$16 sps:$4 sm:$0xff]  }
 0x530   :  { %v4824_v13 = vcombine.high %v4391_v60, %v4392_v0  ;;  %13304 = vmatprep.mubr.bf16.mxu0 %v6771_v35  ;;  %14326 = vmatprep.mubr.bf16.mxu1 %v6771_v35  ;;  %v24551_v14 = vmax.f32 %v25652_v16, %v24329_v41  ;;  %v4795_v53 = vrot.slane %v4787_v26, %v24047_v24  ;;  %v21197_v2 = vld [vmem:[#allocation10 + $0x3cc] ss:$16 sps:$4 sm:$0xff]   ;;  %v21192_v35 = vld [vmem:[#allocation10 + $0x3c0] ss:$16 sps:$4 sm:$0xff]  }
 0x531   :  { %v4802_v40 = vrot.slane %v4788_v34, %v24047_v24  ;;  %v4813_v7 = vrot.slane %v4805_v19, %v24047_v24  ;;  %v4820_v12 = vrot.slane %v4806_v30, %v24047_v24  ;;  %13305 = vmatmul.mubr.bf16.gmra.mrb[68].mxu0 %v6770_v49  ;;  %v4831_v11 = vrot.slane %v4823_v58, %v24047_v24  ;;  %v21195_v19 = vld [vmem:[#allocation10 + $0x3c8] ss:$16 sps:$4 sm:$0xff]   ;;  %v21200_v30 = vld [vmem:[#allocation10 + $0x3e4] ss:$16 sps:$4 sm:$0xff]   ;;  %v21203_v16 = vld [vmem:[#allocation10 + $0x3ec] ss:$16 sps:$4 sm:$0xff]  }
 0x532   :  { %v4838_v41 = vrot.slane %v4824_v13, %v24047_v24  ;;  %14327 = vmatmul.mubr.bf16.gmra.mrb[132].mxu1 %v6770_v49  ;;  %v4803_v44 = vcombine.high %v4795_v53, %v4795_v53  ;;  %v18355_v32 = vrot.slane %v4795_v53, 9  ;;  %13361 = vmatprep.subr.bf16.mxu0 %v21188_v50 }
 0x533   :  { %v4804_v56 = vcombine.high %v4802_v40, %v4802_v40  ;;  %v18357_v60 = vrot.slane %v4802_v40, 9  ;;  %14383 = vmatprep.subr.bf16.mxu1 %v21191_v61  ;;  %v4821_v27 = vcombine.high %v4813_v7, %v4813_v7  ;;  %v4822_v42 = vcombine.high %v4820_v12, %v4820_v12  ;;  %13362 = vmatpush1.bf16.msra.mxu0 %v21186_v33 }
 0x534   :  { %v18359_v21 = vrot.slane %v4813_v7, 9  ;;  %v18361_v0 = vrot.slane %v4820_v12, 9  ;;  %14384 = vmatpush1.bf16.msra.mxu1 %v21189_v36  ;;  %v18356_v49 = vrot.slane %v4803_v44, 9  ;;  %v5637_v26 = vmax.f32 %v4795_v53, %v18355_v32  ;;  %13363 = vmatprep.subr.bf16.mxu0 %v21194_v52 }
 0x535   :  { %v18358_v8 = vrot.slane %v4804_v56, 9  ;;  %v24564_v34 = vmax.f32 %v4802_v40, %v18357_v60  ;;  %14385 = vmatprep.subr.bf16.mxu1 %v21197_v2  ;;  %v18360_v58 = vrot.slane %v4821_v27, 9  ;;  %v18362_v13 = vrot.slane %v4822_v42, 9  ;;  %v21198_v40 = vld [vmem:[#allocation10 + $0x3e0] ss:$16 sps:$4 sm:$0xff]  }
 0x536   :  { %v5641_v50 = vmax.f32 %v4813_v7, %v18359_v21  ;;  %v5643_v61 = vmax.f32 %v4820_v12, %v18361_v0  ;;  %v5638_v46 = vmax.f32 %v4803_v44, %v18356_v49  ;;  %v4839_v48 = vcombine.high %v4831_v11, %v4831_v11  ;;  %v21201_v7 = vld [vmem:[#allocation10 + $0x3e8] ss:$16 sps:$4 sm:$0xff]  }
 0x537   :  { %v5640_v59 = vmax.f32 %v4804_v56, %v18358_v8  ;;  %v4840_v33 = vcombine.high %v4838_v41, %v4838_v41  ;;  %v5642_v36 = vmax.f32 %v4821_v27, %v18360_v58  ;;  %v5644_v5 = vmax.f32 %v4822_v42, %v18362_v13  ;;  %13364 = vmatpush1.bf16.msra.mxu0 %v21192_v35 }
 0x538   :  { %v5729_v29 = vmax.f32 %v24521_v57, %v5641_v50  ;;  %v5731_v53 = vmax.f32 %v24523_v17, %v5643_v61  ;;  %v18363_v52 = vrot.slane %v4831_v11, 9  ;;  %v18364_v2 = vrot.slane %v4839_v48, 9  ;;  %14386 = vmatpush1.bf16.msra.mxu1 %v21195_v19  ;;  %13365 = vmatprep.subr.bf16.mxu0 %v21200_v30  ;;  %v21206_v57 = vld [vmem:[#allocation10 + $0x404] ss:$16 sps:$4 sm:$0xff]   ;;  %v21209_v17 = vld [vmem:[#allocation10 + $0x40c] ss:$16 sps:$4 sm:$0xff]  }
 0x539   :  { %v18365_v32 = vrot.slane %v4838_v41, 9  ;;  %v18366_v60 = vrot.slane %v4840_v33, 9  ;;  %v5730_v12 = vmax.f32 %v24527_v63, %v5642_v36  ;;  %v5732_v44 = vmax.f32 %v24529_v54, %v5644_v5  ;;  %14387 = vmatprep.subr.bf16.mxu1 %v21203_v16 }
 0x53a   :  { %v5832_v56 = vadd.f32 %v24051_v43, %v5729_v29  ;;  %v5834_v27 = vadd.f32 %v24061_v38, %v5731_v53  ;;  %v5645_v42 = vmax.f32 %v4831_v11, %v18363_v52  ;;  %v5646_v21 = vmax.f32 %v4839_v48, %v18364_v2 }
 0x53b   :  { %v5647_v0 = vmax.f32 %v4838_v41, %v18365_v32  ;;  %v5648_v35 = vmax.f32 %v4840_v33, %v18366_v60  ;;  %v5833_v49 = vadd.f32 %v24066_v28, %v5730_v12  ;;  %v5835_v8 = vadd.f32 %v24076_v62, %v5732_v44  ;;  %13366 = vmatpush1.bf16.msra.mxu0 %v21198_v40 }
 0x53c   :  { %v5896_v19 = vmax.f32 %v5832_v56, 0.0  ;;  %v5898_v30 = vmax.f32 %v5834_v27, 0.0  ;;  %v5733_v63 = vmax.f32 %v5637_v26, %v5645_v42  ;;  %v5734_v54 = vmax.f32 %v5638_v46, %v5646_v21  ;;  %14388 = vmatpush1.bf16.msra.mxu1 %v21201_v7  ;;  %13408 = vmatprep.subr.bf16.mxu0 %v21206_v57 }
 0x53d   :  { %v5735_v29 = vmax.f32 %v24564_v34, %v5647_v0  ;;  %v5736_v5 = vmax.f32 %v5640_v59, %v5648_v35  ;;  %v5897_v58 = vmax.f32 %v5833_v49, 0.0  ;;  %v5899_v13 = vmax.f32 %v5835_v8, 0.0  ;;  %14430 = vmatprep.subr.bf16.mxu1 %v21209_v17 }
 0x53e   :  { %v6323_v11 = vrot.slane %v5896_v19, %v24041_v10  ;;  %v6327_v41 = vrot.slane %v5896_v19, %v24079_v15  ;;  %v6339_v48 = vrot.slane %v5898_v30, %v24041_v10  ;;  %v6343_v50 = vrot.slane %v5898_v30, %v24079_v15 }
 0x53f   :  { %v5836_v61 = vadd.f32 %v24057_v51, %v5733_v63  ;;  %v5837_v46 = vadd.f32 %v24083_v55, %v5734_v54  ;;  %v6331_v26 = vrot.slane %v5897_v58, %v24041_v10  ;;  %v6335_v59 = vrot.slane %v5897_v58, %v24079_v15 }
 0x540   :  { %v6347_v34 = vrot.slane %v5899_v13, %v24041_v10  ;;  %v6351_v16 = vrot.slane %v5899_v13, %v24079_v15  ;;  %v5838_v33 = vadd.f32 %v24070_v25, %v5735_v29  ;;  %v5839_v36 = vadd.f32 %v24086_v20, %v5736_v5 }
 0x541   :  { %v5900_v53 = vmax.f32 %v5836_v61, 0.0  ;;  %v5901_v40 = vmax.f32 %v5837_v46, 0.0  ;;  %v6630_v52 = vsel %vm6576_vm1, %v6331_v26, %v6323_v11  ;;  %v6636_v2 = vsel %vm6576_vm1, %v6335_v59, %v6327_v41  ;;  %v25655_v46 = vld [vmem:[#allocation34_spill] sm:$0xff] }
 0x542   :  { %v25653_v32 = vcombine.low %v24545_v37, %v24551_v14  ;;  %v25654_v7 = vcombine.high %v24545_v37, %v24551_v14  ;;  %v6631_v44 = vsel %vm6578_vm2, %v6339_v48, %v6630_v52  ;;  %v6637_v56 = vsel %vm6578_vm2, %v6343_v50, %v6636_v2  ;;  %v25656_v59 = vld [vmem:[#allocation86_spill] sm:$0xff] }
 0x543   :  { %v5902_v27 = vmax.f32 %v5838_v33, 0.0  ;;  %v5903_v57 = vmax.f32 %v5839_v36, 0.0  ;;  %v6632_v17 = vsel %vm6580_vm3, %v6347_v34, %v6631_v44  ;;  %v6638_v42 = vsel %vm6580_vm3, %v6351_v16, %v6637_v56  ;;  %v25657_v36 = vld [vmem:[#allocation87_spill] sm:$0xff] }
 0x544   :  { %v4849_v60 = vrot.slane %v25653_v32, %v24047_v24  ;;  %v4856_v12 = vrot.slane %v25654_v7, %v24047_v24  ;;  %v6355_v21 = vrot.slane %v5900_v53, %v24041_v10  ;;  %v6359_v0 = vrot.slane %v5900_v53, %v24079_v15 }
 0x545   :  { %v6363_v35 = vrot.slane %v5901_v40, %v24041_v10  ;;  %v6367_v49 = vrot.slane %v5901_v40, %v24079_v15  ;;  %v6371_v37 = vrot.slane %v5902_v27, %v24041_v10  ;;  %v6375_v14 = vrot.slane %v5902_v27, %v24079_v15  ;;  %v25658_v40 = vld [vmem:[#allocation36_spill] sm:$0xff] }
 0x546   :  { %v6379_v8 = vrot.slane %v5903_v57, %v24041_v10  ;;  %v6383_v19 = vrot.slane %v5903_v57, %v24079_v15  ;;  %v6633_v30 = vsel %vm6582_vm4, %v6355_v21, %v6632_v17  ;;  %v6639_v63 = vsel %vm6582_vm4, %v6359_v0, %v6638_v42  ;;  %v25659_v57 = vld [vmem:[#allocation37_spill] sm:$0xff]  ;;  %v25660_v17 = vld [vmem:[#allocation88_spill] sm:$0xff]  ;;  %v25663_v21 = vld [vmem:[#allocation39_spill] sm:$0xff] }
 0x547   :  { %v6634_v54 = vsel %vm6584_vm5, %v6363_v35, %v6633_v30  ;;  %v6640_v29 = vsel %vm6584_vm5, %v6367_v49, %v6639_v63  ;;  %v4857_v5 = vcombine.high %v4849_v60, %v4849_v60  ;;  %v4858_v58 = vcombine.high %v4856_v12, %v4856_v12 }
 0x548   :  { %v6635_v13 = vsel %vm6586_vm6, %v6371_v37, %v6634_v54  ;;  %v6641_v11 = vsel %vm6586_vm6, %v6375_v14, %v6640_v29  ;;  %6729 = vst [vmem:[#allocation3 + $0x168] sm:$0x1] %v6379_v8  ;;  %6730 = vst [vmem:[#allocation3 + $0x170] sm:$0x1] %v6383_v19  ;;  %v18367_v41 = vrot.slane %v4849_v60, 9  ;;  %v18369_v48 = vrot.slane %v4856_v12, 9 }
 0x549   :  { %6727 = vst [vmem:[#allocation3 + $0x150] sm:$0xfe] %v6635_v13  ;;  %6728 = vst [vmem:[#allocation3 + $0x158] sm:$0xfe] %v6641_v11  ;;  %v18368_v50 = vrot.slane %v4857_v5, 9  ;;  %v18370_v61 = vrot.slane %v4858_v58, 9  ;;  %v4395_v26 = vmax.f32 %v25655_v46, %v24331_v23  ;;  %v4396_v34 = vmax.f32 %v25656_v59, %v24335_v45 }
 0x54a   :  { %v5649_v16 = vmax.f32 %v4849_v60, %v18367_v41  ;;  %v5651_v33 = vmax.f32 %v4856_v12, %v18369_v48  ;;  %v4397_v53 = vmax.f32 %v25657_v36, %v24353_v18  ;;  %v4398_v52 = vmax.f32 %v25658_v40, %v24363_v31  ;;  %v25661_v18 = vld [vmem:[#allocation89_spill] sm:$0xff]  ;;  %v25662_v31 = vld [vmem:[#allocation52_spill] sm:$0xff] }
 0x54b   :  { %v5650_v2 = vmax.f32 %v4857_v5, %v18368_v50  ;;  %v5652_v32 = vmax.f32 %v4858_v58, %v18370_v61  ;;  %v4859_v7 = vcombine.low %v4395_v26, %v4396_v34  ;;  %v4860_v44 = vcombine.high %v4395_v26, %v4396_v34 }
 0x54c   :  { %v4877_v56 = vcombine.low %v4397_v53, %v4398_v52  ;;  %v4878_v27 = vcombine.high %v4397_v53, %v4398_v52  ;;  %v4399_v23 = vmax.f32 %v25659_v57, %v24367_v22  ;;  %v4400_v45 = vmax.f32 %v25660_v17, %v24371_v1 }
 0x54d   :  { %v4867_v60 = vrot.slane %v4859_v7, %v24047_v24  ;;  %v4874_v12 = vrot.slane %v4860_v44, %v24047_v24  ;;  %v24631_v42 = vmax.f32 %v25661_v18, %v24395_v4  ;;  %v24635_v0 = vmax.f32 %v25663_v21, %v25662_v31 }
 0x54e   :  { %v4885_v35 = vrot.slane %v4877_v56, %v24047_v24  ;;  %v4892_v49 = vrot.slane %v4878_v27, %v24047_v24  ;;  %v4895_v22 = vcombine.low %v4399_v23, %v4400_v45  ;;  %v4896_v37 = vcombine.high %v4399_v23, %v4400_v45 }
 0x54f   :  { %v4875_v14 = vcombine.high %v4867_v60, %v4867_v60  ;;  %v4876_v1 = vcombine.high %v4874_v12, %v4874_v12  ;;  %v18371_v8 = vrot.slane %v4867_v60, 9  ;;  %v18373_v19 = vrot.slane %v4874_v12, 9 }
 0x550   :  { %v4893_v30 = vcombine.high %v4885_v35, %v4885_v35  ;;  %v4894_v63 = vcombine.high %v4892_v49, %v4892_v49  ;;  %v18375_v54 = vrot.slane %v4885_v35, 9  ;;  %v18377_v29 = vrot.slane %v4892_v49, 9 }
 0x551   :  { %v18372_v4 = vrot.slane %v4875_v14, 9  ;;  %v18374_v5 = vrot.slane %v4876_v1, 9  ;;  %v5653_v58 = vmax.f32 %v4867_v60, %v18371_v8  ;;  %v5655_v13 = vmax.f32 %v4874_v12, %v18373_v19 }
 0x552   :  { %v18376_v11 = vrot.slane %v4893_v30, 9  ;;  %v18378_v41 = vrot.slane %v4894_v63, 9  ;;  %v5657_v48 = vmax.f32 %v4885_v35, %v18375_v54  ;;  %v5659_v50 = vmax.f32 %v4892_v49, %v18377_v29 }
 0x553   :  { %v5654_v61 = vmax.f32 %v4875_v14, %v18372_v4  ;;  %v5656_v46 = vmax.f32 %v4876_v1, %v18374_v5  ;;  %v4903_v26 = vrot.slane %v4895_v22, %v24047_v24  ;;  %v4910_v59 = vrot.slane %v4896_v37, %v24047_v24 }
 0x554   :  { %v5658_v34 = vmax.f32 %v4893_v30, %v18376_v11  ;;  %v5660_v36 = vmax.f32 %v4894_v63, %v18378_v41  ;;  %v5737_v53 = vmax.f32 %v5649_v16, %v5657_v48  ;;  %v5739_v40 = vmax.f32 %v5651_v33, %v5659_v50 }
 0x555   :  { %v4911_v52 = vcombine.high %v4903_v26, %v4903_v26  ;;  %v4912_v7 = vcombine.high %v4910_v59, %v4910_v59  ;;  %v18379_v44 = vrot.slane %v4903_v26, 9  ;;  %v18381_v56 = vrot.slane %v4910_v59, 9 }
 0x556   :  { %v5738_v27 = vmax.f32 %v5650_v2, %v5658_v34  ;;  %v5740_v57 = vmax.f32 %v5652_v32, %v5660_v36  ;;  %v5840_v23 = vadd.f32 %v24051_v43, %v5737_v53  ;;  %v5842_v17 = vadd.f32 %v24061_v38, %v5739_v40 }
 0x557   :  { %v18380_v45 = vrot.slane %v4911_v52, 9  ;;  %v18382_v60 = vrot.slane %v4912_v7, 9  ;;  %v5661_v12 = vmax.f32 %v4903_v26, %v18379_v44  ;;  %v5663_v18 = vmax.f32 %v4910_v59, %v18381_v56 }
 0x558   :  { %v5841_v31 = vadd.f32 %v24066_v28, %v5738_v27  ;;  %v5843_v21 = vadd.f32 %v24076_v62, %v5740_v57  ;;  %v5904_v16 = vmax.f32 %v5840_v23, 0.0  ;;  %v5906_v33 = vmax.f32 %v5842_v17, 0.0 }
 0x559   :  { %v5662_v35 = vmax.f32 %v4911_v52, %v18380_v45  ;;  %v5664_v49 = vmax.f32 %v4912_v7, %v18382_v60  ;;  %v5741_v22 = vmax.f32 %v5653_v58, %v5661_v12  ;;  %v5743_v37 = vmax.f32 %v5655_v13, %v5663_v18 }
 0x55a   :  { %v5905_v2 = vmax.f32 %v5841_v31, 0.0  ;;  %v5907_v32 = vmax.f32 %v5843_v21, 0.0  ;;  %v6387_v14 = vrot.slane %v5904_v16, %v24041_v10  ;;  %v6391_v1 = vrot.slane %v5904_v16, %v24079_v15  ;;  %v25664_v16 = vld [vmem:[#allocation53_spill] sm:$0xff] }
 0x55b   :  { %v6403_v8 = vrot.slane %v5906_v33, %v24041_v10  ;;  %v6407_v19 = vrot.slane %v5906_v33, %v24079_v15  ;;  %v5742_v30 = vmax.f32 %v5654_v61, %v5662_v35  ;;  %v5744_v63 = vmax.f32 %v5656_v46, %v5664_v49  ;;  %v25665_v33 = vld [vmem:[#allocation90_spill] sm:$0xff] }
 0x55c   :  { %v6395_v54 = vrot.slane %v5905_v2, %v24041_v10  ;;  %v6399_v29 = vrot.slane %v5905_v2, %v24079_v15  ;;  %v6411_v4 = vrot.slane %v5907_v32, %v24041_v10  ;;  %v6415_v5 = vrot.slane %v5907_v32, %v24079_v15  ;;  %v25666_v49 = vld [vmem:[#allocation54_spill] sm:$0xff] }
 0x55d   :  { %v5844_v58 = vadd.f32 %v24057_v51, %v5741_v22  ;;  %v5845_v13 = vadd.f32 %v24083_v55, %v5742_v30  ;;  %v5846_v11 = vadd.f32 %v24070_v25, %v5743_v37  ;;  %v5847_v41 = vadd.f32 %v24086_v20, %v5744_v63  ;;  %v25667_v22 = vld [vmem:[#allocation91_spill] sm:$0xff] }
 0x55e   :  { %v6642_v48 = vsel %vm6576_vm1, %v6395_v54, %v6387_v14  ;;  %v6648_v50 = vsel %vm6576_vm1, %v6399_v29, %v6391_v1  ;;  %v4913_v61 = vcombine.low %v24631_v42, %v24635_v0  ;;  %v4914_v46 = vcombine.high %v24631_v42, %v24635_v0 }
 0x55f   :  { %v6643_v26 = vsel %vm6578_vm2, %v6403_v8, %v6642_v48  ;;  %v6649_v59 = vsel %vm6578_vm2, %v6407_v19, %v6648_v50  ;;  %v5908_v34 = vmax.f32 %v5844_v58, 0.0  ;;  %v5909_v36 = vmax.f32 %v5845_v13, 0.0  ;;  %v25670_v13 = vld [vmem:[#allocation42_spill] sm:$0xff] }
 0x560   :  { %v6644_v53 = vsel %vm6580_vm3, %v6411_v4, %v6643_v26  ;;  %v6650_v40 = vsel %vm6580_vm3, %v6415_v5, %v6649_v59  ;;  %v5910_v52 = vmax.f32 %v5846_v11, 0.0  ;;  %v5911_v7 = vmax.f32 %v5847_v41, 0.0  ;;  %v25668_v4 = vld [vmem:[#allocation55_spill] sm:$0xff]  ;;  %v25669_v5 = vld [vmem:[#allocation41_spill] sm:$0xff] }
 0x561   :  { %v6419_v44 = vrot.slane %v5908_v34, %v24041_v10  ;;  %v6423_v56 = vrot.slane %v5908_v34, %v24079_v15  ;;  %v6427_v27 = vrot.slane %v5909_v36, %v24041_v10  ;;  %v6431_v42 = vrot.slane %v5909_v36, %v24079_v15 }
 0x562   :  { %v6435_v0 = vrot.slane %v5910_v52, %v24041_v10  ;;  %v6439_v57 = vrot.slane %v5910_v52, %v24079_v15  ;;  %v6443_v23 = vrot.slane %v5911_v7, %v24041_v10  ;;  %v6447_v17 = vrot.slane %v5911_v7, %v24079_v15 }
 0x563   :  { %v6645_v45 = vsel %vm6582_vm4, %v6419_v44, %v6644_v53  ;;  %v6651_v60 = vsel %vm6582_vm4, %v6423_v56, %v6650_v40  ;;  %v4921_v12 = vrot.slane %v4913_v61, %v24047_v24  ;;  %v4928_v18 = vrot.slane %v4914_v46, %v24047_v24 }
 0x564   :  { %v6646_v31 = vsel %vm6584_vm5, %v6427_v27, %v6645_v45  ;;  %v6652_v21 = vsel %vm6584_vm5, %v6431_v42, %v6651_v60  ;;  %6733 = vst [vmem:[#allocation3 + $0x198] sm:$0x1] %v6443_v23  ;;  %6734 = vst [vmem:[#allocation3 + $0x1a0] sm:$0x1] %v6447_v17  ;;  %v4403_v35 = vmax.f32 %v25665_v33, %v25664_v16  ;;  %v25672_v27 = vld [vmem:[#allocation56_spill] sm:$0xff]  ;;  %v6758_v16 = vld [vmem:[#allocation3 + $0x150] sm:$0xff] }
 0x565   :  { %v4404_v37 = vmax.f32 %v25667_v22, %v25666_v49  ;;  %v6647_v2 = vsel %vm6586_vm6, %v6435_v0, %v6646_v31  ;;  %v6653_v32 = vsel %vm6586_vm6, %v6439_v57, %v6652_v21  ;;  %v4929_v14 = vcombine.high %v4921_v12, %v4921_v12  ;;  %v25673_v42 = vld [vmem:[#allocation44_spill] sm:$0xff]  ;;  %v6759_v21 = vld [vmem:[#allocation3 + $0x158] sm:$0xff] }
 0x566   :  { %v4930_v1 = vcombine.high %v4928_v18, %v4928_v18  ;;  %6731 = vst [vmem:[#allocation3 + $0x180] sm:$0xfe] %v6647_v2  ;;  %6732 = vst [vmem:[#allocation3 + $0x188] sm:$0xfe] %v6653_v32  ;;  %v18383_v8 = vrot.slane %v4921_v12, 9  ;;  %v18385_v19 = vrot.slane %v4928_v18, 9  ;;  %v4405_v58 = vmax.f32 %v25669_v5, %v25668_v4 }
 0x567   :  { %v4931_v30 = vcombine.low %v4403_v35, %v4404_v37  ;;  %v4932_v63 = vcombine.high %v4403_v35, %v4404_v37  ;;  %v18384_v54 = vrot.slane %v4929_v14, 9  ;;  %v4406_v11 = vmax.f32 %v25670_v13, %v24439_v39  ;;  %v25671_v39 = vld [vmem:[#allocation92_spill] sm:$0xff] }
 0x568   :  { %v18386_v29 = vrot.slane %v4930_v1, 9  ;;  %v5665_v41 = vmax.f32 %v4921_v12, %v18383_v8  ;;  %v5667_v48 = vmax.f32 %v4928_v18, %v18385_v19  ;;  %v4407_v56 = vmax.f32 %v25671_v39, %v24441_v47  ;;  %v24703_v8 = vld [vmem:[#allocation2] sm:$0xff] }
 0x569   :  { %v4939_v50 = vrot.slane %v4931_v30, %v24047_v24  ;;  %v4946_v61 = vrot.slane %v4932_v63, %v24047_v24  ;;  %v5666_v46 = vmax.f32 %v4929_v14, %v18384_v54  ;;  %v4949_v59 = vcombine.low %v4405_v58, %v4406_v11 }
 0x56a   :  { %v5668_v26 = vmax.f32 %v4930_v1, %v18386_v29  ;;  %v4950_v34 = vcombine.high %v4405_v58, %v4406_v11  ;;  %v4408_v0 = vmax.f32 %v25673_v42, %v25672_v27  ;;  %v6774_v19 = vpack.c.bf16 %v6759_v21, %v24703_v8 }
 0x56b   :  { %v4947_v36 = vcombine.high %v4939_v50, %v4939_v50  ;;  %v4948_v53 = vcombine.high %v4946_v61, %v4946_v61  ;;  %v18387_v40 = vrot.slane %v4939_v50, 9  ;;  %v18389_v52 = vrot.slane %v4946_v61, 9 }
 0x56c   :  { %v4957_v7 = vrot.slane %v4949_v59, %v24047_v24  ;;  %v4964_v44 = vrot.slane %v4950_v34, %v24047_v24  ;;  %v4967_v49 = vcombine.low %v4407_v56, %v4408_v0  ;;  %v4968_v22 = vcombine.high %v4407_v56, %v4408_v0  ;;  %13314 = vmatprep.mubr.bf16.mxu0 %v6774_v19 }
 0x56d   :  { %v18388_v57 = vrot.slane %v4947_v36, 9  ;;  %v18390_v23 = vrot.slane %v4948_v53, 9  ;;  %v5669_v17 = vmax.f32 %v4939_v50, %v18387_v40  ;;  %v24699_v45 = vmax.f32 %v4946_v61, %v18389_v52  ;;  %14336 = vmatprep.mubr.bf16.mxu1 %v6774_v19 }
 0x56e   :  { %v4965_v60 = vcombine.high %v4957_v7, %v4957_v7  ;;  %v4966_v12 = vcombine.high %v4964_v44, %v4964_v44  ;;  %v18391_v18 = vrot.slane %v4957_v7, 9  ;;  %v18393_v31 = vrot.slane %v4964_v44, 9 }
 0x56f   :  { %v5670_v33 = vmax.f32 %v4947_v36, %v18388_v57  ;;  %v5672_v35 = vmax.f32 %v4948_v53, %v18390_v23  ;;  %v4975_v14 = vrot.slane %v4967_v49, %v24047_v24  ;;  %v4982_v1 = vrot.slane %v4968_v22, %v24047_v24 }
 0x570   :  { %v18392_v37 = vrot.slane %v4965_v60, 9  ;;  %v18394_v47 = vrot.slane %v4966_v12, 9  ;;  %v5673_v2 = vmax.f32 %v4957_v7, %v18391_v18  ;;  %v5675_v32 = vmax.f32 %v4964_v44, %v18393_v31 }
 0x571   :  { %v6773_v30 = vpack.c.bf16 %v6758_v16, %v24703_v8  ;;  %v4983_v5 = vcombine.high %v4975_v14, %v4975_v14  ;;  %v4984_v58 = vcombine.high %v4982_v1, %v4982_v1  ;;  %v18395_v13 = vrot.slane %v4975_v14, 9 }
 0x572   :  { %v5674_v63 = vmax.f32 %v4965_v60, %v18392_v37  ;;  %v5676_v54 = vmax.f32 %v4966_v12, %v18394_v47  ;;  %v5745_v29 = vmax.f32 %v5665_v41, %v5673_v2  ;;  %v5747_v4 = vmax.f32 %v5667_v48, %v5675_v32  ;;  %v25675_v32 = vld [vmem:[#allocation93_spill] sm:$0xff] }
 0x573   :  { %v18397_v11 = vrot.slane %v4982_v1, 9  ;;  %13315 = vmatmul.mubr.bf16.gmra.mrb[72].mxu0 %v6773_v30  ;;  %v18396_v36 = vrot.slane %v4983_v5, 9  ;;  %v18398_v53 = vrot.slane %v4984_v58, 9  ;;  %v5677_v40 = vmax.f32 %v4975_v14, %v18395_v13  ;;  %14337 = vmatmul.mubr.bf16.gmra.mrb[136].mxu1 %v6773_v30 }
 0x574   :  { %v5746_v50 = vmax.f32 %v5666_v46, %v5674_v63  ;;  %v5748_v61 = vmax.f32 %v5668_v26, %v5676_v54  ;;  %v5848_v59 = vadd.f32 %v24051_v43, %v5745_v29  ;;  %v5850_v34 = vadd.f32 %v24061_v38, %v5747_v4 }
 0x575   :  { %v5679_v52 = vmax.f32 %v4982_v1, %v18397_v11  ;;  %v5678_v39 = vmax.f32 %v4983_v5, %v18396_v36  ;;  %v5680_v56 = vmax.f32 %v4984_v58, %v18398_v53  ;;  %v5749_v46 = vmax.f32 %v5669_v17, %v5677_v40 }
 0x576   :  { %v5849_v41 = vadd.f32 %v24066_v28, %v5746_v50  ;;  %v5851_v48 = vadd.f32 %v24076_v62, %v5748_v61  ;;  %v5912_v7 = vmax.f32 %v5848_v59, 0.0  ;;  %v5914_v44 = vmax.f32 %v5850_v34, 0.0 }
 0x577   :  { %v5751_v26 = vmax.f32 %v24699_v45, %v5679_v52  ;;  %v5750_v12 = vmax.f32 %v5670_v33, %v5678_v39  ;;  %v5752_v18 = vmax.f32 %v5672_v35, %v5680_v56  ;;  %v5852_v16 = vadd.f32 %v24057_v51, %v5749_v46  ;;  %v25674_v35 = vld [vmem:[#allocation45_spill] sm:$0xff]  ;;  %v25678_v39 = vld [vmem:[#allocation32_spill] sm:$0xff]  ;;  %v25679_v56 = vld [vmem:[#allocation95_spill] sm:$0xff] }
 0x578   :  { %v5913_v27 = vmax.f32 %v5849_v41, 0.0  ;;  %v5915_v42 = vmax.f32 %v5851_v48, 0.0  ;;  %v6451_v0 = vrot.slane %v5912_v7, %v24041_v10  ;;  %v6455_v57 = vrot.slane %v5912_v7, %v24079_v15  ;;  %v25676_v48 = vld [vmem:[#allocation29_spill] sm:$0xff]  ;;  %v25677_v7 = vld [vmem:[#allocation94_spill] sm:$0xff] }
 0x579   :  { %v6467_v23 = vrot.slane %v5914_v44, %v24041_v10  ;;  %v6471_v60 = vrot.slane %v5914_v44, %v24079_v15  ;;  %v5853_v49 = vadd.f32 %v24083_v55, %v5750_v12  ;;  %v5854_v22 = vadd.f32 %v24070_v25, %v5751_v26 }
 0x57a   :  { %v6459_v31 = vrot.slane %v5913_v27, %v24041_v10  ;;  %v6463_v21 = vrot.slane %v5913_v27, %v24079_v15  ;;  %v6475_v17 = vrot.slane %v5915_v42, %v24041_v10  ;;  %v6479_v45 = vrot.slane %v5915_v42, %v24079_v15 }
 0x57b   :  { %v5855_v37 = vadd.f32 %v24086_v20, %v5752_v18  ;;  %v4409_v2 = vmax.f32 %v25674_v35, %v24469_v3  ;;  %v4410_v14 = vmax.f32 %v25675_v32, %v24471_v9  ;;  %v5916_v30 = vmax.f32 %v5852_v16, 0.0  ;;  %v25681_v18 = vld [vmem:[#allocation35_spill] sm:$0xff] }
 0x57c   :  { %v6654_v47 = vsel %vm6576_vm1, %v6459_v31, %v6451_v0  ;;  %v6660_v33 = vsel %vm6576_vm1, %v6463_v21, %v6455_v57  ;;  %v5917_v63 = vmax.f32 %v5853_v49, 0.0  ;;  %v5918_v4 = vmax.f32 %v5854_v22, 0.0  ;;  %v25682_v31 = vld [vmem:[#allocation96_spill] sm:$0xff] }
 0x57d   :  { %v6655_v1 = vsel %vm6578_vm2, %v6467_v23, %v6654_v47  ;;  %v6661_v19 = vsel %vm6578_vm2, %v6471_v60, %v6660_v33  ;;  %v5919_v5 = vmax.f32 %v5855_v37, 0.0  ;;  %v6483_v58 = vrot.slane %v5916_v30, %v24041_v10  ;;  %v25680_v60 = vld [vmem:[#allocation46_spill] sm:$0xff] }
 0x57e   :  { %v6656_v54 = vsel %vm6580_vm3, %v6475_v17, %v6655_v1  ;;  %v6662_v29 = vsel %vm6580_vm3, %v6479_v45, %v6661_v19  ;;  %v6487_v13 = vrot.slane %v5916_v30, %v24079_v15  ;;  %v6491_v3 = vrot.slane %v5917_v63, %v24041_v10 }
 0x57f   :  { %v6495_v9 = vrot.slane %v5917_v63, %v24079_v15  ;;  %v6499_v11 = vrot.slane %v5918_v4, %v24041_v10  ;;  %v6503_v50 = vrot.slane %v5918_v4, %v24079_v15  ;;  %v6507_v61 = vrot.slane %v5919_v5, %v24041_v10 }
 0x580   :  { %v6511_v59 = vrot.slane %v5919_v5, %v24079_v15  ;;  %v6657_v34 = vsel %vm6582_vm4, %v6483_v58, %v6656_v54  ;;  %v6663_v36 = vsel %vm6582_vm4, %v6487_v13, %v6662_v29  ;;  %v4985_v53 = vcombine.low %v4409_v2, %v4410_v14 }
 0x581   :  { %v4986_v40 = vcombine.high %v4409_v2, %v4410_v14  ;;  %v6658_v52 = vsel %vm6584_vm5, %v6491_v3, %v6657_v34  ;;  %v6664_v41 = vsel %vm6584_vm5, %v6495_v9, %v6663_v36  ;;  %6737 = vst [vmem:[#allocation3 + $0x1c8] sm:$0x1] %v6507_v61  ;;  %v4411_v44 = vmax.f32 %v25677_v7, %v25676_v48  ;;  %v25685_v48 = vld [vmem:[#allocation40_spill] sm:$0xff]  ;;  %v25686_v7 = vld [vmem:[#allocation98_spill] sm:$0xff] }
 0x582   :  { %6738 = vst [vmem:[#allocation3 + $0x1d0] sm:$0x1] %v6511_v59  ;;  %v4412_v46 = vmax.f32 %v25679_v56, %v25678_v39  ;;  %v6659_v26 = vsel %vm6586_vm6, %v6499_v11, %v6658_v52  ;;  %v6665_v27 = vsel %vm6586_vm6, %v6503_v50, %v6664_v41  ;;  %v4993_v42 = vrot.slane %v4985_v53, %v24047_v24  ;;  %v25684_v52 = vld [vmem:[#allocation97_spill] sm:$0xff] }
 0x583   :  { %v5000_v0 = vrot.slane %v4986_v40, %v24047_v24  ;;  %6735 = vst [vmem:[#allocation3 + $0x1b0] sm:$0xfe] %v6659_v26  ;;  %6736 = vst [vmem:[#allocation3 + $0x1b8] sm:$0xfe] %v6665_v27  ;;  %v4413_v12 = vmax.f32 %v25680_v60, %v24501_v6  ;;  %v4414_v21 = vmax.f32 %v25682_v31, %v25681_v18  ;;  %v25683_v40 = vld [vmem:[#allocation38_spill] sm:$0xff]  ;;  %v6762_v27 = vld [vmem:[#allocation3 + $0x188] sm:$0xff] }
 0x584   :  { %v5003_v57 = vcombine.low %v4411_v44, %v4412_v46  ;;  %v5004_v23 = vcombine.high %v4411_v44, %v4412_v46  ;;  %v5001_v17 = vcombine.high %v4993_v42, %v4993_v42  ;;  %v18399_v16 = vrot.slane %v4993_v42, 9 }
 0x585   :  { %v5002_v45 = vcombine.high %v5000_v0, %v5000_v0  ;;  %v18401_v49 = vrot.slane %v5000_v0, 9  ;;  %v5021_v47 = vcombine.low %v4413_v12, %v4414_v21  ;;  %v5022_v33 = vcombine.high %v4413_v12, %v4414_v21 }
 0x586   :  { %v5011_v22 = vrot.slane %v5003_v57, %v24047_v24  ;;  %v5018_v37 = vrot.slane %v5004_v23, %v24047_v24  ;;  %v18400_v35 = vrot.slane %v5001_v17, 9  ;;  %v5681_v32 = vmax.f32 %v4993_v42, %v18399_v16  ;;  %v6761_v42 = vld [vmem:[#allocation3 + $0x180] sm:$0xff] }
 0x587   :  { %v18402_v2 = vrot.slane %v5002_v45, 9  ;;  %v5683_v14 = vmax.f32 %v5000_v0, %v18401_v49  ;;  %v5029_v29 = vrot.slane %v5021_v47, %v24047_v24  ;;  %v5036_v4 = vrot.slane %v5022_v33, %v24047_v24  ;;  %v25687_v16 = vld [vmem:[#allocation43_spill] sm:$0xff] }
 0x588   :  { %v5019_v1 = vcombine.high %v5011_v22, %v5011_v22  ;;  %v5020_v6 = vcombine.high %v5018_v37, %v5018_v37  ;;  %v18403_v19 = vrot.slane %v5011_v22, 9  ;;  %v18405_v30 = vrot.slane %v5018_v37, 9 }
 0x589   :  { %v5682_v63 = vmax.f32 %v5001_v17, %v18400_v35  ;;  %v5684_v54 = vmax.f32 %v5002_v45, %v18402_v2  ;;  %v5037_v9 = vcombine.high %v5029_v29, %v5029_v29  ;;  %v5038_v11 = vcombine.high %v5036_v4, %v5036_v4 }
 0x58a   :  { %v18404_v5 = vrot.slane %v5019_v1, 9  ;;  %v18406_v58 = vrot.slane %v5020_v6, 9  ;;  %v24762_v13 = vmax.f32 %v5011_v22, %v18403_v19  ;;  %v24764_v3 = vmax.f32 %v5018_v37, %v18405_v30  ;;  %v6765_v59 = vld [vmem:[#allocation3 + $0x1b8] sm:$0xff]  ;;  %v6764_v34 = vld [vmem:[#allocation3 + $0x1b0] sm:$0xff] }
 0x58b   :  { %v18407_v50 = vrot.slane %v5029_v29, 9  ;;  %v18409_v61 = vrot.slane %v5036_v4, 9  ;;  %v4415_v41 = vmax.f32 %v25684_v52, %v25683_v40  ;;  %v4416_v44 = vmax.f32 %v25686_v7, %v25685_v48  ;;  %v25689_v22 = vld [vmem:[#allocation50_spill] sm:$0xff] }
 0x58c   :  { %v24766_v36 = vmax.f32 %v5019_v1, %v18404_v5  ;;  %v24768_v53 = vmax.f32 %v5020_v6, %v18406_v58  ;;  %v18408_v39 = vrot.slane %v5037_v9, 9  ;;  %v18410_v56 = vrot.slane %v5038_v11, 9  ;;  %v6785_v30 = vld [vmem:[#allocation3 + $0x30] sm:$0xfe] }
 0x58d   :  { %v5689_v46 = vmax.f32 %v5029_v29, %v18407_v50  ;;  %v5691_v26 = vmax.f32 %v5036_v4, %v18409_v61  ;;  %v5039_v0 = vcombine.low %v4415_v41, %v4416_v44  ;;  %v5040_v57 = vcombine.high %v4415_v41, %v4416_v44 }
 0x58e   :  { %v6777_v23 = vpack.c.bf16 %v6765_v59, %v6762_v27  ;;  %v6776_v60 = vpack.c.bf16 %v6764_v34, %v6761_v42  ;;  %v5690_v12 = vmax.f32 %v5037_v9, %v18408_v39  ;;  %v5692_v18 = vmax.f32 %v5038_v11, %v18410_v56 }
 0x58f   :  { %v5753_v31 = vmax.f32 %v5681_v32, %v5689_v46  ;;  %v5755_v21 = vmax.f32 %v5683_v14, %v5691_v26  ;;  %v5047_v17 = vrot.slane %v5039_v0, %v24047_v24  ;;  %v5054_v45 = vrot.slane %v5040_v57, %v24047_v24 }
 0x590   :  { %13324 = vmatprep.mubr.bf16.mxu0 %v6777_v23  ;;  %14346 = vmatprep.mubr.bf16.mxu1 %v6777_v23  ;;  %v25688_v49 = vrot.slane %v25687_v16, 1  ;;  %v25690_v37 = vrot.slane %v25689_v22, 1  ;;  %v5754_v33 = vmax.f32 %v5682_v63, %v5690_v12  ;;  %v5756_v35 = vmax.f32 %v5684_v54, %v5692_v18 }
 0x591   :  { %v5856_v2 = vadd.f32 %v24051_v43, %v5753_v31  ;;  %v5858_v1 = vadd.f32 %v24061_v38, %v5755_v21  ;;  %13325 = vmatmul.mubr.bf16.gmra.mrb[76].mxu0 %v6776_v60  ;;  %v5055_v32 = vcombine.high %v5047_v17, %v5047_v17  ;;  %v5056_v14 = vcombine.high %v5054_v45, %v5054_v45  ;;  %v21204_v31 = vld [vmem:[#allocation10 + $0x400] ss:$16 sps:$4 sm:$0xff]   ;;  %v6794_v21 = vld [vmem:[#allocation3 + $0x78] sm:$0x1] }
 0x592   :  { %v6878_v47 = vsel %vm6875_vm7, %v25690_v37, %v25688_v49  ;;  %v18411_v6 = vrot.slane %v5047_v17, 9  ;;  %v18413_v19 = vrot.slane %v5054_v45, 9  ;;  %14347 = vmatmul.mubr.bf16.gmra.mrb[140].mxu1 %v6776_v60  ;;  %v5857_v29 = vadd.f32 %v24066_v28, %v5754_v33  ;;  %v6788_v28 = vld [vmem:[#allocation3 + $0x48] sm:$0x1]  ;;  %v21207_v49 = vld [vmem:[#allocation10 + $0x408] ss:$16 sps:$4 sm:$0xff]  }
 0x593   :  { %v5859_v4 = vadd.f32 %v24076_v62, %v5756_v35  ;;  %v5920_v5 = vmax.f32 %v5856_v2, 0.0  ;;  %v5922_v58 = vmax.f32 %v5858_v1, 0.0  ;;  %v18412_v9 = vrot.slane %v5055_v32, 9  ;;  %v6800_v35 = vld [vmem:[#allocation3 + $0xa8] sm:$0x1] }
 0x594   :  { %v18414_v63 = vrot.slane %v5056_v14, 9  ;;  %v5693_v54 = vmax.f32 %v5047_v17, %v18411_v6  ;;  %v5695_v11 = vmax.f32 %v5054_v45, %v18413_v19  ;;  %v5921_v43 = vmax.f32 %v5857_v29, 0.0  ;;  %v6803_v6 = vld [vmem:[#allocation3 + $0x120] sm:$0xfe] }
 0x595   :  { %v5923_v50 = vmax.f32 %v5859_v4, 0.0  ;;  %v6515_v38 = vrot.slane %v5920_v5, %v24041_v10  ;;  %v6885_v61 = vrot.slane %v6785_v30, 1  ;;  %v6519_v59 = vrot.slane %v5920_v5, %v24079_v15  ;;  %v6806_v4 = vld [vmem:[#allocation3 + $0x138] sm:$0x1]  ;;  %v6809_v5 = vld [vmem:[#allocation3 + $0x150] sm:$0xfe] }
 0x596   :  { %v6531_v34 = vrot.slane %v5922_v58, %v24041_v10  ;;  %v5694_v40 = vmax.f32 %v5055_v32, %v18412_v9  ;;  %v5696_v52 = vmax.f32 %v5056_v14, %v18414_v63  ;;  %v6523_v62 = vrot.slane %v5921_v43, %v24041_v10  ;;  %v21212_v14 = vld [vmem:[#allocation10 + $0x424] ss:$16 sps:$4 sm:$0xff]  }
 0x597   :  { %v6527_v41 = vrot.slane %v5921_v43, %v24079_v15  ;;  %v6535_v48 = vrot.slane %v5922_v58, %v24079_v15  ;;  %v6539_v7 = vrot.slane %v5923_v50, %v24041_v10  ;;  %v5757_v44 = vmax.f32 %v24762_v13, %v5693_v54 }
 0x598   :  { %v5758_v39 = vmax.f32 %v24766_v36, %v5694_v40  ;;  %v5759_v56 = vmax.f32 %v24764_v3, %v5695_v11  ;;  %v5760_v46 = vmax.f32 %v24768_v53, %v5696_v52  ;;  %v6543_v26 = vrot.slane %v5923_v50, %v24079_v15  ;;  %v6791_v36 = vld [vmem:[#allocation3 + $0x60] sm:$0xfe]  ;;  %v6812_v11 = vld [vmem:[#allocation3 + $0x168] sm:$0x1] }
 0x599   :  { %v6666_v27 = vsel %vm6576_vm1, %v6523_v62, %v6515_v38  ;;  %v6672_v42 = vsel %vm6576_vm1, %v6527_v41, %v6519_v59  ;;  %v6886_v0 = vrot.slane %v6788_v28, 1  ;;  %v5860_v60 = vadd.f32 %v24057_v51, %v5757_v44 }
 0x59a   :  { %v6667_v57 = vsel %vm6578_vm2, %v6531_v34, %v6666_v27  ;;  %v6673_v23 = vsel %vm6578_vm2, %v6535_v48, %v6672_v42  ;;  %v5861_v13 = vadd.f32 %v24083_v55, %v5758_v39  ;;  %v5862_v12 = vadd.f32 %v24070_v25, %v5759_v56  ;;  %v6797_v55 = vld [vmem:[#allocation3 + $0x90] sm:$0xfe]  ;;  %v21213_v48 = vld [vmem:[#allocation10 + $0x428] ss:$16 sps:$4 sm:$0xff]  }
 0x59b   :  { %v6668_v3 = vsel %vm6580_vm3, %v6539_v7, %v6667_v57  ;;  %v6674_v53 = vsel %vm6580_vm3, %v6543_v26, %v6673_v23  ;;  %v5863_v18 = vadd.f32 %v24086_v20, %v5760_v46  ;;  %v5924_v17 = vmax.f32 %v5860_v60, 0.0  ;;  %v21218_v7 = vld [vmem:[#allocation10 + $0x444] ss:$16 sps:$4 sm:$0xff]   ;;  %v21221_v56 = vld [vmem:[#allocation10 + $0x44c] ss:$16 sps:$4 sm:$0xff]  }
 0x59c   :  { %v5925_v45 = vmax.f32 %v5861_v13, 0.0  ;;  %v6887_v16 = vsel %vm6875_vm7, %v6885_v61, %v6886_v0  ;;  %v24810_v51 = vpack.c.bf16 %v24703_v8, %v24703_v8  ;;  %v5926_v22 = vmax.f32 %v5862_v12, 0.0  ;;  %v21210_v61 = vld [vmem:[#allocation10 + $0x420] ss:$16 sps:$4 sm:$0xff]   ;;  %v21219_v0 = vld [vmem:[#allocation10 + $0x448] ss:$16 sps:$4 sm:$0xff]  }
 0x59d   :  { %v5927_v37 = vmax.f32 %v5863_v18, 0.0  ;;  %v6972_v33 = vpack.c.bf16 %v6887_v16, %v6878_v47  ;;  %v6894_v2 = vrot.slane %v6791_v36, 1  ;;  %v6547_v25 = vrot.slane %v5924_v17, %v24041_v10  ;;  %v21215_v47 = vld [vmem:[#allocation10 + $0x42c] ss:$16 sps:$4 sm:$0xff]   ;;  %v21216_v46 = vld [vmem:[#allocation10 + $0x440] ss:$16 sps:$4 sm:$0xff]  }
 0x59e   :  { %v6551_v20 = vrot.slane %v5924_v17, %v24079_v15  ;;  %v6555_v1 = vrot.slane %v5925_v45, %v24041_v10  ;;  %v6895_v32 = vrot.slane %v6794_v21, 1  ;;  %v6559_v19 = vrot.slane %v5925_v45, %v24079_v15  ;;  %v6821_v42 = vld [vmem:[#allocation3 + $0x1b0] sm:$0xfe]  ;;  %v6815_v23 = vld [vmem:[#allocation3 + $0x180] sm:$0xfe] }
 0x59f   :  { %v6563_v8 = vrot.slane %v5926_v22, %v24041_v10  ;;  %v6571_v30 = vrot.slane %v5927_v37, %v24041_v10  ;;  %v6575_v29 = vrot.slane %v5927_v37, %v24079_v15  ;;  %13367 = vmatprep.mubr.bf16.mxu0 %v6972_v33  ;;  %v6567_v58 = vrot.slane %v5926_v22, %v24079_v15  ;;  %v21224_v57 = vld [vmem:[#allocation10 + $0x464] ss:$16 sps:$4 sm:$0xff]   ;;  %v21222_v13 = vld [vmem:[#allocation10 + $0x460] ss:$16 sps:$4 sm:$0xff]   ;;  %v21227_v36 = vld [vmem:[#allocation10 + $0x46c] ss:$16 sps:$4 sm:$0xff]  }
 0x5a0   :  { %v6669_v9 = vsel %vm6582_vm4, %v6547_v25, %v6668_v3  ;;  %v6675_v63 = vsel %vm6582_vm4, %v6551_v20, %v6674_v53  ;;  %14389 = vmatprep.mubr.bf16.mxu1 %v6972_v33  ;;  %13368 = vmatmul.mubr.bf16.vlgmr.msra.gmra.mrb[64].mxu0 %v24810_v51  ;;  %v6903_v54 = vrot.slane %v6797_v55, 1  ;;  %v6904_v38 = vrot.slane %v6800_v35, 1  ;;  %v6824_v3 = vld [vmem:[#allocation3 + $0x1c8] sm:$0x1]  ;;  %v21225_v53 = vld [vmem:[#allocation10 + $0x468] ss:$16 sps:$4 sm:$0xff]  }
 0x5a1   :  { %v6670_v43 = vsel %vm6584_vm5, %v6555_v1, %v6669_v9  ;;  %v6676_v50 = vsel %vm6584_vm5, %v6559_v19, %v6675_v63  ;;  %6741 = vst [vmem:[#allocation3 + $0x1f8] sm:$0x1] %v6571_v30  ;;  %6742 = vst [vmem:[#allocation3 + $0x200] sm:$0x1] %v6575_v29  ;;  %13409 = vmatpush1.bf16.msra.mxu0 %v21204_v31  ;;  %14390 = vmatmul.mubr.bf16.vlgmr.msra.gmra.mrb[128].mxu1 %v24810_v51  ;;  %v6912_v59 = vrot.slane %v6803_v6, 1 }
 0x5a2   :  { %v6671_v34 = vsel %vm6586_vm6, %v6563_v8, %v6670_v43  ;;  %v6677_v40 = vsel %vm6586_vm6, %v6567_v58, %v6676_v50  ;;  %14431 = vmatpush1.bf16.msra.mxu1 %v21207_v49  ;;  %13410 = vmatprep.subr.bf16.mxu0 %v21212_v14  ;;  %v6913_v52 = vrot.slane %v6806_v4, 1  ;;  %v6921_v28 = vrot.slane %v6809_v5, 1  ;;  %v6818_v12 = vld [vmem:[#allocation3 + $0x198] sm:$0x1]  ;;  %v21233_v21 = vld [vmem:[#allocation10 + $0x48c] ss:$16 sps:$4 sm:$0xff]  }
 0x5a3   :  { %6739 = vst [vmem:[#allocation3 + $0x1e0] sm:$0xfe] %v6671_v34  ;;  %6740 = vst [vmem:[#allocation3 + $0x1e8] sm:$0xfe] %v6677_v40  ;;  %v6896_v62 = vsel %vm6875_vm7, %v6894_v2, %v6895_v32  ;;  %v6905_v41 = vsel %vm6875_vm7, %v6903_v54, %v6904_v38  ;;  %14432 = vmatprep.subr.bf16.mxu1 %v21215_v47  ;;  %v6922_v44 = vrot.slane %v6812_v11, 1  ;;  %v6939_v18 = vrot.slane %v6821_v42, 1 }
 0x5a4   :  { %v6975_v39 = vpack.c.bf16 %v6905_v41, %v6896_v62  ;;  %v6914_v26 = vsel %vm6875_vm7, %v6912_v59, %v6913_v52  ;;  %v21230_v31 = vld [vmem:[#allocation10 + $0x484] ss:$16 sps:$4 sm:$0xff]   ;;  %v6930_v17 = vrot.slane %v6815_v23, 1  ;;  %v6940_v45 = vrot.slane %v6824_v3, 1  ;;  %v21228_v33 = vld [vmem:[#allocation10 + $0x480] ss:$16 sps:$4 sm:$0xff]  }
 0x5a5   :  { %13411 = vmatpush1.bf16.msra.mxu0 %v21210_v61  ;;  %v6923_v27 = vsel %vm6875_vm7, %v6921_v28, %v6922_v44  ;;  %v6781_v16 = vld [vmem:[#allocation3 + $0x10] sm:$0xfe]  ;;  %v6784_v49 = vld [vmem:[#allocation3 + $0x28] sm:$0x1]  ;;  %v6931_v55 = vrot.slane %v6818_v12, 1 }
 0x5a6   :  { %13377 = vmatprep.mubr.bf16.mxu0 %v6975_v39  ;;  %14399 = vmatprep.mubr.bf16.mxu1 %v6975_v39  ;;  %v6978_v60 = vpack.c.bf16 %v6923_v27, %v6914_v26  ;;  %v6787_v22 = vld [vmem:[#allocation3 + $0x40] sm:$0xfe]  ;;  %v6790_v37 = vld [vmem:[#allocation3 + $0x58] sm:$0x1]  ;;  %v6941_v35 = vsel %vm6875_vm7, %v6939_v18, %v6940_v45  ;;  %v21231_v2 = vld [vmem:[#allocation10 + $0x488] ss:$16 sps:$4 sm:$0xff]  }
 0x5a7   :  { %14433 = vmatpush1.bf16.msra.mxu1 %v21213_v48  ;;  %13412 = vmatprep.subr.bf16.mxu0 %v21218_v7  ;;  %v6932_v25 = vsel %vm6875_vm7, %v6930_v17, %v6931_v55  ;;  %v21236_v20 = vld [vmem:[#allocation10 + $0x4a4] ss:$16 sps:$4 sm:$0xff]   ;;  %v6882_v1 = vrot.slane %v6781_v16, 1  ;;  %v6883_v32 = vrot.slane %v6784_v49, 1  ;;  %v6891_v14 = vrot.slane %v6787_v22, 1 }
 0x5a8   :  { %14434 = vmatprep.subr.bf16.mxu1 %v21221_v56  ;;  %13378 = vmatmul.mubr.bf16.gmra.mrb[68].mxu0 %v24810_v51  ;;  %v6892_v6 = vrot.slane %v6790_v37, 1  ;;  %v6981_v19 = vpack.c.bf16 %v6941_v35, %v6932_v25  ;;  %v21239_v8 = vld [vmem:[#allocation10 + $0x4ac] ss:$16 sps:$4 sm:$0xff]   ;;  %v21234_v30 = vld [vmem:[#allocation10 + $0x4a0] ss:$16 sps:$4 sm:$0xff]  }
 0x5a9   :  { %13413 = vmatpush1.bf16.msra.mxu0 %v21216_v46  ;;  %14400 = vmatmul.mubr.bf16.gmra.mrb[132].mxu1 %v24810_v51  ;;  %v21242_v29 = vld [vmem:[#allocation10 + $0x4c4] ss:$16 sps:$4 sm:$0xff]   ;;  %v21237_v47 = vld [vmem:[#allocation10 + $0x4a8] ss:$16 sps:$4 sm:$0xff]   ;;  %v6884_v4 = vsel %vm6875_vm7, %v6882_v1, %v6883_v32  ;;  %v21245_v58 = vld [vmem:[#allocation10 + $0x4cc] ss:$16 sps:$4 sm:$0xff]  }
 0x5aa   :  { %13387 = vmatprep.mubr.bf16.mxu0 %v6978_v60  ;;  %14409 = vmatprep.mubr.bf16.mxu1 %v6978_v60  ;;  %v6893_v5 = vsel %vm6875_vm7, %v6891_v14, %v6892_v6  ;;  %v21240_v9 = vld [vmem:[#allocation10 + $0x4c0] ss:$16 sps:$4 sm:$0xff]   ;;  %v21248_v63 = vld [vmem:[#allocation10 + $0x4e4] ss:$16 sps:$4 sm:$0xff]   ;;  %v21243_v11 = vld [vmem:[#allocation10 + $0x4c8] ss:$16 sps:$4 sm:$0xff]  }
 0x5ab   :  { %14435 = vmatpush1.bf16.msra.mxu1 %v21219_v0  ;;  %13414 = vmatprep.subr.bf16.mxu0 %v21224_v57  ;;  %v6974_v54 = vpack.c.bf16 %v6893_v5, %v6884_v4  ;;  %v21251_v43 = vld [vmem:[#allocation10 + $0x4ec] ss:$16 sps:$4 sm:$0xff]   ;;  %v21246_v50 = vld [vmem:[#allocation10 + $0x4e0] ss:$16 sps:$4 sm:$0xff]   ;;  %v21254_v38 = vld [vmem:[#allocation10 + $0x504] ss:$16 sps:$4 sm:$0xff]  }
 0x5ac   :  { %14436 = vmatprep.subr.bf16.mxu1 %v21227_v36  ;;  %v21249_v61 = vld [vmem:[#allocation10 + $0x4e8] ss:$16 sps:$4 sm:$0xff]   ;;  %v21257_v59 = vld [vmem:[#allocation10 + $0x50c] ss:$16 sps:$4 sm:$0xff]   ;;  %v21252_v34 = vld [vmem:[#allocation10 + $0x500] ss:$16 sps:$4 sm:$0xff]  }
 0x5ad   :  { %13415 = vmatpush1.bf16.msra.mxu0 %v21222_v13  ;;  %v21260_v40 = vld [vmem:[#allocation10 + $0x524] ss:$16 sps:$4 sm:$0xff]   ;;  %v21255_v52 = vld [vmem:[#allocation10 + $0x508] ss:$16 sps:$4 sm:$0xff]   ;;  %v21263_v28 = vld [vmem:[#allocation10 + $0x52c] ss:$16 sps:$4 sm:$0xff]  }
 0x5ae   :  { %13416 = vmatprep.subr.bf16.mxu0 %v21230_v31  ;;  %v21258_v62 = vld [vmem:[#allocation10 + $0x520] ss:$16 sps:$4 sm:$0xff]   ;;  %v21261_v41 = vld [vmem:[#allocation10 + $0x528] ss:$16 sps:$4 sm:$0xff]   ;;  %v21269_v48 = vld [vmem:[#allocation10 + $0x54c] ss:$16 sps:$4 sm:$0xff]  }
 0x5af   :  { %14437 = vmatpush1.bf16.msra.mxu1 %v21225_v53  ;;  %v21264_v7 = vld [vmem:[#allocation10 + $0x540] ss:$16 sps:$4 sm:$0xff]   ;;  %v21272_v44 = vld [vmem:[#allocation10 + $0x564] ss:$16 sps:$4 sm:$0xff]   ;;  %v21267_v39 = vld [vmem:[#allocation10 + $0x548] ss:$16 sps:$4 sm:$0xff]  }
 0x5b0   :  { %14438 = vmatprep.subr.bf16.mxu1 %v21233_v21  ;;  %13388 = vmatmul.mubr.bf16.gmra.mrb[72].mxu0 %v24810_v51  ;;  %v21275_v56 = vld [vmem:[#allocation10 + $0x56c] ss:$16 sps:$4 sm:$0xff]   ;;  %v21270_v46 = vld [vmem:[#allocation10 + $0x560] ss:$16 sps:$4 sm:$0xff]   ;;  %v21278_v26 = vld [vmem:[#allocation10 + $0x584] ss:$16 sps:$4 sm:$0xff]  }
 0x5b1   :  { %13417 = vmatpush1.bf16.msra.mxu0 %v21228_v33  ;;  %14410 = vmatmul.mubr.bf16.gmra.mrb[136].mxu1 %v24810_v51  ;;  %v21273_v27 = vld [vmem:[#allocation10 + $0x568] ss:$16 sps:$4 sm:$0xff]   ;;  %v21281_v42 = vld [vmem:[#allocation10 + $0x58c] ss:$16 sps:$4 sm:$0xff]   ;;  %v21276_v0 = vld [vmem:[#allocation10 + $0x580] ss:$16 sps:$4 sm:$0xff]  }
 0x5b2   :  { %13397 = vmatprep.mubr.bf16.mxu0 %v6981_v19  ;;  %14419 = vmatprep.mubr.bf16.mxu1 %v6981_v19  ;;  %v21284_v57 = vld [vmem:[#allocation10 + $0x5a4] ss:$16 sps:$4 sm:$0xff]   ;;  %v21279_v23 = vld [vmem:[#allocation10 + $0x588] ss:$16 sps:$4 sm:$0xff]   ;;  %v21287_v60 = vld [vmem:[#allocation10 + $0x5ac] ss:$16 sps:$4 sm:$0xff]  }
 0x5b3   :  { %14439 = vmatpush1.bf16.msra.mxu1 %v21231_v2  ;;  %13418 = vmatprep.subr.bf16.mxu0 %v21236_v20  ;;  %v6780_v13 = vld [vmem:[#allocation3 + $0x8] sm:$0xfe]  ;;  %v21282_v36 = vld [vmem:[#allocation10 + $0x5a0] ss:$16 sps:$4 sm:$0xff]   ;;  %v6783_v3 = vld [vmem:[#allocation3 + $0x20] sm:$0x1] }
 0x5b4   :  { %14440 = vmatprep.subr.bf16.mxu1 %v21239_v8  ;;  %v6786_v53 = vld [vmem:[#allocation3 + $0x38] sm:$0xfe]  ;;  %v6793_v31 = vld [vmem:[#allocation3 + $0x70] sm:$0xfe]  ;;  %v6796_v21 = vld [vmem:[#allocation3 + $0x88] sm:$0x1] }
 0x5b5   :  { %13419 = vmatpush1.bf16.msra.mxu0 %v21234_v30  ;;  %v21285_v12 = vld [vmem:[#allocation10 + $0x5a8] ss:$16 sps:$4 sm:$0xff]   ;;  %v21290_v18 = vld [vmem:[#allocation10 + $0x5c4] ss:$16 sps:$4 sm:$0xff]   ;;  %v21293_v16 = vld [vmem:[#allocation10 + $0x5cc] ss:$16 sps:$4 sm:$0xff]  }
 0x5b6   :  { %13420 = vmatprep.subr.bf16.mxu0 %v21242_v29  ;;  %v6799_v17 = vld [vmem:[#allocation3 + $0xa0] sm:$0xfe]  ;;  %v6802_v45 = vld [vmem:[#allocation3 + $0xb8] sm:$0x1]  ;;  %v6789_v49 = vld [vmem:[#allocation3 + $0x50] sm:$0x1] }
 0x5b7   :  { %14441 = vmatpush1.bf16.msra.mxu1 %v21237_v47  ;;  %v21288_v55 = vld [vmem:[#allocation10 + $0x5c0] ss:$16 sps:$4 sm:$0xff]   ;;  %v6879_v22 = vrot.slane %v6780_v13, 1  ;;  %v6880_v37 = vrot.slane %v6783_v3, 1  ;;  %v6888_v33 = vrot.slane %v6786_v53, 1  ;;  %v6900_v2 = vrot.slane %v6793_v31, 1 }
 0x5b8   :  { %14442 = vmatprep.subr.bf16.mxu1 %v21245_v58  ;;  %13398 = vmatmul.mubr.bf16.gmra.mrb[76].mxu0 %v24810_v51  ;;  %v21296_v35 = vld [vmem:[#allocation10 + $0x5e4] ss:$16 sps:$4 sm:$0xff]   ;;  %v6901_v25 = vrot.slane %v6796_v21, 1  ;;  %v6909_v20 = vrot.slane %v6799_v17, 1  ;;  %v6910_v1 = vrot.slane %v6802_v45, 1  ;;  %v6889_v6 = vrot.slane %v6789_v49, 1 }
 0x5b9   :  { %13421 = vmatpush1.bf16.msra.mxu0 %v21240_v9  ;;  %14420 = vmatmul.mubr.bf16.gmra.mrb[140].mxu1 %v24810_v51  ;;  %v21266_v51 = vld [vmem:[#allocation10 + $0x544] ss:$16 sps:$4 sm:$0xff]   ;;  %v21291_v32 = vld [vmem:[#allocation10 + $0x5c8] ss:$16 sps:$4 sm:$0xff]   ;;  %v21299_v14 = vld [vmem:[#allocation10 + $0x5ec] ss:$16 sps:$4 sm:$0xff]   ;;  %v6881_v29 = vsel %vm6875_vm7, %v6879_v22, %v6880_v37 }
 0x5ba   :  { %13422 = vmatprep.subr.bf16.mxu0 %v21248_v63  ;;  %13440 = vmatprep.mubr.bf16.mxu0 %v6974_v54  ;;  %v21294_v19 = vld [vmem:[#allocation10 + $0x5e0] ss:$16 sps:$4 sm:$0xff]   ;;  %v6798_v8 = vld [vmem:[#allocation3 + $0x98] sm:$0xfe]  ;;  %v6890_v47 = vsel %vm6875_vm7, %v6888_v33, %v6889_v6  ;;  %v6902_v5 = vsel %vm6875_vm7, %v6900_v2, %v6901_v25  ;;  %v6911_v58 = vsel %vm6875_vm7, %v6909_v20, %v6910_v1  ;;  %v6808_v63 = vld [vmem:[#allocation3 + $0x148] sm:$0x1] }
 0x5bb   :  { %14443 = vmatpush1.bf16.msra.mxu1 %v21243_v11  ;;  %14462 = vmatprep.mubr.bf16.mxu1 %v6974_v54  ;;  %v21297_v30 = vld [vmem:[#allocation10 + $0x5e8] ss:$16 sps:$4 sm:$0xff]   ;;  %v21302_v4 = vld [vmem:[#allocation10 + $0x604] ss:$16 sps:$4 sm:$0xff]   ;;  %v6807_v31 = vld [vmem:[#allocation3 + $0x140] sm:$0x1] }
 0x5bc   :  { %14444 = vmatprep.subr.bf16.mxu1 %v21251_v43  ;;  %v6805_v9 = vld [vmem:[#allocation3 + $0x130] sm:$0xfe]  ;;  %v6811_v54 = vld [vmem:[#allocation3 + $0x160] sm:$0xfe]  ;;  %v6814_v11 = vld [vmem:[#allocation3 + $0x178] sm:$0x1] }
 0x5bd   :  { %13423 = vmatpush1.bf16.msra.mxu0 %v21246_v50  ;;  %v21305_v43 = vld [vmem:[#allocation10 + $0x60c] ss:$16 sps:$4 sm:$0xff]   ;;  %v6826_v53 = vld [vmem:[#allocation3 + $0x1d8] sm:$0x1]  ;;  %v21312_v45 = vld [vmem:[#allocation10 + $0x640] ss:$16 sps:$4 sm:$0xff]  }
 0x5be   :  { %13424 = vmatprep.subr.bf16.mxu0 %v21254_v38  ;;  %v6792_v50 = vld [vmem:[#allocation3 + $0x68] sm:$0xfe]  ;;  %v6973_v38 = vpack.c.bf16 %v6890_v47, %v6881_v29  ;;  %v6817_v13 = vld [vmem:[#allocation3 + $0x190] sm:$0xfe]  ;;  %v6823_v3 = vld [vmem:[#allocation3 + $0x1c0] sm:$0xfe] }
 0x5bf   :  { %14445 = vmatpush1.bf16.msra.mxu1 %v21249_v61  ;;  %v21300_v61 = vld [vmem:[#allocation10 + $0x600] ss:$16 sps:$4 sm:$0xff]   ;;  %v6810_v21 = vld [vmem:[#allocation3 + $0x158] sm:$0xfe]  ;;  %v6813_v49 = vld [vmem:[#allocation3 + $0x170] sm:$0x1] }
 0x5c0   :  { %14446 = vmatprep.subr.bf16.mxu1 %v21257_v59  ;;  %v6977_v59 = vpack.c.bf16 %v6911_v58, %v6902_v5  ;;  %v6936_v22 = vrot.slane %v6817_v13, 1  ;;  %v6945_v33 = vrot.slane %v6823_v3, 1  ;;  %v21315_v2 = vld [vmem:[#allocation10 + $0x648] ss:$16 sps:$4 sm:$0xff]   ;;  %v6916_v20 = vrot.slane %v6807_v31, 1 }
 0x5c1   :  { %13425 = vmatpush1.bf16.msra.mxu0 %v21252_v34  ;;  %v6801_v34 = vld [vmem:[#allocation3 + $0xb0] sm:$0x1]  ;;  %v6924_v1 = vrot.slane %v6810_v21, 1  ;;  %v6925_v6 = vrot.slane %v6813_v49, 1  ;;  %v21321_v29 = vld [vmem:[#allocation10 + $0x668] ss:$16 sps:$4 sm:$0xff]  }
 0x5c2   :  { %13426 = vmatprep.subr.bf16.mxu0 %v21260_v40  ;;  %v6906_v40 = vrot.slane %v6798_v8, 1  ;;  %v6985_v5 = vld [vmem:[#allocation3 + $0x8] sm:$0xfc]  ;;  %v21336_v13 = vld [vmem:[#allocation10 + $0x6c0] ss:$16 sps:$4 sm:$0xff]  }
 0x5c3   :  { %14447 = vmatpush1.bf16.msra.mxu1 %v21255_v52  ;;  %v21308_v52 = vld [vmem:[#allocation10 + $0x624] ss:$16 sps:$4 sm:$0xff]   ;;  %v21329_v58 = vld [vmem:[#allocation10 + $0x68c] ss:$16 sps:$4 sm:$0xff]   ;;  %v21342_v31 = vld [vmem:[#allocation10 + $0x6e0] ss:$16 sps:$4 sm:$0xff]  }
 0x5c4   :  { %14448 = vmatprep.subr.bf16.mxu1 %v21263_v28  ;;  %v6918_v28 = vrot.slane %v6805_v9, 1  ;;  %v6822_v9 = vld [vmem:[#allocation3 + $0x1b8] sm:$0xfe] }
 0x5c5   :  { %13427 = vmatpush1.bf16.msra.mxu0 %v21258_v62  ;;  %v6919_v62 = vrot.slane %v6808_v63, 1  ;;  %v6988_v63 = vld [vmem:[#allocation3 + $0x20] sm:$0x3]  ;;  %v21344_v3 = vld [vmem:[#allocation10 + $0x6e4] ss:$16 sps:$4 sm:$0xff]  }
 0x5c6   :  { %13428 = vmatprep.subr.bf16.mxu0 %v21266_v51  ;;  %v6927_v51 = vrot.slane %v6811_v54, 1  ;;  %v21324_v54 = vld [vmem:[#allocation10 + $0x680] ss:$16 sps:$4 sm:$0xff]   ;;  %v21350_v21 = vld [vmem:[#allocation10 + $0x704] ss:$16 sps:$4 sm:$0xff]  }
 0x5c7   :  { %14449 = vmatpush1.bf16.msra.mxu1 %v21261_v41  ;;  %v6928_v41 = vrot.slane %v6814_v11, 1  ;;  %v21356_v49 = vld [vmem:[#allocation10 + $0x724] ss:$16 sps:$4 sm:$0xff]  }
 0x5c8   :  { %14450 = vmatprep.subr.bf16.mxu1 %v21269_v48  ;;  %v21303_v48 = vld [vmem:[#allocation10 + $0x608] ss:$16 sps:$4 sm:$0xff]  }
 0x5c9   :  { %13429 = vmatpush1.bf16.msra.mxu0 %v21264_v7  ;;  %v6795_v7 = vld [vmem:[#allocation3 + $0x80] sm:$0x1] }
 0x5ca   :  { %13430 = vmatprep.subr.bf16.mxu0 %v21272_v44  ;;  %v21311_v44 = vld [vmem:[#allocation10 + $0x62c] ss:$16 sps:$4 sm:$0xff]  }
 0x5cb   :  { %14451 = vmatpush1.bf16.msra.mxu1 %v21267_v39  ;;  %v6897_v39 = vrot.slane %v6792_v50, 1  ;;  %v6994_v50 = vld [vmem:[#allocation3 + $0x50] sm:$0x3] }
 0x5cc   :  { %14452 = vmatprep.subr.bf16.mxu1 %v21275_v56  ;;  %v6907_v56 = vrot.slane %v6801_v34, 1  ;;  %v6825_v34 = vld [vmem:[#allocation3 + $0x1d0] sm:$0x1] }
 0x5cd   :  { %13431 = vmatpush1.bf16.msra.mxu0 %v21270_v46  ;;  %v21306_v46 = vld [vmem:[#allocation10 + $0x620] ss:$16 sps:$4 sm:$0xff]  }
 0x5ce   :  { %13432 = vmatprep.subr.bf16.mxu0 %v21278_v26  ;;  %v21309_v26 = vld [vmem:[#allocation10 + $0x628] ss:$16 sps:$4 sm:$0xff]  }
 0x5cf   :  { %14453 = vmatpush1.bf16.msra.mxu1 %v21273_v27  ;;  %v21314_v27 = vld [vmem:[#allocation10 + $0x644] ss:$16 sps:$4 sm:$0xff]  }
 0x5d0   :  { %14454 = vmatprep.subr.bf16.mxu1 %v21281_v42  ;;  %v6898_v42 = vrot.slane %v6795_v7, 1  ;;  %v21330_v7 = vld [vmem:[#allocation10 + $0x6a0] ss:$16 sps:$4 sm:$0xff]  }
 0x5d1   :  { %13433 = vmatpush1.bf16.msra.mxu0 %v21276_v0  ;;  %v6908_v0 = vsel %vm6875_vm7, %v6906_v40, %v6907_v56  ;;  %v21327_v40 = vld [vmem:[#allocation10 + $0x688] ss:$16 sps:$4 sm:$0xff]   ;;  %v21338_v56 = vld [vmem:[#allocation10 + $0x6c4] ss:$16 sps:$4 sm:$0xff]  }
 0x5d2   :  { %13434 = vmatprep.subr.bf16.mxu0 %v21284_v57  ;;  %v21317_v57 = vld [vmem:[#allocation10 + $0x64c] ss:$16 sps:$4 sm:$0xff]  }
 0x5d3   :  { %14455 = vmatpush1.bf16.msra.mxu1 %v21279_v23  ;;  %v6920_v23 = vsel %vm6875_vm7, %v6918_v28, %v6919_v62  ;;  %v6942_v28 = vrot.slane %v6822_v9, 1  ;;  %v6819_v62 = vld [vmem:[#allocation3 + $0x1a0] sm:$0x1]  ;;  %v21381_v9 = vld [vmem:[#allocation10 + $0x7a8] ss:$16 sps:$4 sm:$0xff]  }
 0x5d4   :  { %14456 = vmatprep.subr.bf16.mxu1 %v21287_v60  ;;  %v6929_v60 = vsel %vm6875_vm7, %v6927_v51, %v6928_v41  ;;  %v7084_v51 = vrot.slane %v6985_v5, 2  ;;  %v7085_v41 = vrot.slane %v6988_v63, 2  ;;  %v21378_v5 = vld [vmem:[#allocation10 + $0x7a0] ss:$16 sps:$4 sm:$0xff]  }
 0x5d5   :  { %13435 = vmatpush1.bf16.msra.mxu0 %v21282_v36  ;;  %v6820_v36 = vld [vmem:[#allocation3 + $0x1a8] sm:$0x1]  ;;  %v6984_v63 = vld [vmem:[#allocation3] sm:$0xfc] }
 0x5d6   :  { %13436 = vmatprep.subr.bf16.mxu0 %v21290_v18  ;;  %v6804_v18 = vld [vmem:[#allocation3 + $0x128] sm:$0xfe]  ;;  %v6937_v37 = vrot.slane %v6820_v36, 1 }
 0x5d7   :  { %14457 = vmatpush1.bf16.msra.mxu1 %v21285_v12  ;;  %v6899_v12 = vsel %vm6875_vm7, %v6897_v39, %v6898_v42  ;;  %v6915_v25 = vrot.slane %v6804_v18, 1  ;;  %v6943_v39 = vrot.slane %v6825_v34, 1  ;;  %v21347_v18 = vld [vmem:[#allocation10 + $0x6ec] ss:$16 sps:$4 sm:$0xff]  }
 0x5d8   :  { %14458 = vmatprep.subr.bf16.mxu1 %v21293_v16  ;;  %v6976_v17 = vpack.c.bf16 %v6908_v0, %v6899_v12  ;;  %v6980_v16 = vpack.c.bf16 %v6929_v60, %v6920_v23  ;;  %v6938_v8 = vsel %vm6875_vm7, %v6936_v22, %v6937_v37  ;;  %v21341_v0 = vld [vmem:[#allocation10 + $0x6cc] ss:$16 sps:$4 sm:$0xff]   ;;  %v21354_v37 = vld [vmem:[#allocation10 + $0x720] ss:$16 sps:$4 sm:$0xff]  }
 0x5d9   :  { %13437 = vmatpush1.bf16.msra.mxu0 %v21288_v55  ;;  %v21320_v55 = vld [vmem:[#allocation10 + $0x664] ss:$16 sps:$4 sm:$0xff]   ;;  %v6917_v47 = vsel %vm6875_vm7, %v6915_v25, %v6916_v20  ;;  %v6944_v42 = vsel %vm6875_vm7, %v6942_v28, %v6943_v39  ;;  %v21359_v22 = vld [vmem:[#allocation10 + $0x72c] ss:$16 sps:$4 sm:$0xff]   ;;  %v21360_v25 = vld [vmem:[#allocation10 + $0x740] ss:$16 sps:$4 sm:$0xff]  }
 0x5da   :  { %13438 = vmatprep.subr.bf16.mxu0 %v21296_v35  ;;  %v6946_v35 = vrot.slane %v6826_v53, 1  ;;  %v21339_v53 = vld [vmem:[#allocation10 + $0x6c8] ss:$16 sps:$4 sm:$0xff]   ;;  %v21368_v20 = vld [vmem:[#allocation10 + $0x764] ss:$16 sps:$4 sm:$0xff]   ;;  %v7081_v28 = vrot.slane %v6984_v63, 2 }
 0x5db   :  { %14459 = vmatpush1.bf16.msra.mxu1 %v21291_v32  ;;  %v21323_v32 = vld [vmem:[#allocation10 + $0x66c] ss:$16 sps:$4 sm:$0xff]  }
 0x5dc   :  { %14460 = vmatprep.subr.bf16.mxu1 %v21299_v14  ;;  %v21318_v14 = vld [vmem:[#allocation10 + $0x660] ss:$16 sps:$4 sm:$0xff]   ;;  %v6997_v34 = vld [vmem:[#allocation3 + $0x68] sm:$0xfc]  ;;  %v7000_v39 = vld [vmem:[#allocation3 + $0x80] sm:$0x3] }
 0x5dd   :  { %13439 = vmatpush1.bf16.msra.mxu0 %v21294_v19  ;;  %v21326_v19 = vld [vmem:[#allocation10 + $0x684] ss:$16 sps:$4 sm:$0xff]  }
 0x5de   :  { %13481 = vmatprep.subr.bf16.mxu0 %v21302_v4  ;;  %v6926_v4 = vsel %vm6875_vm7, %v6924_v1, %v6925_v6  ;;  %v21363_v1 = vld [vmem:[#allocation10 + $0x748] ss:$16 sps:$4 sm:$0xff]   ;;  %v21374_v6 = vld [vmem:[#allocation10 + $0x784] ss:$16 sps:$4 sm:$0xff]  }
 0x5df   :  { %14461 = vmatpush1.bf16.msra.mxu1 %v21297_v30  ;;  %v6947_v30 = vsel %vm6875_vm7, %v6945_v33, %v6946_v35  ;;  %v21362_v33 = vld [vmem:[#allocation10 + $0x744] ss:$16 sps:$4 sm:$0xff]   ;;  %v21357_v35 = vld [vmem:[#allocation10 + $0x728] ss:$16 sps:$4 sm:$0xff]  }
 0x5e0   :  { %13441 = vmatmul.mubr.bf16.vlgmr.msra.gmra.mrb[64].mxu0 %v6973_v38  ;;  %14503 = vmatprep.subr.bf16.mxu1 %v21305_v43  ;;  %v6983_v11 = vpack.c.bf16 %v6947_v30, %v6938_v8  ;;  %v6991_v43 = vld [vmem:[#allocation3 + $0x38] sm:$0xfc]  ;;  %v21372_v30 = vld [vmem:[#allocation10 + $0x780] ss:$16 sps:$4 sm:$0xff]  }
 0x5e1   :  { %13482 = vmatpush1.bf16.msra.mxu0 %v21300_v61  ;;  %13450 = vmatprep.mubr.bf16.mxu0 %v6977_v59  ;;  %v21332_v61 = vld [vmem:[#allocation10 + $0x6a4] ss:$16 sps:$4 sm:$0xff]   ;;  %v21377_v8 = vld [vmem:[#allocation10 + $0x78c] ss:$16 sps:$4 sm:$0xff]  }
 0x5e2   :  { %14463 = vmatmul.mubr.bf16.vlgmr.msra.gmra.mrb[128].mxu1 %v6973_v38  ;;  %13483 = vmatprep.subr.bf16.mxu0 %v21308_v52  ;;  %v6979_v38 = vpack.c.bf16 %v6926_v4, %v6917_v47  ;;  %v21335_v52 = vld [vmem:[#allocation10 + $0x6ac] ss:$16 sps:$4 sm:$0xff]   ;;  %v21375_v47 = vld [vmem:[#allocation10 + $0x788] ss:$16 sps:$4 sm:$0xff]  }
 0x5e3   :  { %14504 = vmatpush1.bf16.msra.mxu1 %v21303_v48  ;;  %14472 = vmatprep.mubr.bf16.mxu1 %v6977_v59  ;;  %v6816_v59 = vld [vmem:[#allocation3 + $0x188] sm:$0xfe]  ;;  %v7093_v48 = vrot.slane %v6991_v43, 2  ;;  %v6990_v43 = vld [vmem:[#allocation3 + $0x30] sm:$0xfc] }
 0x5e4   :  { %14505 = vmatprep.subr.bf16.mxu1 %v21311_v44  ;;  %v6933_v44 = vrot.slane %v6816_v59, 1  ;;  %v21383_v4 = vld [vmem:[#allocation10 + $0x7ac] ss:$16 sps:$4 sm:$0xff]   ;;  %v21392_v59 = vld [vmem:[#allocation10 + $0x7e4] ss:$16 sps:$4 sm:$0xff]  }
 0x5e5   :  { %13484 = vmatpush1.bf16.msra.mxu0 %v21306_v46  ;;  %v7094_v46 = vrot.slane %v6994_v50, 2  ;;  %v21384_v50 = vld [vmem:[#allocation10 + $0x7c0] ss:$16 sps:$4 sm:$0xff]  }
 0x5e6   :  { %13485 = vmatprep.subr.bf16.mxu0 %v21314_v27  ;;  %v6934_v27 = vrot.slane %v6819_v62, 1 }
 0x5e7   :  { %14506 = vmatpush1.bf16.msra.mxu1 %v21309_v26  ;;  %v21333_v26 = vld [vmem:[#allocation10 + $0x6a8] ss:$16 sps:$4 sm:$0xff]   ;;  %v7095_v23 = vsel %vm7080_vm8, %v7093_v48, %v7094_v46  ;;  %v7102_v46 = vrot.slane %v6997_v34, 2 }
 0x5e8   :  { %13451 = vmatmul.mubr.bf16.gmra.mrb[68].mxu0 %v6976_v17  ;;  %14507 = vmatprep.subr.bf16.mxu1 %v21317_v57  ;;  %v7086_v57 = vsel %vm7080_vm8, %v7084_v51, %v7085_v41  ;;  %v6935_v60 = vsel %vm6875_vm7, %v6933_v44, %v6934_v27  ;;  %v7090_v51 = vrot.slane %v6990_v43, 2  ;;  %v21395_v41 = vld [vmem:[#allocation10 + $0x7ec] ss:$16 sps:$4 sm:$0xff]   ;;  %v21393_v27 = vld [vmem:[#allocation10 + $0x7e8] ss:$16 sps:$4 sm:$0xff]  }
 0x5e9   :  { %13486 = vmatpush1.bf16.msra.mxu0 %v21312_v45  ;;  %13460 = vmatprep.mubr.bf16.mxu0 %v6980_v16  ;;  %v6982_v36 = vpack.c.bf16 %v6944_v42, %v6935_v60  ;;  %v7178_v12 = vpack.c.bf16 %v7095_v23, %v7086_v57  ;;  %v21353_v45 = vld [vmem:[#allocation10 + $0x70c] ss:$16 sps:$4 sm:$0xff]   ;;  %v7002_v57 = vld [vmem:[#allocation3 + $0x90] sm:$0xfc]  ;;  %v7103_v60 = vrot.slane %v7000_v39, 2 }
 0x5ea   :  { %14473 = vmatmul.mubr.bf16.gmra.mrb[132].mxu1 %v6976_v17  ;;  %13487 = vmatprep.subr.bf16.mxu0 %v21320_v55  ;;  %v21345_v17 = vld [vmem:[#allocation10 + $0x6e8] ss:$16 sps:$4 sm:$0xff]   ;;  %v21401_v23 = vld [vmem:[#allocation10 + $0x80c] ss:$16 sps:$4 sm:$0xff]   ;;  %v21422_v39 = vld [vmem:[#allocation10 + $0x884] ss:$16 sps:$4 sm:$0xff]  }
 0x5eb   :  { %14508 = vmatpush1.bf16.msra.mxu1 %v21315_v2  ;;  %14482 = vmatprep.mubr.bf16.mxu1 %v6980_v16  ;;  %v21348_v16 = vld [vmem:[#allocation10 + $0x700] ss:$16 sps:$4 sm:$0xff]   ;;  %v21351_v55 = vld [vmem:[#allocation10 + $0x708] ss:$16 sps:$4 sm:$0xff]   ;;  %v21365_v2 = vld [vmem:[#allocation10 + $0x74c] ss:$16 sps:$4 sm:$0xff]  }
 0x5ec   :  { %14509 = vmatprep.subr.bf16.mxu1 %v21323_v32  ;;  %v21371_v32 = vld [vmem:[#allocation10 + $0x76c] ss:$16 sps:$4 sm:$0xff]   ;;  %v21411_v34 = vld [vmem:[#allocation10 + $0x848] ss:$16 sps:$4 sm:$0xff]  }
 0x5ed   :  { %13488 = vmatpush1.bf16.msra.mxu0 %v21318_v14  ;;  %v21366_v14 = vld [vmem:[#allocation10 + $0x760] ss:$16 sps:$4 sm:$0xff]   ;;  %v7027_v43 = vld [vmem:[#allocation3 + $0x1b8] sm:$0xfc] }
 0x5ee   :  { %13489 = vmatprep.subr.bf16.mxu0 %v21326_v19  ;;  %v21369_v19 = vld [vmem:[#allocation10 + $0x768] ss:$16 sps:$4 sm:$0xff]  }
 0x5ef   :  { %14510 = vmatpush1.bf16.msra.mxu1 %v21321_v29  ;;  %v21380_v29 = vld [vmem:[#allocation10 + $0x7a4] ss:$16 sps:$4 sm:$0xff]  }
 0x5f0   :  { %13461 = vmatmul.mubr.bf16.gmra.mrb[72].mxu0 %v6979_v38  ;;  %14511 = vmatprep.subr.bf16.mxu1 %v21329_v58  ;;  %v21386_v58 = vld [vmem:[#allocation10 + $0x7c4] ss:$16 sps:$4 sm:$0xff]  }
 0x5f1   :  { %13490 = vmatpush1.bf16.msra.mxu0 %v21324_v54  ;;  %13470 = vmatprep.mubr.bf16.mxu0 %v6983_v11  ;;  %v21389_v54 = vld [vmem:[#allocation10 + $0x7cc] ss:$16 sps:$4 sm:$0xff]  }
 0x5f2   :  { %14483 = vmatmul.mubr.bf16.gmra.mrb[136].mxu1 %v6979_v38  ;;  %13491 = vmatprep.subr.bf16.mxu0 %v21332_v61  ;;  %v6993_v38 = vld [vmem:[#allocation3 + $0x48] sm:$0x3]  ;;  %v7003_v61 = vld [vmem:[#allocation3 + $0x98] sm:$0xfc] }
 0x5f3   :  { %14512 = vmatpush1.bf16.msra.mxu1 %v21327_v40  ;;  %14492 = vmatprep.mubr.bf16.mxu1 %v6983_v11  ;;  %v6987_v11 = vld [vmem:[#allocation3 + $0x18] sm:$0x3]  ;;  %v7006_v40 = vld [vmem:[#allocation3 + $0xb0] sm:$0x3]  ;;  %v7111_v48 = vrot.slane %v7003_v61, 2  ;;  %v7091_v44 = vrot.slane %v6993_v38, 2 }
 0x5f4   :  { %14513 = vmatprep.subr.bf16.mxu1 %v21335_v52  ;;  %v21387_v52 = vld [vmem:[#allocation10 + $0x7c8] ss:$16 sps:$4 sm:$0xff]   ;;  %v7082_v62 = vrot.slane %v6987_v11, 2  ;;  %v7017_v11 = vld [vmem:[#allocation3 + $0x168] sm:$0x3] }
 0x5f5   :  { %13492 = vmatpush1.bf16.msra.mxu0 %v21330_v7  ;;  %v21390_v7 = vld [vmem:[#allocation10 + $0x7e0] ss:$16 sps:$4 sm:$0xff]   ;;  %v21416_v38 = vld [vmem:[#allocation10 + $0x864] ss:$16 sps:$4 sm:$0xff]   ;;  %v7021_v61 = vld [vmem:[#allocation3 + $0x188] sm:$0xfc] }
 0x5f6   :  { %13493 = vmatprep.subr.bf16.mxu0 %v21338_v56  ;;  %v21398_v56 = vld [vmem:[#allocation10 + $0x804] ss:$16 sps:$4 sm:$0xff]   ;;  %v7083_v42 = vsel %vm7080_vm8, %v7081_v28, %v7082_v62 }
 0x5f7   :  { %14514 = vmatpush1.bf16.msra.mxu1 %v21333_v26  ;;  %v7112_v26 = vrot.slane %v7006_v40, 2 }
 0x5f8   :  { %13471 = vmatmul.mubr.bf16.gmra.mrb[76].mxu0 %v6982_v36  ;;  %14515 = vmatprep.subr.bf16.mxu1 %v21341_v0  ;;  %v7092_v0 = vsel %vm7080_vm8, %v7090_v51, %v7091_v44  ;;  %v21419_v51 = vld [vmem:[#allocation10 + $0x86c] ss:$16 sps:$4 sm:$0xff]  }
 0x5f9   :  { %13494 = vmatpush1.bf16.msra.mxu0 %v21336_v13  ;;  %13513 = vmatprep.mubr.bf16.mxu0 %v7178_v12  ;;  %v7113_v13 = vsel %vm7080_vm8, %v7111_v48, %v7112_v26  ;;  %v21414_v48 = vld [vmem:[#allocation10 + $0x860] ss:$16 sps:$4 sm:$0xff]   ;;  %v7024_v44 = vld [vmem:[#allocation3 + $0x1a0] sm:$0x3]  ;;  %v21417_v26 = vld [vmem:[#allocation10 + $0x868] ss:$16 sps:$4 sm:$0xff]  }
 0x5fa   :  { %14493 = vmatmul.mubr.bf16.gmra.mrb[140].mxu1 %v6982_v36  ;;  %13495 = vmatprep.subr.bf16.mxu0 %v21344_v3  ;;  %v7009_v36 = vld [vmem:[#allocation3 + $0x128] sm:$0xfc]  ;;  %v21396_v3 = vld [vmem:[#allocation10 + $0x800] ss:$16 sps:$4 sm:$0xff]  }
 0x5fb   :  { %14516 = vmatpush1.bf16.msra.mxu1 %v21339_v53  ;;  %14535 = vmatprep.mubr.bf16.mxu1 %v7178_v12  ;;  %v7012_v53 = vld [vmem:[#allocation3 + $0x140] sm:$0x3]  ;;  %v7015_v12 = vld [vmem:[#allocation3 + $0x158] sm:$0xfc] }
 0x5fc   :  { %14517 = vmatprep.subr.bf16.mxu1 %v21347_v18  ;;  %v7177_v18 = vpack.c.bf16 %v7092_v0, %v7083_v42  ;;  %v21425_v0 = vld [vmem:[#allocation10 + $0x88c] ss:$16 sps:$4 sm:$0xff]  }
 0x5fd   :  { %13496 = vmatpush1.bf16.msra.mxu0 %v21342_v31  ;;  %v7104_v31 = vsel %vm7080_vm8, %v7102_v46, %v7103_v60  ;;  %v7026_v60 = vld [vmem:[#allocation3 + $0x1b0] sm:$0xfc] }
 0x5fe   :  { %13497 = vmatprep.subr.bf16.mxu0 %v21350_v21  ;;  %v21404_v21 = vld [vmem:[#allocation10 + $0x824] ss:$16 sps:$4 sm:$0xff]  }
 0x5ff   :  { %14518 = vmatpush1.bf16.msra.mxu1 %v21345_v17  ;;  %v6996_v17 = vld [vmem:[#allocation3 + $0x60] sm:$0xfc] }
 0x600   :  { %14519 = vmatprep.subr.bf16.mxu1 %v21353_v45  ;;  %v6999_v45 = vld [vmem:[#allocation3 + $0x78] sm:$0x3] }
 0x601   :  { %13498 = vmatpush1.bf16.msra.mxu0 %v21348_v16  ;;  %v7005_v16 = vld [vmem:[#allocation3 + $0xa8] sm:$0x3] }
 0x602   :  { %13499 = vmatprep.subr.bf16.mxu0 %v21356_v49  ;;  %v21399_v49 = vld [vmem:[#allocation10 + $0x808] ss:$16 sps:$4 sm:$0xff]  }
 0x603   :  { %14520 = vmatpush1.bf16.msra.mxu1 %v21351_v55  ;;  %v7181_v55 = vpack.c.bf16 %v7113_v13, %v7104_v31  ;;  %v21420_v13 = vld [vmem:[#allocation10 + $0x880] ss:$16 sps:$4 sm:$0xff]   ;;  %v21423_v31 = vld [vmem:[#allocation10 + $0x888] ss:$16 sps:$4 sm:$0xff]  }
 0x604   :  { %14521 = vmatprep.subr.bf16.mxu1 %v21359_v22  ;;  %v7108_v22 = vrot.slane %v7002_v57, 2  ;;  %v7139_v57 = vrot.slane %v7024_v44, 2  ;;  %v21471_v44 = vld [vmem:[#allocation10 + $0x988] ss:$16 sps:$4 sm:$0xff]  }
 0x605   :  { %13500 = vmatpush1.bf16.msra.mxu0 %v21354_v37  ;;  %v7018_v37 = vld [vmem:[#allocation3 + $0x170] sm:$0x3] }
 0x606   :  { %13501 = vmatprep.subr.bf16.mxu0 %v21362_v33  ;;  %v21407_v33 = vld [vmem:[#allocation10 + $0x82c] ss:$16 sps:$4 sm:$0xff]  }
 0x607   :  { %14522 = vmatpush1.bf16.msra.mxu1 %v21357_v35  ;;  %v7120_v35 = vrot.slane %v7009_v36, 2 }
 0x608   :  { %14523 = vmatprep.subr.bf16.mxu1 %v21365_v2  ;;  %v7121_v2 = vrot.slane %v7012_v53, 2  ;;  %v21428_v53 = vld [vmem:[#allocation10 + $0x8a4] ss:$16 sps:$4 sm:$0xff]  }
 0x609   :  { %13502 = vmatpush1.bf16.msra.mxu0 %v21360_v25  ;;  %v7129_v25 = vrot.slane %v7015_v12, 2  ;;  %v7020_v12 = vld [vmem:[#allocation3 + $0x180] sm:$0xfc] }
 0x60a   :  { %13503 = vmatprep.subr.bf16.mxu0 %v21368_v20  ;;  %v21402_v20 = vld [vmem:[#allocation10 + $0x820] ss:$16 sps:$4 sm:$0xff]  }
 0x60b   :  { %14524 = vmatpush1.bf16.msra.mxu1 %v21363_v1  ;;  %v7099_v1 = vrot.slane %v6996_v17, 2  ;;  %v7144_v17 = vrot.slane %v7026_v60, 2  ;;  %v21480_v60 = vld [vmem:[#allocation10 + $0x9c0] ss:$16 sps:$4 sm:$0xff]  }
 0x60c   :  { %14525 = vmatprep.subr.bf16.mxu1 %v21371_v32  ;;  %v7109_v32 = vrot.slane %v7005_v16, 2  ;;  %v7023_v16 = vld [vmem:[#allocation3 + $0x198] sm:$0x3] }
 0x60d   :  { %13504 = vmatpush1.bf16.msra.mxu0 %v21366_v14  ;;  %v21410_v14 = vld [vmem:[#allocation10 + $0x844] ss:$16 sps:$4 sm:$0xff]  }
 0x60e   :  { %13505 = vmatprep.subr.bf16.mxu0 %v21374_v6  ;;  %v7130_v6 = vrot.slane %v7018_v37, 2  ;;  %v21434_v37 = vld [vmem:[#allocation10 + $0x8c4] ss:$16 sps:$4 sm:$0xff]  }
 0x60f   :  { %14526 = vmatpush1.bf16.msra.mxu1 %v21369_v19  ;;  %v21405_v19 = vld [vmem:[#allocation10 + $0x828] ss:$16 sps:$4 sm:$0xff]  }
 0x610   :  { %14527 = vmatprep.subr.bf16.mxu1 %v21377_v8  ;;  %v7100_v8 = vrot.slane %v6999_v45, 2  ;;  %v21431_v45 = vld [vmem:[#allocation10 + $0x8ac] ss:$16 sps:$4 sm:$0xff]  }
 0x611   :  { %13506 = vmatpush1.bf16.msra.mxu0 %v21372_v30  ;;  %v7110_v30 = vsel %vm7080_vm8, %v7108_v22, %v7109_v32  ;;  %v21432_v32 = vld [vmem:[#allocation10 + $0x8c0] ss:$16 sps:$4 sm:$0xff]  }
 0x612   :  { %13507 = vmatprep.subr.bf16.mxu0 %v21380_v29  ;;  %v7008_v29 = vld [vmem:[#allocation3 + $0x120] sm:$0xfc]  ;;  %v7101_v63 = vsel %vm7080_vm8, %v7099_v1, %v7100_v8  ;;  %v21435_v8 = vld [vmem:[#allocation10 + $0x8c8] ss:$16 sps:$4 sm:$0xff]  }
 0x613   :  { %14528 = vmatpush1.bf16.msra.mxu1 %v21375_v47  ;;  %v21413_v47 = vld [vmem:[#allocation10 + $0x84c] ss:$16 sps:$4 sm:$0xff]  }
 0x614   :  { %14529 = vmatprep.subr.bf16.mxu1 %v21383_v4  ;;  %v7122_v4 = vsel %vm7080_vm8, %v7120_v35, %v7121_v2  ;;  %v7136_v35 = vrot.slane %v7023_v16, 2  ;;  %v21494_v16 = vld [vmem:[#allocation10 + $0xa04] ss:$16 sps:$4 sm:$0xff]  }
 0x615   :  { %13508 = vmatpush1.bf16.msra.mxu0 %v21378_v5  ;;  %v7131_v5 = vsel %vm7080_vm8, %v7129_v25, %v7130_v6  ;;  %v21437_v25 = vld [vmem:[#allocation10 + $0x8cc] ss:$16 sps:$4 sm:$0xff]  }
 0x616   :  { %13509 = vmatprep.subr.bf16.mxu0 %v21386_v58  ;;  %v7011_v58 = vld [vmem:[#allocation3 + $0x138] sm:$0x3]  ;;  %v7184_v40 = vpack.c.bf16 %v7131_v5, %v7122_v4  ;;  %v7189_v6 = vld [vmem:[#allocation3 + $0x30] sm:$0xff]  ;;  %v21441_v5 = vld [vmem:[#allocation10 + $0x8e8] ss:$16 sps:$4 sm:$0xff]  }
 0x617   :  { %14530 = vmatpush1.bf16.msra.mxu1 %v21381_v9  ;;  %v7014_v9 = vld [vmem:[#allocation3 + $0x150] sm:$0xfc]  ;;  %v7118_v28 = vrot.slane %v7011_v58, 2  ;;  %v21449_v58 = vld [vmem:[#allocation10 + $0x90c] ss:$16 sps:$4 sm:$0xff]  }
 0x618   :  { %14531 = vmatprep.subr.bf16.mxu1 %v21389_v54  ;;  %v21408_v54 = vld [vmem:[#allocation10 + $0x840] ss:$16 sps:$4 sm:$0xff]   ;;  %v7126_v62 = vrot.slane %v7014_v9, 2  ;;  %v21446_v4 = vld [vmem:[#allocation10 + $0x904] ss:$16 sps:$4 sm:$0xff]  }
 0x619   :  { %13510 = vmatpush1.bf16.msra.mxu0 %v21384_v50  ;;  %v7180_v50 = vpack.c.bf16 %v7110_v30, %v7101_v63  ;;  %v21444_v9 = vld [vmem:[#allocation10 + $0x900] ss:$16 sps:$4 sm:$0xff]   ;;  %v21452_v63 = vld [vmem:[#allocation10 + $0x924] ss:$16 sps:$4 sm:$0xff]  }
 0x61a   :  { %13511 = vmatprep.subr.bf16.mxu0 %v21392_v59  ;;  %v7030_v59 = vld [vmem:[#allocation3 + $0x1d0] sm:$0x3] }
 0x61b   :  { %14532 = vmatpush1.bf16.msra.mxu1 %v21387_v52  ;;  %v7117_v52 = vrot.slane %v7008_v29, 2  ;;  %v7148_v46 = vrot.slane %v7030_v59, 2  ;;  %v21443_v29 = vld [vmem:[#allocation10 + $0x8ec] ss:$16 sps:$4 sm:$0xff]   ;;  %v21456_v59 = vld [vmem:[#allocation10 + $0x940] ss:$16 sps:$4 sm:$0xff]  }
 0x61c   :  { %14533 = vmatprep.subr.bf16.mxu1 %v21395_v41  ;;  %v7147_v41 = vrot.slane %v7027_v43, 2  ;;  %v21450_v43 = vld [vmem:[#allocation10 + $0x920] ss:$16 sps:$4 sm:$0xff]  }
 0x61d   :  { %13512 = vmatpush1.bf16.msra.mxu0 %v21390_v7  ;;  %v7127_v7 = vrot.slane %v7017_v11, 2  ;;  %v21455_v11 = vld [vmem:[#allocation10 + $0x92c] ss:$16 sps:$4 sm:$0xff]  }
 0x61e   :  { %13554 = vmatprep.subr.bf16.mxu0 %v21398_v56  ;;  %v7138_v56 = vrot.slane %v7021_v61, 2  ;;  %v21461_v61 = vld [vmem:[#allocation10 + $0x94c] ss:$16 sps:$4 sm:$0xff]  }
 0x61f   :  { %14534 = vmatpush1.bf16.msra.mxu1 %v21393_v27  ;;  %v7119_v27 = vsel %vm7080_vm8, %v7117_v52, %v7118_v28  ;;  %v7128_v42 = vsel %vm7080_vm8, %v7126_v62, %v7127_v7  ;;  %v21467_v52 = vld [vmem:[#allocation10 + $0x96c] ss:$16 sps:$4 sm:$0xff]   ;;  %v21462_v28 = vld [vmem:[#allocation10 + $0x960] ss:$16 sps:$4 sm:$0xff]   ;;  %v21470_v62 = vld [vmem:[#allocation10 + $0x984] ss:$16 sps:$4 sm:$0xff]  }
 0x620   :  { %13514 = vmatmul.mubr.bf16.vlgmr.msra.gmra.mrb[64].mxu0 %v7177_v18  ;;  %14576 = vmatprep.subr.bf16.mxu1 %v21401_v23  ;;  %v7149_v23 = vsel %vm7080_vm8, %v7147_v41, %v7148_v46  ;;  %v7183_v36 = vpack.c.bf16 %v7128_v42, %v7119_v27  ;;  %v21473_v41 = vld [vmem:[#allocation10 + $0x98c] ss:$16 sps:$4 sm:$0xff]   ;;  %v21476_v7 = vld [vmem:[#allocation10 + $0x9a4] ss:$16 sps:$4 sm:$0xff]  }
 0x621   :  { %13523 = vmatprep.mubr.bf16.mxu0 %v7181_v55  ;;  %13555 = vmatpush1.bf16.msra.mxu0 %v21396_v3  ;;  %v7140_v3 = vsel %vm7080_vm8, %v7138_v56, %v7139_v57  ;;  %v21474_v56 = vld [vmem:[#allocation10 + $0x9a0] ss:$16 sps:$4 sm:$0xff]   ;;  %v21482_v46 = vld [vmem:[#allocation10 + $0x9c4] ss:$16 sps:$4 sm:$0xff]   ;;  %v21477_v57 = vld [vmem:[#allocation10 + $0x9a8] ss:$16 sps:$4 sm:$0xff]  }
 0x622   :  { %14536 = vmatmul.mubr.bf16.vlgmr.msra.gmra.mrb[128].mxu1 %v7177_v18  ;;  %13556 = vmatprep.subr.bf16.mxu0 %v21404_v21  ;;  %v7029_v18 = vld [vmem:[#allocation3 + $0x1c8] sm:$0x3]  ;;  %v7187_v21 = vpack.c.bf16 %v7149_v23, %v7140_v3  ;;  %v6992_v42 = vld [vmem:[#allocation3 + $0x40] sm:$0xfc]  ;;  %v21485_v23 = vld [vmem:[#allocation10 + $0x9cc] ss:$16 sps:$4 sm:$0xff]  }
 0x623   :  { %14545 = vmatprep.mubr.bf16.mxu1 %v7181_v55  ;;  %14577 = vmatpush1.bf16.msra.mxu1 %v21399_v49  ;;  %v21426_v49 = vld [vmem:[#allocation10 + $0x8a0] ss:$16 sps:$4 sm:$0xff]   ;;  %v7135_v55 = vrot.slane %v7020_v12, 2  ;;  %v7145_v22 = vrot.slane %v7029_v18, 2  ;;  %v6989_v27 = vld [vmem:[#allocation3 + $0x28] sm:$0x3] }
 0x624   :  { %14578 = vmatprep.subr.bf16.mxu1 %v21407_v33  ;;  %v21429_v33 = vld [vmem:[#allocation10 + $0x8a8] ss:$16 sps:$4 sm:$0xff]   ;;  %v7096_v3 = vrot.slane %v6992_v42, 2  ;;  %v21488_v12 = vld [vmem:[#allocation10 + $0x9e4] ss:$16 sps:$4 sm:$0xff]  }
 0x625   :  { %13557 = vmatpush1.bf16.msra.mxu0 %v21402_v20  ;;  %v7146_v2 = vsel %vm7080_vm8, %v7144_v17, %v7145_v22  ;;  %v7192_v20 = vld [vmem:[#allocation3 + $0x60] sm:$0xff]  ;;  %v7137_v1 = vsel %vm7080_vm8, %v7135_v55, %v7136_v35  ;;  %v21483_v18 = vld [vmem:[#allocation10 + $0x9c8] ss:$16 sps:$4 sm:$0xff]   ;;  %v7001_v55 = vld [vmem:[#allocation3 + $0x88] sm:$0x3] }
 0x626   :  { %13558 = vmatprep.subr.bf16.mxu0 %v21410_v14  ;;  %v7186_v14 = vpack.c.bf16 %v7146_v2, %v7137_v1  ;;  %v7213_v30 = vpack.c.bf16 %v7192_v20, %v7189_v6  ;;  %v7004_v22 = vld [vmem:[#allocation3 + $0xa0] sm:$0xfc]  ;;  %v21497_v2 = vld [vmem:[#allocation10 + $0xa0c] ss:$16 sps:$4 sm:$0xff]   ;;  %v7025_v42 = vld [vmem:[#allocation3 + $0x1a8] sm:$0x3] }
 0x627   :  { %14579 = vmatpush1.bf16.msra.mxu1 %v21405_v19  ;;  %v21440_v19 = vld [vmem:[#allocation10 + $0x8e4] ss:$16 sps:$4 sm:$0xff]   ;;  %v21492_v20 = vld [vmem:[#allocation10 + $0xa00] ss:$16 sps:$4 sm:$0xff]  }
 0x628   :  { %13524 = vmatmul.mubr.bf16.gmra.mrb[68].mxu0 %v7180_v50  ;;  %14580 = vmatprep.subr.bf16.mxu1 %v21413_v47  ;;  %v21438_v47 = vld [vmem:[#allocation10 + $0x8e0] ss:$16 sps:$4 sm:$0xff]  }
 0x629   :  { %13533 = vmatprep.mubr.bf16.mxu0 %v7184_v40  ;;  %13559 = vmatpush1.bf16.msra.mxu0 %v21408_v54  ;;  %v21447_v54 = vld [vmem:[#allocation10 + $0x908] ss:$16 sps:$4 sm:$0xff]  }
 0x62a   :  { %14546 = vmatmul.mubr.bf16.gmra.mrb[132].mxu1 %v7180_v50  ;;  %13560 = vmatprep.subr.bf16.mxu0 %v21416_v38  ;;  %v21458_v50 = vld [vmem:[#allocation10 + $0x944] ss:$16 sps:$4 sm:$0xff]   ;;  %v21453_v38 = vld [vmem:[#allocation10 + $0x928] ss:$16 sps:$4 sm:$0xff]  }
 0x62b   :  { %14555 = vmatprep.mubr.bf16.mxu1 %v7184_v40  ;;  %14581 = vmatpush1.bf16.msra.mxu1 %v21411_v34  ;;  %v21464_v34 = vld [vmem:[#allocation10 + $0x964] ss:$16 sps:$4 sm:$0xff]   ;;  %v21459_v40 = vld [vmem:[#allocation10 + $0x948] ss:$16 sps:$4 sm:$0xff]  }
 0x62c   :  { %14582 = vmatprep.subr.bf16.mxu1 %v21419_v51  ;;  %v21465_v51 = vld [vmem:[#allocation10 + $0x968] ss:$16 sps:$4 sm:$0xff]  }
 0x62d   :  { %13561 = vmatpush1.bf16.msra.mxu0 %v21414_v48  ;;  %v21468_v48 = vld [vmem:[#allocation10 + $0x980] ss:$16 sps:$4 sm:$0xff]  }
 0x62e   :  { %13562 = vmatprep.subr.bf16.mxu0 %v21422_v39  ;;  %v21479_v39 = vld [vmem:[#allocation10 + $0x9ac] ss:$16 sps:$4 sm:$0xff]  }
 0x62f   :  { %14583 = vmatpush1.bf16.msra.mxu1 %v21417_v26  ;;  %v6986_v26 = vld [vmem:[#allocation3 + $0x10] sm:$0xfc] }
 0x630   :  { %13534 = vmatmul.mubr.bf16.gmra.mrb[72].mxu0 %v7183_v36  ;;  %14584 = vmatprep.subr.bf16.mxu1 %v21425_v0  ;;  %v6995_v0 = vld [vmem:[#allocation3 + $0x58] sm:$0x3] }
 0x631   :  { %13543 = vmatprep.mubr.bf16.mxu0 %v7187_v21  ;;  %13563 = vmatpush1.bf16.msra.mxu0 %v21420_v13  ;;  %v7087_v13 = vrot.slane %v6986_v26, 2  ;;  %v21518_v26 = vld [vmem:[#allocation10 + $0xa84] ss:$16 sps:$4 sm:$0xff]  }
 0x632   :  { %14556 = vmatmul.mubr.bf16.gmra.mrb[136].mxu1 %v7183_v36  ;;  %13564 = vmatprep.subr.bf16.mxu0 %v21428_v53  ;;  %v7088_v36 = vrot.slane %v6989_v27, 2  ;;  %v7097_v53 = vrot.slane %v6995_v0, 2  ;;  %v7022_v27 = vld [vmem:[#allocation3 + $0x190] sm:$0xfc]  ;;  %v7028_v0 = vld [vmem:[#allocation3 + $0x1c0] sm:$0xfc] }
 0x633   :  { %14565 = vmatprep.mubr.bf16.mxu1 %v7187_v21  ;;  %14585 = vmatpush1.bf16.msra.mxu1 %v21423_v31  ;;  %v21491_v31 = vld [vmem:[#allocation10 + $0x9ec] ss:$16 sps:$4 sm:$0xff]   ;;  %v21486_v21 = vld [vmem:[#allocation10 + $0x9e0] ss:$16 sps:$4 sm:$0xff]  }
 0x634   :  { %14586 = vmatprep.subr.bf16.mxu1 %v21431_v45  ;;  %v7089_v17 = vsel %vm7080_vm8, %v7087_v13, %v7088_v36  ;;  %v7098_v45 = vsel %vm7080_vm8, %v7096_v3, %v7097_v53  ;;  %v21521_v13 = vld [vmem:[#allocation10 + $0xa8c] ss:$16 sps:$4 sm:$0xff]   ;;  %v21516_v3 = vld [vmem:[#allocation10 + $0xa80] ss:$16 sps:$4 sm:$0xff]   ;;  %v7141_v53 = vrot.slane %v7022_v27, 2 }
 0x635   :  { %13565 = vmatpush1.bf16.msra.mxu0 %v21426_v49  ;;  %v6998_v49 = vld [vmem:[#allocation3 + $0x70] sm:$0xfc]  ;;  %v7179_v35 = vpack.c.bf16 %v7098_v45, %v7089_v17  ;;  %v7210_v36 = vld [vmem:[#allocation3 + $0x1e0] sm:$0xff]  ;;  %v21519_v45 = vld [vmem:[#allocation10 + $0xa88] ss:$16 sps:$4 sm:$0xff]  }
 0x636   :  { %13566 = vmatprep.subr.bf16.mxu0 %v21434_v37  ;;  %v7007_v37 = vld [vmem:[#allocation3 + $0xb8] sm:$0x3]  ;;  %v7105_v1 = vrot.slane %v6998_v49, 2  ;;  %v21527_v49 = vld [vmem:[#allocation10 + $0xaac] ss:$16 sps:$4 sm:$0xff]  }
 0x637   :  { %14587 = vmatpush1.bf16.msra.mxu1 %v21429_v33  ;;  %v21489_v33 = vld [vmem:[#allocation10 + $0x9e8] ss:$16 sps:$4 sm:$0xff]   ;;  %v7115_v6 = vrot.slane %v7007_v37, 2  ;;  %v21524_v17 = vld [vmem:[#allocation10 + $0xaa4] ss:$16 sps:$4 sm:$0xff]  }
 0x638   :  { %13544 = vmatmul.mubr.bf16.gmra.mrb[76].mxu0 %v7186_v14  ;;  %14588 = vmatprep.subr.bf16.mxu1 %v21437_v25  ;;  %v7198_v25 = vld [vmem:[#allocation3 + $0xc0] sm:$0xff]  ;;  %v21579_v27 = vld [vmem:[#allocation10 + $0xbc8] ss:$16 sps:$4 sm:$0xff]  }
 0x639   :  { %13567 = vmatpush1.bf16.msra.mxu0 %v21432_v32  ;;  %13586 = vmatprep.mubr.bf16.mxu0 %v7213_v30  ;;  %v7106_v32 = vrot.slane %v7001_v55, 2  ;;  %v21522_v55 = vld [vmem:[#allocation10 + $0xaa0] ss:$16 sps:$4 sm:$0xff]  }
 0x63a   :  { %14566 = vmatmul.mubr.bf16.gmra.mrb[140].mxu1 %v7186_v14  ;;  %13568 = vmatprep.subr.bf16.mxu0 %v21440_v19  ;;  %v7114_v14 = vrot.slane %v7004_v22, 2  ;;  %v7195_v19 = vld [vmem:[#allocation3 + $0x90] sm:$0xff] }
 0x63b   :  { %14589 = vmatpush1.bf16.msra.mxu1 %v21435_v8  ;;  %14608 = vmatprep.mubr.bf16.mxu1 %v7213_v30  ;;  %v21500_v8 = vld [vmem:[#allocation10 + $0xa24] ss:$16 sps:$4 sm:$0xff]   ;;  %v21495_v30 = vld [vmem:[#allocation10 + $0xa08] ss:$16 sps:$4 sm:$0xff]  }
 0x63c   :  { %14590 = vmatprep.subr.bf16.mxu1 %v21443_v29  ;;  %v7216_v29 = vpack.c.bf16 %v7198_v25, %v7195_v19  ;;  %v21539_v19 = vld [vmem:[#allocation10 + $0xaec] ss:$16 sps:$4 sm:$0xff]  }
 0x63d   :  { %13569 = vmatpush1.bf16.msra.mxu0 %v21438_v47  ;;  %v21503_v47 = vld [vmem:[#allocation10 + $0xa2c] ss:$16 sps:$4 sm:$0xff]  }
 0x63e   :  { %13570 = vmatprep.subr.bf16.mxu0 %v21446_v4  ;;  %v21498_v4 = vld [vmem:[#allocation10 + $0xa20] ss:$16 sps:$4 sm:$0xff]  }
 0x63f   :  { %14591 = vmatpush1.bf16.msra.mxu1 %v21441_v5  ;;  %v7107_v5 = vsel %vm7080_vm8, %v7105_v1, %v7106_v32  ;;  %v22711_v1 = vld [vmem:[#allocation2] sm:$0xff] }
 0x640   :  { %14592 = vmatprep.subr.bf16.mxu1 %v21449_v58  ;;  %v7116_v58 = vsel %vm7080_vm8, %v7114_v14, %v7115_v6  ;;  %v24880_v32 = vpack.c.bf16 %v22711_v1, %v22711_v1  ;;  %v21536_v14 = vld [vmem:[#allocation10 + $0xae4] ss:$16 sps:$4 sm:$0xff]   ;;  %v21531_v6 = vld [vmem:[#allocation10 + $0xac8] ss:$16 sps:$4 sm:$0xff]  }
 0x641   :  { %13571 = vmatpush1.bf16.msra.mxu0 %v21444_v9  ;;  %v21506_v9 = vld [vmem:[#allocation10 + $0xa44] ss:$16 sps:$4 sm:$0xff]   ;;  %v21609_v1 = vld [vmem:[#allocation10 + $0xc68] ss:$16 sps:$4 sm:$0xff]  }
 0x642   :  { %13572 = vmatprep.subr.bf16.mxu0 %v21452_v63  ;;  %v7010_v63 = vld [vmem:[#allocation3 + $0x130] sm:$0xfc] }
 0x643   :  { %14593 = vmatpush1.bf16.msra.mxu1 %v21447_v54  ;;  %v7013_v54 = vld [vmem:[#allocation3 + $0x148] sm:$0x3] }
 0x644   :  { %14594 = vmatprep.subr.bf16.mxu1 %v21455_v11  ;;  %v7016_v11 = vld [vmem:[#allocation3 + $0x160] sm:$0xfc] }
 0x645   :  { %13573 = vmatpush1.bf16.msra.mxu0 %v21450_v43  ;;  %v7019_v43 = vld [vmem:[#allocation3 + $0x178] sm:$0x3] }
 0x646   :  { %13574 = vmatprep.subr.bf16.mxu0 %v21458_v50  ;;  %v21501_v50 = vld [vmem:[#allocation10 + $0xa28] ss:$16 sps:$4 sm:$0xff]  }
 0x647   :  { %14595 = vmatpush1.bf16.msra.mxu1 %v21453_v38  ;;  %v7182_v38 = vpack.c.bf16 %v7116_v58, %v7107_v5  ;;  %v21548_v5 = vld [vmem:[#allocation10 + $0xb24] ss:$16 sps:$4 sm:$0xff]   ;;  %v21543_v58 = vld [vmem:[#allocation10 + $0xb08] ss:$16 sps:$4 sm:$0xff]  }
 0x648   :  { %14596 = vmatprep.subr.bf16.mxu1 %v21461_v61  ;;  %v21509_v61 = vld [vmem:[#allocation10 + $0xa4c] ss:$16 sps:$4 sm:$0xff]  }
 0x649   :  { %13575 = vmatpush1.bf16.msra.mxu0 %v21456_v59  ;;  %v7204_v59 = vld [vmem:[#allocation3 + $0x180] sm:$0xff] }
 0x64a   :  { %13576 = vmatprep.subr.bf16.mxu0 %v21464_v34  ;;  %v21504_v34 = vld [vmem:[#allocation10 + $0xa40] ss:$16 sps:$4 sm:$0xff]  }
 0x64b   :  { %14597 = vmatpush1.bf16.msra.mxu1 %v21459_v40  ;;  %v7123_v40 = vrot.slane %v7010_v63, 2  ;;  %v21546_v63 = vld [vmem:[#allocation10 + $0xb20] ss:$16 sps:$4 sm:$0xff]  }
 0x64c   :  { %14598 = vmatprep.subr.bf16.mxu1 %v21467_v52  ;;  %v7124_v52 = vrot.slane %v7013_v54, 2  ;;  %v21554_v54 = vld [vmem:[#allocation10 + $0xb44] ss:$16 sps:$4 sm:$0xff]  }
 0x64d   :  { %13577 = vmatpush1.bf16.msra.mxu0 %v21462_v28  ;;  %v7132_v28 = vrot.slane %v7016_v11, 2  ;;  %v21549_v11 = vld [vmem:[#allocation10 + $0xb28] ss:$16 sps:$4 sm:$0xff]  }
 0x64e   :  { %13578 = vmatprep.subr.bf16.mxu0 %v21470_v62  ;;  %v7133_v62 = vrot.slane %v7019_v43, 2  ;;  %v21557_v43 = vld [vmem:[#allocation10 + $0xb4c] ss:$16 sps:$4 sm:$0xff]  }
 0x64f   :  { %14599 = vmatpush1.bf16.msra.mxu1 %v21465_v51  ;;  %v7201_v51 = vld [vmem:[#allocation3 + $0x150] sm:$0xff] }
 0x650   :  { %14600 = vmatprep.subr.bf16.mxu1 %v21473_v41  ;;  %v21512_v41 = vld [vmem:[#allocation10 + $0xa64] ss:$16 sps:$4 sm:$0xff]  }
 0x651   :  { %13579 = vmatpush1.bf16.msra.mxu0 %v21468_v48  ;;  %v21507_v48 = vld [vmem:[#allocation10 + $0xa48] ss:$16 sps:$4 sm:$0xff]  }
 0x652   :  { %13580 = vmatprep.subr.bf16.mxu0 %v21476_v7  ;;  %v7219_v7 = vpack.c.bf16 %v7204_v59, %v7201_v51  ;;  %v21563_v59 = vld [vmem:[#allocation10 + $0xb6c] ss:$16 sps:$4 sm:$0xff]   ;;  %v21572_v51 = vld [vmem:[#allocation10 + $0xba4] ss:$16 sps:$4 sm:$0xff]  }
 0x653   :  { %14601 = vmatpush1.bf16.msra.mxu1 %v21471_v44  ;;  %v21515_v44 = vld [vmem:[#allocation10 + $0xa6c] ss:$16 sps:$4 sm:$0xff]  }
 0x654   :  { %14602 = vmatprep.subr.bf16.mxu1 %v21479_v39  ;;  %v21510_v39 = vld [vmem:[#allocation10 + $0xa60] ss:$16 sps:$4 sm:$0xff]  }
 0x655   :  { %13581 = vmatpush1.bf16.msra.mxu0 %v21474_v56  ;;  %v7125_v56 = vsel %vm7080_vm8, %v7123_v40, %v7124_v52  ;;  %v21566_v40 = vld [vmem:[#allocation10 + $0xb84] ss:$16 sps:$4 sm:$0xff]   ;;  %v21561_v52 = vld [vmem:[#allocation10 + $0xb68] ss:$16 sps:$4 sm:$0xff]  }
 0x656   :  { %13582 = vmatprep.subr.bf16.mxu0 %v21482_v46  ;;  %v7134_v46 = vsel %vm7080_vm8, %v7132_v28, %v7133_v62  ;;  %v21569_v28 = vld [vmem:[#allocation10 + $0xb8c] ss:$16 sps:$4 sm:$0xff]   ;;  %v21564_v62 = vld [vmem:[#allocation10 + $0xb80] ss:$16 sps:$4 sm:$0xff]  }
 0x657   :  { %14603 = vmatpush1.bf16.msra.mxu1 %v21477_v57  ;;  %v7031_v57 = vld [vmem:[#allocation3 + $0x1d8] sm:$0x3] }
 0x658   :  { %14604 = vmatprep.subr.bf16.mxu1 %v21485_v23  ;;  %v21513_v23 = vld [vmem:[#allocation10 + $0xa68] ss:$16 sps:$4 sm:$0xff]  }
 0x659   :  { %13583 = vmatpush1.bf16.msra.mxu0 %v21480_v60  ;;  %v7185_v60 = vpack.c.bf16 %v7134_v46, %v7125_v56  ;;  %v21581_v56 = vld [vmem:[#allocation10 + $0xbcc] ss:$16 sps:$4 sm:$0xff]   ;;  %v21576_v46 = vld [vmem:[#allocation10 + $0xbc0] ss:$16 sps:$4 sm:$0xff]  }
 0x65a   :  { %13584 = vmatprep.subr.bf16.mxu0 %v21488_v12  ;;  %v7142_v12 = vrot.slane %v7025_v42, 2  ;;  %v21587_v42 = vld [vmem:[#allocation10 + $0xbec] ss:$16 sps:$4 sm:$0xff]  }
 0x65b   :  { %14605 = vmatpush1.bf16.msra.mxu1 %v21483_v18  ;;  %v7150_v18 = vrot.slane %v7028_v0, 2  ;;  %v21582_v0 = vld [vmem:[#allocation10 + $0xbe0] ss:$16 sps:$4 sm:$0xff]  }
 0x65c   :  { %14606 = vmatprep.subr.bf16.mxu1 %v21491_v31  ;;  %v7151_v31 = vrot.slane %v7031_v57, 2  ;;  %v7143_v22 = vsel %vm7080_vm8, %v7141_v53, %v7142_v12  ;;  %v21590_v57 = vld [vmem:[#allocation10 + $0xc04] ss:$16 sps:$4 sm:$0xff]  }
 0x65d   :  { %13585 = vmatpush1.bf16.msra.mxu0 %v21486_v21  ;;  %v7207_v21 = vld [vmem:[#allocation3 + $0x1b0] sm:$0xff] }
 0x65e   :  { %13627 = vmatprep.subr.bf16.mxu0 %v21494_v16  ;;  %v7222_v16 = vpack.c.bf16 %v7210_v36, %v7207_v21  ;;  %v7152_v37 = vsel %vm7080_vm8, %v7150_v18, %v7151_v31  ;;  %v7190_v36 = vld [vmem:[#allocation3 + $0x38] sm:$0xff]  ;;  %v21594_v21 = vld [vmem:[#allocation10 + $0xc20] ss:$16 sps:$4 sm:$0xff]  }
 0x65f   :  { %14607 = vmatpush1.bf16.msra.mxu1 %v21489_v33  ;;  %v21530_v33 = vld [vmem:[#allocation10 + $0xac4] ss:$16 sps:$4 sm:$0xff]   ;;  %v7188_v25 = vpack.c.bf16 %v7152_v37, %v7143_v22  ;;  %v21591_v18 = vld [vmem:[#allocation10 + $0xc08] ss:$16 sps:$4 sm:$0xff]   ;;  %v21599_v31 = vld [vmem:[#allocation10 + $0xc2c] ss:$16 sps:$4 sm:$0xff]  }
 0x660   :  { %13587 = vmatmul.mubr.bf16.vlgmr.msra.gmra.mrb[64].mxu0 %v7179_v35  ;;  %14649 = vmatprep.subr.bf16.mxu1 %v21497_v2  ;;  %v21533_v2 = vld [vmem:[#allocation10 + $0xacc] ss:$16 sps:$4 sm:$0xff]   ;;  %v21596_v12 = vld [vmem:[#allocation10 + $0xc24] ss:$16 sps:$4 sm:$0xff]   ;;  %v21600_v22 = vld [vmem:[#allocation10 + $0xc40] ss:$16 sps:$4 sm:$0xff]  }
 0x661   :  { %13596 = vmatprep.mubr.bf16.mxu0 %v7216_v29  ;;  %13628 = vmatpush1.bf16.msra.mxu0 %v21492_v20  ;;  %v21528_v20 = vld [vmem:[#allocation10 + $0xac0] ss:$16 sps:$4 sm:$0xff]  }
 0x662   :  { %14609 = vmatmul.mubr.bf16.vlgmr.msra.gmra.mrb[128].mxu1 %v7179_v35  ;;  %13629 = vmatprep.subr.bf16.mxu0 %v21500_v8  ;;  %v21525_v35 = vld [vmem:[#allocation10 + $0xaa8] ss:$16 sps:$4 sm:$0xff]   ;;  %v21534_v8 = vld [vmem:[#allocation10 + $0xae0] ss:$16 sps:$4 sm:$0xff]  }
 0x663   :  { %14618 = vmatprep.mubr.bf16.mxu1 %v7216_v29  ;;  %14650 = vmatpush1.bf16.msra.mxu1 %v21495_v30  ;;  %v21542_v30 = vld [vmem:[#allocation10 + $0xb04] ss:$16 sps:$4 sm:$0xff]   ;;  %v21537_v29 = vld [vmem:[#allocation10 + $0xae8] ss:$16 sps:$4 sm:$0xff]  }
 0x664   :  { %14651 = vmatprep.subr.bf16.mxu1 %v21503_v47  ;;  %v21545_v47 = vld [vmem:[#allocation10 + $0xb0c] ss:$16 sps:$4 sm:$0xff]  }
 0x665   :  { %13630 = vmatpush1.bf16.msra.mxu0 %v21498_v4  ;;  %v21540_v4 = vld [vmem:[#allocation10 + $0xb00] ss:$16 sps:$4 sm:$0xff]  }
 0x666   :  { %13631 = vmatprep.subr.bf16.mxu0 %v21506_v9  ;;  %v21551_v9 = vld [vmem:[#allocation10 + $0xb2c] ss:$16 sps:$4 sm:$0xff]  }
 0x667   :  { %14652 = vmatpush1.bf16.msra.mxu1 %v21501_v50  ;;  %v21552_v50 = vld [vmem:[#allocation10 + $0xb40] ss:$16 sps:$4 sm:$0xff]  }
 0x668   :  { %13597 = vmatmul.mubr.bf16.gmra.mrb[68].mxu0 %v7182_v38  ;;  %14653 = vmatprep.subr.bf16.mxu1 %v21509_v61  ;;  %v21555_v61 = vld [vmem:[#allocation10 + $0xb48] ss:$16 sps:$4 sm:$0xff]  }
 0x669   :  { %13606 = vmatprep.mubr.bf16.mxu0 %v7219_v7  ;;  %13632 = vmatpush1.bf16.msra.mxu0 %v21504_v34  ;;  %v21558_v34 = vld [vmem:[#allocation10 + $0xb60] ss:$16 sps:$4 sm:$0xff]  }
 0x66a   :  { %14619 = vmatmul.mubr.bf16.gmra.mrb[132].mxu1 %v7182_v38  ;;  %13633 = vmatprep.subr.bf16.mxu0 %v21512_v41  ;;  %v21560_v38 = vld [vmem:[#allocation10 + $0xb64] ss:$16 sps:$4 sm:$0xff]   ;;  %v21567_v41 = vld [vmem:[#allocation10 + $0xb88] ss:$16 sps:$4 sm:$0xff]  }
 0x66b   :  { %14628 = vmatprep.mubr.bf16.mxu1 %v7219_v7  ;;  %14654 = vmatpush1.bf16.msra.mxu1 %v21507_v48  ;;  %v21575_v48 = vld [vmem:[#allocation10 + $0xbac] ss:$16 sps:$4 sm:$0xff]   ;;  %v21570_v7 = vld [vmem:[#allocation10 + $0xba0] ss:$16 sps:$4 sm:$0xff]  }
 0x66c   :  { %14655 = vmatprep.subr.bf16.mxu1 %v21515_v44  ;;  %v21578_v44 = vld [vmem:[#allocation10 + $0xbc4] ss:$16 sps:$4 sm:$0xff]  }
 0x66d   :  { %13634 = vmatpush1.bf16.msra.mxu0 %v21510_v39  ;;  %v21573_v39 = vld [vmem:[#allocation10 + $0xba8] ss:$16 sps:$4 sm:$0xff]  }
 0x66e   :  { %13635 = vmatprep.subr.bf16.mxu0 %v21518_v26  ;;  %v21584_v26 = vld [vmem:[#allocation10 + $0xbe4] ss:$16 sps:$4 sm:$0xff]  }
 0x66f   :  { %14656 = vmatpush1.bf16.msra.mxu1 %v21513_v23  ;;  %v21585_v23 = vld [vmem:[#allocation10 + $0xbe8] ss:$16 sps:$4 sm:$0xff]  }
 0x670   :  { %13607 = vmatmul.mubr.bf16.gmra.mrb[72].mxu0 %v7185_v60  ;;  %14657 = vmatprep.subr.bf16.mxu1 %v21521_v13  ;;  %v21593_v13 = vld [vmem:[#allocation10 + $0xc0c] ss:$16 sps:$4 sm:$0xff]  }
 0x671   :  { %13616 = vmatprep.mubr.bf16.mxu0 %v7222_v16  ;;  %13636 = vmatpush1.bf16.msra.mxu0 %v21516_v3  ;;  %v21588_v3 = vld [vmem:[#allocation10 + $0xc00] ss:$16 sps:$4 sm:$0xff]  }
 0x672   :  { %14629 = vmatmul.mubr.bf16.gmra.mrb[136].mxu1 %v7185_v60  ;;  %13637 = vmatprep.subr.bf16.mxu0 %v21524_v17  ;;  %v7193_v60 = vld [vmem:[#allocation3 + $0x68] sm:$0xff] }
 0x673   :  { %14638 = vmatprep.mubr.bf16.mxu1 %v7222_v16  ;;  %14658 = vmatpush1.bf16.msra.mxu1 %v21519_v45  ;;  %v7214_v53 = vpack.c.bf16 %v7193_v60, %v7190_v36  ;;  %v21602_v17 = vld [vmem:[#allocation10 + $0xc44] ss:$16 sps:$4 sm:$0xff]   ;;  %v21597_v45 = vld [vmem:[#allocation10 + $0xc28] ss:$16 sps:$4 sm:$0xff]   ;;  %v21653_v36 = vld [vmem:[#allocation10 + $0xd4c] ss:$16 sps:$4 sm:$0xff]  }
 0x674   :  { %14659 = vmatprep.subr.bf16.mxu1 %v21527_v49  ;;  %v7199_v16 = vld [vmem:[#allocation3 + $0xc8] sm:$0xff] }
 0x675   :  { %13638 = vmatpush1.bf16.msra.mxu0 %v21522_v55  ;;  %v21605_v49 = vld [vmem:[#allocation10 + $0xc4c] ss:$16 sps:$4 sm:$0xff]   ;;  %v21650_v60 = vld [vmem:[#allocation10 + $0xd44] ss:$16 sps:$4 sm:$0xff]  }
 0x676   :  { %13639 = vmatprep.subr.bf16.mxu0 %v21530_v33  ;;  %v7196_v55 = vld [vmem:[#allocation3 + $0x98] sm:$0xff] }
 0x677   :  { %14660 = vmatpush1.bf16.msra.mxu1 %v21525_v35  ;;  %v7217_v37 = vpack.c.bf16 %v7199_v16, %v7196_v55  ;;  %v21608_v33 = vld [vmem:[#allocation10 + $0xc64] ss:$16 sps:$4 sm:$0xff]   ;;  %v21603_v35 = vld [vmem:[#allocation10 + $0xc48] ss:$16 sps:$4 sm:$0xff]   ;;  %v21660_v16 = vld [vmem:[#allocation10 + $0xd80] ss:$16 sps:$4 sm:$0xff]  }
 0x678   :  { %14661 = vmatprep.subr.bf16.mxu1 %v21533_v2  ;;  %13617 = vmatmul.mubr.bf16.gmra.mrb[76].mxu0 %v7188_v25  ;;  %v21611_v2 = vld [vmem:[#allocation10 + $0xc6c] ss:$16 sps:$4 sm:$0xff]   ;;  %v21663_v55 = vld [vmem:[#allocation10 + $0xd88] ss:$16 sps:$4 sm:$0xff]  }
 0x679   :  { %13640 = vmatpush1.bf16.msra.mxu0 %v21528_v20  ;;  %13659 = vmatprep.mubr.bf16.mxu0 %v24880_v32  ;;  %v21614_v20 = vld [vmem:[#allocation10 + $0xc84] ss:$16 sps:$4 sm:$0xff]  }
 0x67a   :  { %13641 = vmatprep.subr.bf16.mxu0 %v21536_v14  ;;  %14639 = vmatmul.mubr.bf16.gmra.mrb[140].mxu1 %v7188_v25  ;;  %v21606_v25 = vld [vmem:[#allocation10 + $0xc60] ss:$16 sps:$4 sm:$0xff]   ;;  %v7205_v14 = vld [vmem:[#allocation3 + $0x188] sm:$0xff] }
 0x67b   :  { %14662 = vmatpush1.bf16.msra.mxu1 %v21531_v6  ;;  %14681 = vmatprep.mubr.bf16.mxu1 %v24880_v32  ;;  %v21617_v6 = vld [vmem:[#allocation10 + $0xc8c] ss:$16 sps:$4 sm:$0xff]  }
 0x67c   :  { %14663 = vmatprep.subr.bf16.mxu1 %v21539_v19  ;;  %v7202_v19 = vld [vmem:[#allocation3 + $0x158] sm:$0xff] }
 0x67d   :  { %13642 = vmatpush1.bf16.msra.mxu0 %v21534_v8  ;;  %v21612_v8 = vld [vmem:[#allocation10 + $0xc80] ss:$16 sps:$4 sm:$0xff]  }
 0x67e   :  { %13643 = vmatprep.subr.bf16.mxu0 %v21542_v30  ;;  %v7232_v30 = vld [vmem:[#allocation3 + $0x68] sm:$0xfe] }
 0x67f   :  { %14664 = vmatpush1.bf16.msra.mxu1 %v21537_v29  ;;  %v7220_v29 = vpack.c.bf16 %v7205_v14, %v7202_v19  ;;  %v7244_v14 = vld [vmem:[#allocation3 + $0xc8] sm:$0xfe]  ;;  %v7234_v19 = vld [vmem:[#allocation3 + $0x78] sm:$0x1] }
 0x680   :  { %14665 = vmatprep.subr.bf16.mxu1 %v21545_v47  ;;  %v21620_v47 = vld [vmem:[#allocation10 + $0xca4] ss:$16 sps:$4 sm:$0xff]  }
 0x681   :  { %13644 = vmatpush1.bf16.msra.mxu0 %v21540_v4  ;;  %v21615_v4 = vld [vmem:[#allocation10 + $0xc88] ss:$16 sps:$4 sm:$0xff]  }
 0x682   :  { %13645 = vmatprep.subr.bf16.mxu0 %v21548_v5  ;;  %v7226_v5 = vld [vmem:[#allocation3 + $0x38] sm:$0xfe] }
 0x683   :  { %14666 = vmatpush1.bf16.msra.mxu1 %v21543_v58  ;;  %v7235_v58 = vld [vmem:[#allocation3 + $0x80] sm:$0x1] }
 0x684   :  { %14667 = vmatprep.subr.bf16.mxu1 %v21551_v9  ;;  %v21623_v9 = vld [vmem:[#allocation10 + $0xcac] ss:$16 sps:$4 sm:$0xff]  }
 0x685   :  { %13646 = vmatpush1.bf16.msra.mxu0 %v21546_v63  ;;  %v7333_v63 = vrot.slane %v7232_v30, 1  ;;  %v21675_v30 = vld [vmem:[#allocation10 + $0xdc8] ss:$16 sps:$4 sm:$0xff]  }
 0x686   :  { %13647 = vmatprep.subr.bf16.mxu0 %v21554_v54  ;;  %v21618_v54 = vld [vmem:[#allocation10 + $0xca0] ss:$16 sps:$4 sm:$0xff]  }
 0x687   :  { %14668 = vmatpush1.bf16.msra.mxu1 %v21549_v11  ;;  %v7229_v11 = vld [vmem:[#allocation3 + $0x50] sm:$0x1] }
 0x688   :  { %14669 = vmatprep.subr.bf16.mxu1 %v21557_v43  ;;  %v21626_v43 = vld [vmem:[#allocation10 + $0xcc4] ss:$16 sps:$4 sm:$0xff]  }
 0x689   :  { %13648 = vmatpush1.bf16.msra.mxu0 %v21552_v50  ;;  %v7324_v50 = vrot.slane %v7226_v5, 1  ;;  %v7228_v5 = vld [vmem:[#allocation3 + $0x48] sm:$0x1] }
 0x68a   :  { %13649 = vmatprep.subr.bf16.mxu0 %v21560_v38  ;;  %v7334_v38 = vrot.slane %v7235_v58, 1  ;;  %v7351_v58 = vrot.slane %v7244_v14, 1  ;;  %v7258_v14 = vld [vmem:[#allocation3 + $0x198] sm:$0x1] }
 0x68b   :  { %14670 = vmatpush1.bf16.msra.mxu1 %v21555_v61  ;;  %v21621_v61 = vld [vmem:[#allocation10 + $0xca8] ss:$16 sps:$4 sm:$0xff]  }
 0x68c   :  { %14671 = vmatprep.subr.bf16.mxu1 %v21563_v59  ;;  %v7211_v59 = vld [vmem:[#allocation3 + $0x1e8] sm:$0xff] }
 0x68d   :  { %13650 = vmatpush1.bf16.msra.mxu0 %v21558_v34  ;;  %v21629_v34 = vld [vmem:[#allocation10 + $0xccc] ss:$16 sps:$4 sm:$0xff]  }
 0x68e   :  { %13651 = vmatprep.subr.bf16.mxu0 %v21566_v40  ;;  %v7325_v40 = vrot.slane %v7229_v11, 1  ;;  %v7241_v11 = vld [vmem:[#allocation3 + $0xb0] sm:$0x1] }
 0x68f   :  { %14672 = vmatpush1.bf16.msra.mxu1 %v21561_v52  ;;  %v7335_v52 = vsel %vm6875_vm7, %v7333_v63, %v7334_v38 }
 0x690   :  { %14673 = vmatprep.subr.bf16.mxu1 %v21569_v28  ;;  %v7208_v28 = vld [vmem:[#allocation3 + $0x1b8] sm:$0xff] }
 0x691   :  { %13652 = vmatpush1.bf16.msra.mxu0 %v21564_v62  ;;  %v21624_v62 = vld [vmem:[#allocation10 + $0xcc0] ss:$16 sps:$4 sm:$0xff]  }
 0x692   :  { %13653 = vmatprep.subr.bf16.mxu0 %v21572_v51  ;;  %v7223_v51 = vpack.c.bf16 %v7211_v59, %v7208_v28  ;;  %v7322_v59 = vrot.slane %v7228_v5, 1 }
 0x693   :  { %14674 = vmatpush1.bf16.msra.mxu1 %v21567_v41  ;;  %v7326_v41 = vsel %vm6875_vm7, %v7324_v50, %v7325_v40  ;;  %v21689_v40 = vld [vmem:[#allocation10 + $0xe0c] ss:$16 sps:$4 sm:$0xff]  }
 0x694   :  { %14675 = vmatprep.subr.bf16.mxu1 %v21575_v48  ;;  %v21632_v48 = vld [vmem:[#allocation10 + $0xce4] ss:$16 sps:$4 sm:$0xff]  }
 0x695   :  { %13654 = vmatpush1.bf16.msra.mxu0 %v21570_v7  ;;  %v21627_v7 = vld [vmem:[#allocation10 + $0xcc8] ss:$16 sps:$4 sm:$0xff]  }
 0x696   :  { %13655 = vmatprep.subr.bf16.mxu0 %v21578_v44  ;;  %v7418_v44 = vpack.c.bf16 %v7335_v52, %v7326_v41  ;;  %v7343_v52 = vrot.slane %v7241_v11, 1  ;;  %v21684_v41 = vld [vmem:[#allocation10 + $0xe00] ss:$16 sps:$4 sm:$0xff]   ;;  %v21710_v11 = vld [vmem:[#allocation10 + $0xe84] ss:$16 sps:$4 sm:$0xff]  }
 0x697   :  { %14676 = vmatpush1.bf16.msra.mxu1 %v21573_v39  ;;  %v21630_v39 = vld [vmem:[#allocation10 + $0xce0] ss:$16 sps:$4 sm:$0xff]  }
 0x698   :  { %14677 = vmatprep.subr.bf16.mxu1 %v21581_v56  ;;  %v21638_v56 = vld [vmem:[#allocation10 + $0xd04] ss:$16 sps:$4 sm:$0xff]  }
 0x699   :  { %13656 = vmatpush1.bf16.msra.mxu0 %v21576_v46  ;;  %v21633_v46 = vld [vmem:[#allocation10 + $0xce8] ss:$16 sps:$4 sm:$0xff]  }
 0x69a   :  { %13657 = vmatprep.subr.bf16.mxu0 %v21584_v26  ;;  %v21641_v26 = vld [vmem:[#allocation10 + $0xd0c] ss:$16 sps:$4 sm:$0xff]  }
 0x69b   :  { %14678 = vmatpush1.bf16.msra.mxu1 %v21579_v27  ;;  %v21636_v27 = vld [vmem:[#allocation10 + $0xd00] ss:$16 sps:$4 sm:$0xff]  }
 0x69c   :  { %14679 = vmatprep.subr.bf16.mxu1 %v21587_v42  ;;  %v21644_v42 = vld [vmem:[#allocation10 + $0xd24] ss:$16 sps:$4 sm:$0xff]  }
 0x69d   :  { %13658 = vmatpush1.bf16.msra.mxu0 %v21582_v0  ;;  %v21639_v0 = vld [vmem:[#allocation10 + $0xd08] ss:$16 sps:$4 sm:$0xff]  }
 0x69e   :  { %13700 = vmatprep.subr.bf16.mxu0 %v21590_v57  ;;  %v21647_v57 = vld [vmem:[#allocation10 + $0xd2c] ss:$16 sps:$4 sm:$0xff]  }
 0x69f   :  { %14680 = vmatpush1.bf16.msra.mxu1 %v21585_v23  ;;  %v21642_v23 = vld [vmem:[#allocation10 + $0xd20] ss:$16 sps:$4 sm:$0xff]  }
 0x6a0   :  { %13660 = vmatmul.mubr.bf16.vlgmr.msra.gmra.mrb[64].mxu0 %v7214_v53  ;;  %14722 = vmatprep.subr.bf16.mxu1 %v21593_v13  ;;  %v21645_v13 = vld [vmem:[#allocation10 + $0xd28] ss:$16 sps:$4 sm:$0xff]  }
 0x6a1   :  { %13701 = vmatpush1.bf16.msra.mxu0 %v21588_v3  ;;  %13669 = vmatprep.mubr.bf16.mxu0 %v24880_v32  ;;  %v21648_v3 = vld [vmem:[#allocation10 + $0xd40] ss:$16 sps:$4 sm:$0xff]  }
 0x6a2   :  { %14682 = vmatmul.mubr.bf16.vlgmr.msra.gmra.mrb[128].mxu1 %v7214_v53  ;;  %13702 = vmatprep.subr.bf16.mxu0 %v21596_v12  ;;  %v21656_v53 = vld [vmem:[#allocation10 + $0xd64] ss:$16 sps:$4 sm:$0xff]   ;;  %v21651_v12 = vld [vmem:[#allocation10 + $0xd48] ss:$16 sps:$4 sm:$0xff]  }
 0x6a3   :  { %14723 = vmatpush1.bf16.msra.mxu1 %v21591_v18  ;;  %14691 = vmatprep.mubr.bf16.mxu1 %v24880_v32  ;;  %v21659_v18 = vld [vmem:[#allocation10 + $0xd6c] ss:$16 sps:$4 sm:$0xff]  }
 0x6a4   :  { %14724 = vmatprep.subr.bf16.mxu1 %v21599_v31  ;;  %v21654_v31 = vld [vmem:[#allocation10 + $0xd60] ss:$16 sps:$4 sm:$0xff]  }
 0x6a5   :  { %13703 = vmatpush1.bf16.msra.mxu0 %v21594_v21  ;;  %v21662_v21 = vld [vmem:[#allocation10 + $0xd84] ss:$16 sps:$4 sm:$0xff]  }
 0x6a6   :  { %13704 = vmatprep.subr.bf16.mxu0 %v21602_v17  ;;  %v21657_v17 = vld [vmem:[#allocation10 + $0xd68] ss:$16 sps:$4 sm:$0xff]  }
 0x6a7   :  { %14725 = vmatpush1.bf16.msra.mxu1 %v21597_v45  ;;  %v21665_v45 = vld [vmem:[#allocation10 + $0xd8c] ss:$16 sps:$4 sm:$0xff]  }
 0x6a8   :  { %13670 = vmatmul.mubr.bf16.gmra.mrb[68].mxu0 %v7217_v37  ;;  %14726 = vmatprep.subr.bf16.mxu1 %v21605_v49  ;;  %v21668_v49 = vld [vmem:[#allocation10 + $0xda4] ss:$16 sps:$4 sm:$0xff]  }
 0x6a9   :  { %13705 = vmatpush1.bf16.msra.mxu0 %v21600_v22  ;;  %13679 = vmatprep.mubr.bf16.mxu0 %v24880_v32  ;;  %v21671_v22 = vld [vmem:[#allocation10 + $0xdac] ss:$16 sps:$4 sm:$0xff]  }
 0x6aa   :  { %14692 = vmatmul.mubr.bf16.gmra.mrb[132].mxu1 %v7217_v37  ;;  %13706 = vmatprep.subr.bf16.mxu0 %v21608_v33  ;;  %v21666_v37 = vld [vmem:[#allocation10 + $0xda0] ss:$16 sps:$4 sm:$0xff]   ;;  %v21674_v33 = vld [vmem:[#allocation10 + $0xdc4] ss:$16 sps:$4 sm:$0xff]  }
 0x6ab   :  { %14727 = vmatpush1.bf16.msra.mxu1 %v21603_v35  ;;  %14701 = vmatprep.mubr.bf16.mxu1 %v24880_v32  ;;  %v21669_v35 = vld [vmem:[#allocation10 + $0xda8] ss:$16 sps:$4 sm:$0xff]  }
 0x6ac   :  { %14728 = vmatprep.subr.bf16.mxu1 %v21611_v2  ;;  %v21677_v2 = vld [vmem:[#allocation10 + $0xdcc] ss:$16 sps:$4 sm:$0xff]  }
 0x6ad   :  { %13707 = vmatpush1.bf16.msra.mxu0 %v21606_v25  ;;  %v7231_v25 = vld [vmem:[#allocation3 + $0x60] sm:$0xfe] }
 0x6ae   :  { %13708 = vmatprep.subr.bf16.mxu0 %v21614_v20  ;;  %v21672_v20 = vld [vmem:[#allocation10 + $0xdc0] ss:$16 sps:$4 sm:$0xff]  }
 0x6af   :  { %14729 = vmatpush1.bf16.msra.mxu1 %v21609_v1  ;;  %v7225_v1 = vld [vmem:[#allocation3 + $0x30] sm:$0xfe] }
 0x6b0   :  { %13680 = vmatmul.mubr.bf16.gmra.mrb[72].mxu0 %v7220_v29  ;;  %14730 = vmatprep.subr.bf16.mxu1 %v21617_v6  ;;  %v21680_v6 = vld [vmem:[#allocation10 + $0xde4] ss:$16 sps:$4 sm:$0xff]   ;;  %v7321_v63 = vrot.slane %v7225_v1, 1 }
 0x6b1   :  { %13709 = vmatpush1.bf16.msra.mxu0 %v21612_v8  ;;  %13689 = vmatprep.mubr.bf16.mxu0 %v24880_v32  ;;  %v7238_v8 = vld [vmem:[#allocation3 + $0x98] sm:$0xfe] }
 0x6b2   :  { %14702 = vmatmul.mubr.bf16.gmra.mrb[136].mxu1 %v7220_v29  ;;  %13710 = vmatprep.subr.bf16.mxu0 %v21620_v47  ;;  %v7330_v29 = vrot.slane %v7231_v25, 1  ;;  %v7247_v47 = vld [vmem:[#allocation3 + $0xe0] sm:$0x1]  ;;  %v7342_v50 = vrot.slane %v7238_v8, 1  ;;  %v21704_v1 = vld [vmem:[#allocation10 + $0xe64] ss:$16 sps:$4 sm:$0xff]  }
 0x6b3   :  { %14731 = vmatpush1.bf16.msra.mxu1 %v21615_v4  ;;  %14711 = vmatprep.mubr.bf16.mxu1 %v24880_v32  ;;  %v21635_v32 = vld [vmem:[#allocation10 + $0xcec] ss:$16 sps:$4 sm:$0xff]   ;;  %v7352_v38 = vrot.slane %v7247_v47, 1 }
 0x6b4   :  { %14732 = vmatprep.subr.bf16.mxu1 %v21623_v9  ;;  %v21683_v4 = vld [vmem:[#allocation10 + $0xdec] ss:$16 sps:$4 sm:$0xff]   ;;  %v21678_v9 = vld [vmem:[#allocation10 + $0xde0] ss:$16 sps:$4 sm:$0xff]  }
 0x6b5   :  { %13711 = vmatpush1.bf16.msra.mxu0 %v21618_v54  ;;  %v7331_v54 = vrot.slane %v7234_v19, 1  ;;  %v7353_v28 = vsel %vm6875_vm7, %v7351_v58, %v7352_v38  ;;  %v21699_v19 = vld [vmem:[#allocation10 + $0xe48] ss:$16 sps:$4 sm:$0xff]   ;;  %v21707_v47 = vld [vmem:[#allocation10 + $0xe6c] ss:$16 sps:$4 sm:$0xff]  }
 0x6b6   :  { %13712 = vmatprep.subr.bf16.mxu0 %v21626_v43  ;;  %v21686_v43 = vld [vmem:[#allocation10 + $0xe04] ss:$16 sps:$4 sm:$0xff]   ;;  %v21702_v58 = vld [vmem:[#allocation10 + $0xe60] ss:$16 sps:$4 sm:$0xff]   ;;  %v21705_v38 = vld [vmem:[#allocation10 + $0xe68] ss:$16 sps:$4 sm:$0xff]  }
 0x6b7   :  { %14733 = vmatpush1.bf16.msra.mxu1 %v21621_v61  ;;  %v21681_v61 = vld [vmem:[#allocation10 + $0xde8] ss:$16 sps:$4 sm:$0xff]  }
 0x6b8   :  { %13690 = vmatmul.mubr.bf16.gmra.mrb[76].mxu0 %v7223_v51  ;;  %14734 = vmatprep.subr.bf16.mxu1 %v21629_v34  ;;  %v7332_v34 = vsel %vm6875_vm7, %v7330_v29, %v7331_v54  ;;  %v7271_v29 = vld [vmem:[#allocation3 + $0x200] sm:$0x1]  ;;  %v7265_v54 = vld [vmem:[#allocation3 + $0x1d0] sm:$0x1] }
 0x6b9   :  { %13713 = vmatpush1.bf16.msra.mxu0 %v21624_v62  ;;  %13732 = vmatprep.mubr.bf16.mxu0 %v7418_v44  ;;  %v7243_v62 = vld [vmem:[#allocation3 + $0xc0] sm:$0xfe] }
 0x6ba   :  { %14712 = vmatmul.mubr.bf16.gmra.mrb[140].mxu1 %v7223_v51  ;;  %13714 = vmatprep.subr.bf16.mxu0 %v21632_v48  ;;  %v7323_v51 = vsel %vm6875_vm7, %v7321_v63, %v7322_v59  ;;  %v7237_v48 = vld [vmem:[#allocation3 + $0x90] sm:$0xfe]  ;;  %v7367_v63 = vrot.slane %v7258_v14, 1 }
 0x6bb   :  { %14735 = vmatpush1.bf16.msra.mxu1 %v21627_v7  ;;  %14754 = vmatprep.mubr.bf16.mxu1 %v7418_v44  ;;  %v7256_v7 = vld [vmem:[#allocation3 + $0x188] sm:$0xfe]  ;;  %v7417_v44 = vpack.c.bf16 %v7332_v34, %v7323_v51  ;;  %v21708_v51 = vld [vmem:[#allocation10 + $0xe80] ss:$16 sps:$4 sm:$0xff]  }
 0x6bc   :  { %14736 = vmatprep.subr.bf16.mxu1 %v21635_v32  ;;  %v7344_v32 = vsel %vm6875_vm7, %v7342_v50, %v7343_v52  ;;  %v7388_v50 = vrot.slane %v7271_v29, 1  ;;  %v21713_v34 = vld [vmem:[#allocation10 + $0xe8c] ss:$16 sps:$4 sm:$0xff]   ;;  %v21734_v14 = vld [vmem:[#allocation10 + $0xf04] ss:$16 sps:$4 sm:$0xff]  }
 0x6bd   :  { %13715 = vmatpush1.bf16.msra.mxu0 %v21630_v39  ;;  %v21692_v39 = vld [vmem:[#allocation10 + $0xe24] ss:$16 sps:$4 sm:$0xff]   ;;  %v21735_v29 = vld [vmem:[#allocation10 + $0xf08] ss:$16 sps:$4 sm:$0xff]  }
 0x6be   :  { %13716 = vmatprep.subr.bf16.mxu0 %v21638_v56  ;;  %v7246_v56 = vld [vmem:[#allocation3 + $0xd8] sm:$0x1] }
 0x6bf   :  { %14737 = vmatpush1.bf16.msra.mxu1 %v21633_v46  ;;  %v7250_v46 = vld [vmem:[#allocation3 + $0x158] sm:$0xfe] }
 0x6c0   :  { %14738 = vmatprep.subr.bf16.mxu1 %v21641_v26  ;;  %v21687_v26 = vld [vmem:[#allocation10 + $0xe08] ss:$16 sps:$4 sm:$0xff]  }
 0x6c1   :  { %13717 = vmatpush1.bf16.msra.mxu0 %v21636_v27  ;;  %v7421_v27 = vpack.c.bf16 %v7353_v28, %v7344_v32  ;;  %v7267_v28 = vld [vmem:[#allocation3 + $0x1e0] sm:$0xfe] }
 0x6c2   :  { %13718 = vmatprep.subr.bf16.mxu0 %v21644_v42  ;;  %v7348_v42 = vrot.slane %v7243_v62, 1  ;;  %v21716_v32 = vld [vmem:[#allocation10 + $0xea4] ss:$16 sps:$4 sm:$0xff]  }
 0x6c3   :  { %14739 = vmatpush1.bf16.msra.mxu1 %v21639_v0  ;;  %v7259_v0 = vld [vmem:[#allocation3 + $0x1a0] sm:$0x1] }
 0x6c4   :  { %14740 = vmatprep.subr.bf16.mxu1 %v21647_v57  ;;  %v21695_v57 = vld [vmem:[#allocation10 + $0xe2c] ss:$16 sps:$4 sm:$0xff]  }
 0x6c5   :  { %13719 = vmatpush1.bf16.msra.mxu0 %v21642_v23  ;;  %v7240_v23 = vld [vmem:[#allocation3 + $0xa8] sm:$0x1] }
 0x6c6   :  { %13720 = vmatprep.subr.bf16.mxu0 %v21650_v60  ;;  %v7369_v60 = vrot.slane %v7256_v7, 1 }
 0x6c7   :  { %14741 = vmatpush1.bf16.msra.mxu1 %v21645_v13  ;;  %v21690_v13 = vld [vmem:[#allocation10 + $0xe20] ss:$16 sps:$4 sm:$0xff]  }
 0x6c8   :  { %14742 = vmatprep.subr.bf16.mxu1 %v21653_v36  ;;  %v7339_v36 = vrot.slane %v7237_v48, 1  ;;  %v7435_v48 = vld [vmem:[#allocation3 + $0x60] sm:$0xfc] }
 0x6c9   :  { %13721 = vmatpush1.bf16.msra.mxu0 %v21648_v3  ;;  %v7349_v3 = vrot.slane %v7246_v56, 1  ;;  %v7270_v56 = vld [vmem:[#allocation3 + $0x1f8] sm:$0x1] }
 0x6ca   :  { %13722 = vmatprep.subr.bf16.mxu0 %v21656_v53  ;;  %v7253_v53 = vld [vmem:[#allocation3 + $0x170] sm:$0x1] }
 0x6cb   :  { %14743 = vmatpush1.bf16.msra.mxu1 %v21651_v12  ;;  %v21698_v12 = vld [vmem:[#allocation10 + $0xe44] ss:$16 sps:$4 sm:$0xff]  }
 0x6cc   :  { %14744 = vmatprep.subr.bf16.mxu1 %v21659_v18  ;;  %v7360_v18 = vrot.slane %v7250_v46, 1  ;;  %v21711_v46 = vld [vmem:[#allocation10 + $0xe88] ss:$16 sps:$4 sm:$0xff]  }
 0x6cd   :  { %13723 = vmatpush1.bf16.msra.mxu0 %v21654_v31  ;;  %v7370_v31 = vrot.slane %v7259_v0, 1  ;;  %v21719_v0 = vld [vmem:[#allocation10 + $0xeac] ss:$16 sps:$4 sm:$0xff]  }
 0x6ce   :  { %13724 = vmatprep.subr.bf16.mxu0 %v21662_v21  ;;  %v21693_v21 = vld [vmem:[#allocation10 + $0xe28] ss:$16 sps:$4 sm:$0xff]  }
 0x6cf   :  { %14745 = vmatpush1.bf16.msra.mxu1 %v21657_v17  ;;  %v7340_v17 = vrot.slane %v7240_v23, 1  ;;  %v7534_v23 = vrot.slane %v7435_v48, 2  ;;  %v7230_v48 = vld [vmem:[#allocation3 + $0x58] sm:$0x1] }
 0x6d0   :  { %14746 = vmatprep.subr.bf16.mxu1 %v21665_v45  ;;  %v7350_v45 = vsel %vm6875_vm7, %v7348_v42, %v7349_v3  ;;  %v7438_v42 = vld [vmem:[#allocation3 + $0x78] sm:$0x3]  ;;  %v7432_v3 = vld [vmem:[#allocation3 + $0x48] sm:$0x3] }
 0x6d1   :  { %13725 = vmatpush1.bf16.msra.mxu0 %v21660_v16  ;;  %v21701_v16 = vld [vmem:[#allocation10 + $0xe4c] ss:$16 sps:$4 sm:$0xff]  }
 0x6d2   :  { %13726 = vmatprep.subr.bf16.mxu0 %v21668_v49  ;;  %v7361_v49 = vrot.slane %v7253_v53, 1  ;;  %v21722_v53 = vld [vmem:[#allocation10 + $0xec4] ss:$16 sps:$4 sm:$0xff]  }
 0x6d3   :  { %14747 = vmatpush1.bf16.msra.mxu1 %v21663_v55  ;;  %v7371_v55 = vsel %vm6875_vm7, %v7369_v60, %v7370_v31  ;;  %v21714_v60 = vld [vmem:[#allocation10 + $0xea0] ss:$16 sps:$4 sm:$0xff]   ;;  %v21717_v31 = vld [vmem:[#allocation10 + $0xea8] ss:$16 sps:$4 sm:$0xff]  }
 0x6d4   :  { %14748 = vmatprep.subr.bf16.mxu1 %v21671_v22  ;;  %v7255_v22 = vld [vmem:[#allocation3 + $0x180] sm:$0xfe] }
 0x6d5   :  { %13727 = vmatpush1.bf16.msra.mxu0 %v21666_v37  ;;  %v7341_v37 = vsel %vm6875_vm7, %v7339_v36, %v7340_v17  ;;  %v7385_v36 = vrot.slane %v7270_v56, 1  ;;  %v21773_v56 = vld [vmem:[#allocation10 + $0xfcc] ss:$16 sps:$4 sm:$0xff]  }
 0x6d6   :  { %13728 = vmatprep.subr.bf16.mxu0 %v21674_v33  ;;  %v21696_v33 = vld [vmem:[#allocation10 + $0xe40] ss:$16 sps:$4 sm:$0xff]   ;;  %v7420_v25 = vpack.c.bf16 %v7350_v45, %v7341_v37  ;;  %v21725_v45 = vld [vmem:[#allocation10 + $0xecc] ss:$16 sps:$4 sm:$0xff]  }
 0x6d7   :  { %14749 = vmatpush1.bf16.msra.mxu1 %v21669_v35  ;;  %v7249_v35 = vld [vmem:[#allocation3 + $0x150] sm:$0xfe] }
 0x6d8   :  { %14750 = vmatprep.subr.bf16.mxu1 %v21677_v2  ;;  %v7268_v2 = vld [vmem:[#allocation3 + $0x1e8] sm:$0xfe] }
 0x6d9   :  { %13729 = vmatpush1.bf16.msra.mxu0 %v21672_v20  ;;  %v7362_v20 = vsel %vm6875_vm7, %v7360_v18, %v7361_v49  ;;  %v7387_v5 = vrot.slane %v7268_v2, 1  ;;  %v7535_v18 = vrot.slane %v7438_v42, 2  ;;  %v21723_v2 = vld [vmem:[#allocation10 + $0xec8] ss:$16 sps:$4 sm:$0xff]  }
 0x6da   :  { %13730 = vmatprep.subr.bf16.mxu0 %v21680_v6  ;;  %v7262_v6 = vld [vmem:[#allocation3 + $0x1b8] sm:$0xfe]  ;;  %v7424_v8 = vpack.c.bf16 %v7371_v55, %v7362_v20 }
 0x6db   :  { %14751 = vmatpush1.bf16.msra.mxu1 %v21675_v30  ;;  %v7366_v30 = vrot.slane %v7255_v22, 1  ;;  %v7389_v52 = vsel %vm6875_vm7, %v7387_v5, %v7388_v50  ;;  %v7536_v49 = vsel %vm7080_vm8, %v7534_v23, %v7535_v18  ;;  %v21720_v22 = vld [vmem:[#allocation10 + $0xec0] ss:$16 sps:$4 sm:$0xff]   ;;  %v21731_v20 = vld [vmem:[#allocation10 + $0xeec] ss:$16 sps:$4 sm:$0xff]  }
 0x6dc   :  { %14752 = vmatprep.subr.bf16.mxu1 %v21683_v4  ;;  %v7252_v4 = vld [vmem:[#allocation3 + $0x168] sm:$0x1]  ;;  %v21750_v50 = vld [vmem:[#allocation10 + $0xf60] ss:$16 sps:$4 sm:$0xff]  }
 0x6dd   :  { %13731 = vmatpush1.bf16.msra.mxu0 %v21678_v9  ;;  %v7357_v9 = vrot.slane %v7249_v35, 1  ;;  %v7368_v59 = vsel %vm6875_vm7, %v7366_v30, %v7367_v63  ;;  %v21728_v35 = vld [vmem:[#allocation10 + $0xee4] ss:$16 sps:$4 sm:$0xff]   ;;  %v21744_v63 = vld [vmem:[#allocation10 + $0xf40] ss:$16 sps:$4 sm:$0xff]  }
 0x6de   :  { %13773 = vmatprep.subr.bf16.mxu0 %v21686_v43  ;;  %v7378_v43 = vrot.slane %v7262_v6, 1  ;;  %v21729_v6 = vld [vmem:[#allocation10 + $0xee8] ss:$16 sps:$4 sm:$0xff]   ;;  %v21740_v30 = vld [vmem:[#allocation10 + $0xf24] ss:$16 sps:$4 sm:$0xff]  }
 0x6df   :  { %14753 = vmatpush1.bf16.msra.mxu1 %v21681_v61  ;;  %v7358_v61 = vrot.slane %v7252_v4, 1  ;;  %v21738_v4 = vld [vmem:[#allocation10 + $0xf20] ss:$16 sps:$4 sm:$0xff]   ;;  %v21746_v5 = vld [vmem:[#allocation10 + $0xf44] ss:$16 sps:$4 sm:$0xff]  }
 0x6e0   :  { %13733 = vmatmul.mubr.bf16.vlgmr.msra.gmra.mrb[64].mxu0 %v7417_v44  ;;  %14795 = vmatprep.subr.bf16.mxu1 %v21689_v40  ;;  %v7379_v40 = vrot.slane %v7265_v54, 1  ;;  %v21752_v54 = vld [vmem:[#allocation10 + $0xf64] ss:$16 sps:$4 sm:$0xff]  }
 0x6e1   :  { %13742 = vmatprep.mubr.bf16.mxu0 %v7421_v27  ;;  %13774 = vmatpush1.bf16.msra.mxu0 %v21684_v41  ;;  %v7359_v62 = vsel %vm6875_vm7, %v7357_v9, %v7358_v61  ;;  %v7429_v41 = vld [vmem:[#allocation3 + $0x30] sm:$0xfc]  ;;  %v21749_v9 = vld [vmem:[#allocation10 + $0xf4c] ss:$16 sps:$4 sm:$0xff]   ;;  %v21753_v61 = vld [vmem:[#allocation10 + $0xf68] ss:$16 sps:$4 sm:$0xff]  }
 0x6e2   :  { %14755 = vmatmul.mubr.bf16.vlgmr.msra.gmra.mrb[128].mxu1 %v7417_v44  ;;  %13775 = vmatprep.subr.bf16.mxu0 %v21692_v39  ;;  %v7423_v7 = vpack.c.bf16 %v7368_v59, %v7359_v62  ;;  %v7380_v44 = vsel %vm6875_vm7, %v7378_v43, %v7379_v40  ;;  %v7261_v39 = vld [vmem:[#allocation3 + $0x1b0] sm:$0xfe] }
 0x6e3   :  { %14764 = vmatprep.mubr.bf16.mxu1 %v7421_v27  ;;  %14796 = vmatpush1.bf16.msra.mxu1 %v21687_v26  ;;  %v7427_v26 = vpack.c.bf16 %v7389_v52, %v7380_v44  ;;  %v7384_v27 = vrot.slane %v7267_v28, 1  ;;  %v21755_v43 = vld [vmem:[#allocation10 + $0xf6c] ss:$16 sps:$4 sm:$0xff]   ;;  %v21764_v40 = vld [vmem:[#allocation10 + $0xfa4] ss:$16 sps:$4 sm:$0xff]  }
 0x6e4   :  { %14797 = vmatprep.subr.bf16.mxu1 %v21695_v57  ;;  %v7264_v57 = vld [vmem:[#allocation3 + $0x1c8] sm:$0x1]  ;;  %v21761_v59 = vld [vmem:[#allocation10 + $0xf8c] ss:$16 sps:$4 sm:$0xff]   ;;  %v21759_v52 = vld [vmem:[#allocation10 + $0xf88] ss:$16 sps:$4 sm:$0xff]  }
 0x6e5   :  { %13776 = vmatpush1.bf16.msra.mxu0 %v21690_v13  ;;  %v7375_v13 = vrot.slane %v7261_v39, 1  ;;  %v7386_v17 = vsel %vm6875_vm7, %v7384_v27, %v7385_v36  ;;  %v21767_v28 = vld [vmem:[#allocation10 + $0xfac] ss:$16 sps:$4 sm:$0xff]   ;;  %v21762_v62 = vld [vmem:[#allocation10 + $0xfa0] ss:$16 sps:$4 sm:$0xff]  }
 0x6e6   :  { %13777 = vmatprep.subr.bf16.mxu0 %v21698_v12  ;;  %v7525_v12 = vrot.slane %v7429_v41, 2  ;;  %v7227_v41 = vld [vmem:[#allocation3 + $0x40] sm:$0xfe]  ;;  %v7236_v44 = vld [vmem:[#allocation3 + $0x88] sm:$0x1] }
 0x6e7   :  { %14798 = vmatpush1.bf16.msra.mxu1 %v21693_v21  ;;  %v7376_v21 = vrot.slane %v7264_v57, 1  ;;  %v7441_v39 = vld [vmem:[#allocation3 + $0x90] sm:$0xfc]  ;;  %v7327_v42 = vrot.slane %v7227_v41, 1  ;;  %v7337_v23 = vrot.slane %v7236_v44, 1 }
 0x6e8   :  { %13743 = vmatmul.mubr.bf16.gmra.mrb[68].mxu0 %v7420_v25  ;;  %14799 = vmatprep.subr.bf16.mxu1 %v21701_v16  ;;  %v7526_v16 = vrot.slane %v7432_v3, 2  ;;  %v21768_v27 = vld [vmem:[#allocation10 + $0xfc0] ss:$16 sps:$4 sm:$0xff]   ;;  %v7444_v36 = vld [vmem:[#allocation3 + $0xa8] sm:$0x3] }
 0x6e9   :  { %13752 = vmatprep.mubr.bf16.mxu0 %v7424_v8  ;;  %13778 = vmatpush1.bf16.msra.mxu0 %v21696_v33  ;;  %v7377_v55 = vsel %vm6875_vm7, %v7375_v13, %v7376_v21  ;;  %v21771_v13 = vld [vmem:[#allocation10 + $0xfc8] ss:$16 sps:$4 sm:$0xff]   ;;  %v21779_v3 = vld [vmem:[#allocation10 + $0xfec] ss:$16 sps:$4 sm:$0xff]   ;;  %v7468_v41 = vld [vmem:[#allocation3 + $0x1c8] sm:$0x3] }
 0x6ea   :  { %14765 = vmatmul.mubr.bf16.gmra.mrb[132].mxu1 %v7420_v25  ;;  %13779 = vmatprep.subr.bf16.mxu0 %v21704_v1  ;;  %v7426_v37 = vpack.c.bf16 %v7386_v17, %v7377_v55  ;;  %v7527_v33 = vsel %vm7080_vm8, %v7525_v12, %v7526_v16  ;;  %v21726_v1 = vld [vmem:[#allocation10 + $0xee0] ss:$16 sps:$4 sm:$0xff]   ;;  %v21797_v44 = vld [vmem:[#allocation10 + $0x104c] ss:$16 sps:$4 sm:$0xff]  }
 0x6eb   :  { %14774 = vmatprep.mubr.bf16.mxu1 %v7424_v8  ;;  %14800 = vmatpush1.bf16.msra.mxu1 %v21699_v19  ;;  %v7621_v25 = vpack.c.bf16 %v7536_v49, %v7527_v33  ;;  %v21737_v19 = vld [vmem:[#allocation10 + $0xf0c] ss:$16 sps:$4 sm:$0xff]   ;;  %v21732_v8 = vld [vmem:[#allocation10 + $0xf00] ss:$16 sps:$4 sm:$0xff]   ;;  %v7242_v49 = vld [vmem:[#allocation3 + $0xb8] sm:$0x1] }
 0x6ec   :  { %14801 = vmatprep.subr.bf16.mxu1 %v21707_v47  ;;  %v21743_v47 = vld [vmem:[#allocation10 + $0xf2c] ss:$16 sps:$4 sm:$0xff]   ;;  %v7453_v33 = vld [vmem:[#allocation3 + $0x150] sm:$0xfc] }
 0x6ed   :  { %13780 = vmatpush1.bf16.msra.mxu0 %v21702_v58  ;;  %v21741_v58 = vld [vmem:[#allocation10 + $0xf28] ss:$16 sps:$4 sm:$0xff]   ;;  %v7239_v16 = vld [vmem:[#allocation3 + $0xa0] sm:$0xfe]  ;;  %v7245_v55 = vld [vmem:[#allocation3 + $0xd0] sm:$0xfe] }
 0x6ee   :  { %13781 = vmatprep.subr.bf16.mxu0 %v21710_v11  ;;  %v21747_v11 = vld [vmem:[#allocation10 + $0xf48] ss:$16 sps:$4 sm:$0xff]  }
 0x6ef   :  { %14802 = vmatpush1.bf16.msra.mxu1 %v21705_v38  ;;  %v21758_v38 = vld [vmem:[#allocation10 + $0xf84] ss:$16 sps:$4 sm:$0xff]  }
 0x6f0   :  { %13753 = vmatmul.mubr.bf16.gmra.mrb[72].mxu0 %v7423_v7  ;;  %14803 = vmatprep.subr.bf16.mxu1 %v21713_v34  ;;  %v21756_v34 = vld [vmem:[#allocation10 + $0xf80] ss:$16 sps:$4 sm:$0xff]  }
 0x6f1   :  { %13762 = vmatprep.mubr.bf16.mxu0 %v7427_v26  ;;  %13782 = vmatpush1.bf16.msra.mxu0 %v21708_v51  ;;  %v21770_v51 = vld [vmem:[#allocation10 + $0xfc4] ss:$16 sps:$4 sm:$0xff]  }
 0x6f2   :  { %14775 = vmatmul.mubr.bf16.gmra.mrb[136].mxu1 %v7423_v7  ;;  %13783 = vmatprep.subr.bf16.mxu0 %v21716_v32  ;;  %v7233_v7 = vld [vmem:[#allocation3 + $0x70] sm:$0xfe]  ;;  %v21765_v32 = vld [vmem:[#allocation10 + $0xfa8] ss:$16 sps:$4 sm:$0xff]  }
 0x6f3   :  { %14784 = vmatprep.mubr.bf16.mxu1 %v7427_v26  ;;  %14804 = vmatpush1.bf16.msra.mxu1 %v21711_v46  ;;  %v7447_v46 = vld [vmem:[#allocation3 + $0xc0] sm:$0xfc]  ;;  %v7450_v26 = vld [vmem:[#allocation3 + $0xd8] sm:$0x3]  ;;  %v7336_v57 = vrot.slane %v7233_v7, 1 }
 0x6f4   :  { %14805 = vmatprep.subr.bf16.mxu1 %v21719_v0  ;;  %v7328_v0 = vrot.slane %v7230_v48, 1  ;;  %v7552_v12 = vrot.slane %v7447_v46, 2  ;;  %v7553_v18 = vrot.slane %v7450_v26, 2  ;;  %v7474_v48 = vld [vmem:[#allocation3 + $0x1f8] sm:$0x3] }
 0x6f5   :  { %13784 = vmatpush1.bf16.msra.mxu0 %v21714_v60  ;;  %v21776_v60 = vld [vmem:[#allocation10 + $0xfe4] ss:$16 sps:$4 sm:$0xff]   ;;  %v7338_v17 = vsel %vm6875_vm7, %v7336_v57, %v7337_v23  ;;  %v21792_v46 = vld [vmem:[#allocation10 + $0x1040] ss:$16 sps:$4 sm:$0xff]  }
 0x6f6   :  { %13785 = vmatprep.subr.bf16.mxu0 %v21722_v53  ;;  %v7543_v53 = vrot.slane %v7441_v39, 2  ;;  %v7329_v21 = vsel %vm6875_vm7, %v7327_v42, %v7328_v0  ;;  %v21800_v23 = vld [vmem:[#allocation10 + $0x1064] ss:$16 sps:$4 sm:$0xff]  }
 0x6f7   :  { %14806 = vmatpush1.bf16.msra.mxu1 %v21717_v31  ;;  %v21774_v31 = vld [vmem:[#allocation10 + $0xfe0] ss:$16 sps:$4 sm:$0xff]  }
 0x6f8   :  { %13763 = vmatmul.mubr.bf16.gmra.mrb[76].mxu0 %v7426_v37  ;;  %14807 = vmatprep.subr.bf16.mxu1 %v21725_v45  ;;  %v21782_v45 = vld [vmem:[#allocation10 + $0x1004] ss:$16 sps:$4 sm:$0xff]  }
 0x6f9   :  { %13786 = vmatpush1.bf16.msra.mxu0 %v21720_v22  ;;  %13805 = vmatprep.mubr.bf16.mxu0 %v7621_v25  ;;  %v7248_v22 = vld [vmem:[#allocation3 + $0xe8] sm:$0x1] }
 0x6fa   :  { %14785 = vmatmul.mubr.bf16.gmra.mrb[140].mxu1 %v7426_v37  ;;  %13787 = vmatprep.subr.bf16.mxu0 %v21728_v35  ;;  %v21777_v37 = vld [vmem:[#allocation10 + $0xfe8] ss:$16 sps:$4 sm:$0xff]   ;;  %v7462_v35 = vld [vmem:[#allocation3 + $0x198] sm:$0x3] }
 0x6fb   :  { %14808 = vmatpush1.bf16.msra.mxu1 %v21723_v2  ;;  %14827 = vmatprep.mubr.bf16.mxu1 %v7621_v25  ;;  %v7419_v2 = vpack.c.bf16 %v7338_v17, %v7329_v21  ;;  %v21785_v25 = vld [vmem:[#allocation10 + $0x100c] ss:$16 sps:$4 sm:$0xff]   ;;  %v21801_v21 = vld [vmem:[#allocation10 + $0x1068] ss:$16 sps:$4 sm:$0xff]  }
 0x6fc   :  { %14809 = vmatprep.subr.bf16.mxu1 %v21731_v20  ;;  %v7544_v20 = vrot.slane %v7444_v36, 2 }
 0x6fd   :  { %13788 = vmatpush1.bf16.msra.mxu0 %v21726_v1  ;;  %v7554_v1 = vsel %vm7080_vm8, %v7552_v12, %v7553_v18  ;;  %v21803_v12 = vld [vmem:[#allocation10 + $0x106c] ss:$16 sps:$4 sm:$0xff]  }
 0x6fe   :  { %13789 = vmatprep.subr.bf16.mxu0 %v21734_v14  ;;  %v7459_v14 = vld [vmem:[#allocation3 + $0x180] sm:$0xfc] }
 0x6ff   :  { %14810 = vmatpush1.bf16.msra.mxu1 %v21729_v6  ;;  %v21780_v6 = vld [vmem:[#allocation10 + $0x1000] ss:$16 sps:$4 sm:$0xff]  }
 0x700   :  { %14811 = vmatprep.subr.bf16.mxu1 %v21737_v19  ;;  %v7345_v19 = vrot.slane %v7239_v16, 1  ;;  %v21806_v16 = vld [vmem:[#allocation10 + $0x1084] ss:$16 sps:$4 sm:$0xff]  }
 0x701   :  { %13790 = vmatpush1.bf16.msra.mxu0 %v21732_v8  ;;  %v7346_v8 = vrot.slane %v7242_v49, 1  ;;  %v7263_v49 = vld [vmem:[#allocation3 + $0x1c0] sm:$0xfe] }
 0x702   :  { %13791 = vmatprep.subr.bf16.mxu0 %v21740_v30  ;;  %v7354_v30 = vrot.slane %v7245_v55, 1  ;;  %v7266_v55 = vld [vmem:[#allocation3 + $0x1d8] sm:$0x1] }
 0x703   :  { %14812 = vmatpush1.bf16.msra.mxu1 %v21735_v29  ;;  %v7355_v29 = vrot.slane %v7248_v22, 1  ;;  %v7269_v22 = vld [vmem:[#allocation3 + $0x1f0] sm:$0xfe] }
 0x704   :  { %14813 = vmatprep.subr.bf16.mxu1 %v21743_v47  ;;  %v7545_v47 = vsel %vm7080_vm8, %v7543_v53, %v7544_v20  ;;  %v21798_v53 = vld [vmem:[#allocation10 + $0x1060] ss:$16 sps:$4 sm:$0xff]  }
 0x705   :  { %13792 = vmatpush1.bf16.msra.mxu0 %v21738_v4  ;;  %v21788_v4 = vld [vmem:[#allocation10 + $0x1024] ss:$16 sps:$4 sm:$0xff]  }
 0x706   :  { %13793 = vmatprep.subr.bf16.mxu0 %v21746_v5  ;;  %v21783_v5 = vld [vmem:[#allocation10 + $0x1008] ss:$16 sps:$4 sm:$0xff]  }
 0x707   :  { %14814 = vmatpush1.bf16.msra.mxu1 %v21741_v58  ;;  %v7624_v58 = vpack.c.bf16 %v7554_v1, %v7545_v47  ;;  %v21809_v1 = vld [vmem:[#allocation10 + $0x108c] ss:$16 sps:$4 sm:$0xff]  }
 0x708   :  { %14815 = vmatprep.subr.bf16.mxu1 %v21749_v9  ;;  %v7456_v9 = vld [vmem:[#allocation3 + $0x168] sm:$0x3] }
 0x709   :  { %13794 = vmatpush1.bf16.msra.mxu0 %v21744_v63  ;;  %v21791_v63 = vld [vmem:[#allocation10 + $0x102c] ss:$16 sps:$4 sm:$0xff]  }
 0x70a   :  { %13795 = vmatprep.subr.bf16.mxu0 %v21752_v54  ;;  %v7561_v54 = vrot.slane %v7453_v33, 2  ;;  %v7431_v33 = vld [vmem:[#allocation3 + $0x40] sm:$0xfc] }
 0x70b   :  { %14816 = vmatpush1.bf16.msra.mxu1 %v21747_v11  ;;  %v7570_v11 = vrot.slane %v7459_v14, 2 }
 0x70c   :  { %14817 = vmatprep.subr.bf16.mxu1 %v21755_v43  ;;  %v7571_v43 = vrot.slane %v7462_v35, 2  ;;  %v7434_v35 = vld [vmem:[#allocation3 + $0x58] sm:$0x3] }
 0x70d   :  { %13796 = vmatpush1.bf16.msra.mxu0 %v21750_v50  ;;  %v21786_v50 = vld [vmem:[#allocation10 + $0x1020] ss:$16 sps:$4 sm:$0xff]  }
 0x70e   :  { %13797 = vmatprep.subr.bf16.mxu0 %v21758_v38  ;;  %v7347_v38 = vsel %vm6875_vm7, %v7345_v19, %v7346_v8  ;;  %v7572_v39 = vsel %vm7080_vm8, %v7570_v11, %v7571_v43  ;;  %v21804_v19 = vld [vmem:[#allocation10 + $0x1080] ss:$16 sps:$4 sm:$0xff]   ;;  %v7381_v8 = vrot.slane %v7263_v49, 1  ;;  %v21815_v43 = vld [vmem:[#allocation10 + $0x10ac] ss:$16 sps:$4 sm:$0xff]  }
 0x70f   :  { %14818 = vmatpush1.bf16.msra.mxu1 %v21753_v61  ;;  %v7356_v61 = vsel %vm6875_vm7, %v7354_v30, %v7355_v29  ;;  %v7382_v30 = vrot.slane %v7266_v55, 1  ;;  %v7390_v29 = vrot.slane %v7269_v22, 1  ;;  %v21855_v49 = vld [vmem:[#allocation10 + $0x1188] ss:$16 sps:$4 sm:$0xff]   ;;  %v21863_v55 = vld [vmem:[#allocation10 + $0x11ac] ss:$16 sps:$4 sm:$0xff]  }
 0x710   :  { %14819 = vmatprep.subr.bf16.mxu1 %v21761_v59  ;;  %v21794_v59 = vld [vmem:[#allocation10 + $0x1044] ss:$16 sps:$4 sm:$0xff]   ;;  %v7422_v7 = vpack.c.bf16 %v7356_v61, %v7347_v38  ;;  %v21858_v22 = vld [vmem:[#allocation10 + $0x11a0] ss:$16 sps:$4 sm:$0xff]  }
 0x711   :  { %13798 = vmatpush1.bf16.msra.mxu0 %v21756_v34  ;;  %v7251_v34 = vld [vmem:[#allocation3 + $0x160] sm:$0xfe]  ;;  %v7383_v38 = vsel %vm6875_vm7, %v7381_v8, %v7382_v30 }
 0x712   :  { %13799 = vmatprep.subr.bf16.mxu0 %v21764_v40  ;;  %v7254_v40 = vld [vmem:[#allocation3 + $0x178] sm:$0x1]  ;;  %v7363_v26 = vrot.slane %v7251_v34, 1  ;;  %v21864_v8 = vld [vmem:[#allocation10 + $0x11c0] ss:$16 sps:$4 sm:$0xff]  }
 0x713   :  { %14820 = vmatpush1.bf16.msra.mxu1 %v21759_v52  ;;  %v7257_v52 = vld [vmem:[#allocation3 + $0x190] sm:$0xfe]  ;;  %v7439_v30 = vld [vmem:[#allocation3 + $0x80] sm:$0x3] }
 0x714   :  { %14821 = vmatprep.subr.bf16.mxu1 %v21767_v28  ;;  %v7260_v28 = vld [vmem:[#allocation3 + $0x1a8] sm:$0x1]  ;;  %v7372_v42 = vrot.slane %v7257_v52, 1  ;;  %v21813_v52 = vld [vmem:[#allocation10 + $0x10a8] ss:$16 sps:$4 sm:$0xff]  }
 0x715   :  { %13800 = vmatpush1.bf16.msra.mxu0 %v21762_v62  ;;  %v7465_v62 = vld [vmem:[#allocation3 + $0x1b0] sm:$0xfc]  ;;  %v7373_v0 = vrot.slane %v7260_v28, 1  ;;  %v21821_v28 = vld [vmem:[#allocation10 + $0x10cc] ss:$16 sps:$4 sm:$0xff]  }
 0x716   :  { %13801 = vmatprep.subr.bf16.mxu0 %v21770_v51  ;;  %v21789_v51 = vld [vmem:[#allocation10 + $0x1028] ss:$16 sps:$4 sm:$0xff]   ;;  %v7579_v36 = vrot.slane %v7465_v62, 2 }
 0x717   :  { %14822 = vmatpush1.bf16.msra.mxu1 %v21765_v32  ;;  %v7562_v32 = vrot.slane %v7456_v9, 2 }
 0x718   :  { %14823 = vmatprep.subr.bf16.mxu1 %v21773_v56  ;;  %v7471_v56 = vld [vmem:[#allocation3 + $0x1e0] sm:$0xfc] }
 0x719   :  { %13802 = vmatpush1.bf16.msra.mxu0 %v21768_v27  ;;  %v7364_v27 = vrot.slane %v7254_v40, 1  ;;  %v7563_v57 = vsel %vm7080_vm8, %v7561_v54, %v7562_v32  ;;  %v7588_v18 = vrot.slane %v7471_v56, 2  ;;  %v21807_v54 = vld [vmem:[#allocation10 + $0x1088] ss:$16 sps:$4 sm:$0xff]   ;;  %v21822_v32 = vld [vmem:[#allocation10 + $0x10e0] ss:$16 sps:$4 sm:$0xff]  }
 0x71a   :  { %13803 = vmatprep.subr.bf16.mxu0 %v21776_v60  ;;  %v21795_v60 = vld [vmem:[#allocation10 + $0x1048] ss:$16 sps:$4 sm:$0xff]  }
 0x71b   :  { %14824 = vmatpush1.bf16.msra.mxu1 %v21771_v13  ;;  %v7627_v13 = vpack.c.bf16 %v7572_v39, %v7563_v57  ;;  %v7365_v17 = vsel %vm6875_vm7, %v7363_v26, %v7364_v27  ;;  %v21830_v39 = vld [vmem:[#allocation10 + $0x1104] ss:$16 sps:$4 sm:$0xff]   ;;  %v21825_v56 = vld [vmem:[#allocation10 + $0x10e8] ss:$16 sps:$4 sm:$0xff]   ;;  %v21828_v26 = vld [vmem:[#allocation10 + $0x1100] ss:$16 sps:$4 sm:$0xff]  }
 0x71c   :  { %14825 = vmatprep.subr.bf16.mxu1 %v21779_v3  ;;  %v7580_v3 = vrot.slane %v7468_v41, 2  ;;  %v21836_v27 = vld [vmem:[#allocation10 + $0x1124] ss:$16 sps:$4 sm:$0xff]   ;;  %v21834_v57 = vld [vmem:[#allocation10 + $0x1120] ss:$16 sps:$4 sm:$0xff]  }
 0x71d   :  { %13804 = vmatpush1.bf16.msra.mxu0 %v21774_v31  ;;  %v7589_v31 = vrot.slane %v7474_v48, 2  ;;  %v21824_v48 = vld [vmem:[#allocation10 + $0x10e4] ss:$16 sps:$4 sm:$0xff]  }
 0x71e   :  { %13846 = vmatprep.subr.bf16.mxu0 %v21782_v45  ;;  %v7374_v45 = vsel %vm6875_vm7, %v7372_v42, %v7373_v0  ;;  %v7581_v14 = vsel %vm7080_vm8, %v7579_v36, %v7580_v3  ;;  %v21831_v42 = vld [vmem:[#allocation10 + $0x1108] ss:$16 sps:$4 sm:$0xff]   ;;  %v21839_v0 = vld [vmem:[#allocation10 + $0x112c] ss:$16 sps:$4 sm:$0xff]   ;;  %v21840_v36 = vld [vmem:[#allocation10 + $0x1140] ss:$16 sps:$4 sm:$0xff]  }
 0x71f   :  { %14826 = vmatpush1.bf16.msra.mxu1 %v21777_v37  ;;  %v7272_v37 = vld [vmem:[#allocation3 + $0x208] sm:$0x1]  ;;  %v7425_v20 = vpack.c.bf16 %v7374_v45, %v7365_v17  ;;  %v21857_v17 = vld [vmem:[#allocation10 + $0x118c] ss:$16 sps:$4 sm:$0xff]   ;;  %v21852_v45 = vld [vmem:[#allocation10 + $0x1180] ss:$16 sps:$4 sm:$0xff]  }
 0x720   :  { %13806 = vmatmul.mubr.bf16.vlgmr.msra.gmra.mrb[64].mxu0 %v7419_v2  ;;  %14868 = vmatprep.subr.bf16.mxu1 %v21785_v25  ;;  %v7440_v25 = vld [vmem:[#allocation3 + $0x88] sm:$0x3]  ;;  %v7391_v47 = vrot.slane %v7272_v37, 1  ;;  %v7436_v37 = vld [vmem:[#allocation3 + $0x68] sm:$0xfc] }
 0x721   :  { %13815 = vmatprep.mubr.bf16.mxu0 %v7624_v58  ;;  %13847 = vmatpush1.bf16.msra.mxu0 %v21780_v6  ;;  %v7590_v6 = vsel %vm7080_vm8, %v7588_v18, %v7589_v31  ;;  %v21848_v3 = vld [vmem:[#allocation10 + $0x1164] ss:$16 sps:$4 sm:$0xff]   ;;  %v21846_v18 = vld [vmem:[#allocation10 + $0x1160] ss:$16 sps:$4 sm:$0xff]  }
 0x722   :  { %14828 = vmatmul.mubr.bf16.vlgmr.msra.gmra.mrb[128].mxu1 %v7419_v2  ;;  %13848 = vmatprep.subr.bf16.mxu0 %v21788_v4  ;;  %v7437_v2 = vld [vmem:[#allocation3 + $0x70] sm:$0xfc]  ;;  %v7630_v11 = vpack.c.bf16 %v7590_v6, %v7581_v14  ;;  %v7392_v61 = vsel %vm6875_vm7, %v7390_v29, %v7391_v47  ;;  %v21869_v14 = vld [vmem:[#allocation10 + $0x11cc] ss:$16 sps:$4 sm:$0xff]   ;;  %v7537_v29 = vrot.slane %v7436_v37, 2 }
 0x723   :  { %14837 = vmatprep.mubr.bf16.mxu1 %v7624_v58  ;;  %14869 = vmatpush1.bf16.msra.mxu1 %v21783_v5  ;;  %v21812_v4 = vld [vmem:[#allocation10 + $0x10a4] ss:$16 sps:$4 sm:$0xff]   ;;  %v7531_v5 = vrot.slane %v7431_v33, 2  ;;  %v7532_v58 = vrot.slane %v7434_v35, 2  ;;  %v7540_v9 = vrot.slane %v7437_v2, 2  ;;  %v7428_v62 = vpack.c.bf16 %v7392_v61, %v7383_v38 }
 0x724   :  { %14870 = vmatprep.subr.bf16.mxu1 %v21791_v63  ;;  %v7541_v63 = vrot.slane %v7440_v25, 2  ;;  %v21854_v31 = vld [vmem:[#allocation10 + $0x1184] ss:$16 sps:$4 sm:$0xff]   ;;  %v21861_v33 = vld [vmem:[#allocation10 + $0x11a8] ss:$16 sps:$4 sm:$0xff]  }
 0x725   :  { %13849 = vmatpush1.bf16.msra.mxu0 %v21786_v50  ;;  %v21810_v50 = vld [vmem:[#allocation10 + $0x10a0] ss:$16 sps:$4 sm:$0xff]   ;;  %v7533_v34 = vsel %vm7080_vm8, %v7531_v5, %v7532_v58  ;;  %v21866_v35 = vld [vmem:[#allocation10 + $0x11c4] ss:$16 sps:$4 sm:$0xff]   ;;  %v7430_v6 = vld [vmem:[#allocation3 + $0x38] sm:$0xfc] }
 0x726   :  { %13850 = vmatprep.subr.bf16.mxu0 %v21794_v59  ;;  %v21818_v59 = vld [vmem:[#allocation10 + $0x10c4] ss:$16 sps:$4 sm:$0xff]   ;;  %v7542_v40 = vsel %vm7080_vm8, %v7540_v9, %v7541_v63  ;;  %v21867_v63 = vld [vmem:[#allocation10 + $0x11c8] ss:$16 sps:$4 sm:$0xff]  }
 0x727   :  { %14871 = vmatpush1.bf16.msra.mxu1 %v21789_v51  ;;  %v21816_v51 = vld [vmem:[#allocation10 + $0x10c0] ss:$16 sps:$4 sm:$0xff]   ;;  %v7623_v41 = vpack.c.bf16 %v7542_v40, %v7533_v34  ;;  %v7446_v25 = vld [vmem:[#allocation3 + $0xb8] sm:$0x3]  ;;  %v7448_v61 = vld [vmem:[#allocation3 + $0xc8] sm:$0xfc] }
 0x728   :  { %13816 = vmatmul.mubr.bf16.gmra.mrb[68].mxu0 %v7422_v7  ;;  %14872 = vmatprep.subr.bf16.mxu1 %v21797_v44  ;;  %v21827_v44 = vld [vmem:[#allocation10 + $0x10ec] ss:$16 sps:$4 sm:$0xff]   ;;  %v7443_v2 = vld [vmem:[#allocation3 + $0xa0] sm:$0xfc]  ;;  %v7550_v5 = vrot.slane %v7446_v25, 2 }
 0x729   :  { %13825 = vmatprep.mubr.bf16.mxu0 %v7627_v13  ;;  %13851 = vmatpush1.bf16.msra.mxu0 %v21792_v46  ;;  %v21833_v46 = vld [vmem:[#allocation10 + $0x110c] ss:$16 sps:$4 sm:$0xff]   ;;  %v21872_v47 = vld [vmem:[#allocation10 + $0x11e4] ss:$16 sps:$4 sm:$0xff]  }
 0x72a   :  { %14838 = vmatmul.mubr.bf16.gmra.mrb[132].mxu1 %v7422_v7  ;;  %13852 = vmatprep.subr.bf16.mxu0 %v21800_v23  ;;  %v21819_v7 = vld [vmem:[#allocation10 + $0x10c8] ss:$16 sps:$4 sm:$0xff]   ;;  %v21842_v23 = vld [vmem:[#allocation10 + $0x1144] ss:$16 sps:$4 sm:$0xff]  }
 0x72b   :  { %14847 = vmatprep.mubr.bf16.mxu1 %v7627_v13  ;;  %14873 = vmatpush1.bf16.msra.mxu1 %v21795_v60  ;;  %v21837_v60 = vld [vmem:[#allocation10 + $0x1128] ss:$16 sps:$4 sm:$0xff]   ;;  %v21845_v13 = vld [vmem:[#allocation10 + $0x114c] ss:$16 sps:$4 sm:$0xff]   ;;  %v21878_v40 = vld [vmem:[#allocation10 + $0x1204] ss:$16 sps:$4 sm:$0xff]  }
 0x72c   :  { %14874 = vmatprep.subr.bf16.mxu1 %v21803_v12  ;;  %v21851_v12 = vld [vmem:[#allocation10 + $0x116c] ss:$16 sps:$4 sm:$0xff]   ;;  %v7473_v37 = vld [vmem:[#allocation3 + $0x1f0] sm:$0xfc] }
 0x72d   :  { %13853 = vmatpush1.bf16.msra.mxu0 %v21798_v53  ;;  %v21843_v53 = vld [vmem:[#allocation10 + $0x1148] ss:$16 sps:$4 sm:$0xff]  }
 0x72e   :  { %13854 = vmatprep.subr.bf16.mxu0 %v21806_v16  ;;  %v21860_v16 = vld [vmem:[#allocation10 + $0x11a4] ss:$16 sps:$4 sm:$0xff]   ;;  %v7460_v25 = vld [vmem:[#allocation3 + $0x188] sm:$0xfc] }
 0x72f   :  { %14875 = vmatpush1.bf16.msra.mxu1 %v21801_v21  ;;  %v21849_v21 = vld [vmem:[#allocation10 + $0x1168] ss:$16 sps:$4 sm:$0xff]  }
 0x730   :  { %13826 = vmatmul.mubr.bf16.gmra.mrb[72].mxu0 %v7425_v20  ;;  %14876 = vmatprep.subr.bf16.mxu1 %v21809_v1  ;;  %v7452_v1 = vld [vmem:[#allocation3 + $0xe8] sm:$0x3] }
 0x731   :  { %13835 = vmatprep.mubr.bf16.mxu0 %v7630_v11  ;;  %13855 = vmatpush1.bf16.msra.mxu0 %v21804_v19  ;;  %v7433_v19 = vld [vmem:[#allocation3 + $0x50] sm:$0x3]  ;;  %v7559_v9 = vrot.slane %v7452_v1, 2  ;;  %v21888_v1 = vld [vmem:[#allocation10 + $0x1240] ss:$16 sps:$4 sm:$0xff]  }
 0x732   :  { %14848 = vmatmul.mubr.bf16.gmra.mrb[136].mxu1 %v7425_v20  ;;  %13856 = vmatprep.subr.bf16.mxu0 %v21812_v4  ;;  %v7449_v20 = vld [vmem:[#allocation3 + $0xd0] sm:$0xfc]  ;;  %v7549_v4 = vrot.slane %v7443_v2, 2  ;;  %v7529_v38 = vrot.slane %v7433_v19, 2  ;;  %v21893_v2 = vld [vmem:[#allocation10 + $0x124c] ss:$16 sps:$4 sm:$0xff]  }
 0x733   :  { %14857 = vmatprep.mubr.bf16.mxu1 %v7630_v11  ;;  %14877 = vmatpush1.bf16.msra.mxu1 %v21807_v54  ;;  %v7558_v58 = vrot.slane %v7449_v20, 2  ;;  %v21875_v54 = vld [vmem:[#allocation10 + $0x11ec] ss:$16 sps:$4 sm:$0xff]   ;;  %v7528_v11 = vrot.slane %v7430_v6, 2 }
 0x734   :  { %14878 = vmatprep.subr.bf16.mxu1 %v21815_v43  ;;  %v7538_v43 = vrot.slane %v7439_v30, 2  ;;  %v7454_v6 = vld [vmem:[#allocation3 + $0x158] sm:$0xfc]  ;;  %v7463_v19 = vld [vmem:[#allocation3 + $0x1a0] sm:$0x3] }
 0x735   :  { %13857 = vmatpush1.bf16.msra.mxu0 %v21810_v50  ;;  %v21870_v50 = vld [vmem:[#allocation10 + $0x11e0] ss:$16 sps:$4 sm:$0xff]  }
 0x736   :  { %13858 = vmatprep.subr.bf16.mxu0 %v21818_v59  ;;  %v21873_v59 = vld [vmem:[#allocation10 + $0x11e8] ss:$16 sps:$4 sm:$0xff]   ;;  %v7539_v34 = vsel %vm7080_vm8, %v7537_v29, %v7538_v43  ;;  %v7574_v43 = vrot.slane %v7463_v19, 2  ;;  %v21936_v19 = vld [vmem:[#allocation10 + $0x1340] ss:$16 sps:$4 sm:$0xff]  }
 0x737   :  { %14879 = vmatpush1.bf16.msra.mxu1 %v21813_v52  ;;  %v7551_v52 = vsel %vm7080_vm8, %v7549_v4, %v7550_v5  ;;  %v21891_v5 = vld [vmem:[#allocation10 + $0x1248] ss:$16 sps:$4 sm:$0xff]  }
 0x738   :  { %14880 = vmatprep.subr.bf16.mxu1 %v21821_v28  ;;  %13836 = vmatmul.mubr.bf16.gmra.mrb[76].mxu0 %v7428_v62  ;;  %v7560_v28 = vsel %vm7080_vm8, %v7558_v58, %v7559_v9  ;;  %v7573_v58 = vrot.slane %v7460_v25, 2  ;;  %v21899_v9 = vld [vmem:[#allocation10 + $0x126c] ss:$16 sps:$4 sm:$0xff]  }
 0x739   :  { %13859 = vmatpush1.bf16.msra.mxu0 %v21816_v51  ;;  %13878 = vmatprep.mubr.bf16.mxu0 %v7623_v41  ;;  %v7458_v51 = vld [vmem:[#allocation3 + $0x178] sm:$0x3]  ;;  %v21935_v25 = vld [vmem:[#allocation10 + $0x132c] ss:$16 sps:$4 sm:$0xff]  }
 0x73a   :  { %13860 = vmatprep.subr.bf16.mxu0 %v21824_v48  ;;  %14858 = vmatmul.mubr.bf16.gmra.mrb[140].mxu1 %v7428_v62  ;;  %v7455_v62 = vld [vmem:[#allocation3 + $0x160] sm:$0xfc]  ;;  %v7464_v48 = vld [vmem:[#allocation3 + $0x1a8] sm:$0x3] }
 0x73b   :  { %14881 = vmatpush1.bf16.msra.mxu1 %v21819_v7  ;;  %14900 = vmatprep.mubr.bf16.mxu1 %v7623_v41  ;;  %v7461_v41 = vld [vmem:[#allocation3 + $0x190] sm:$0xfc]  ;;  %v7530_v7 = vsel %vm7080_vm8, %v7528_v11, %v7529_v38  ;;  %v7564_v11 = vrot.slane %v7454_v6, 2  ;;  %v21941_v6 = vld [vmem:[#allocation10 + $0x134c] ss:$16 sps:$4 sm:$0xff]  }
 0x73c   :  { %14882 = vmatprep.subr.bf16.mxu1 %v21827_v44  ;;  %v21881_v44 = vld [vmem:[#allocation10 + $0x120c] ss:$16 sps:$4 sm:$0xff]  }
 0x73d   :  { %13861 = vmatpush1.bf16.msra.mxu0 %v21822_v32  ;;  %v7442_v32 = vld [vmem:[#allocation3 + $0x98] sm:$0xfc] }
 0x73e   :  { %13862 = vmatprep.subr.bf16.mxu0 %v21830_v39  ;;  %v7445_v39 = vld [vmem:[#allocation3 + $0xb0] sm:$0x3] }
 0x73f   :  { %14883 = vmatpush1.bf16.msra.mxu1 %v21825_v56  ;;  %v7622_v56 = vpack.c.bf16 %v7539_v34, %v7530_v7  ;;  %v21908_v7 = vld [vmem:[#allocation10 + $0x12a4] ss:$16 sps:$4 sm:$0xff]  }
 0x740   :  { %14884 = vmatprep.subr.bf16.mxu1 %v21833_v46  ;;  %v21876_v46 = vld [vmem:[#allocation10 + $0x1200] ss:$16 sps:$4 sm:$0xff]  }
 0x741   :  { %13863 = vmatpush1.bf16.msra.mxu0 %v21828_v26  ;;  %v7626_v26 = vpack.c.bf16 %v7560_v28, %v7551_v52  ;;  %v21905_v52 = vld [vmem:[#allocation10 + $0x128c] ss:$16 sps:$4 sm:$0xff]  }
 0x742   :  { %13864 = vmatprep.subr.bf16.mxu0 %v21836_v27  ;;  %v7451_v27 = vld [vmem:[#allocation3 + $0xe0] sm:$0x3]  ;;  %v7472_v28 = vld [vmem:[#allocation3 + $0x1e8] sm:$0xfc] }
 0x743   :  { %14885 = vmatpush1.bf16.msra.mxu1 %v21831_v42  ;;  %v7555_v42 = vrot.slane %v7448_v61, 2 }
 0x744   :  { %14886 = vmatprep.subr.bf16.mxu1 %v21839_v0  ;;  %v21884_v0 = vld [vmem:[#allocation10 + $0x1224] ss:$16 sps:$4 sm:$0xff]  }
 0x745   :  { %13865 = vmatpush1.bf16.msra.mxu0 %v21834_v57  ;;  %v7567_v57 = vrot.slane %v7455_v62, 2 }
 0x746   :  { %13866 = vmatprep.subr.bf16.mxu0 %v21842_v23  ;;  %v7568_v23 = vrot.slane %v7458_v51, 2  ;;  %v21900_v51 = vld [vmem:[#allocation10 + $0x1280] ss:$16 sps:$4 sm:$0xff]  }
 0x747   :  { %14887 = vmatpush1.bf16.msra.mxu1 %v21837_v60  ;;  %v7576_v60 = vrot.slane %v7461_v41, 2 }
 0x748   :  { %14888 = vmatprep.subr.bf16.mxu1 %v21845_v13  ;;  %v7577_v13 = vrot.slane %v7464_v48, 2 }
 0x749   :  { %13867 = vmatpush1.bf16.msra.mxu0 %v21840_v36  ;;  %v21879_v36 = vld [vmem:[#allocation10 + $0x1208] ss:$16 sps:$4 sm:$0xff]  }
 0x74a   :  { %13868 = vmatprep.subr.bf16.mxu0 %v21848_v3  ;;  %v21887_v3 = vld [vmem:[#allocation10 + $0x122c] ss:$16 sps:$4 sm:$0xff]  }
 0x74b   :  { %14889 = vmatpush1.bf16.msra.mxu1 %v21843_v53  ;;  %v7546_v53 = vrot.slane %v7442_v32, 2  ;;  %v7475_v32 = vld [vmem:[#allocation3 + $0x200] sm:$0x3] }
 0x74c   :  { %14890 = vmatprep.subr.bf16.mxu1 %v21851_v12  ;;  %v7556_v12 = vrot.slane %v7451_v27, 2  ;;  %v21906_v27 = vld [vmem:[#allocation10 + $0x12a0] ss:$16 sps:$4 sm:$0xff]  }
 0x74d   :  { %13869 = vmatpush1.bf16.msra.mxu0 %v21846_v18  ;;  %v21882_v18 = vld [vmem:[#allocation10 + $0x1220] ss:$16 sps:$4 sm:$0xff]  }
 0x74e   :  { %13870 = vmatprep.subr.bf16.mxu0 %v21854_v31  ;;  %v7547_v31 = vrot.slane %v7445_v39, 2  ;;  %v21903_v39 = vld [vmem:[#allocation10 + $0x1288] ss:$16 sps:$4 sm:$0xff]  }
 0x74f   :  { %14891 = vmatpush1.bf16.msra.mxu1 %v21849_v21  ;;  %v21885_v21 = vld [vmem:[#allocation10 + $0x1228] ss:$16 sps:$4 sm:$0xff]  }
 0x750   :  { %14892 = vmatprep.subr.bf16.mxu1 %v21857_v17  ;;  %v7557_v17 = vsel %vm7080_vm8, %v7555_v42, %v7556_v12  ;;  %v21912_v12 = vld [vmem:[#allocation10 + $0x12c0] ss:$16 sps:$4 sm:$0xff]  }
 0x751   :  { %13871 = vmatpush1.bf16.msra.mxu0 %v21852_v45  ;;  %v21890_v45 = vld [vmem:[#allocation10 + $0x1244] ss:$16 sps:$4 sm:$0xff]  }
 0x752   :  { %13872 = vmatprep.subr.bf16.mxu0 %v21860_v16  ;;  %v7569_v16 = vsel %vm7080_vm8, %v7567_v57, %v7568_v23  ;;  %v21914_v57 = vld [vmem:[#allocation10 + $0x12c4] ss:$16 sps:$4 sm:$0xff]   ;;  %v21909_v23 = vld [vmem:[#allocation10 + $0x12a8] ss:$16 sps:$4 sm:$0xff]  }
 0x753   :  { %14893 = vmatpush1.bf16.msra.mxu1 %v21855_v49  ;;  %v7578_v49 = vsel %vm7080_vm8, %v7576_v60, %v7577_v13 }
 0x754   :  { %14894 = vmatprep.subr.bf16.mxu1 %v21863_v55  ;;  %v7467_v55 = vld [vmem:[#allocation3 + $0x1c0] sm:$0xfc] }
 0x755   :  { %13873 = vmatpush1.bf16.msra.mxu0 %v21858_v22  ;;  %v7470_v22 = vld [vmem:[#allocation3 + $0x1d8] sm:$0x3]  ;;  %v7585_v30 = vrot.slane %v7467_v55, 2 }
 0x756   :  { %13874 = vmatprep.subr.bf16.mxu0 %v21866_v35  ;;  %v7548_v35 = vsel %vm7080_vm8, %v7546_v53, %v7547_v31  ;;  %v7586_v29 = vrot.slane %v7470_v22, 2  ;;  %v7635_v31 = vld [vmem:[#allocation3 + $0x68] sm:$0xff] }
 0x757   :  { %14895 = vmatpush1.bf16.msra.mxu1 %v21861_v33  ;;  %v7476_v33 = vld [vmem:[#allocation3 + $0x208] sm:$0x3]  ;;  %v7625_v20 = vpack.c.bf16 %v7557_v17, %v7548_v35  ;;  %v21915_v17 = vld [vmem:[#allocation10 + $0x12c8] ss:$16 sps:$4 sm:$0xff]  }
 0x758   :  { %14896 = vmatprep.subr.bf16.mxu1 %v21869_v14  ;;  %v7629_v14 = vpack.c.bf16 %v7578_v49, %v7569_v16  ;;  %v7595_v4 = vrot.slane %v7476_v33, 2  ;;  %v7587_v38 = vsel %vm7080_vm8, %v7585_v30, %v7586_v29  ;;  %v21923_v16 = vld [vmem:[#allocation10 + $0x12ec] ss:$16 sps:$4 sm:$0xff]   ;;  %v21918_v49 = vld [vmem:[#allocation10 + $0x12e0] ss:$16 sps:$4 sm:$0xff]  }
 0x759   :  { %13875 = vmatpush1.bf16.msra.mxu0 %v21864_v8  ;;  %v21896_v8 = vld [vmem:[#allocation10 + $0x1264] ss:$16 sps:$4 sm:$0xff]   ;;  %v21921_v22 = vld [vmem:[#allocation10 + $0x12e8] ss:$16 sps:$4 sm:$0xff]   ;;  %v21924_v33 = vld [vmem:[#allocation10 + $0x1300] ss:$16 sps:$4 sm:$0xff]  }
 0x75a   :  { %13876 = vmatprep.subr.bf16.mxu0 %v21872_v47  ;;  %v7594_v47 = vrot.slane %v7473_v37, 2  ;;  %v21926_v55 = vld [vmem:[#allocation10 + $0x1304] ss:$16 sps:$4 sm:$0xff]   ;;  %v21929_v37 = vld [vmem:[#allocation10 + $0x130c] ss:$16 sps:$4 sm:$0xff]  }
 0x75b   :  { %14897 = vmatpush1.bf16.msra.mxu1 %v21867_v63  ;;  %v7457_v63 = vld [vmem:[#allocation3 + $0x170] sm:$0x3]  ;;  %v21932_v35 = vld [vmem:[#allocation10 + $0x1324] ss:$16 sps:$4 sm:$0xff]   ;;  %v21939_v30 = vld [vmem:[#allocation10 + $0x1348] ss:$16 sps:$4 sm:$0xff]  }
 0x75c   :  { %14898 = vmatprep.subr.bf16.mxu1 %v21875_v54  ;;  %v21894_v54 = vld [vmem:[#allocation10 + $0x1260] ss:$16 sps:$4 sm:$0xff]   ;;  %v7596_v61 = vsel %vm7080_vm8, %v7594_v47, %v7595_v4  ;;  %v7565_v34 = vrot.slane %v7457_v63, 2  ;;  %v21947_v29 = vld [vmem:[#allocation10 + $0x136c] ss:$16 sps:$4 sm:$0xff]  }
 0x75d   :  { %13877 = vmatpush1.bf16.msra.mxu0 %v21870_v50  ;;  %v21902_v50 = vld [vmem:[#allocation10 + $0x1284] ss:$16 sps:$4 sm:$0xff]   ;;  %v7632_v41 = vpack.c.bf16 %v7596_v61, %v7587_v38  ;;  %v21942_v47 = vld [vmem:[#allocation10 + $0x1360] ss:$16 sps:$4 sm:$0xff]   ;;  %v21957_v38 = vld [vmem:[#allocation10 + $0x13a8] ss:$16 sps:$4 sm:$0xff]  }
 0x75e   :  { %13919 = vmatprep.subr.bf16.mxu0 %v21878_v40  ;;  %v7575_v40 = vsel %vm7080_vm8, %v7573_v58, %v7574_v43  ;;  %v7566_v62 = vsel %vm7080_vm8, %v7564_v11, %v7565_v34  ;;  %v21950_v4 = vld [vmem:[#allocation10 + $0x1384] ss:$16 sps:$4 sm:$0xff]   ;;  %v21953_v58 = vld [vmem:[#allocation10 + $0x138c] ss:$16 sps:$4 sm:$0xff]   ;;  %v21954_v43 = vld [vmem:[#allocation10 + $0x13a0] ss:$16 sps:$4 sm:$0xff]  }
 0x75f   :  { %14899 = vmatpush1.bf16.msra.mxu1 %v21873_v59  ;;  %v21897_v59 = vld [vmem:[#allocation10 + $0x1268] ss:$16 sps:$4 sm:$0xff]   ;;  %v7628_v48 = vpack.c.bf16 %v7575_v40, %v7566_v62  ;;  %v21956_v63 = vld [vmem:[#allocation10 + $0x13a4] ss:$16 sps:$4 sm:$0xff]   ;;  %v21959_v11 = vld [vmem:[#allocation10 + $0x13ac] ss:$16 sps:$4 sm:$0xff]  }
 0x760   :  { %13879 = vmatmul.mubr.bf16.vlgmr.msra.gmra.mrb[64].mxu0 %v7622_v56  ;;  %14941 = vmatprep.subr.bf16.mxu1 %v21881_v44  ;;  %v7466_v44 = vld [vmem:[#allocation3 + $0x1b8] sm:$0xfc]  ;;  %v21968_v34 = vld [vmem:[#allocation10 + $0x13e4] ss:$16 sps:$4 sm:$0xff]  }
 0x761   :  { %13920 = vmatpush1.bf16.msra.mxu0 %v21876_v46  ;;  %13888 = vmatprep.mubr.bf16.mxu0 %v7626_v26  ;;  %v21911_v46 = vld [vmem:[#allocation10 + $0x12ac] ss:$16 sps:$4 sm:$0xff]   ;;  %v7582_v42 = vrot.slane %v7466_v44, 2  ;;  %v21963_v40 = vld [vmem:[#allocation10 + $0x13c8] ss:$16 sps:$4 sm:$0xff]  }
 0x762   :  { %14901 = vmatmul.mubr.bf16.vlgmr.msra.gmra.mrb[128].mxu1 %v7622_v56  ;;  %13921 = vmatprep.subr.bf16.mxu0 %v21884_v0  ;;  %v7591_v56 = vrot.slane %v7472_v28, 2  ;;  %v7592_v0 = vrot.slane %v7475_v32, 2  ;;  %v21965_v61 = vld [vmem:[#allocation10 + $0x13cc] ss:$16 sps:$4 sm:$0xff]   ;;  %v21966_v28 = vld [vmem:[#allocation10 + $0x13e0] ss:$16 sps:$4 sm:$0xff]  }
 0x763   :  { %14942 = vmatpush1.bf16.msra.mxu1 %v21879_v36  ;;  %14910 = vmatprep.mubr.bf16.mxu1 %v7626_v26  ;;  %v7469_v26 = vld [vmem:[#allocation3 + $0x1d0] sm:$0x3]  ;;  %v21974_v62 = vld [vmem:[#allocation10 + $0x1404] ss:$16 sps:$4 sm:$0xff]   ;;  %v21972_v32 = vld [vmem:[#allocation10 + $0x1400] ss:$16 sps:$4 sm:$0xff]  }
 0x764   :  { %14943 = vmatprep.subr.bf16.mxu1 %v21887_v3  ;;  %v7583_v60 = vrot.slane %v7469_v26, 2  ;;  %v7593_v13 = vsel %vm7080_vm8, %v7591_v56, %v7592_v0  ;;  %v21917_v36 = vld [vmem:[#allocation10 + $0x12cc] ss:$16 sps:$4 sm:$0xff]   ;;  %v21980_v56 = vld [vmem:[#allocation10 + $0x1424] ss:$16 sps:$4 sm:$0xff]  }
 0x765   :  { %13922 = vmatpush1.bf16.msra.mxu0 %v21882_v18  ;;  %v7638_v3 = vld [vmem:[#allocation3 + $0x98] sm:$0xff]  ;;  %v7634_v44 = vld [vmem:[#allocation3 + $0x60] sm:$0xff] }
 0x766   :  { %13923 = vmatprep.subr.bf16.mxu0 %v21890_v45  ;;  %v7584_v53 = vsel %vm7080_vm8, %v7582_v42, %v7583_v60  ;;  %v7659_v45 = vpack.c.bf16 %v7638_v3, %v7635_v31  ;;  %v24938_v26 = vld [vmem:[#allocation2] sm:$0xff]  ;;  %v21987_v31 = vld [vmem:[#allocation10 + $0x1448] ss:$16 sps:$4 sm:$0xff]  }
 0x767   :  { %14944 = vmatpush1.bf16.msra.mxu1 %v21885_v21  ;;  %v7631_v18 = vpack.c.bf16 %v7593_v13, %v7584_v53  ;;  %v21920_v21 = vld [vmem:[#allocation10 + $0x12e4] ss:$16 sps:$4 sm:$0xff]   ;;  %v21983_v42 = vld [vmem:[#allocation10 + $0x142c] ss:$16 sps:$4 sm:$0xff]   ;;  %v21978_v0 = vld [vmem:[#allocation10 + $0x1420] ss:$16 sps:$4 sm:$0xff]  }
 0x768   :  { %13889 = vmatmul.mubr.bf16.gmra.mrb[68].mxu0 %v7625_v20  ;;  %14945 = vmatprep.subr.bf16.mxu1 %v21893_v2  ;;  %v21927_v2 = vld [vmem:[#allocation10 + $0x1308] ss:$16 sps:$4 sm:$0xff]   ;;  %v7640_v60 = vld [vmem:[#allocation3 + $0xc0] sm:$0xff] }
 0x769   :  { %13924 = vmatpush1.bf16.msra.mxu0 %v21888_v1  ;;  %13898 = vmatprep.mubr.bf16.mxu0 %v7629_v14  ;;  %v21938_v1 = vld [vmem:[#allocation10 + $0x1344] ss:$16 sps:$4 sm:$0xff]   ;;  %v21989_v13 = vld [vmem:[#allocation10 + $0x144c] ss:$16 sps:$4 sm:$0xff]   ;;  %v21984_v3 = vld [vmem:[#allocation10 + $0x1440] ss:$16 sps:$4 sm:$0xff]   ;;  %v7661_v53 = vpack.c.bf16 %v24938_v26, %v7640_v60 }
 0x76a   :  { %14911 = vmatmul.mubr.bf16.gmra.mrb[132].mxu1 %v7625_v20  ;;  %13925 = vmatprep.subr.bf16.mxu0 %v21896_v8  ;;  %v21930_v20 = vld [vmem:[#allocation10 + $0x1320] ss:$16 sps:$4 sm:$0xff]   ;;  %v21944_v8 = vld [vmem:[#allocation10 + $0x1364] ss:$16 sps:$4 sm:$0xff]  }
 0x76b   :  { %14946 = vmatpush1.bf16.msra.mxu1 %v21891_v5  ;;  %14920 = vmatprep.mubr.bf16.mxu1 %v7629_v14  ;;  %v21933_v14 = vld [vmem:[#allocation10 + $0x1328] ss:$16 sps:$4 sm:$0xff]   ;;  %v22038_v60 = vld [vmem:[#allocation10 + $0x1560] ss:$16 sps:$4 sm:$0xff]  }
 0x76c   :  { %14947 = vmatprep.subr.bf16.mxu1 %v21899_v9  ;;  %v21945_v5 = vld [vmem:[#allocation10 + $0x1368] ss:$16 sps:$4 sm:$0xff]   ;;  %v21948_v9 = vld [vmem:[#allocation10 + $0x1380] ss:$16 sps:$4 sm:$0xff]  }
 0x76d   :  { %13926 = vmatpush1.bf16.msra.mxu0 %v21894_v54  ;;  %v21951_v54 = vld [vmem:[#allocation10 + $0x1388] ss:$16 sps:$4 sm:$0xff]  }
 0x76e   :  { %13927 = vmatprep.subr.bf16.mxu0 %v21902_v50  ;;  %v21962_v50 = vld [vmem:[#allocation10 + $0x13c4] ss:$16 sps:$4 sm:$0xff]  }
 0x76f   :  { %14948 = vmatpush1.bf16.msra.mxu1 %v21897_v59  ;;  %v21960_v59 = vld [vmem:[#allocation10 + $0x13c0] ss:$16 sps:$4 sm:$0xff]  }
 0x770   :  { %13899 = vmatmul.mubr.bf16.gmra.mrb[72].mxu0 %v7628_v48  ;;  %14949 = vmatprep.subr.bf16.mxu1 %v21905_v52  ;;  %v21971_v52 = vld [vmem:[#allocation10 + $0x13ec] ss:$16 sps:$4 sm:$0xff]  }
 0x771   :  { %13928 = vmatpush1.bf16.msra.mxu0 %v21900_v51  ;;  %13908 = vmatprep.mubr.bf16.mxu0 %v7632_v41  ;;  %v21969_v51 = vld [vmem:[#allocation10 + $0x13e8] ss:$16 sps:$4 sm:$0xff]  }
 0x772   :  { %14921 = vmatmul.mubr.bf16.gmra.mrb[136].mxu1 %v7628_v48  ;;  %13929 = vmatprep.subr.bf16.mxu0 %v21908_v7  ;;  %v21977_v48 = vld [vmem:[#allocation10 + $0x140c] ss:$16 sps:$4 sm:$0xff]  }
 0x773   :  { %14950 = vmatpush1.bf16.msra.mxu1 %v21903_v39  ;;  %14930 = vmatprep.mubr.bf16.mxu1 %v7632_v41  ;;  %v7637_v41 = vld [vmem:[#allocation3 + $0x90] sm:$0xff]  ;;  %v7641_v7 = vld [vmem:[#allocation3 + $0xc8] sm:$0xff] }
 0x774   :  { %14951 = vmatprep.subr.bf16.mxu1 %v21911_v46  ;;  %v7658_v39 = vpack.c.bf16 %v7637_v41, %v7634_v44  ;;  %v21975_v46 = vld [vmem:[#allocation10 + $0x1408] ss:$16 sps:$4 sm:$0xff]   ;;  %v22025_v41 = vld [vmem:[#allocation10 + $0x150c] ss:$16 sps:$4 sm:$0xff]  }
 0x775   :  { %13930 = vmatpush1.bf16.msra.mxu0 %v21906_v27  ;;  %v7662_v27 = vpack.c.bf16 %v24938_v26, %v7641_v7  ;;  %v22028_v7 = vld [vmem:[#allocation10 + $0x1524] ss:$16 sps:$4 sm:$0xff]   ;;  %v22023_v44 = vld [vmem:[#allocation10 + $0x1508] ss:$16 sps:$4 sm:$0xff]  }
 0x776   :  { %13931 = vmatprep.subr.bf16.mxu0 %v21914_v57  ;;  %v21986_v57 = vld [vmem:[#allocation10 + $0x1444] ss:$16 sps:$4 sm:$0xff]  }
 0x777   :  { %14952 = vmatpush1.bf16.msra.mxu1 %v21909_v23  ;;  %v21981_v23 = vld [vmem:[#allocation10 + $0x1428] ss:$16 sps:$4 sm:$0xff]  }
 0x778   :  { %13909 = vmatmul.mubr.bf16.gmra.mrb[76].mxu0 %v7631_v18  ;;  %14953 = vmatprep.subr.bf16.mxu1 %v21917_v36  ;;  %v7650_v36 = vld [vmem:[#allocation3 + $0x1b8] sm:$0xff] }
 0x779   :  { %13932 = vmatpush1.bf16.msra.mxu0 %v21912_v12  ;;  %13951 = vmatprep.mubr.bf16.mxu0 %v7659_v45  ;;  %v7647_v12 = vld [vmem:[#allocation3 + $0x188] sm:$0xff] }
 0x77a   :  { %14931 = vmatmul.mubr.bf16.gmra.mrb[140].mxu1 %v7631_v18  ;;  %13933 = vmatprep.subr.bf16.mxu0 %v21920_v21  ;;  %v21992_v18 = vld [vmem:[#allocation10 + $0x1464] ss:$16 sps:$4 sm:$0xff]   ;;  %v7665_v21 = vpack.c.bf16 %v7650_v36, %v7647_v12  ;;  %v22041_v36 = vld [vmem:[#allocation10 + $0x1568] ss:$16 sps:$4 sm:$0xff]  }
 0x77b   :  { %14954 = vmatpush1.bf16.msra.mxu1 %v21915_v17  ;;  %14973 = vmatprep.mubr.bf16.mxu1 %v7659_v45  ;;  %v21995_v17 = vld [vmem:[#allocation10 + $0x146c] ss:$16 sps:$4 sm:$0xff]   ;;  %v21990_v45 = vld [vmem:[#allocation10 + $0x1460] ss:$16 sps:$4 sm:$0xff]   ;;  %v22052_v12 = vld [vmem:[#allocation10 + $0x15a4] ss:$16 sps:$4 sm:$0xff]  }
 0x77c   :  { %14955 = vmatprep.subr.bf16.mxu1 %v21923_v16  ;;  %v21998_v16 = vld [vmem:[#allocation10 + $0x1484] ss:$16 sps:$4 sm:$0xff]  }
 0x77d   :  { %13934 = vmatpush1.bf16.msra.mxu0 %v21918_v49  ;;  %v21993_v49 = vld [vmem:[#allocation10 + $0x1468] ss:$16 sps:$4 sm:$0xff]  }
 0x77e   :  { %13935 = vmatprep.subr.bf16.mxu0 %v21926_v55  ;;  %v7649_v55 = vld [vmem:[#allocation3 + $0x1b0] sm:$0xff] }
 0x77f   :  { %14956 = vmatpush1.bf16.msra.mxu1 %v21921_v22  ;;  %v22001_v22 = vld [vmem:[#allocation10 + $0x148c] ss:$16 sps:$4 sm:$0xff]  }
 0x780   :  { %14957 = vmatprep.subr.bf16.mxu1 %v21929_v37  ;;  %v7653_v37 = vld [vmem:[#allocation3 + $0x1e8] sm:$0xff] }
 0x781   :  { %13936 = vmatpush1.bf16.msra.mxu0 %v21924_v33  ;;  %v7646_v33 = vld [vmem:[#allocation3 + $0x180] sm:$0xff] }
 0x782   :  { %13937 = vmatprep.subr.bf16.mxu0 %v21932_v35  ;;  %v21996_v35 = vld [vmem:[#allocation10 + $0x1480] ss:$16 sps:$4 sm:$0xff]  }
 0x783   :  { %14958 = vmatpush1.bf16.msra.mxu1 %v21927_v2  ;;  %v7676_v2 = vld [vmem:[#allocation3 + $0x90] sm:$0xfe] }
 0x784   :  { %14959 = vmatprep.subr.bf16.mxu1 %v21935_v25  ;;  %v7664_v25 = vpack.c.bf16 %v7649_v55, %v7646_v33  ;;  %v22056_v55 = vld [vmem:[#allocation10 + $0x15c0] ss:$16 sps:$4 sm:$0xff]   ;;  %v22064_v33 = vld [vmem:[#allocation10 + $0x15e4] ss:$16 sps:$4 sm:$0xff]  }
 0x785   :  { %13938 = vmatpush1.bf16.msra.mxu0 %v21930_v20  ;;  %v22004_v20 = vld [vmem:[#allocation10 + $0x14a4] ss:$16 sps:$4 sm:$0xff]  }
 0x786   :  { %13939 = vmatprep.subr.bf16.mxu0 %v21938_v1  ;;  %v21999_v1 = vld [vmem:[#allocation10 + $0x1488] ss:$16 sps:$4 sm:$0xff]  }
 0x787   :  { %14960 = vmatpush1.bf16.msra.mxu1 %v21933_v14  ;;  %v7668_v14 = vpack.c.bf16 %v24938_v26, %v7653_v37  ;;  %v7691_v37 = vld [vmem:[#allocation3 + $0x108] sm:$0x1] }
 0x788   :  { %14961 = vmatprep.subr.bf16.mxu1 %v21941_v6  ;;  %v7670_v6 = vld [vmem:[#allocation3 + $0x60] sm:$0xfe] }
 0x789   :  { %13940 = vmatpush1.bf16.msra.mxu0 %v21936_v19  ;;  %v7679_v19 = vld [vmem:[#allocation3 + $0xa8] sm:$0x1] }
 0x78a   :  { %13941 = vmatprep.subr.bf16.mxu0 %v21944_v8  ;;  %v22007_v8 = vld [vmem:[#allocation10 + $0x14ac] ss:$16 sps:$4 sm:$0xff]  }
 0x78b   :  { %14962 = vmatpush1.bf16.msra.mxu1 %v21939_v30  ;;  %v7775_v30 = vrot.slane %v7676_v2, 1  ;;  %v7685_v2 = vld [vmem:[#allocation3 + $0xd8] sm:$0x1] }
 0x78c   :  { %14963 = vmatprep.subr.bf16.mxu1 %v21947_v29  ;;  %v22002_v29 = vld [vmem:[#allocation10 + $0x14a0] ss:$16 sps:$4 sm:$0xff]  }
 0x78d   :  { %13942 = vmatpush1.bf16.msra.mxu0 %v21942_v47  ;;  %v7673_v47 = vld [vmem:[#allocation3 + $0x78] sm:$0x1] }
 0x78e   :  { %13943 = vmatprep.subr.bf16.mxu0 %v21950_v4  ;;  %v22010_v4 = vld [vmem:[#allocation10 + $0x14c4] ss:$16 sps:$4 sm:$0xff]  }
 0x78f   :  { %14964 = vmatpush1.bf16.msra.mxu1 %v21945_v5  ;;  %v7766_v5 = vrot.slane %v7670_v6, 1  ;;  %v22062_v6 = vld [vmem:[#allocation10 + $0x15e0] ss:$16 sps:$4 sm:$0xff]  }
 0x790   :  { %14965 = vmatprep.subr.bf16.mxu1 %v21953_v58  ;;  %v7776_v58 = vrot.slane %v7679_v19, 1  ;;  %v22070_v19 = vld [vmem:[#allocation10 + $0x1604] ss:$16 sps:$4 sm:$0xff]  }
 0x791   :  { %13944 = vmatpush1.bf16.msra.mxu0 %v21948_v9  ;;  %v22005_v9 = vld [vmem:[#allocation10 + $0x14a8] ss:$16 sps:$4 sm:$0xff]  }
 0x792   :  { %13945 = vmatprep.subr.bf16.mxu0 %v21956_v63  ;;  %v7652_v63 = vld [vmem:[#allocation3 + $0x1e0] sm:$0xff] }
 0x793   :  { %14966 = vmatpush1.bf16.msra.mxu1 %v21951_v54  ;;  %v22013_v54 = vld [vmem:[#allocation10 + $0x14cc] ss:$16 sps:$4 sm:$0xff]  }
 0x794   :  { %14967 = vmatprep.subr.bf16.mxu1 %v21959_v11  ;;  %v7767_v11 = vrot.slane %v7673_v47, 1  ;;  %v22073_v47 = vld [vmem:[#allocation10 + $0x160c] ss:$16 sps:$4 sm:$0xff]  }
 0x795   :  { %13946 = vmatpush1.bf16.msra.mxu0 %v21954_v43  ;;  %v7777_v43 = vsel %vm6875_vm7, %v7775_v30, %v7776_v58  ;;  %v22065_v30 = vld [vmem:[#allocation10 + $0x15e8] ss:$16 sps:$4 sm:$0xff]   ;;  %v22068_v58 = vld [vmem:[#allocation10 + $0x1600] ss:$16 sps:$4 sm:$0xff]  }
 0x796   :  { %13947 = vmatprep.subr.bf16.mxu0 %v21962_v50  ;;  %v22008_v50 = vld [vmem:[#allocation10 + $0x14c0] ss:$16 sps:$4 sm:$0xff]  }
 0x797   :  { %14968 = vmatpush1.bf16.msra.mxu1 %v21957_v38  ;;  %v7667_v38 = vpack.c.bf16 %v24938_v26, %v7652_v63  ;;  %v22076_v63 = vld [vmem:[#allocation10 + $0x1624] ss:$16 sps:$4 sm:$0xff]  }
 0x798   :  { %14969 = vmatprep.subr.bf16.mxu1 %v21965_v61  ;;  %v7768_v61 = vsel %vm6875_vm7, %v7766_v5, %v7767_v11 }
 0x799   :  { %13948 = vmatpush1.bf16.msra.mxu0 %v21960_v59  ;;  %v22016_v59 = vld [vmem:[#allocation10 + $0x14e4] ss:$16 sps:$4 sm:$0xff]  }
 0x79a   :  { %13949 = vmatprep.subr.bf16.mxu0 %v21968_v34  ;;  %v22011_v34 = vld [vmem:[#allocation10 + $0x14c8] ss:$16 sps:$4 sm:$0xff]  }
 0x79b   :  { %14970 = vmatpush1.bf16.msra.mxu1 %v21963_v40  ;;  %v7862_v40 = vpack.c.bf16 %v7777_v43, %v7768_v61  ;;  %v7694_v43 = vld [vmem:[#allocation3 + $0x180] sm:$0xfe] }
 0x79c   :  { %14971 = vmatprep.subr.bf16.mxu1 %v21971_v52  ;;  %v22019_v52 = vld [vmem:[#allocation10 + $0x14ec] ss:$16 sps:$4 sm:$0xff]   ;;  %v22074_v61 = vld [vmem:[#allocation10 + $0x1620] ss:$16 sps:$4 sm:$0xff]  }
 0x79d   :  { %13950 = vmatpush1.bf16.msra.mxu0 %v21966_v28  ;;  %v22014_v28 = vld [vmem:[#allocation10 + $0x14e0] ss:$16 sps:$4 sm:$0xff]  }
 0x79e   :  { %13992 = vmatprep.subr.bf16.mxu0 %v21974_v62  ;;  %v22022_v62 = vld [vmem:[#allocation10 + $0x1504] ss:$16 sps:$4 sm:$0xff]  }
 0x79f   :  { %14972 = vmatpush1.bf16.msra.mxu1 %v21969_v51  ;;  %v22017_v51 = vld [vmem:[#allocation10 + $0x14e8] ss:$16 sps:$4 sm:$0xff]  }
 0x7a0   :  { %13952 = vmatmul.mubr.bf16.vlgmr.msra.gmra.mrb[64].mxu0 %v7658_v39  ;;  %15014 = vmatprep.subr.bf16.mxu1 %v21977_v48  ;;  %v22020_v48 = vld [vmem:[#allocation10 + $0x1500] ss:$16 sps:$4 sm:$0xff]  }
 0x7a1   :  { %13961 = vmatprep.mubr.bf16.mxu0 %v7662_v27  ;;  %13993 = vmatpush1.bf16.msra.mxu0 %v21972_v32  ;;  %v22031_v32 = vld [vmem:[#allocation10 + $0x152c] ss:$16 sps:$4 sm:$0xff]  }
 0x7a2   :  { %14974 = vmatmul.mubr.bf16.vlgmr.msra.gmra.mrb[128].mxu1 %v7658_v39  ;;  %13994 = vmatprep.subr.bf16.mxu0 %v21980_v56  ;;  %v22026_v39 = vld [vmem:[#allocation10 + $0x1520] ss:$16 sps:$4 sm:$0xff]   ;;  %v22034_v56 = vld [vmem:[#allocation10 + $0x1544] ss:$16 sps:$4 sm:$0xff]  }
 0x7a3   :  { %14983 = vmatprep.mubr.bf16.mxu1 %v7662_v27  ;;  %15015 = vmatpush1.bf16.msra.mxu1 %v21975_v46  ;;  %v22029_v46 = vld [vmem:[#allocation10 + $0x1528] ss:$16 sps:$4 sm:$0xff]   ;;  %v22037_v27 = vld [vmem:[#allocation10 + $0x154c] ss:$16 sps:$4 sm:$0xff]  }
 0x7a4   :  { %15016 = vmatprep.subr.bf16.mxu1 %v21983_v42  ;;  %v22032_v42 = vld [vmem:[#allocation10 + $0x1540] ss:$16 sps:$4 sm:$0xff]  }
 0x7a5   :  { %13995 = vmatpush1.bf16.msra.mxu0 %v21978_v0  ;;  %v22040_v0 = vld [vmem:[#allocation10 + $0x1564] ss:$16 sps:$4 sm:$0xff]  }
 0x7a6   :  { %13996 = vmatprep.subr.bf16.mxu0 %v21986_v57  ;;  %v22035_v57 = vld [vmem:[#allocation10 + $0x1548] ss:$16 sps:$4 sm:$0xff]  }
 0x7a7   :  { %15017 = vmatpush1.bf16.msra.mxu1 %v21981_v23  ;;  %v22043_v23 = vld [vmem:[#allocation10 + $0x156c] ss:$16 sps:$4 sm:$0xff]  }
 0x7a8   :  { %13962 = vmatmul.mubr.bf16.gmra.mrb[68].mxu0 %v7661_v53  ;;  %15018 = vmatprep.subr.bf16.mxu1 %v21989_v13  ;;  %v22046_v13 = vld [vmem:[#allocation10 + $0x1584] ss:$16 sps:$4 sm:$0xff]  }
 0x7a9   :  { %13971 = vmatprep.mubr.bf16.mxu0 %v7665_v21  ;;  %13997 = vmatpush1.bf16.msra.mxu0 %v21984_v3  ;;  %v22049_v3 = vld [vmem:[#allocation10 + $0x158c] ss:$16 sps:$4 sm:$0xff]  }
 0x7aa   :  { %14984 = vmatmul.mubr.bf16.gmra.mrb[132].mxu1 %v7661_v53  ;;  %13998 = vmatprep.subr.bf16.mxu0 %v21992_v18  ;;  %v22044_v53 = vld [vmem:[#allocation10 + $0x1580] ss:$16 sps:$4 sm:$0xff]   ;;  %v22047_v18 = vld [vmem:[#allocation10 + $0x1588] ss:$16 sps:$4 sm:$0xff]  }
 0x7ab   :  { %14993 = vmatprep.mubr.bf16.mxu1 %v7665_v21  ;;  %15019 = vmatpush1.bf16.msra.mxu1 %v21987_v31  ;;  %v22055_v31 = vld [vmem:[#allocation10 + $0x15ac] ss:$16 sps:$4 sm:$0xff]   ;;  %v22050_v21 = vld [vmem:[#allocation10 + $0x15a0] ss:$16 sps:$4 sm:$0xff]  }
 0x7ac   :  { %15020 = vmatprep.subr.bf16.mxu1 %v21995_v17  ;;  %v22058_v17 = vld [vmem:[#allocation10 + $0x15c4] ss:$16 sps:$4 sm:$0xff]  }
 0x7ad   :  { %13999 = vmatpush1.bf16.msra.mxu0 %v21990_v45  ;;  %v22053_v45 = vld [vmem:[#allocation10 + $0x15a8] ss:$16 sps:$4 sm:$0xff]  }
 0x7ae   :  { %14000 = vmatprep.subr.bf16.mxu0 %v21998_v16  ;;  %v22061_v16 = vld [vmem:[#allocation10 + $0x15cc] ss:$16 sps:$4 sm:$0xff]  }
 0x7af   :  { %15021 = vmatpush1.bf16.msra.mxu1 %v21993_v49  ;;  %v7682_v49 = vld [vmem:[#allocation3 + $0xc0] sm:$0xfe] }
 0x7b0   :  { %13972 = vmatmul.mubr.bf16.gmra.mrb[72].mxu0 %v7664_v25  ;;  %15022 = vmatprep.subr.bf16.mxu1 %v22001_v22  ;;  %v7688_v22 = vld [vmem:[#allocation3 + $0xf0] sm:$0xfe] }
 0x7b1   :  { %13981 = vmatprep.mubr.bf16.mxu0 %v7668_v14  ;;  %14001 = vmatpush1.bf16.msra.mxu0 %v21996_v35  ;;  %v22059_v35 = vld [vmem:[#allocation10 + $0x15c8] ss:$16 sps:$4 sm:$0xff]  }
 0x7b2   :  { %14994 = vmatmul.mubr.bf16.gmra.mrb[136].mxu1 %v7664_v25  ;;  %14002 = vmatprep.subr.bf16.mxu0 %v22004_v20  ;;  %v22067_v25 = vld [vmem:[#allocation10 + $0x15ec] ss:$16 sps:$4 sm:$0xff]   ;;  %v7784_v20 = vrot.slane %v7682_v49, 1  ;;  %v22092_v49 = vld [vmem:[#allocation10 + $0x1680] ss:$16 sps:$4 sm:$0xff]  }
 0x7b3   :  { %15003 = vmatprep.mubr.bf16.mxu1 %v7668_v14  ;;  %15023 = vmatpush1.bf16.msra.mxu1 %v21999_v1  ;;  %v7793_v1 = vrot.slane %v7688_v22, 1  ;;  %v7794_v14 = vrot.slane %v7691_v37, 1 }
 0x7b4   :  { %15024 = vmatprep.subr.bf16.mxu1 %v22007_v8  ;;  %v7785_v8 = vrot.slane %v7685_v2, 1  ;;  %v22095_v2 = vld [vmem:[#allocation10 + $0x1688] ss:$16 sps:$4 sm:$0xff]  }
 0x7b5   :  { %14003 = vmatpush1.bf16.msra.mxu0 %v22002_v29  ;;  %v24948_v29 = vpack.c.bf16 %v24938_v26, %v24938_v26  ;;  %v7795_v5 = vsel %vm6875_vm7, %v7793_v1, %v7794_v14  ;;  %v22079_v26 = vld [vmem:[#allocation10 + $0x162c] ss:$16 sps:$4 sm:$0xff]   ;;  %v22098_v1 = vld [vmem:[#allocation10 + $0x16a0] ss:$16 sps:$4 sm:$0xff]   ;;  %v22106_v14 = vld [vmem:[#allocation10 + $0x16c4] ss:$16 sps:$4 sm:$0xff]  }
 0x7b6   :  { %14004 = vmatprep.subr.bf16.mxu0 %v22010_v4  ;;  %v7786_v4 = vsel %vm6875_vm7, %v7784_v20, %v7785_v8  ;;  %v22103_v20 = vld [vmem:[#allocation10 + $0x16ac] ss:$16 sps:$4 sm:$0xff]   ;;  %v22101_v8 = vld [vmem:[#allocation10 + $0x16a8] ss:$16 sps:$4 sm:$0xff]  }
 0x7b7   :  { %15025 = vmatpush1.bf16.msra.mxu1 %v22005_v9  ;;  %v7700_v9 = vld [vmem:[#allocation3 + $0x1b0] sm:$0xfe]  ;;  %v7865_v11 = vpack.c.bf16 %v7795_v5, %v7786_v4 }
 0x7b8   :  { %13982 = vmatmul.mubr.bf16.gmra.mrb[76].mxu0 %v7667_v38  ;;  %15026 = vmatprep.subr.bf16.mxu1 %v22013_v54  ;;  %v22071_v54 = vld [vmem:[#allocation10 + $0x1608] ss:$16 sps:$4 sm:$0xff]   ;;  %v22112_v5 = vld [vmem:[#allocation10 + $0x16e4] ss:$16 sps:$4 sm:$0xff]  }
 0x7b9   :  { %14005 = vmatpush1.bf16.msra.mxu0 %v22008_v50  ;;  %14024 = vmatprep.mubr.bf16.mxu0 %v7862_v40  ;;  %v7703_v50 = vld [vmem:[#allocation3 + $0x1c8] sm:$0x1] }
 0x7ba   :  { %15004 = vmatmul.mubr.bf16.gmra.mrb[140].mxu1 %v7667_v38  ;;  %14006 = vmatprep.subr.bf16.mxu0 %v22016_v59  ;;  %v7811_v38 = vrot.slane %v7700_v9, 1  ;;  %v7697_v59 = vld [vmem:[#allocation3 + $0x198] sm:$0x1]  ;;  %v22115_v9 = vld [vmem:[#allocation10 + $0x16ec] ss:$16 sps:$4 sm:$0xff]  }
 0x7bb   :  { %15027 = vmatpush1.bf16.msra.mxu1 %v22011_v34  ;;  %15046 = vmatprep.mubr.bf16.mxu1 %v7862_v40  ;;  %v22082_v34 = vld [vmem:[#allocation10 + $0x1644] ss:$16 sps:$4 sm:$0xff]   ;;  %v7802_v40 = vrot.slane %v7694_v43, 1  ;;  %v22121_v43 = vld [vmem:[#allocation10 + $0x170c] ss:$16 sps:$4 sm:$0xff]  }
 0x7bc   :  { %15028 = vmatprep.subr.bf16.mxu1 %v22019_v52  ;;  %v7812_v52 = vrot.slane %v7703_v50, 1  ;;  %v22116_v50 = vld [vmem:[#allocation10 + $0x1700] ss:$16 sps:$4 sm:$0xff]  }
 0x7bd   :  { %14007 = vmatpush1.bf16.msra.mxu0 %v22014_v28  ;;  %v22077_v28 = vld [vmem:[#allocation10 + $0x1628] ss:$16 sps:$4 sm:$0xff]  }
 0x7be   :  { %14008 = vmatprep.subr.bf16.mxu0 %v22022_v62  ;;  %v22085_v62 = vld [vmem:[#allocation10 + $0x164c] ss:$16 sps:$4 sm:$0xff]  }
 0x7bf   :  { %15029 = vmatpush1.bf16.msra.mxu1 %v22017_v51  ;;  %v7803_v51 = vrot.slane %v7697_v59, 1  ;;  %v22122_v59 = vld [vmem:[#allocation10 + $0x1720] ss:$16 sps:$4 sm:$0xff]  }
 0x7c0   :  { %15030 = vmatprep.subr.bf16.mxu1 %v22025_v41  ;;  %v7813_v41 = vsel %vm6875_vm7, %v7811_v38, %v7812_v52  ;;  %v22119_v38 = vld [vmem:[#allocation10 + $0x1708] ss:$16 sps:$4 sm:$0xff]   ;;  %v22128_v52 = vld [vmem:[#allocation10 + $0x1740] ss:$16 sps:$4 sm:$0xff]  }
 0x7c1   :  { %14009 = vmatpush1.bf16.msra.mxu0 %v22020_v48  ;;  %v7706_v48 = vld [vmem:[#allocation3 + $0x1e0] sm:$0xfe] }
 0x7c2   :  { %14010 = vmatprep.subr.bf16.mxu0 %v22028_v7  ;;  %v22080_v7 = vld [vmem:[#allocation10 + $0x1640] ss:$16 sps:$4 sm:$0xff]  }
 0x7c3   :  { %15031 = vmatpush1.bf16.msra.mxu1 %v22023_v44  ;;  %v7712_v44 = vld [vmem:[#allocation3 + $0x210] sm:$0xfe] }
 0x7c4   :  { %15032 = vmatprep.subr.bf16.mxu1 %v22031_v32  ;;  %v7715_v32 = vld [vmem:[#allocation3 + $0x228] sm:$0x1] }
 0x7c5   :  { %14011 = vmatpush1.bf16.msra.mxu0 %v22026_v39  ;;  %v7804_v39 = vsel %vm6875_vm7, %v7802_v40, %v7803_v51  ;;  %v22125_v40 = vld [vmem:[#allocation10 + $0x1728] ss:$16 sps:$4 sm:$0xff]   ;;  %v22139_v51 = vld [vmem:[#allocation10 + $0x176c] ss:$16 sps:$4 sm:$0xff]  }
 0x7c6   :  { %14012 = vmatprep.subr.bf16.mxu0 %v22034_v56  ;;  %v22088_v56 = vld [vmem:[#allocation10 + $0x1664] ss:$16 sps:$4 sm:$0xff]  }
 0x7c7   :  { %15033 = vmatpush1.bf16.msra.mxu1 %v22029_v46  ;;  %v7709_v46 = vld [vmem:[#allocation3 + $0x1f8] sm:$0x1] }
 0x7c8   :  { %15034 = vmatprep.subr.bf16.mxu1 %v22037_v27  ;;  %v22083_v27 = vld [vmem:[#allocation10 + $0x1648] ss:$16 sps:$4 sm:$0xff]  }
 0x7c9   :  { %14013 = vmatpush1.bf16.msra.mxu0 %v22032_v42  ;;  %v7868_v42 = vpack.c.bf16 %v7813_v41, %v7804_v39  ;;  %v22134_v41 = vld [vmem:[#allocation10 + $0x1760] ss:$16 sps:$4 sm:$0xff]   ;;  %v22148_v39 = vld [vmem:[#allocation10 + $0x17a4] ss:$16 sps:$4 sm:$0xff]  }
 0x7ca   :  { %14014 = vmatprep.subr.bf16.mxu0 %v22040_v0  ;;  %v22091_v0 = vld [vmem:[#allocation10 + $0x166c] ss:$16 sps:$4 sm:$0xff]  }
 0x7cb   :  { %15035 = vmatpush1.bf16.msra.mxu1 %v22035_v57  ;;  %v7820_v57 = vrot.slane %v7706_v48, 1  ;;  %v22142_v48 = vld [vmem:[#allocation10 + $0x1784] ss:$16 sps:$4 sm:$0xff]  }
 0x7cc   :  { %15036 = vmatprep.subr.bf16.mxu1 %v22043_v23  ;;  %v7829_v23 = vrot.slane %v7712_v44, 1  ;;  %v22145_v44 = vld [vmem:[#allocation10 + $0x178c] ss:$16 sps:$4 sm:$0xff]  }
 0x7cd   :  { %14015 = vmatpush1.bf16.msra.mxu0 %v22038_v60  ;;  %v7830_v60 = vrot.slane %v7715_v32, 1  ;;  %v22140_v32 = vld [vmem:[#allocation10 + $0x1780] ss:$16 sps:$4 sm:$0xff]  }
 0x7ce   :  { %14016 = vmatprep.subr.bf16.mxu0 %v22046_v13  ;;  %v22086_v13 = vld [vmem:[#allocation10 + $0x1660] ss:$16 sps:$4 sm:$0xff]  }
 0x7cf   :  { %15037 = vmatpush1.bf16.msra.mxu1 %v22041_v36  ;;  %v7821_v36 = vrot.slane %v7709_v46, 1  ;;  %v22151_v46 = vld [vmem:[#allocation10 + $0x17ac] ss:$16 sps:$4 sm:$0xff]  }
 0x7d0   :  { %15038 = vmatprep.subr.bf16.mxu1 %v22049_v3  ;;  %v22089_v3 = vld [vmem:[#allocation10 + $0x1668] ss:$16 sps:$4 sm:$0xff]  }
 0x7d1   :  { %14017 = vmatpush1.bf16.msra.mxu0 %v22044_v53  ;;  %v22094_v53 = vld [vmem:[#allocation10 + $0x1684] ss:$16 sps:$4 sm:$0xff]  }
 0x7d2   :  { %14018 = vmatprep.subr.bf16.mxu0 %v22052_v12  ;;  %v7672_v12 = vld [vmem:[#allocation3 + $0x70] sm:$0xfe] }
 0x7d3   :  { %15039 = vmatpush1.bf16.msra.mxu1 %v22047_v18  ;;  %v7675_v18 = vld [vmem:[#allocation3 + $0x88] sm:$0x1]  ;;  %v7772_v22 = vrot.slane %v7672_v12, 1  ;;  %v7674_v12 = vld [vmem:[#allocation3 + $0x80] sm:$0x1] }
 0x7d4   :  { %15040 = vmatprep.subr.bf16.mxu1 %v22055_v31  ;;  %v7678_v31 = vld [vmem:[#allocation3 + $0xa0] sm:$0xfe]  ;;  %v7773_v37 = vrot.slane %v7675_v18, 1 }
 0x7d5   :  { %14019 = vmatpush1.bf16.msra.mxu0 %v22050_v21  ;;  %v7681_v21 = vld [vmem:[#allocation3 + $0xb8] sm:$0x1]  ;;  %v22152_v18 = vld [vmem:[#allocation10 + $0x17c0] ss:$16 sps:$4 sm:$0xff]  }
 0x7d6   :  { %14020 = vmatprep.subr.bf16.mxu0 %v22058_v17  ;;  %v22097_v17 = vld [vmem:[#allocation10 + $0x168c] ss:$16 sps:$4 sm:$0xff]  }
 0x7d7   :  { %15041 = vmatpush1.bf16.msra.mxu1 %v22053_v45  ;;  %v7822_v45 = vsel %vm6875_vm7, %v7820_v57, %v7821_v36  ;;  %v22154_v57 = vld [vmem:[#allocation10 + $0x17c4] ss:$16 sps:$4 sm:$0xff]  }
 0x7d8   :  { %15042 = vmatprep.subr.bf16.mxu1 %v22061_v16  ;;  %v7831_v16 = vsel %vm6875_vm7, %v7829_v23, %v7830_v60  ;;  %v7684_v23 = vld [vmem:[#allocation3 + $0xd0] sm:$0xfe]  ;;  %v7687_v60 = vld [vmem:[#allocation3 + $0xe8] sm:$0x1]  ;;  %v7693_v36 = vld [vmem:[#allocation3 + $0x118] sm:$0x1] }
 0x7d9   :  { %14021 = vmatpush1.bf16.msra.mxu0 %v22056_v55  ;;  %v22100_v55 = vld [vmem:[#allocation10 + $0x16a4] ss:$16 sps:$4 sm:$0xff]  }
 0x7da   :  { %14022 = vmatprep.subr.bf16.mxu0 %v22064_v33  ;;  %v7781_v33 = vrot.slane %v7678_v31, 1  ;;  %v7680_v31 = vld [vmem:[#allocation3 + $0xb0] sm:$0x1] }
 0x7db   :  { %15043 = vmatpush1.bf16.msra.mxu1 %v22059_v35  ;;  %v7782_v35 = vrot.slane %v7681_v21, 1 }
 0x7dc   :  { %15044 = vmatprep.subr.bf16.mxu1 %v22067_v25  ;;  %v7871_v25 = vpack.c.bf16 %v7831_v16, %v7822_v45  ;;  %v7790_v45 = vrot.slane %v7684_v23, 1  ;;  %v7791_v16 = vrot.slane %v7687_v60, 1  ;;  %v22181_v23 = vld [vmem:[#allocation10 + $0x184c] ss:$16 sps:$4 sm:$0xff]  }
 0x7dd   :  { %14023 = vmatpush1.bf16.msra.mxu0 %v22062_v6  ;;  %v7774_v6 = vsel %vm6875_vm7, %v7772_v22, %v7773_v37  ;;  %v22155_v22 = vld [vmem:[#allocation10 + $0x17c8] ss:$16 sps:$4 sm:$0xff]  }
 0x7de   :  { %14065 = vmatprep.subr.bf16.mxu0 %v22070_v19  ;;  %v7783_v19 = vsel %vm6875_vm7, %v7781_v33, %v7782_v35  ;;  %v7683_v37 = vld [vmem:[#allocation3 + $0xc8] sm:$0xfe]  ;;  %v7701_v60 = vld [vmem:[#allocation3 + $0x1b8] sm:$0xfe] }
 0x7df   :  { %15045 = vmatpush1.bf16.msra.mxu1 %v22065_v30  ;;  %v22109_v30 = vld [vmem:[#allocation10 + $0x16cc] ss:$16 sps:$4 sm:$0xff]   ;;  %v7864_v4 = vpack.c.bf16 %v7783_v19, %v7774_v6  ;;  %v22161_v6 = vld [vmem:[#allocation10 + $0x17e8] ss:$16 sps:$4 sm:$0xff]  }
 0x7e0   :  { %14025 = vmatmul.mubr.bf16.vlgmr.msra.gmra.mrb[64].mxu0 %v24948_v29  ;;  %15087 = vmatprep.subr.bf16.mxu1 %v22073_v47  ;;  %v22104_v47 = vld [vmem:[#allocation10 + $0x16c0] ss:$16 sps:$4 sm:$0xff]   ;;  %v22163_v33 = vld [vmem:[#allocation10 + $0x17ec] ss:$16 sps:$4 sm:$0xff]  }
 0x7e1   :  { %14034 = vmatprep.mubr.bf16.mxu0 %v7865_v11  ;;  %14066 = vmatpush1.bf16.msra.mxu0 %v22068_v58  ;;  %v22107_v58 = vld [vmem:[#allocation10 + $0x16c8] ss:$16 sps:$4 sm:$0xff]  }
 0x7e2   :  { %15047 = vmatmul.mubr.bf16.vlgmr.msra.gmra.mrb[128].mxu1 %v24948_v29  ;;  %14067 = vmatprep.subr.bf16.mxu0 %v22076_v63  ;;  %v22110_v63 = vld [vmem:[#allocation10 + $0x16e0] ss:$16 sps:$4 sm:$0xff]  }
 0x7e3   :  { %15056 = vmatprep.mubr.bf16.mxu1 %v7865_v11  ;;  %15088 = vmatpush1.bf16.msra.mxu1 %v22071_v54  ;;  %v22118_v54 = vld [vmem:[#allocation10 + $0x1704] ss:$16 sps:$4 sm:$0xff]   ;;  %v22113_v11 = vld [vmem:[#allocation10 + $0x16e8] ss:$16 sps:$4 sm:$0xff]  }
 0x7e4   :  { %15089 = vmatprep.subr.bf16.mxu1 %v22079_v26  ;;  %v22124_v26 = vld [vmem:[#allocation10 + $0x1724] ss:$16 sps:$4 sm:$0xff]  }
 0x7e5   :  { %14068 = vmatpush1.bf16.msra.mxu0 %v22074_v61  ;;  %v22127_v61 = vld [vmem:[#allocation10 + $0x172c] ss:$16 sps:$4 sm:$0xff]  }
 0x7e6   :  { %14069 = vmatprep.subr.bf16.mxu0 %v22082_v34  ;;  %v22130_v34 = vld [vmem:[#allocation10 + $0x1744] ss:$16 sps:$4 sm:$0xff]  }
 0x7e7   :  { %15090 = vmatpush1.bf16.msra.mxu1 %v22077_v28  ;;  %v22136_v28 = vld [vmem:[#allocation10 + $0x1764] ss:$16 sps:$4 sm:$0xff]  }
 0x7e8   :  { %14035 = vmatmul.mubr.bf16.gmra.mrb[68].mxu0 %v24948_v29  ;;  %15091 = vmatprep.subr.bf16.mxu1 %v22085_v62  ;;  %v22131_v62 = vld [vmem:[#allocation10 + $0x1748] ss:$16 sps:$4 sm:$0xff]  }
 0x7e9   :  { %14044 = vmatprep.mubr.bf16.mxu0 %v7868_v42  ;;  %14070 = vmatpush1.bf16.msra.mxu0 %v22080_v7  ;;  %v22137_v7 = vld [vmem:[#allocation10 + $0x1768] ss:$16 sps:$4 sm:$0xff]  }
 0x7ea   :  { %15057 = vmatmul.mubr.bf16.gmra.mrb[132].mxu1 %v24948_v29  ;;  %14071 = vmatprep.subr.bf16.mxu0 %v22088_v56  ;;  %v22143_v56 = vld [vmem:[#allocation10 + $0x1788] ss:$16 sps:$4 sm:$0xff]  }
 0x7eb   :  { %15066 = vmatprep.mubr.bf16.mxu1 %v7868_v42  ;;  %15092 = vmatpush1.bf16.msra.mxu1 %v22083_v27  ;;  %v22146_v27 = vld [vmem:[#allocation10 + $0x17a0] ss:$16 sps:$4 sm:$0xff]   ;;  %v7677_v42 = vld [vmem:[#allocation3 + $0x98] sm:$0xfe] }
 0x7ec   :  { %15093 = vmatprep.subr.bf16.mxu1 %v22091_v0  ;;  %v22149_v0 = vld [vmem:[#allocation10 + $0x17a8] ss:$16 sps:$4 sm:$0xff]   ;;  %v7778_v21 = vrot.slane %v7677_v42, 1  ;;  %v7711_v42 = vld [vmem:[#allocation3 + $0x208] sm:$0x1] }
 0x7ed   :  { %14072 = vmatpush1.bf16.msra.mxu0 %v22086_v13  ;;  %v7690_v13 = vld [vmem:[#allocation3 + $0x100] sm:$0xfe] }
 0x7ee   :  { %14073 = vmatprep.subr.bf16.mxu0 %v22094_v53  ;;  %v7671_v53 = vld [vmem:[#allocation3 + $0x68] sm:$0xfe] }
 0x7ef   :  { %15094 = vmatpush1.bf16.msra.mxu1 %v22089_v3  ;;  %v22157_v3 = vld [vmem:[#allocation10 + $0x17cc] ss:$16 sps:$4 sm:$0xff]   ;;  %v7769_v35 = vrot.slane %v7671_v53, 1 }
 0x7f0   :  { %14045 = vmatmul.mubr.bf16.gmra.mrb[72].mxu0 %v24948_v29  ;;  %15095 = vmatprep.subr.bf16.mxu1 %v22097_v17  ;;  %v22160_v17 = vld [vmem:[#allocation10 + $0x17e4] ss:$16 sps:$4 sm:$0xff]  }
 0x7f1   :  { %14054 = vmatprep.mubr.bf16.mxu0 %v7871_v25  ;;  %14074 = vmatpush1.bf16.msra.mxu0 %v22092_v49  ;;  %v7799_v49 = vrot.slane %v7690_v13, 1  ;;  %v7695_v53 = vld [vmem:[#allocation3 + $0x188] sm:$0xfe] }
 0x7f2   :  { %15067 = vmatmul.mubr.bf16.gmra.mrb[136].mxu1 %v24948_v29  ;;  %14075 = vmatprep.subr.bf16.mxu0 %v22100_v55  ;;  %v7800_v55 = vrot.slane %v7693_v36, 1  ;;  %v22176_v36 = vld [vmem:[#allocation10 + $0x1840] ss:$16 sps:$4 sm:$0xff]  }
 0x7f3   :  { %15076 = vmatprep.mubr.bf16.mxu1 %v7871_v25  ;;  %15096 = vmatpush1.bf16.msra.mxu1 %v22095_v2  ;;  %v7779_v2 = vrot.slane %v7680_v31, 1  ;;  %v7689_v25 = vld [vmem:[#allocation3 + $0xf8] sm:$0xfe] }
 0x7f4   :  { %15097 = vmatprep.subr.bf16.mxu1 %v22103_v20  ;;  %v22158_v20 = vld [vmem:[#allocation10 + $0x17e0] ss:$16 sps:$4 sm:$0xff]  }
 0x7f5   :  { %14076 = vmatpush1.bf16.msra.mxu0 %v22098_v1  ;;  %v7770_v1 = vrot.slane %v7674_v12, 1  ;;  %v7780_v19 = vsel %vm6875_vm7, %v7778_v21, %v7779_v2  ;;  %v7704_v12 = vld [vmem:[#allocation3 + $0x1d0] sm:$0x1]  ;;  %v7827_v21 = vrot.slane %v7711_v42, 1  ;;  %v22190_v2 = vld [vmem:[#allocation10 + $0x1884] ss:$16 sps:$4 sm:$0xff]  }
 0x7f6   :  { %14077 = vmatprep.subr.bf16.mxu0 %v22106_v14  ;;  %v7692_v14 = vld [vmem:[#allocation3 + $0x110] sm:$0x1] }
 0x7f7   :  { %15098 = vmatpush1.bf16.msra.mxu1 %v22101_v8  ;;  %v22166_v8 = vld [vmem:[#allocation10 + $0x1804] ss:$16 sps:$4 sm:$0xff]  }
 0x7f8   :  { %15099 = vmatprep.subr.bf16.mxu1 %v22109_v30  ;;  %14055 = vmatmul.mubr.bf16.gmra.mrb[76].mxu0 %v24948_v29  ;;  %v7792_v30 = vsel %vm6875_vm7, %v7790_v45, %v7791_v16  ;;  %v22179_v16 = vld [vmem:[#allocation10 + $0x1848] ss:$16 sps:$4 sm:$0xff]  }
 0x7f9   :  { %14078 = vmatpush1.bf16.msra.mxu0 %v22104_v47  ;;  %14097 = vmatprep.mubr.bf16.mxu0 %v7864_v4  ;;  %v7801_v47 = vsel %vm6875_vm7, %v7799_v49, %v7800_v55  ;;  %v7814_v49 = vrot.slane %v7701_v60, 1  ;;  %v22187_v55 = vld [vmem:[#allocation10 + $0x186c] ss:$16 sps:$4 sm:$0xff]  }
 0x7fa   :  { %14079 = vmatprep.subr.bf16.mxu0 %v22112_v5  ;;  %15077 = vmatmul.mubr.bf16.gmra.mrb[140].mxu1 %v24948_v29  ;;  %v22133_v29 = vld [vmem:[#allocation10 + $0x174c] ss:$16 sps:$4 sm:$0xff]   ;;  %v7699_v5 = vld [vmem:[#allocation3 + $0x1a8] sm:$0x1] }
 0x7fb   :  { %15100 = vmatpush1.bf16.msra.mxu1 %v22107_v58  ;;  %15119 = vmatprep.mubr.bf16.mxu1 %v7864_v4  ;;  %v7696_v4 = vld [vmem:[#allocation3 + $0x190] sm:$0xfe]  ;;  %v7702_v58 = vld [vmem:[#allocation3 + $0x1c0] sm:$0xfe] }
 0x7fc   :  { %15101 = vmatprep.subr.bf16.mxu1 %v22115_v9  ;;  %v7705_v9 = vld [vmem:[#allocation3 + $0x1d8] sm:$0x1]  ;;  %v22211_v60 = vld [vmem:[#allocation10 + $0x18ec] ss:$16 sps:$4 sm:$0xff]  }
 0x7fd   :  { %14080 = vmatpush1.bf16.msra.mxu0 %v22110_v63  ;;  %v7771_v63 = vsel %vm6875_vm7, %v7769_v35, %v7770_v1  ;;  %v7815_v35 = vrot.slane %v7704_v12, 1  ;;  %v22185_v1 = vld [vmem:[#allocation10 + $0x1868] ss:$16 sps:$4 sm:$0xff]   ;;  %v22212_v12 = vld [vmem:[#allocation10 + $0x1900] ss:$16 sps:$4 sm:$0xff]  }
 0x7fe   :  { %14081 = vmatprep.subr.bf16.mxu0 %v22118_v54  ;;  %v22169_v54 = vld [vmem:[#allocation10 + $0x180c] ss:$16 sps:$4 sm:$0xff]  }
 0x7ff   :  { %15102 = vmatpush1.bf16.msra.mxu1 %v22113_v11  ;;  %v7686_v11 = vld [vmem:[#allocation3 + $0xe0] sm:$0x1] }
 0x800   :  { %15103 = vmatprep.subr.bf16.mxu1 %v22121_v43  ;;  %v7787_v43 = vrot.slane %v7683_v37, 1  ;;  %v22182_v37 = vld [vmem:[#allocation10 + $0x1860] ss:$16 sps:$4 sm:$0xff]  }
 0x801   :  { %14082 = vmatpush1.bf16.msra.mxu0 %v22116_v50  ;;  %v7863_v50 = vpack.c.bf16 %v7780_v19, %v7771_v63  ;;  %v7707_v19 = vld [vmem:[#allocation3 + $0x1e8] sm:$0xfe]  ;;  %v7881_v63 = vld [vmem:[#allocation3 + $0x98] sm:$0xfc] }
 0x802   :  { %14083 = vmatprep.subr.bf16.mxu0 %v22124_v26  ;;  %v22164_v26 = vld [vmem:[#allocation10 + $0x1800] ss:$16 sps:$4 sm:$0xff]  }
 0x803   :  { %15104 = vmatpush1.bf16.msra.mxu1 %v22119_v38  ;;  %v7867_v38 = vpack.c.bf16 %v7801_v47, %v7792_v30  ;;  %v7713_v30 = vld [vmem:[#allocation3 + $0x218] sm:$0xfe]  ;;  %v7716_v47 = vld [vmem:[#allocation3 + $0x230] sm:$0x1] }
 0x804   :  { %15105 = vmatprep.subr.bf16.mxu1 %v22127_v61  ;;  %v7796_v61 = vrot.slane %v7689_v25, 1 }
 0x805   :  { %14084 = vmatpush1.bf16.msra.mxu0 %v22122_v59  ;;  %v7797_v59 = vrot.slane %v7692_v14, 1 }
 0x806   :  { %14085 = vmatprep.subr.bf16.mxu0 %v22130_v34  ;;  %v22172_v34 = vld [vmem:[#allocation10 + $0x1824] ss:$16 sps:$4 sm:$0xff]  }
 0x807   :  { %15106 = vmatpush1.bf16.msra.mxu1 %v22125_v40  ;;  %v7808_v40 = vrot.slane %v7696_v4, 1 }
 0x808   :  { %15107 = vmatprep.subr.bf16.mxu1 %v22133_v29  ;;  %v7809_v29 = vrot.slane %v7699_v5, 1  ;;  %v22188_v5 = vld [vmem:[#allocation10 + $0x1880] ss:$16 sps:$4 sm:$0xff]  }
 0x809   :  { %14086 = vmatpush1.bf16.msra.mxu0 %v22128_v52  ;;  %v7817_v52 = vrot.slane %v7702_v58, 1 }
 0x80a   :  { %14087 = vmatprep.subr.bf16.mxu0 %v22136_v28  ;;  %v7818_v28 = vrot.slane %v7705_v9, 1  ;;  %v7710_v9 = vld [vmem:[#allocation3 + $0x200] sm:$0x1] }
 0x80b   :  { %15108 = vmatpush1.bf16.msra.mxu1 %v22131_v62  ;;  %v22167_v62 = vld [vmem:[#allocation10 + $0x1808] ss:$16 sps:$4 sm:$0xff]  }
 0x80c   :  { %15109 = vmatprep.subr.bf16.mxu1 %v22139_v51  ;;  %v7788_v51 = vrot.slane %v7686_v11, 1  ;;  %v22196_v11 = vld [vmem:[#allocation10 + $0x18a4] ss:$16 sps:$4 sm:$0xff]  }
 0x80d   :  { %14088 = vmatpush1.bf16.msra.mxu0 %v22134_v41  ;;  %v22175_v41 = vld [vmem:[#allocation10 + $0x182c] ss:$16 sps:$4 sm:$0xff]  }
 0x80e   :  { %14089 = vmatprep.subr.bf16.mxu0 %v22142_v48  ;;  %v22170_v48 = vld [vmem:[#allocation10 + $0x1820] ss:$16 sps:$4 sm:$0xff]  }
 0x80f   :  { %15110 = vmatpush1.bf16.msra.mxu1 %v22137_v7  ;;  %v7789_v7 = vsel %vm6875_vm7, %v7787_v43, %v7788_v51  ;;  %v7875_v43 = vld [vmem:[#allocation3 + $0x68] sm:$0xfc] }
 0x810   :  { %15111 = vmatprep.subr.bf16.mxu1 %v22145_v44  ;;  %v22173_v44 = vld [vmem:[#allocation10 + $0x1828] ss:$16 sps:$4 sm:$0xff]   ;;  %v7973_v51 = vrot.slane %v7875_v43, 2  ;;  %v22256_v43 = vld [vmem:[#allocation10 + $0x19e4] ss:$16 sps:$4 sm:$0xff]  }
 0x811   :  { %14090 = vmatpush1.bf16.msra.mxu0 %v22140_v32  ;;  %v7798_v32 = vsel %vm6875_vm7, %v7796_v61, %v7797_v59  ;;  %v7832_v61 = vrot.slane %v7713_v30, 1  ;;  %v7833_v59 = vrot.slane %v7716_v47, 1  ;;  %v22250_v30 = vld [vmem:[#allocation10 + $0x19c4] ss:$16 sps:$4 sm:$0xff]   ;;  %v22245_v47 = vld [vmem:[#allocation10 + $0x19a8] ss:$16 sps:$4 sm:$0xff]  }
 0x812   :  { %14091 = vmatprep.subr.bf16.mxu0 %v22148_v39  ;;  %v22178_v39 = vld [vmem:[#allocation10 + $0x1844] ss:$16 sps:$4 sm:$0xff]   ;;  %v7866_v13 = vpack.c.bf16 %v7798_v32, %v7789_v7  ;;  %v22205_v32 = vld [vmem:[#allocation10 + $0x18cc] ss:$16 sps:$4 sm:$0xff]  }
 0x813   :  { %15112 = vmatpush1.bf16.msra.mxu1 %v22143_v56  ;;  %v7810_v56 = vsel %vm6875_vm7, %v7808_v40, %v7809_v29  ;;  %v7982_v40 = vrot.slane %v7881_v63, 2  ;;  %v22194_v29 = vld [vmem:[#allocation10 + $0x18a0] ss:$16 sps:$4 sm:$0xff]  }
 0x814   :  { %15113 = vmatprep.subr.bf16.mxu1 %v22151_v46  ;;  %v7819_v46 = vsel %vm6875_vm7, %v7817_v52, %v7818_v28  ;;  %v7824_v52 = vrot.slane %v7710_v9, 1  ;;  %v7878_v28 = vld [vmem:[#allocation3 + $0x80] sm:$0x3]  ;;  %v7887_v9 = vld [vmem:[#allocation3 + $0xc8] sm:$0xfc] }
 0x815   :  { %14092 = vmatpush1.bf16.msra.mxu0 %v22146_v27  ;;  %v7708_v27 = vld [vmem:[#allocation3 + $0x1f0] sm:$0xfe] }
 0x816   :  { %14093 = vmatprep.subr.bf16.mxu0 %v22154_v57  ;;  %v7717_v57 = vld [vmem:[#allocation3 + $0x238] sm:$0x1]  ;;  %v7826_v31 = vrot.slane %v7708_v27, 1  ;;  %v22248_v63 = vld [vmem:[#allocation10 + $0x19c0] ss:$16 sps:$4 sm:$0xff]  }
 0x817   :  { %15114 = vmatpush1.bf16.msra.mxu1 %v22149_v0  ;;  %v7714_v0 = vld [vmem:[#allocation3 + $0x220] sm:$0xfe]  ;;  %v7836_v45 = vrot.slane %v7717_v57, 1  ;;  %v22203_v57 = vld [vmem:[#allocation10 + $0x18c8] ss:$16 sps:$4 sm:$0xff]  }
 0x818   :  { %15115 = vmatprep.subr.bf16.mxu1 %v22157_v3  ;;  %v7870_v3 = vpack.c.bf16 %v7819_v46, %v7810_v56  ;;  %v7828_v25 = vsel %vm6875_vm7, %v7826_v31, %v7827_v21  ;;  %v22200_v46 = vld [vmem:[#allocation10 + $0x18c0] ss:$16 sps:$4 sm:$0xff]   ;;  %v22215_v31 = vld [vmem:[#allocation10 + $0x1908] ss:$16 sps:$4 sm:$0xff]   ;;  %v22223_v21 = vld [vmem:[#allocation10 + $0x192c] ss:$16 sps:$4 sm:$0xff]  }
 0x819   :  { %14094 = vmatpush1.bf16.msra.mxu0 %v22152_v18  ;;  %v22184_v18 = vld [vmem:[#allocation10 + $0x1864] ss:$16 sps:$4 sm:$0xff]  }
 0x81a   :  { %14095 = vmatprep.subr.bf16.mxu0 %v22160_v17  ;;  %v7835_v17 = vrot.slane %v7714_v0, 1  ;;  %v22208_v0 = vld [vmem:[#allocation10 + $0x18e4] ss:$16 sps:$4 sm:$0xff]  }
 0x81b   :  { %15116 = vmatpush1.bf16.msra.mxu1 %v22155_v22  ;;  %v7698_v22 = vld [vmem:[#allocation3 + $0x1a0] sm:$0x1] }
 0x81c   :  { %15117 = vmatprep.subr.bf16.mxu1 %v22163_v33  ;;  %v7805_v33 = vrot.slane %v7695_v53, 1  ;;  %v7806_v14 = vrot.slane %v7698_v22, 1  ;;  %v22217_v53 = vld [vmem:[#allocation10 + $0x190c] ss:$16 sps:$4 sm:$0xff]   ;;  %v22232_v22 = vld [vmem:[#allocation10 + $0x1964] ss:$16 sps:$4 sm:$0xff]  }
 0x81d   :  { %14096 = vmatpush1.bf16.msra.mxu0 %v22158_v20  ;;  %v7837_v20 = vsel %vm6875_vm7, %v7835_v17, %v7836_v45  ;;  %v22218_v17 = vld [vmem:[#allocation10 + $0x1920] ss:$16 sps:$4 sm:$0xff]   ;;  %v22226_v45 = vld [vmem:[#allocation10 + $0x1944] ss:$16 sps:$4 sm:$0xff]  }
 0x81e   :  { %14138 = vmatprep.subr.bf16.mxu0 %v22166_v8  ;;  %v22193_v8 = vld [vmem:[#allocation10 + $0x188c] ss:$16 sps:$4 sm:$0xff]   ;;  %v7807_v4 = vsel %vm6875_vm7, %v7805_v33, %v7806_v14  ;;  %v7873_v58 = vpack.c.bf16 %v7837_v20, %v7828_v25  ;;  %v22233_v25 = vld [vmem:[#allocation10 + $0x1968] ss:$16 sps:$4 sm:$0xff]   ;;  %v22244_v14 = vld [vmem:[#allocation10 + $0x19a4] ss:$16 sps:$4 sm:$0xff]  }
 0x81f   :  { %15118 = vmatpush1.bf16.msra.mxu1 %v22161_v6  ;;  %v7816_v6 = vsel %vm6875_vm7, %v7814_v49, %v7815_v35  ;;  %v22229_v49 = vld [vmem:[#allocation10 + $0x194c] ss:$16 sps:$4 sm:$0xff]   ;;  %v22230_v35 = vld [vmem:[#allocation10 + $0x1960] ss:$16 sps:$4 sm:$0xff]  }
 0x820   :  { %14098 = vmatmul.mubr.bf16.vlgmr.msra.gmra.mrb[64].mxu0 %v7863_v50  ;;  %15160 = vmatprep.subr.bf16.mxu1 %v22169_v54  ;;  %v7869_v54 = vpack.c.bf16 %v7816_v6, %v7807_v4  ;;  %v22235_v33 = vld [vmem:[#allocation10 + $0x196c] ss:$16 sps:$4 sm:$0xff]   ;;  %v22239_v6 = vld [vmem:[#allocation10 + $0x1988] ss:$16 sps:$4 sm:$0xff]  }
 0x821   :  { %14139 = vmatpush1.bf16.msra.mxu0 %v22164_v26  ;;  %14107 = vmatprep.mubr.bf16.mxu0 %v7867_v38  ;;  %v22191_v26 = vld [vmem:[#allocation10 + $0x1888] ss:$16 sps:$4 sm:$0xff]   ;;  %v22241_v20 = vld [vmem:[#allocation10 + $0x198c] ss:$16 sps:$4 sm:$0xff]  }
 0x822   :  { %15120 = vmatmul.mubr.bf16.vlgmr.msra.gmra.mrb[128].mxu1 %v7863_v50  ;;  %14140 = vmatprep.subr.bf16.mxu0 %v22172_v34  ;;  %v7884_v50 = vld [vmem:[#allocation3 + $0xb0] sm:$0x3] }
 0x823   :  { %15161 = vmatpush1.bf16.msra.mxu1 %v22167_v62  ;;  %15129 = vmatprep.mubr.bf16.mxu1 %v7867_v38  ;;  %v7823_v38 = vrot.slane %v7707_v19, 1  ;;  %v22199_v34 = vld [vmem:[#allocation10 + $0x18ac] ss:$16 sps:$4 sm:$0xff]   ;;  %v22202_v62 = vld [vmem:[#allocation10 + $0x18c4] ss:$16 sps:$4 sm:$0xff]  }
 0x824   :  { %15162 = vmatprep.subr.bf16.mxu1 %v22175_v41  ;;  %v7983_v41 = vrot.slane %v7884_v50, 2  ;;  %v22247_v19 = vld [vmem:[#allocation10 + $0x19ac] ss:$16 sps:$4 sm:$0xff]   ;;  %v7877_v50 = vld [vmem:[#allocation3 + $0x78] sm:$0x3] }
 0x825   :  { %14141 = vmatpush1.bf16.msra.mxu0 %v22170_v48  ;;  %v22197_v48 = vld [vmem:[#allocation10 + $0x18a8] ss:$16 sps:$4 sm:$0xff]   ;;  %v7825_v7 = vsel %vm6875_vm7, %v7823_v38, %v7824_v52  ;;  %v22253_v4 = vld [vmem:[#allocation10 + $0x19cc] ss:$16 sps:$4 sm:$0xff]  }
 0x826   :  { %14142 = vmatprep.subr.bf16.mxu0 %v22178_v39  ;;  %v7974_v39 = vrot.slane %v7878_v28, 2  ;;  %v7984_v56 = vsel %vm7080_vm8, %v7982_v40, %v7983_v41  ;;  %v22251_v38 = vld [vmem:[#allocation10 + $0x19c8] ss:$16 sps:$4 sm:$0xff]   ;;  %v7991_v40 = vrot.slane %v7887_v9, 2  ;;  %v22254_v28 = vld [vmem:[#allocation10 + $0x19e0] ss:$16 sps:$4 sm:$0xff]  }
 0x827   :  { %15163 = vmatpush1.bf16.msra.mxu1 %v22173_v44  ;;  %v7834_v44 = vsel %vm6875_vm7, %v7832_v61, %v7833_v59  ;;  %v7890_v59 = vld [vmem:[#allocation3 + $0xe0] sm:$0x3]  ;;  %v22262_v41 = vld [vmem:[#allocation10 + $0x1a04] ss:$16 sps:$4 sm:$0xff]  }
 0x828   :  { %14108 = vmatmul.mubr.bf16.gmra.mrb[68].mxu0 %v7866_v13  ;;  %15164 = vmatprep.subr.bf16.mxu1 %v22181_v23  ;;  %v7872_v27 = vpack.c.bf16 %v7834_v44, %v7825_v7  ;;  %v7975_v42 = vsel %vm7080_vm8, %v7973_v51, %v7974_v39  ;;  %v22257_v7 = vld [vmem:[#allocation10 + $0x19e8] ss:$16 sps:$4 sm:$0xff]   ;;  %v7971_v44 = vrot.slane %v7877_v50, 2  ;;  %v7886_v39 = vld [vmem:[#allocation3 + $0xc0] sm:$0xfc] }
 0x829   :  { %14143 = vmatpush1.bf16.msra.mxu0 %v22176_v36  ;;  %14117 = vmatprep.mubr.bf16.mxu0 %v7870_v3  ;;  %v8067_v23 = vpack.c.bf16 %v7984_v56, %v7975_v42  ;;  %v22214_v36 = vld [vmem:[#allocation10 + $0x1904] ss:$16 sps:$4 sm:$0xff]   ;;  %v22265_v56 = vld [vmem:[#allocation10 + $0x1a0c] ss:$16 sps:$4 sm:$0xff]   ;;  %v22275_v50 = vld [vmem:[#allocation10 + $0x1a48] ss:$16 sps:$4 sm:$0xff]  }
 0x82a   :  { %15130 = vmatmul.mubr.bf16.gmra.mrb[132].mxu1 %v7866_v13  ;;  %14144 = vmatprep.subr.bf16.mxu0 %v22184_v18  ;;  %v22206_v13 = vld [vmem:[#allocation10 + $0x18e0] ss:$16 sps:$4 sm:$0xff]   ;;  %v22220_v18 = vld [vmem:[#allocation10 + $0x1924] ss:$16 sps:$4 sm:$0xff]  }
 0x82b   :  { %15165 = vmatpush1.bf16.msra.mxu1 %v22179_v16  ;;  %15139 = vmatprep.mubr.bf16.mxu1 %v7870_v3  ;;  %v22209_v3 = vld [vmem:[#allocation10 + $0x18e8] ss:$16 sps:$4 sm:$0xff]   ;;  %v7892_v42 = vld [vmem:[#allocation3 + $0xf0] sm:$0xfc] }
 0x82c   :  { %15166 = vmatprep.subr.bf16.mxu1 %v22187_v55  ;;  %v22221_v16 = vld [vmem:[#allocation10 + $0x1928] ss:$16 sps:$4 sm:$0xff]   ;;  %v22224_v55 = vld [vmem:[#allocation10 + $0x1940] ss:$16 sps:$4 sm:$0xff]  }
 0x82d   :  { %14145 = vmatpush1.bf16.msra.mxu0 %v22182_v37  ;;  %v22227_v37 = vld [vmem:[#allocation10 + $0x1948] ss:$16 sps:$4 sm:$0xff]  }
 0x82e   :  { %14146 = vmatprep.subr.bf16.mxu0 %v22190_v2  ;;  %v22238_v2 = vld [vmem:[#allocation10 + $0x1984] ss:$16 sps:$4 sm:$0xff]  }
 0x82f   :  { %15167 = vmatpush1.bf16.msra.mxu1 %v22185_v1  ;;  %v22236_v1 = vld [vmem:[#allocation10 + $0x1980] ss:$16 sps:$4 sm:$0xff]  }
 0x830   :  { %14118 = vmatmul.mubr.bf16.gmra.mrb[72].mxu0 %v7869_v54  ;;  %15168 = vmatprep.subr.bf16.mxu1 %v22193_v8  ;;  %v22242_v8 = vld [vmem:[#allocation10 + $0x19a0] ss:$16 sps:$4 sm:$0xff]  }
 0x831   :  { %14147 = vmatpush1.bf16.msra.mxu0 %v22188_v5  ;;  %14127 = vmatprep.mubr.bf16.mxu0 %v7873_v58  ;;  %v7874_v5 = vld [vmem:[#allocation3 + $0x60] sm:$0xfc] }
 0x832   :  { %15140 = vmatmul.mubr.bf16.gmra.mrb[136].mxu1 %v7869_v54  ;;  %14148 = vmatprep.subr.bf16.mxu0 %v22196_v11  ;;  %v7893_v54 = vld [vmem:[#allocation3 + $0xf8] sm:$0xfc]  ;;  %v7896_v11 = vld [vmem:[#allocation3 + $0x110] sm:$0x3] }
 0x833   :  { %15169 = vmatpush1.bf16.msra.mxu1 %v22191_v26  ;;  %15149 = vmatprep.mubr.bf16.mxu1 %v7873_v58  ;;  %v7880_v58 = vld [vmem:[#allocation3 + $0x90] sm:$0xfc]  ;;  %v7883_v26 = vld [vmem:[#allocation3 + $0xa8] sm:$0x3]  ;;  %v8001_v52 = vrot.slane %v7896_v11, 2 }
 0x834   :  { %15170 = vmatprep.subr.bf16.mxu1 %v22199_v34  ;;  %v7979_v61 = vrot.slane %v7880_v58, 2  ;;  %v22259_v34 = vld [vmem:[#allocation10 + $0x19ec] ss:$16 sps:$4 sm:$0xff]   ;;  %v7980_v51 = vrot.slane %v7883_v26, 2  ;;  %v7901_v11 = vld [vmem:[#allocation3 + $0x198] sm:$0x3] }
 0x835   :  { %14149 = vmatpush1.bf16.msra.mxu0 %v22194_v29  ;;  %v8000_v29 = vrot.slane %v7893_v54, 2  ;;  %v7920_v58 = vld [vmem:[#allocation3 + $0x230] sm:$0x3]  ;;  %v22280_v54 = vld [vmem:[#allocation10 + $0x1a64] ss:$16 sps:$4 sm:$0xff]  }
 0x836   :  { %14150 = vmatprep.subr.bf16.mxu0 %v22202_v62  ;;  %v7970_v62 = vrot.slane %v7874_v5, 2  ;;  %v7917_v5 = vld [vmem:[#allocation3 + $0x218] sm:$0xfc] }
 0x837   :  { %15171 = vmatpush1.bf16.msra.mxu1 %v22197_v48  ;;  %v7992_v48 = vrot.slane %v7890_v59, 2  ;;  %v22283_v59 = vld [vmem:[#allocation10 + $0x1a6c] ss:$16 sps:$4 sm:$0xff]  }
 0x838   :  { %14128 = vmatmul.mubr.bf16.gmra.mrb[76].mxu0 %v7872_v27  ;;  %15172 = vmatprep.subr.bf16.mxu1 %v22205_v32  ;;  %v7981_v32 = vsel %vm7080_vm8, %v7979_v61, %v7980_v51  ;;  %v7914_v61 = vld [vmem:[#allocation3 + $0x200] sm:$0x3]  ;;  %v22286_v51 = vld [vmem:[#allocation10 + $0x1a84] ss:$16 sps:$4 sm:$0xff]  }
 0x839   :  { %14151 = vmatpush1.bf16.msra.mxu0 %v22200_v46  ;;  %14170 = vmatprep.mubr.bf16.mxu0 %v8067_v23  ;;  %v7993_v46 = vsel %vm7080_vm8, %v7991_v40, %v7992_v48  ;;  %v8036_v40 = vrot.slane %v7917_v5, 2  ;;  %v22281_v48 = vld [vmem:[#allocation10 + $0x1a68] ss:$16 sps:$4 sm:$0xff]   ;;  %v25691_v5 = vmov 0  }
 0x83a   :  { %15150 = vmatmul.mubr.bf16.gmra.mrb[140].mxu1 %v7872_v27  ;;  %14152 = vmatprep.subr.bf16.mxu0 %v22208_v0  ;;  %v8002_v27 = vsel %vm7080_vm8, %v8000_v29, %v8001_v52  ;;  %v7895_v0 = vld [vmem:[#allocation3 + $0x108] sm:$0x3]  ;;  %v8037_v29 = vrot.slane %v7920_v58, 2  ;;  %v22278_v52 = vld [vmem:[#allocation10 + $0x1a60] ss:$16 sps:$4 sm:$0xff]  }
 0x83b   :  { %15173 = vmatpush1.bf16.msra.mxu1 %v22203_v57  ;;  %15192 = vmatprep.mubr.bf16.mxu1 %v8067_v23  ;;  %v7972_v57 = vsel %vm7080_vm8, %v7970_v62, %v7971_v44  ;;  %v22260_v23 = vld [vmem:[#allocation10 + $0x1a00] ss:$16 sps:$4 sm:$0xff]  }
 0x83c   :  { %15174 = vmatprep.subr.bf16.mxu1 %v22211_v60  ;;  %v7889_v60 = vld [vmem:[#allocation3 + $0xd8] sm:$0x3] }
 0x83d   :  { %14153 = vmatpush1.bf16.msra.mxu0 %v22206_v13  ;;  %v7905_v13 = vld [vmem:[#allocation3 + $0x1b8] sm:$0xfc] }
 0x83e   :  { %14154 = vmatprep.subr.bf16.mxu0 %v22214_v36  ;;  %v8066_v36 = vpack.c.bf16 %v7981_v32, %v7972_v57  ;;  %v7910_v32 = vld [vmem:[#allocation3 + $0x1e0] sm:$0xfc] }
 0x83f   :  { %15175 = vmatpush1.bf16.msra.mxu1 %v22209_v3  ;;  %v22268_v3 = vld [vmem:[#allocation10 + $0x1a24] ss:$16 sps:$4 sm:$0xff]   ;;  %v22284_v57 = vld [vmem:[#allocation10 + $0x1a80] ss:$16 sps:$4 sm:$0xff]  }
 0x840   :  { %15176 = vmatprep.subr.bf16.mxu1 %v22217_v53  ;;  %v7988_v53 = vrot.slane %v7886_v39, 2  ;;  %v22289_v39 = vld [vmem:[#allocation10 + $0x1a8c] ss:$16 sps:$4 sm:$0xff]  }
 0x841   :  { %14155 = vmatpush1.bf16.msra.mxu0 %v22212_v12  ;;  %v7899_v12 = vld [vmem:[#allocation3 + $0x188] sm:$0xfc] }
 0x842   :  { %14156 = vmatprep.subr.bf16.mxu0 %v22220_v18  ;;  %v22263_v18 = vld [vmem:[#allocation10 + $0x1a08] ss:$16 sps:$4 sm:$0xff]  }
 0x843   :  { %15177 = vmatpush1.bf16.msra.mxu1 %v22215_v31  ;;  %v8070_v31 = vpack.c.bf16 %v8002_v27, %v7993_v46  ;;  %v8038_v46 = vsel %vm7080_vm8, %v8036_v40, %v8037_v29  ;;  %v7916_v27 = vld [vmem:[#allocation3 + $0x210] sm:$0xfc]  ;;  %v22308_v29 = vld [vmem:[#allocation13] ss:$8 sps:$4 sm:$0xff]  }
 0x844   :  { %15178 = vmatprep.subr.bf16.mxu1 %v22223_v21  ;;  %v7997_v21 = vrot.slane %v7892_v42, 2  ;;  %v7919_v42 = vld [vmem:[#allocation3 + $0x228] sm:$0x3] }
 0x845   :  { %14157 = vmatpush1.bf16.msra.mxu0 %v22218_v17  ;;  %v7998_v17 = vrot.slane %v7895_v0, 2 }
 0x846   :  { %14158 = vmatprep.subr.bf16.mxu0 %v22226_v45  ;;  %v7908_v45 = vld [vmem:[#allocation3 + $0x1d0] sm:$0x3] }
 0x847   :  { %15179 = vmatpush1.bf16.msra.mxu1 %v22221_v16  ;;  %v22271_v16 = vld [vmem:[#allocation10 + $0x1a2c] ss:$16 sps:$4 sm:$0xff]  }
 0x848   :  { %15180 = vmatprep.subr.bf16.mxu1 %v22229_v49  ;;  %v7902_v49 = vld [vmem:[#allocation3 + $0x1a0] sm:$0x3] }
 0x849   :  { %14159 = vmatpush1.bf16.msra.mxu0 %v22224_v55  ;;  %v8018_v55 = vrot.slane %v7905_v13, 2  ;;  %v22292_v13 = vld [vmem:[#allocation10 + $0x1aa4] ss:$16 sps:$4 sm:$0xff]  }
 0x84a   :  { %14160 = vmatprep.subr.bf16.mxu0 %v22232_v22  ;;  %v22266_v22 = vld [vmem:[#allocation10 + $0x1a20] ss:$16 sps:$4 sm:$0xff]  }
 0x84b   :  { %15181 = vmatpush1.bf16.msra.mxu1 %v22227_v37  ;;  %v7989_v37 = vrot.slane %v7889_v60, 2 }
 0x84c   :  { %15182 = vmatprep.subr.bf16.mxu1 %v22235_v33  ;;  %v22274_v33 = vld [vmem:[#allocation10 + $0x1a44] ss:$16 sps:$4 sm:$0xff]  }
 0x84d   :  { %14161 = vmatpush1.bf16.msra.mxu0 %v22230_v35  ;;  %v8009_v35 = vrot.slane %v7899_v12, 2  ;;  %v8033_v12 = vrot.slane %v7916_v27, 2 }
 0x84e   :  { %14162 = vmatprep.subr.bf16.mxu0 %v22238_v2  ;;  %v8019_v2 = vrot.slane %v7908_v45, 2  ;;  %v22298_v45 = vld [vmem:[#allocation10 + $0x1ac4] ss:$16 sps:$4 sm:$0xff]  }
 0x84f   :  { %15183 = vmatpush1.bf16.msra.mxu1 %v22233_v25  ;;  %v22269_v25 = vld [vmem:[#allocation10 + $0x1a28] ss:$16 sps:$4 sm:$0xff]  }
 0x850   :  { %15184 = vmatprep.subr.bf16.mxu1 %v22241_v20  ;;  %v7990_v20 = vsel %vm7080_vm8, %v7988_v53, %v7989_v37  ;;  %v8024_v53 = vrot.slane %v7910_v32, 2  ;;  %v22293_v37 = vld [vmem:[#allocation10 + $0x1aa8] ss:$16 sps:$4 sm:$0xff]  }
 0x851   :  { %14163 = vmatpush1.bf16.msra.mxu0 %v22236_v1  ;;  %v7999_v1 = vsel %vm7080_vm8, %v7997_v21, %v7998_v17  ;;  %v22290_v17 = vld [vmem:[#allocation10 + $0x1aa0] ss:$16 sps:$4 sm:$0xff]  }
 0x852   :  { %14164 = vmatprep.subr.bf16.mxu0 %v22244_v14  ;;  %v8010_v14 = vrot.slane %v7902_v49, 2  ;;  %v8069_v9 = vpack.c.bf16 %v7999_v1, %v7990_v20  ;;  %v7879_v49 = vld [vmem:[#allocation3 + $0x88] sm:$0x3] }
 0x853   :  { %15185 = vmatpush1.bf16.msra.mxu1 %v22239_v6  ;;  %v22277_v6 = vld [vmem:[#allocation10 + $0x1a4c] ss:$16 sps:$4 sm:$0xff]   ;;  %v7977_v1 = vrot.slane %v7879_v49, 2 }
 0x854   :  { %15186 = vmatprep.subr.bf16.mxu1 %v22247_v19  ;;  %v8020_v19 = vsel %vm7080_vm8, %v8018_v55, %v8019_v2  ;;  %v7882_v55 = vld [vmem:[#allocation3 + $0xa0] sm:$0xfc]  ;;  %v22301_v2 = vld [vmem:[#allocation10 + $0x1acc] ss:$16 sps:$4 sm:$0xff]  }
 0x855   :  { %14165 = vmatpush1.bf16.msra.mxu0 %v22242_v8  ;;  %v7898_v8 = vld [vmem:[#allocation3 + $0x180] sm:$0xfc]  ;;  %v22316_v32 = vld [vmem:[#allocation13 + $0x24] ss:$8 sps:$4 sm:$0xff]  }
 0x856   :  { %14166 = vmatprep.subr.bf16.mxu0 %v22250_v30  ;;  %v7904_v30 = vld [vmem:[#allocation3 + $0x1b0] sm:$0xfc]  ;;  %v22320_v49 = vld [vmem:[#allocation13 + $0x40] ss:$8 sps:$4 sm:$0xff]  }
 0x857   :  { %15187 = vmatpush1.bf16.msra.mxu1 %v22245_v47  ;;  %v7911_v47 = vld [vmem:[#allocation3 + $0x1e8] sm:$0xfc] }
 0x858   :  { %15188 = vmatprep.subr.bf16.mxu1 %v22253_v4  ;;  %v22272_v4 = vld [vmem:[#allocation10 + $0x1a40] ss:$16 sps:$4 sm:$0xff]  }
 0x859   :  { %14167 = vmatpush1.bf16.msra.mxu0 %v22248_v63  ;;  %v8011_v63 = vsel %vm7080_vm8, %v8009_v35, %v8010_v14  ;;  %v7985_v14 = vrot.slane %v7882_v55, 2  ;;  %v22325_v55 = vld [vmem:[#allocation13 + $0x54] ss:$8 sps:$4 sm:$0xff]  }
 0x85a   :  { %14168 = vmatprep.subr.bf16.mxu0 %v22256_v43  ;;  %v7907_v43 = vld [vmem:[#allocation3 + $0x1c8] sm:$0x3]  ;;  %v8073_v26 = vpack.c.bf16 %v8020_v19, %v8011_v63  ;;  %v7888_v63 = vld [vmem:[#allocation3 + $0xd0] sm:$0xfc] }
 0x85b   :  { %15189 = vmatpush1.bf16.msra.mxu1 %v22251_v38  ;;  %v8015_v38 = vrot.slane %v7904_v30, 2  ;;  %v8016_v62 = vrot.slane %v7907_v43, 2  ;;  %v22299_v30 = vld [vmem:[#allocation10 + $0x1ac8] ss:$16 sps:$4 sm:$0xff]   ;;  %v7897_v43 = vld [vmem:[#allocation3 + $0x118] sm:$0x3] }
 0x85c   :  { %15190 = vmatprep.subr.bf16.mxu1 %v22259_v34  ;;  %v8027_v34 = vrot.slane %v7911_v47, 2  ;;  %v22307_v47 = vld [vmem:[#allocation10 + $0x1aec] ss:$16 sps:$4 sm:$0xff]   ;;  %v8004_v40 = vrot.slane %v7897_v43, 2 }
 0x85d   :  { %14169 = vmatpush1.bf16.msra.mxu0 %v22254_v28  ;;  %v8006_v28 = vrot.slane %v7898_v8, 2  ;;  %v8017_v44 = vsel %vm7080_vm8, %v8015_v38, %v8016_v62  ;;  %v22304_v8 = vld [vmem:[#allocation10 + $0x1ae4] ss:$16 sps:$4 sm:$0xff]  }
 0x85e   :  { %14211 = vmatprep.subr.bf16.mxu0 %v22262_v41  ;;  %v8028_v41 = vrot.slane %v7914_v61, 2  ;;  %v7994_v61 = vrot.slane %v7888_v63, 2  ;;  %v22349_v63 = vld [vmem:[#allocation13 + $0xd4] ss:$8 sps:$4 sm:$0xff]   ;;  %v22350_v43 = vld [vmem:[#allocation13 + $0xe0] ss:$8 sps:$4 sm:$0xff]  }
 0x85f   :  { %15191 = vmatpush1.bf16.msra.mxu1 %v22257_v7  ;;  %v8007_v7 = vrot.slane %v7901_v11, 2  ;;  %v7894_v11 = vld [vmem:[#allocation3 + $0x100] sm:$0xfc] }
 0x860   :  { %14171 = vmatmul.mubr.bf16.vlgmr.msra.gmra.mrb[64].mxu0 %v8066_v36  ;;  %15233 = vmatprep.subr.bf16.mxu1 %v22265_v56  ;;  %v8029_v56 = vsel %vm7080_vm8, %v8027_v34, %v8028_v41  ;;  %v8003_v34 = vrot.slane %v7894_v11, 2  ;;  %v7903_v41 = vld [vmem:[#allocation3 + $0x1a8] sm:$0x3] }
 0x861   :  { %14180 = vmatprep.mubr.bf16.mxu0 %v8070_v31  ;;  %14212 = vmatpush1.bf16.msra.mxu0 %v22260_v23  ;;  %v8008_v0 = vsel %vm7080_vm8, %v8006_v28, %v8007_v7  ;;  %v7913_v23 = vld [vmem:[#allocation3 + $0x1f8] sm:$0x3]  ;;  %v7906_v7 = vld [vmem:[#allocation3 + $0x1c0] sm:$0xfc]  ;;  %v22352_v11 = vld [vmem:[#allocation13 + $0xe4] ss:$8 sps:$4 sm:$0xff]  }
 0x862   :  { %15193 = vmatmul.mubr.bf16.vlgmr.msra.gmra.mrb[128].mxu1 %v8066_v36  ;;  %14213 = vmatprep.subr.bf16.mxu0 %v22268_v3  ;;  %v8072_v60 = vpack.c.bf16 %v8017_v44, %v8008_v0  ;;  %v22287_v36 = vld [vmem:[#allocation10 + $0x1a88] ss:$16 sps:$4 sm:$0xff]   ;;  %v8076_v3 = vpack.c.bf16 %v8038_v46, %v8029_v56  ;;  %v8025_v21 = vrot.slane %v7913_v23, 2  ;;  %v8005_v62 = vsel %vm7080_vm8, %v8003_v34, %v8004_v40  ;;  %v7909_v44 = vld [vmem:[#allocation3 + $0x1d8] sm:$0x3]  ;;  %v25692_v34 = vld [vmem:[#allocation48_spill] sm:$0xff] }
 0x863   :  { %15202 = vmatprep.mubr.bf16.mxu1 %v8070_v31  ;;  %15234 = vmatpush1.bf16.msra.mxu1 %v22263_v18  ;;  %v8034_v18 = vrot.slane %v7919_v42, 2  ;;  %v22295_v31 = vld [vmem:[#allocation10 + $0x1aac] ss:$16 sps:$4 sm:$0xff]   ;;  %v8013_v46 = vrot.slane %v7903_v41, 2  ;;  %v8021_v27 = vrot.slane %v7906_v7, 2  ;;  %v8022_v42 = vrot.slane %v7909_v44, 2 }
 0x864   :  { %15235 = vmatprep.subr.bf16.mxu1 %v22271_v16  ;;  %v7876_v16 = vld [vmem:[#allocation3 + $0x70] sm:$0xfc]  ;;  %v22314_v0 = vld [vmem:[#allocation13 + $0x20] ss:$8 sps:$4 sm:$0xff]  }
 0x865   :  { %14214 = vmatpush1.bf16.msra.mxu0 %v22266_v22  ;;  %v7885_v22 = vld [vmem:[#allocation3 + $0xb8] sm:$0x3]  ;;  %v8035_v35 = vsel %vm7080_vm8, %v8033_v12, %v8034_v18  ;;  %v7976_v20 = vrot.slane %v7876_v16, 2  ;;  %v22322_v18 = vld [vmem:[#allocation13 + $0x44] ss:$8 sps:$4 sm:$0xff]  }
 0x866   :  { %14215 = vmatprep.subr.bf16.mxu0 %v22274_v33  ;;  %v8026_v33 = vsel %vm7080_vm8, %v8024_v53, %v8025_v21  ;;  %v7918_v53 = vld [vmem:[#allocation3 + $0x220] sm:$0xfc]  ;;  %v7921_v12 = vld [vmem:[#allocation3 + $0x238] sm:$0x3] }
 0x867   :  { %15236 = vmatpush1.bf16.msra.mxu1 %v22269_v25  ;;  %v22296_v25 = vld [vmem:[#allocation10 + $0x1ac0] ss:$16 sps:$4 sm:$0xff]   ;;  %v8075_v19 = vpack.c.bf16 %v8035_v35, %v8026_v33  ;;  %v7978_v58 = vsel %vm7080_vm8, %v7976_v20, %v7977_v1  ;;  %v8040_v16 = vrot.slane %v7921_v12, 2 }
 0x868   :  { %14181 = vmatmul.mubr.bf16.gmra.mrb[68].mxu0 %v8069_v9  ;;  %15237 = vmatprep.subr.bf16.mxu1 %v22277_v6  ;;  %v7986_v6 = vrot.slane %v7885_v22, 2  ;;  %v22323_v33 = vld [vmem:[#allocation13 + $0x50] ss:$8 sps:$4 sm:$0xff]   ;;  %v22331_v1 = vld [vmem:[#allocation13 + $0x74] ss:$8 sps:$4 sm:$0xff]  }
 0x869   :  { %14190 = vmatprep.mubr.bf16.mxu0 %v8073_v26  ;;  %14216 = vmatpush1.bf16.msra.mxu0 %v22272_v4  ;;  %v22302_v4 = vld [vmem:[#allocation10 + $0x1ae0] ss:$16 sps:$4 sm:$0xff]  }
 0x86a   :  { %15203 = vmatmul.mubr.bf16.gmra.mrb[132].mxu1 %v8069_v9  ;;  %14217 = vmatprep.subr.bf16.mxu0 %v22280_v54  ;;  %v7987_v9 = vsel %vm7080_vm8, %v7985_v14, %v7986_v6  ;;  %v7891_v54 = vld [vmem:[#allocation3 + $0xe8] sm:$0x3]  ;;  %v22329_v20 = vld [vmem:[#allocation13 + $0x70] ss:$8 sps:$4 sm:$0xff]   ;;  %v22332_v14 = vld [vmem:[#allocation13 + $0x80] ss:$8 sps:$4 sm:$0xff]  }
 0x86b   :  { %15212 = vmatprep.mubr.bf16.mxu1 %v8073_v26  ;;  %15238 = vmatpush1.bf16.msra.mxu1 %v22275_v50  ;;  %v22310_v50 = vld [vmem:[#allocation13 + $0x4] ss:$8 sps:$4 sm:$0xff]   ;;  %v8068_v38 = vpack.c.bf16 %v7987_v9, %v7978_v58  ;;  %v22344_v58 = vld [vmem:[#allocation13 + $0xc0] ss:$8 sps:$4 sm:$0xff]  }
 0x86c   :  { %15239 = vmatprep.subr.bf16.mxu1 %v22283_v59  ;;  %v22305_v26 = vld [vmem:[#allocation10 + $0x1ae8] ss:$16 sps:$4 sm:$0xff]   ;;  %v7995_v59 = vrot.slane %v7891_v54, 2 }
 0x86d   :  { %14218 = vmatpush1.bf16.msra.mxu0 %v22278_v52  ;;  %v22313_v52 = vld [vmem:[#allocation13 + $0x14] ss:$8 sps:$4 sm:$0xff]   ;;  %v22334_v6 = vld [vmem:[#allocation13 + $0x84] ss:$8 sps:$4 sm:$0xff]   ;;  %v22347_v54 = vld [vmem:[#allocation13 + $0xd0] ss:$8 sps:$4 sm:$0xff]  }
 0x86e   :  { %14219 = vmatprep.subr.bf16.mxu0 %v22286_v51  ;;  %v7996_v28 = vsel %vm7080_vm8, %v7994_v61, %v7995_v59  ;;  %v7900_v51 = vld [vmem:[#allocation3 + $0x190] sm:$0xfc]  ;;  %v15306_v61 = vld [vmem:[#allocation12] sm:$0x3] }
 0x86f   :  { %15240 = vmatpush1.bf16.msra.mxu1 %v22281_v48  ;;  %v22311_v48 = vld [vmem:[#allocation13 + $0x10] ss:$8 sps:$4 sm:$0xff]   ;;  %v8012_v56 = vrot.slane %v7900_v51, 2  ;;  %v22346_v9 = vld [vmem:[#allocation13 + $0xc4] ss:$8 sps:$4 sm:$0xff]   ;;  %v25013_v59 = vrot.slane %v15306_v61, %v24041_v10  ;;  %v25016_v40 = vrot.slane %v15306_v61, %v25692_v34 }
 0x870   :  { %14191 = vmatmul.mubr.bf16.gmra.mrb[72].mxu0 %v8072_v60  ;;  %15241 = vmatprep.subr.bf16.mxu1 %v22289_v39  ;;  %v8071_v39 = vpack.c.bf16 %v8005_v62, %v7996_v28 }
 0x871   :  { %14200 = vmatprep.mubr.bf16.mxu0 %v8076_v3  ;;  %14220 = vmatpush1.bf16.msra.mxu0 %v22284_v57  ;;  %v22319_v57 = vld [vmem:[#allocation13 + $0x34] ss:$8 sps:$4 sm:$0xff]   ;;  %v8014_v23 = vsel %vm7080_vm8, %v8012_v56, %v8013_v46  ;;  %v15668_v7 = vcombine.low %v25013_v59, %v25016_v40 }
 0x872   :  { %15213 = vmatmul.mubr.bf16.gmra.mrb[136].mxu1 %v8072_v60  ;;  %14221 = vmatprep.subr.bf16.mxu0 %v22292_v13  ;;  %v8023_v60 = vsel %vm7080_vm8, %v8021_v27, %v8022_v42  ;;  %v7912_v13 = vld [vmem:[#allocation3 + $0x1f0] sm:$0xfc] }
 0x873   :  { %15222 = vmatprep.mubr.bf16.mxu1 %v8076_v3  ;;  %15242 = vmatpush1.bf16.msra.mxu1 %v22287_v36  ;;  %v7915_v36 = vld [vmem:[#allocation3 + $0x208] sm:$0x3]  ;;  %v22317_v3 = vld [vmem:[#allocation13 + $0x30] ss:$8 sps:$4 sm:$0xff]   ;;  %v8030_v21 = vrot.slane %v7912_v13, 2 }
 0x874   :  { %15243 = vmatprep.subr.bf16.mxu1 %v22295_v31  ;;  %v8074_v31 = vpack.c.bf16 %v8023_v60, %v8014_v23 }
 0x875   :  { %14222 = vmatpush1.bf16.msra.mxu0 %v22290_v17  ;;  %v8031_v17 = vrot.slane %v7915_v36, 2 }
 0x876   :  { %14223 = vmatprep.subr.bf16.mxu0 %v22298_v45  ;;  %v8039_v45 = vrot.slane %v7918_v53, 2 }
 0x877   :  { %15244 = vmatpush1.bf16.msra.mxu1 %v22293_v37  ;;  %v8032_v22 = vsel %vm7080_vm8, %v8030_v21, %v8031_v17 }
 0x878   :  { %14201 = vmatmul.mubr.bf16.gmra.mrb[76].mxu0 %v8075_v19  ;;  %15245 = vmatprep.subr.bf16.mxu1 %v22301_v2  ;;  %v8041_v37 = vsel %vm7080_vm8, %v8039_v45, %v8040_v16  ;;  %v22326_v2 = vld [vmem:[#allocation13 + $0x60] ss:$8 sps:$4 sm:$0xff]  }
 0x879   :  { %14224 = vmatpush1.bf16.msra.mxu0 %v22296_v25  ;;  %14243 = vmatprep.mubr.bf16.mxu0 %v25691_v5  ;;  %v8077_v35 = vpack.c.bf16 %v8041_v37, %v8032_v22  ;;  %v22328_v25 = vld [vmem:[#allocation13 + $0x64] ss:$8 sps:$4 sm:$0xff]  }
 0x87a   :  { %15223 = vmatmul.mubr.bf16.gmra.mrb[140].mxu1 %v8075_v19  ;;  %14225 = vmatprep.subr.bf16.mxu0 %v22304_v8  ;;  %v22335_v19 = vld [vmem:[#allocation13 + $0x90] ss:$8 sps:$4 sm:$0xff]   ;;  %v22337_v8 = vld [vmem:[#allocation13 + $0x94] ss:$8 sps:$4 sm:$0xff]  }
 0x87b   :  { %15246 = vmatpush1.bf16.msra.mxu1 %v22299_v30  ;;  %15265 = vmatprep.mubr.bf16.mxu1 %v25691_v5  ;;  %v22338_v30 = vld [vmem:[#allocation13 + $0xa0] ss:$8 sps:$4 sm:$0xff]  }
 0x87c   :  { %15247 = vmatprep.subr.bf16.mxu1 %v22307_v47  ;;  %v22340_v47 = vld [vmem:[#allocation13 + $0xa4] ss:$8 sps:$4 sm:$0xff]  }
 0x87d   :  { %14226 = vmatpush1.bf16.msra.mxu0 %v22302_v4  ;;  %v22341_v4 = vld [vmem:[#allocation13 + $0xb0] ss:$8 sps:$4 sm:$0xff]  }
 0x87e   :  { %17471 = vmatprep.subr.bf16.mxu0 %v22310_v50  ;;  %v22355_v50 = vld [vmem:[#allocation13 + $0xf4] ss:$8 sps:$4 sm:$0xff]  }
 0x87f   :  { %15248 = vmatpush1.bf16.msra.mxu1 %v22305_v26  ;;  %v22353_v26 = vld [vmem:[#allocation13 + $0xf0] ss:$8 sps:$4 sm:$0xff]  }
 0x880   :  { %14244 = vmatmul.mubr.bf16.vlgmr.msra.gmra.mrb[64].mxu0 %v8068_v38 }
 0x881   :  { %14253 = vmatprep.mubr.bf16.mxu0 %v25691_v5  ;;  %17472 = vmatpush1.bf16.msra.mxu0 %v22308_v29 }
 0x882   :  { %15266 = vmatmul.mubr.bf16.vlgmr.msra.gmra.mrb[128].mxu1 %v8068_v38  ;;  %17473 = vmatprep.subr.bf16.mxu0 %v22313_v52  ;;  %v22358_v38 = vld [vmem:[#allocation13 + $0x104] ss:$8 sps:$4 sm:$0xff]  }
 0x883   :  { %15275 = vmatprep.mubr.bf16.mxu1 %v25691_v5 }
 0x885   :  { %17474 = vmatpush1.bf16.msra.mxu0 %v22311_v48 }
 0x886   :  { %17475 = vmatprep.subr.bf16.mxu0 %v22316_v32 }
 0x888   :  { %14254 = vmatmul.mubr.bf16.gmra.mrb[68].mxu0 %v8071_v39 }
 0x889   :  { %14263 = vmatprep.mubr.bf16.mxu0 %v25691_v5  ;;  %17476 = vmatpush1.bf16.msra.mxu0 %v22314_v0  ;;  %v25021_v0 = vrot.slane %v15668_v7, %v24047_v24 }
 0x88a   :  { %15276 = vmatmul.mubr.bf16.gmra.mrb[132].mxu1 %v8071_v39  ;;  %17477 = vmatprep.subr.bf16.mxu0 %v22319_v57 }
 0x88b   :  { %15285 = vmatprep.mubr.bf16.mxu1 %v25691_v5  ;;  %v15686_v37 = vrot.slane %v25021_v0, 1 }
 0x88d   :  { %17478 = vmatpush1.bf16.msra.mxu0 %v22317_v3 }
 0x88e   :  { %17479 = vmatprep.subr.bf16.mxu0 %v22322_v18 }
 0x890   :  { %14264 = vmatmul.mubr.bf16.gmra.mrb[72].mxu0 %v8074_v31 }
 0x891   :  { %14273 = vmatprep.mubr.bf16.mxu0 %v25691_v5  ;;  %17480 = vmatpush1.bf16.msra.mxu0 %v22320_v49 }
 0x892   :  { %15286 = vmatmul.mubr.bf16.gmra.mrb[136].mxu1 %v8074_v31  ;;  %17481 = vmatprep.subr.bf16.mxu0 %v22325_v55 }
 0x893   :  { %15295 = vmatprep.mubr.bf16.mxu1 %v25691_v5  ;;  %v22343_v5 = vld [vmem:[#allocation13 + $0xb4] ss:$8 sps:$4 sm:$0xff]  }
 0x895   :  { %17482 = vmatpush1.bf16.msra.mxu0 %v22323_v33 }
 0x896   :  { %17483 = vmatprep.subr.bf16.mxu0 %v22328_v25 }
 0x898   :  { %14274 = vmatmul.mubr.bf16.gmra.mrb[76].mxu0 %v8077_v35 }
 0x899   :  { %17484 = vmatpush1.bf16.msra.mxu0 %v22326_v2 }
 0x89a   :  { %15296 = vmatmul.mubr.bf16.gmra.mrb[140].mxu1 %v8077_v35  ;;  %17485 = vmatprep.subr.bf16.mxu0 %v22331_v1 }
 0x89d   :  { %17486 = vmatpush1.bf16.msra.mxu0 %v22329_v20  ;;  %v25030_v20 = vcombine.high %v25021_v0, %v25021_v0 }
 0x89e   :  { %17487 = vmatprep.subr.bf16.mxu0 %v22334_v6 }
 0x8a1   :  { %17488 = vmatpush1.bf16.msra.mxu0 %v22332_v14 }
 0x8a2   :  { %17489 = vmatprep.subr.bf16.mxu0 %v22337_v8 }
 0x8a5   :  { %17490 = vmatpush1.bf16.msra.mxu0 %v22335_v19 }
 0x8a6   :  { %17491 = vmatprep.subr.bf16.mxu0 %v22340_v47 }
 0x8a9   :  { %17492 = vmatpush1.bf16.msra.mxu0 %v22338_v30 }
 0x8aa   :  { %17493 = vmatprep.subr.bf16.mxu0 %v22343_v5 }
 0x8ad   :  { %17494 = vmatpush1.bf16.msra.mxu0 %v22341_v4 }
 0x8ae   :  { %17495 = vmatprep.subr.bf16.mxu0 %v22346_v9 }
 0x8b1   :  { %17496 = vmatpush1.bf16.msra.mxu0 %v22344_v58 }
 0x8b2   :  { %17497 = vmatprep.subr.bf16.mxu0 %v22349_v63 }
 0x8b5   :  { %17498 = vmatpush1.bf16.msra.mxu0 %v22347_v54 }
 0x8b6   :  { %17499 = vmatprep.subr.bf16.mxu0 %v22352_v11 }
 0x8b9   :  { %17500 = vmatpush1.bf16.msra.mxu0 %v22350_v43 }
 0x8ba   :  { %17501 = vmatprep.subr.bf16.mxu0 %v22355_v50 }
 0x8bd   :  { %17502 = vmatpush1.bf16.msra.mxu0 %v22353_v26 }
 0x8be   :  { %17512 = vmatprep.subr.bf16.mxu0 %v22358_v38 }
 0x953   :  { %v14245_v29 = vpop.f32.mrb[64].mxu0 }
 0x954   :  { %v14247_v52 = vpop.f32.mrb[65].mxu0 }
 0x955   :  { %v15267_v28 = vpop.f32.mrb[128].mxu1  ;;  %v14249_v62 = vpop.f32.mrb[66].mxu0 }
 0x956   :  { %v15307_v51 = vmax.f32 %v14245_v29, %v15267_v28  ;;  %v15269_v41 = vpop.f32.mrb[129].mxu1  ;;  %v14251_v48 = vpop.f32.mrb[67].mxu0 }
 0x957   :  { %v15308_v44 = vmax.f32 %v14247_v52, %v15269_v41  ;;  %v15271_v32 = vpop.f32.mrb[130].mxu1 }
 0x958   :  { %v15309_v39 = vmax.f32 %v14249_v62, %v15271_v32  ;;  %v15273_v56 = vpop.f32.mrb[131].mxu1 }
 0x959   :  { %v15339_v46 = vcombine.low %v15307_v51, %v15308_v44  ;;  %v15340_v27 = vcombine.high %v15307_v51, %v15308_v44  ;;  %v15310_v42 = vmax.f32 %v14251_v48, %v15273_v56 }
 0x95b   :  { %v15347_v57 = vrot.slane %v15339_v46, %v24047_v24  ;;  %v15354_v23 = vrot.slane %v15340_v27, %v24047_v24  ;;  %v15357_v60 = vcombine.low %v15309_v39, %v15310_v42  ;;  %v15358_v13 = vcombine.high %v15309_v39, %v15310_v42  ;;  %v14255_v36 = vpop.f32.mrb[68].mxu0 }
 0x95c   :  { %v14257_v3 = vpop.f32.mrb[69].mxu0 }
 0x95d   :  { %v15355_v53 = vcombine.high %v15347_v57, %v15347_v57  ;;  %v15356_v12 = vcombine.high %v15354_v23, %v15354_v23  ;;  %v19279_v18 = vrot.slane %v15347_v57, 9  ;;  %v19281_v31 = vrot.slane %v15354_v23, 9  ;;  %v15277_v21 = vpop.f32.mrb[132].mxu1  ;;  %v14259_v17 = vpop.f32.mrb[70].mxu0 }
 0x95e   :  { %v15365_v45 = vrot.slane %v15357_v60, %v24047_v24  ;;  %v15372_v16 = vrot.slane %v15358_v13, %v24047_v24  ;;  %v15311_v49 = vmax.f32 %v14255_v36, %v15277_v21  ;;  %v15279_v55 = vpop.f32.mrb[133].mxu1  ;;  %v14261_v22 = vpop.f32.mrb[71].mxu0 }
 0x95f   :  { %v19280_v33 = vrot.slane %v15355_v53, 9  ;;  %v19282_v35 = vrot.slane %v15356_v12, 9  ;;  %v15611_v2 = vmax.f32 %v15347_v57, %v19279_v18  ;;  %v15281_v25 = vpop.f32.mrb[134].mxu1  ;;  %v25034_v47 = vmax.f32 %v15354_v23, %v19281_v31 }
 0x960   :  { %v15373_v1 = vcombine.high %v15365_v45, %v15365_v45  ;;  %v15374_v14 = vcombine.high %v15372_v16, %v15372_v16  ;;  %v19283_v6 = vrot.slane %v15365_v45, 9  ;;  %v19285_v19 = vrot.slane %v15372_v16, 9  ;;  %v15283_v8 = vpop.f32.mrb[135].mxu1 }
 0x961   :  { %v25032_v30 = vmax.f32 %v15355_v53, %v19280_v33  ;;  %v15312_v4 = vmax.f32 %v14257_v3, %v15279_v55  ;;  %v15313_v5 = vmax.f32 %v14259_v17, %v15281_v25  ;;  %v25038_v11 = vmax.f32 %v15356_v12, %v19282_v35 }
 0x962   :  { %v19284_v58 = vrot.slane %v15373_v1, 9  ;;  %v19286_v9 = vrot.slane %v15374_v14, 9  ;;  %v15615_v63 = vmax.f32 %v15365_v45, %v19283_v6  ;;  %v25036_v54 = vmax.f32 %v15372_v16, %v19285_v19 }
 0x963   :  { %v15375_v43 = vcombine.low %v15311_v49, %v15312_v4  ;;  %v15376_v50 = vcombine.high %v15311_v49, %v15312_v4  ;;  %v15314_v26 = vmax.f32 %v14261_v22, %v15283_v8  ;;  %v14265_v38 = vpop.f32.mrb[72].mxu0 }
 0x964   :  { %v25040_v61 = vmax.f32 %v15373_v1, %v19284_v58  ;;  %v25042_v29 = vmax.f32 %v15374_v14, %v19286_v9  ;;  %v15643_v52 = vmax.f32 %v15611_v2, %v15615_v63  ;;  %v15645_v28 = vmax.f32 %v25034_v47, %v25036_v54  ;;  %v14267_v62 = vpop.f32.mrb[73].mxu0  ;;  %v22361_v54 = vld [vmem:[#allocation13 + $0x114] ss:$8 sps:$4 sm:$0xff]  }
 0x965   :  { %v15383_v51 = vrot.slane %v15375_v43, %v24047_v24  ;;  %v15390_v41 = vrot.slane %v15376_v50, %v24047_v24  ;;  %v15393_v48 = vcombine.low %v15313_v5, %v15314_v26  ;;  %v15394_v7 = vcombine.high %v15313_v5, %v15314_v26  ;;  %v15287_v44 = vpop.f32.mrb[136].mxu1  ;;  %v14269_v32 = vpop.f32.mrb[74].mxu0 }
 0x966   :  { %v15644_v39 = vmax.f32 %v25032_v30, %v25040_v61  ;;  %v15646_v56 = vmax.f32 %v25038_v11, %v25042_v29  ;;  %v15315_v46 = vmax.f32 %v14265_v38, %v15287_v44  ;;  %v15289_v27 = vpop.f32.mrb[137].mxu1  ;;  %v14271_v42 = vpop.f32.mrb[75].mxu0  ;;  %v25053_v57 = vadd.f32 %v25021_v0, %v15643_v52  ;;  %v22370_v11 = vld [vmem:[#allocation13 + $0x144] ss:$8 sps:$4 sm:$0xff]   ;;  %v22368_v29 = vld [vmem:[#allocation13 + $0x140] ss:$8 sps:$4 sm:$0xff]  }
 0x967   :  { %v15391_v23 = vcombine.high %v15383_v51, %v15383_v51  ;;  %v15392_v60 = vcombine.high %v15390_v41, %v15390_v41  ;;  %v19287_v13 = vrot.slane %v15383_v51, 9  ;;  %v19289_v36 = vrot.slane %v15390_v41, 9  ;;  %v15291_v3 = vpop.f32.mrb[138].mxu1 }
 0x968   :  { %v15401_v53 = vrot.slane %v15393_v48, %v24047_v24  ;;  %v15408_v12 = vrot.slane %v15394_v7, %v24047_v24  ;;  %v15316_v18 = vmax.f32 %v14267_v62, %v15289_v27  ;;  %v15317_v31 = vmax.f32 %v14269_v32, %v15291_v3  ;;  %v15293_v21 = vpop.f32.mrb[139].mxu1 }
 0x969   :  { %v19288_v17 = vrot.slane %v15391_v23, 9  ;;  %v19290_v45 = vrot.slane %v15392_v60, 9  ;;  %v25057_v16 = vmax.f32 %v15383_v51, %v19287_v13  ;;  %v25059_v49 = vmax.f32 %v15390_v41, %v19289_v36 }
 0x96a   :  { %v15409_v55 = vcombine.high %v15401_v53, %v15401_v53  ;;  %v15410_v22 = vcombine.high %v15408_v12, %v15408_v12  ;;  %v19291_v33 = vrot.slane %v15401_v53, 9  ;;  %v19293_v35 = vrot.slane %v15408_v12, 9 }
 0x96b   :  { %v25061_v2 = vmax.f32 %v15391_v23, %v19288_v17  ;;  %v25063_v25 = vmax.f32 %v15392_v60, %v19290_v45  ;;  %v15411_v1 = vcombine.low %v15315_v46, %v15316_v18  ;;  %v15412_v14 = vcombine.high %v15315_v46, %v15316_v18  ;;  %v14275_v6 = vpop.f32.mrb[76].mxu0 }
 0x96c   :  { %v19292_v19 = vrot.slane %v15409_v55, 9  ;;  %v19294_v8 = vrot.slane %v15410_v22, 9  ;;  %v25065_v4 = vmax.f32 %v15401_v53, %v19291_v33  ;;  %v25067_v5 = vmax.f32 %v15408_v12, %v19293_v35  ;;  %v14277_v58 = vpop.f32.mrb[77].mxu0 }
 0x96d   :  { %v15419_v9 = vrot.slane %v15411_v1, %v24047_v24  ;;  %v15426_v63 = vrot.slane %v15412_v14, %v24047_v24  ;;  %v15318_v43 = vmax.f32 %v14271_v42, %v15293_v21  ;;  %v15297_v50 = vpop.f32.mrb[140].mxu1  ;;  %v14279_v26 = vpop.f32.mrb[78].mxu0  ;;  %v15714_v38 = vmax.f32 %v25053_v57, 0.0 }
 0x96e   :  { %v25072_v52 = vmax.f32 %v15409_v55, %v19292_v19  ;;  %v25074_v62 = vmax.f32 %v15410_v22, %v19294_v8  ;;  %v15649_v41 = vmax.f32 %v25059_v49, %v25067_v5  ;;  %v15299_v48 = vpop.f32.mrb[141].mxu1  ;;  %v14281_v7 = vpop.f32.mrb[79].mxu0  ;;  %v15319_v55 = vmax.f32 %v14275_v6, %v15297_v50  ;;  %v22389_v49 = vld [vmem:[#allocation13 + $0x1b0] ss:$8 sps:$4 sm:$0xff]   ;;  %v22394_v5 = vld [vmem:[#allocation13 + $0x1c4] ss:$8 sps:$4 sm:$0xff]  }
 0x96f   :  { %v15427_v44 = vcombine.high %v15419_v9, %v15419_v9  ;;  %v15428_v32 = vcombine.high %v15426_v63, %v15426_v63  ;;  %v19295_v46 = vrot.slane %v15419_v9, 9  ;;  %v19297_v27 = vrot.slane %v15426_v63, 9  ;;  %v15301_v42 = vpop.f32.mrb[142].mxu1 }
 0x970   :  { %v15429_v13 = vcombine.low %v15317_v31, %v15318_v43  ;;  %v15430_v36 = vcombine.high %v15317_v31, %v15318_v43  ;;  %v15303_v3 = vpop.f32.mrb[143].mxu1  ;;  %v15320_v22 = vmax.f32 %v14277_v58, %v15299_v48  ;;  %v15321_v1 = vmax.f32 %v14279_v26, %v15301_v42 }
 0x971   :  { %v19296_v53 = vrot.slane %v15427_v44, 9  ;;  %v19298_v12 = vrot.slane %v15428_v32, 9  ;;  %v15627_v18 = vmax.f32 %v15419_v9, %v19295_v46  ;;  %v25084_v21 = vmax.f32 %v15426_v63, %v19297_v27 }
 0x972   :  { %v15437_v17 = vrot.slane %v15429_v13, %v24047_v24  ;;  %v15444_v45 = vrot.slane %v15430_v36, %v24047_v24  ;;  %v15322_v14 = vmax.f32 %v14281_v7, %v15303_v3  ;;  %v15447_v23 = vcombine.low %v15319_v55, %v15320_v22 }
 0x973   :  { %v15628_v33 = vmax.f32 %v15427_v44, %v19296_v53  ;;  %v25088_v35 = vmax.f32 %v15428_v32, %v19298_v12  ;;  %v15448_v51 = vcombine.high %v15319_v55, %v15320_v22 }
 0x974   :  { %v15445_v19 = vcombine.high %v15437_v17, %v15437_v17  ;;  %v15446_v8 = vcombine.high %v15444_v45, %v15444_v45  ;;  %v19299_v31 = vrot.slane %v15437_v17, 9  ;;  %v19301_v43 = vrot.slane %v15444_v45, 9 }
 0x975   :  { %v15465_v9 = vcombine.low %v15321_v1, %v15322_v14  ;;  %v15466_v63 = vcombine.high %v15321_v1, %v15322_v14  ;;  %v15455_v6 = vrot.slane %v15447_v23, %v24047_v24  ;;  %v15462_v58 = vrot.slane %v15448_v51, %v24047_v24 }
 0x976   :  { %v19300_v46 = vrot.slane %v15445_v19, 9  ;;  %v19302_v27 = vrot.slane %v15446_v8, 9  ;;  %v15631_v13 = vmax.f32 %v15437_v17, %v19299_v31  ;;  %v15633_v60 = vmax.f32 %v15444_v45, %v19301_v43 }
 0x977   :  { %v15473_v50 = vrot.slane %v15465_v9, %v24047_v24  ;;  %v15480_v26 = vrot.slane %v15466_v63, %v24047_v24  ;;  %v15463_v42 = vcombine.high %v15455_v6, %v15455_v6  ;;  %v15464_v36 = vcombine.high %v15462_v58, %v15462_v58 }
 0x978   :  { %v15632_v48 = vmax.f32 %v15445_v19, %v19300_v46  ;;  %v25094_v7 = vmax.f32 %v15446_v8, %v19302_v27  ;;  %v15651_v44 = vmax.f32 %v15627_v18, %v15631_v13  ;;  %v15653_v32 = vmax.f32 %v25084_v21, %v15633_v60 }
 0x979   :  { %v19303_v3 = vrot.slane %v15455_v6, 9  ;;  %v19305_v53 = vrot.slane %v15462_v58, 9  ;;  %v15481_v51 = vcombine.high %v15473_v50, %v15473_v50  ;;  %v15482_v17 = vcombine.high %v15480_v26, %v15480_v26 }
 0x97a   :  { %v15652_v12 = vmax.f32 %v15628_v33, %v15632_v48  ;;  %v15654_v23 = vmax.f32 %v25088_v35, %v25094_v7  ;;  %v19304_v45 = vrot.slane %v15463_v42, 9  ;;  %v19306_v55 = vrot.slane %v15464_v36, 9  ;;  %v22371_v35 = vld [vmem:[#allocation13 + $0x150] ss:$8 sps:$4 sm:$0xff]   ;;  %v22376_v7 = vld [vmem:[#allocation13 + $0x164] ss:$8 sps:$4 sm:$0xff]  }
 0x97b   :  { %v25099_v22 = vmax.f32 %v15455_v6, %v19303_v3  ;;  %v25101_v1 = vmax.f32 %v15462_v58, %v19305_v53  ;;  %v19307_v18 = vrot.slane %v15473_v50, 9  ;;  %v19308_v14 = vrot.slane %v15481_v51, 9 }
 0x97c   :  { %v19309_v60 = vrot.slane %v15480_v26, 9  ;;  %v19310_v21 = vrot.slane %v15482_v17, 9  ;;  %v25103_v19 = vmax.f32 %v15463_v42, %v19304_v45  ;;  %v25105_v8 = vmax.f32 %v15464_v36, %v19306_v55 }
 0x97d   :  { %v15706_v33 = vadd.f32 %v25021_v0, %v15651_v44  ;;  %v15735_v31 = vrot.slane %v15714_v38, %v24041_v10  ;;  %v25111_v43 = vmax.f32 %v15473_v50, %v19307_v18  ;;  %v25113_v9 = vmax.f32 %v15481_v51, %v19308_v14 }
 0x97e   :  { %v25115_v63 = vmax.f32 %v15480_v26, %v19309_v60  ;;  %v25117_v46 = vmax.f32 %v15482_v17, %v19310_v21  ;;  %v15739_v13 = vrot.slane %v15714_v38, %v24079_v15  ;;  %v15699_v6 = vadd.f32 %v15686_v37, %v15644_v39  ;;  %v22359_v21 = vld [vmem:[#allocation13 + $0x110] ss:$8 sps:$4 sm:$0xff]  }
 0x97f   :  { %v15722_v27 = vmax.f32 %v15706_v33, 0.0  ;;  %v15707_v58 = vadd.f32 %v15686_v37, %v15652_v12  ;;  %v15655_v50 = vmax.f32 %v25099_v22, %v25111_v43  ;;  %v15656_v26 = vmax.f32 %v25103_v19, %v25113_v9  ;;  %v22356_v12 = vld [vmem:[#allocation13 + $0x100] ss:$8 sps:$4 sm:$0xff]   ;;  %v22400_v43 = vld [vmem:[#allocation13 + $0x1e4] ss:$8 sps:$4 sm:$0xff]  }
 0x980   :  { %v15657_v48 = vmax.f32 %v25101_v1, %v25115_v63  ;;  %v15658_v57 = vmax.f32 %v25105_v8, %v25117_v46  ;;  %v15715_v39 = vmax.f32 %v15699_v6, 0.0  ;;  %v15700_v0 = vadd.f32 %v25030_v20, %v15645_v28 }
 0x981   :  { %v15743_v30 = vrot.slane %v15722_v27, %v24041_v10  ;;  %v15747_v61 = vrot.slane %v15722_v27, %v24079_v15  ;;  %v15723_v38 = vmax.f32 %v15707_v58, 0.0  ;;  %v15708_v37 = vadd.f32 %v25030_v20, %v15653_v32 }
 0x982   :  { %v15762_v36 = vrot.slane %v15715_v39, %v24079_v15  ;;  %v15758_v17 = vrot.slane %v15715_v39, %v24041_v10  ;;  %v15716_v28 = vmax.f32 %v15700_v0, 0.0  ;;  %v15687_v27 = vrot.slane %v25030_v20, 1  ;;  %v22362_v39 = vld [vmem:[#allocation13 + $0x120] ss:$8 sps:$4 sm:$0xff]   ;;  %v22367_v0 = vld [vmem:[#allocation13 + $0x134] ss:$8 sps:$4 sm:$0xff]  }
 0x983   :  { %v15750_v44 = vsel %vm15748_vm9, %v15747_v61, %v15739_v13  ;;  %v15749_v42 = vsel %vm15748_vm9, %v15743_v30, %v15735_v31  ;;  %v15770_v3 = vrot.slane %v15723_v38, %v24079_v15  ;;  %v15766_v45 = vrot.slane %v15723_v38, %v24041_v10  ;;  %v22364_v13 = vld [vmem:[#allocation13 + $0x124] ss:$8 sps:$4 sm:$0xff]  }
 0x984   :  { %v15908_v53 = vpack.c.bf16 %v15750_v44, %v15750_v44  ;;  %v15907_v51 = vpack.c.bf16 %v15749_v42, %v15749_v42  ;;  %v15724_v32 = vmax.f32 %v15708_v37, 0.0  ;;  %v15784_v14 = vrot.slane %v15716_v28, %v24079_v15  ;;  %v22365_v42 = vld [vmem:[#allocation13 + $0x130] ss:$8 sps:$4 sm:$0xff]  }
 0x985   :  { %v15772_v47 = vsel %vm15748_vm9, %v15770_v3, %v15762_v36  ;;  %v25152_v18 = vsel %vm15748_vm9, %v15766_v45, %v15758_v17  ;;  %v15780_v33 = vrot.slane %v15716_v28, %v24041_v10  ;;  %v15701_v30 = vadd.f32 %v15687_v27, %v15646_v56  ;;  %v22373_v56 = vld [vmem:[#allocation13 + $0x154] ss:$8 sps:$4 sm:$0xff]   ;;  %v22380_v45 = vld [vmem:[#allocation13 + $0x180] ss:$8 sps:$4 sm:$0xff]  }
 0x986   :  { %17503 = vmatprep.mubr.bf16.mxu0 %v15908_v53  ;;  %v15910_v55 = vpack.c.bf16 %v15772_v47, %v15772_v47  ;;  %v15792_v60 = vrot.slane %v15724_v32, %v24079_v15  ;;  %v15788_v31 = vrot.slane %v15724_v32, %v24041_v10  ;;  %v15709_v61 = vadd.f32 %v15687_v27, %v15654_v23  ;;  %v22374_v23 = vld [vmem:[#allocation13 + $0x160] ss:$8 sps:$4 sm:$0xff]   ;;  %v22379_v3 = vld [vmem:[#allocation13 + $0x174] ss:$8 sps:$4 sm:$0xff]   ;;  %v22377_v53 = vld [vmem:[#allocation13 + $0x170] ss:$8 sps:$4 sm:$0xff]  }
 0x987   :  { %17504 = vmatmul.mubr.bf16.vlgmr.msra.gmra.mrb[80].mxu0 %v15907_v51  ;;  %v15717_v38 = vmax.f32 %v15701_v30, 0.0  ;;  %v22382_v51 = vld [vmem:[#allocation13 + $0x184] ss:$8 sps:$4 sm:$0xff]   ;;  %v22392_v27 = vld [vmem:[#allocation13 + $0x1c0] ss:$8 sps:$4 sm:$0xff]  }
 0x988   :  { %17513 = vmatpush1.bf16.msra.mxu0 %v22356_v12  ;;  %17544 = vmatprep.mubr.bf16.mxu0 %v15910_v55  ;;  %v25160_v6 = vsel %vm15748_vm9, %v15792_v60, %v15784_v14  ;;  %v25163_v58 = vsel %vm15748_vm9, %v15788_v31, %v15780_v33  ;;  %v15725_v20 = vmax.f32 %v15709_v61, 0.0  ;;  %v15669_v12 = vcombine.high %v25013_v59, %v25016_v40  ;;  %v22383_v55 = vld [vmem:[#allocation13 + $0x190] ss:$8 sps:$4 sm:$0xff]   ;;  %v22388_v40 = vld [vmem:[#allocation13 + $0x1a4] ss:$8 sps:$4 sm:$0xff]  }
 0x989   :  { %17514 = vmatprep.subr.bf16.mxu0 %v22361_v54  ;;  %v15806_v37 = vrot.slane %v15717_v38, %v24079_v15  ;;  %v22385_v54 = vld [vmem:[#allocation13 + $0x194] ss:$8 sps:$4 sm:$0xff]   ;;  %v25693_v14 = vmax.f32 %v25063_v25, %v25074_v62  ;;  %v25695_v25 = vmax.f32 %v25061_v2, %v25072_v52 }
 0x98a   :  { %v15814_v44 = vrot.slane %v15725_v20, %v24079_v15  ;;  %v15683_v17 = vrot.slane %v15669_v12, %v24047_v24  ;;  %v22386_v24 = vld [vmem:[#allocation13 + $0x1a0] ss:$8 sps:$4 sm:$0xff]   ;;  %v22391_v60 = vld [vmem:[#allocation13 + $0x1b4] ss:$8 sps:$4 sm:$0xff]   ;;  %v15810_v30 = vrot.slane %v15725_v20, %v24041_v10 }
 0x98b   :  { %v22397_v61 = vld [vmem:[#allocation13 + $0x1d4] ss:$8 sps:$4 sm:$0xff]  }
 0x98c   :  { %17515 = vmatpush1.bf16.msra.mxu0 %v22359_v21  ;;  %v25174_v36 = vsel %vm15748_vm9, %v15814_v44, %v15806_v37  ;;  %v15685_v47 = vcombine.high %v15683_v17, %v15683_v17  ;;  %v25694_v21 = vmax.f32 %v25057_v16, %v25065_v4  ;;  %v15688_v31 = vrot.slane %v15683_v17, 1 }
 0x98d   :  { %17516 = vmatprep.subr.bf16.mxu0 %v22364_v13  ;;  %v15802_v13 = vrot.slane %v15717_v38, %v24041_v10  ;;  %v22395_v38 = vld [vmem:[#allocation13 + $0x1d0] ss:$8 sps:$4 sm:$0xff]  }
 0x98e   :  { %v15704_v28 = vadd.f32 %v15685_v47, %v15649_v41  ;;  %v15689_v32 = vrot.slane %v15685_v47, 1  ;;  %v15702_v33 = vadd.f32 %v15683_v17, %v25694_v21  ;;  %v15703_v62 = vadd.f32 %v15688_v31, %v25695_v25  ;;  %v22407_v21 = vld [vmem:[#allocation13 + $0x210] ss:$8 sps:$4 sm:$0xff]   ;;  %v22421_v25 = vld [vmem:[#allocation13 + $0x254] ss:$8 sps:$4 sm:$0xff]  }
 0x98f   :  { %v25194_v4 = vsel %vm15748_vm9, %v15810_v30, %v15802_v13  ;;  %v15712_v2 = vadd.f32 %v15685_v47, %v15657_v48  ;;  %v15711_v37 = vadd.f32 %v15688_v31, %v15656_v26  ;;  %v22410_v31 = vld [vmem:[#allocation13 + $0x220] ss:$8 sps:$4 sm:$0xff]   ;;  %v22427_v13 = vld [vmem:[#allocation13 + $0x274] ss:$8 sps:$4 sm:$0xff]   ;;  %v22425_v30 = vld [vmem:[#allocation13 + $0x270] ss:$8 sps:$4 sm:$0xff]  }
 0x990   :  { %17517 = vmatpush1.bf16.msra.mxu0 %v22362_v39  ;;  %v15705_v59 = vadd.f32 %v15689_v32, %v25693_v14  ;;  %v15718_v41 = vmax.f32 %v15702_v33, 0.0  ;;  %v15720_v16 = vmax.f32 %v15704_v28, 0.0  ;;  %v15710_v39 = vadd.f32 %v15683_v17, %v15655_v50  ;;  %v22412_v33 = vld [vmem:[#allocation13 + $0x224] ss:$8 sps:$4 sm:$0xff]  }
 0x991   :  { %17518 = vmatprep.subr.bf16.mxu0 %v22367_v0  ;;  %v15719_v0 = vmax.f32 %v15703_v62, 0.0  ;;  %v15728_v44 = vmax.f32 %v15712_v2, 0.0  ;;  %v15713_v22 = vadd.f32 %v15689_v32, %v15658_v57  ;;  %v15727_v19 = vmax.f32 %v15711_v37, 0.0  ;;  %v22401_v32 = vld [vmem:[#allocation13 + $0x1f0] ss:$8 sps:$4 sm:$0xff]  }
 0x992   :  { %v15828_v52 = vrot.slane %v15718_v41, %v24079_v15  ;;  %v15726_v20 = vmax.f32 %v15710_v39, 0.0  ;;  %v15824_v1 = vrot.slane %v15718_v41, %v24041_v10  ;;  %v15872_v63 = vrot.slane %v15720_v16, %v24079_v15  ;;  %v22418_v41 = vld [vmem:[#allocation13 + $0x244] ss:$8 sps:$4 sm:$0xff]   ;;  %v22433_v39 = vld [vmem:[#allocation13 + $0x294] ss:$8 sps:$4 sm:$0xff]  }
 0x993   :  { %v15868_v50 = vrot.slane %v15720_v16, %v24041_v10  ;;  %v15721_v48 = vmax.f32 %v15705_v59, 0.0  ;;  %v15880_v9 = vrot.slane %v15728_v44, %v24079_v15  ;;  %v15850_v26 = vrot.slane %v15719_v0, %v24079_v15  ;;  %v22424_v62 = vld [vmem:[#allocation13 + $0x264] ss:$8 sps:$4 sm:$0xff]   ;;  %v22428_v16 = vld [vmem:[#allocation13 + $0x280] ss:$8 sps:$4 sm:$0xff]  }
 0x994   :  { %17519 = vmatpush1.bf16.msra.mxu0 %v22365_v42  ;;  %v15836_v42 = vrot.slane %v15726_v20, %v24079_v15  ;;  %v15846_v8 = vrot.slane %v15719_v0, %v24041_v10  ;;  %v15876_v46 = vrot.slane %v15728_v44, %v24041_v10  ;;  %v15729_v57 = vmax.f32 %v15713_v22, 0.0  ;;  %v22431_v2 = vld [vmem:[#allocation13 + $0x290] ss:$8 sps:$4 sm:$0xff]   ;;  %v22434_v0 = vld [vmem:[#allocation13 + $0x2a0] ss:$8 sps:$4 sm:$0xff]  }
 0x995   :  { %17520 = vmatprep.subr.bf16.mxu0 %v22370_v11  ;;  %v15832_v11 = vrot.slane %v15726_v20, %v24041_v10  ;;  %v22437_v20 = vld [vmem:[#allocation13 + $0x2b0] ss:$8 sps:$4 sm:$0xff]   ;;  %v22442_v37 = vld [vmem:[#allocation13 + $0x2c4] ss:$8 sps:$4 sm:$0xff]   ;;  %v22440_v44 = vld [vmem:[#allocation13 + $0x2c0] ss:$8 sps:$4 sm:$0xff]  }
 0x996   :  { %v25230_v12 = vsel %vm15748_vm9, %v15876_v46, %v15868_v50  ;;  %v15902_v47 = vrot.slane %v15729_v57, %v24079_v15  ;;  %v15898_v28 = vrot.slane %v15729_v57, %v24041_v10  ;;  %v22445_v22 = vld [vmem:[#allocation13 + $0x2d4] ss:$8 sps:$4 sm:$0xff]   ;;  %v22460_v46 = vld [vmem:[#allocation13 + $0x324] ss:$8 sps:$4 sm:$0xff]   ;;  %v22458_v57 = vld [vmem:[#allocation13 + $0x320] ss:$8 sps:$4 sm:$0xff]  }
 0x997   :  { %v22451_v50 = vld [vmem:[#allocation13 + $0x2f4] ss:$8 sps:$4 sm:$0xff]  }
 0x998   :  { %17521 = vmatpush1.bf16.msra.mxu0 %v22368_v29  ;;  %v22398_v29 = vld [vmem:[#allocation13 + $0x1e0] ss:$8 sps:$4 sm:$0xff]  }
 0x999   :  { %17522 = vmatprep.subr.bf16.mxu0 %v22373_v56  ;;  %v25219_v56 = vsel %vm15748_vm9, %v15836_v42, %v15828_v52  ;;  %v22436_v52 = vld [vmem:[#allocation13 + $0x2a4] ss:$8 sps:$4 sm:$0xff]  }
 0x99a   :  { %v22454_v42 = vld [vmem:[#allocation13 + $0x304] ss:$8 sps:$4 sm:$0xff]  }
 0x99c   :  { %17523 = vmatpush1.bf16.msra.mxu0 %v22371_v35  ;;  %v25222_v35 = vsel %vm15748_vm9, %v15832_v11, %v15824_v1  ;;  %v22448_v1 = vld [vmem:[#allocation13 + $0x2e4] ss:$8 sps:$4 sm:$0xff]   ;;  %v22452_v11 = vld [vmem:[#allocation13 + $0x300] ss:$8 sps:$4 sm:$0xff]  }
 0x99d   :  { %17524 = vmatprep.subr.bf16.mxu0 %v22376_v7  ;;  %v15858_v7 = vrot.slane %v15727_v19, %v24079_v15 }
 0x9a0   :  { %17525 = vmatpush1.bf16.msra.mxu0 %v22374_v23  ;;  %v15854_v23 = vrot.slane %v15727_v19, %v24041_v10  ;;  %v15911_v19 = vpack.c.bf16 %v25163_v58, %v25163_v58  ;;  %v22464_v58 = vld [vmem:[#allocation13 + $0x340] ss:$8 sps:$4 sm:$0xff]  }
 0x9a1   :  { %17526 = vmatprep.subr.bf16.mxu0 %v22379_v3  ;;  %v22403_v3 = vld [vmem:[#allocation13 + $0x1f4] ss:$8 sps:$4 sm:$0xff]  }
 0x9a2   :  { %v25236_v17 = vsel %vm15748_vm9, %v15854_v23, %v15846_v8  ;;  %v22455_v8 = vld [vmem:[#allocation13 + $0x310] ss:$8 sps:$4 sm:$0xff]   ;;  %v22466_v23 = vld [vmem:[#allocation13 + $0x344] ss:$8 sps:$4 sm:$0xff]  }
 0x9a4   :  { %17527 = vmatpush1.bf16.msra.mxu0 %v22377_v53  ;;  %v25227_v53 = vsel %vm15748_vm9, %v15880_v9, %v15872_v63  ;;  %v22446_v63 = vld [vmem:[#allocation13 + $0x2e0] ss:$8 sps:$4 sm:$0xff]   ;;  %v22457_v9 = vld [vmem:[#allocation13 + $0x314] ss:$8 sps:$4 sm:$0xff]  }
 0x9a5   :  { %17528 = vmatprep.subr.bf16.mxu0 %v22382_v51  ;;  %v25233_v51 = vsel %vm15748_vm9, %v15858_v7, %v15850_v26  ;;  %v15914_v26 = vpack.c.bf16 %v25174_v36, %v25174_v36  ;;  %v22461_v7 = vld [vmem:[#allocation13 + $0x330] ss:$8 sps:$4 sm:$0xff]  }
 0x9a6   :  { %v22467_v36 = vld [vmem:[#allocation13 + $0x350] ss:$8 sps:$4 sm:$0xff]  }
 0x9a8   :  { %17529 = vmatpush1.bf16.msra.mxu0 %v22380_v45  ;;  %v15894_v45 = vrot.slane %v15721_v48, %v24079_v15  ;;  %v22409_v15 = vld [vmem:[#allocation13 + $0x214] ss:$8 sps:$4 sm:$0xff]  }
 0x9a9   :  { %17530 = vmatprep.subr.bf16.mxu0 %v22385_v54  ;;  %v15890_v54 = vrot.slane %v15721_v48, %v24041_v10  ;;  %v22449_v48 = vld [vmem:[#allocation13 + $0x2f0] ss:$8 sps:$4 sm:$0xff]  }
 0x9aa   :  { %v25243_v14 = vsel %vm15748_vm9, %v15902_v47, %v15894_v45  ;;  %v22472_v45 = vld [vmem:[#allocation13 + $0x364] ss:$8 sps:$4 sm:$0xff]   ;;  %v22470_v47 = vld [vmem:[#allocation13 + $0x360] ss:$8 sps:$4 sm:$0xff]  }
 0x9ab   :  { %v25246_v59 = vsel %vm15748_vm9, %v15898_v28, %v15890_v54  ;;  %v22475_v54 = vld [vmem:[#allocation13 + $0x374] ss:$8 sps:$4 sm:$0xff]   ;;  %v22473_v28 = vld [vmem:[#allocation13 + $0x370] ss:$8 sps:$4 sm:$0xff]  }
 0x9ac   :  { %17531 = vmatpush1.bf16.msra.mxu0 %v22383_v55  ;;  %v22406_v55 = vld [vmem:[#allocation13 + $0x204] ss:$8 sps:$4 sm:$0xff]  }
 0x9ad   :  { %17532 = vmatprep.subr.bf16.mxu0 %v22388_v40  ;;  %v22404_v40 = vld [vmem:[#allocation13 + $0x200] ss:$8 sps:$4 sm:$0xff]  }
 0x9b0   :  { %17533 = vmatpush1.bf16.msra.mxu0 %v22386_v24  ;;  %v15909_v24 = vpack.c.bf16 %v25152_v18, %v25152_v18  ;;  %v22416_v18 = vld [vmem:[#allocation13 + $0x240] ss:$8 sps:$4 sm:$0xff]  }
 0x9b1   :  { %17534 = vmatprep.subr.bf16.mxu0 %v22391_v60  ;;  %v15912_v60 = vpack.c.bf16 %v25160_v6, %v25160_v6  ;;  %v22419_v6 = vld [vmem:[#allocation13 + $0x250] ss:$8 sps:$4 sm:$0xff]  }
 0x9b4   :  { %17535 = vmatpush1.bf16.msra.mxu0 %v22389_v49  ;;  %v22415_v49 = vld [vmem:[#allocation13 + $0x234] ss:$8 sps:$4 sm:$0xff]  }
 0x9b5   :  { %17536 = vmatprep.subr.bf16.mxu0 %v22394_v5  ;;  %v22413_v5 = vld [vmem:[#allocation13 + $0x230] ss:$8 sps:$4 sm:$0xff]  }
 0x9b8   :  { %17537 = vmatpush1.bf16.msra.mxu0 %v22392_v27  ;;  %v22422_v27 = vld [vmem:[#allocation13 + $0x260] ss:$8 sps:$4 sm:$0xff]  }
 0x9b9   :  { %17538 = vmatprep.subr.bf16.mxu0 %v22397_v61  ;;  %v22430_v61 = vld [vmem:[#allocation13 + $0x284] ss:$8 sps:$4 sm:$0xff]  }
 0x9bc   :  { %17539 = vmatpush1.bf16.msra.mxu0 %v22395_v38  ;;  %v22439_v38 = vld [vmem:[#allocation13 + $0x2b4] ss:$8 sps:$4 sm:$0xff]  }
 0x9bd   :  { %17540 = vmatprep.subr.bf16.mxu0 %v22400_v43  ;;  %v22443_v43 = vld [vmem:[#allocation13 + $0x2d0] ss:$8 sps:$4 sm:$0xff]  }
 0x9c0   :  { %17541 = vmatpush1.bf16.msra.mxu0 %v22398_v29  ;;  %v22463_v29 = vld [vmem:[#allocation13 + $0x334] ss:$8 sps:$4 sm:$0xff]  }
 0x9c1   :  { %17542 = vmatprep.subr.bf16.mxu0 %v22403_v3  ;;  %v22469_v3 = vld [vmem:[#allocation13 + $0x354] ss:$8 sps:$4 sm:$0xff]  }
 0x9c4   :  { %17543 = vmatpush1.bf16.msra.mxu0 %v22401_v32  ;;  %v22478_v32 = vld [vmem:[#allocation13 + $0x384] ss:$8 sps:$4 sm:$0xff]  }
 0x9c5   :  { %17553 = vmatprep.subr.bf16.mxu0 %v22406_v55  ;;  %v22476_v55 = vld [vmem:[#allocation13 + $0x380] ss:$8 sps:$4 sm:$0xff]  }
 0x9c7   :  { %17545 = vmatmul.mubr.bf16.vlgmr.msra.gmra.mrb[80].mxu0 %v15909_v24  ;;  %v22479_v24 = vld [vmem:[#allocation13 + $0x390] ss:$8 sps:$4 sm:$0xff]  }
 0x9c8   :  { %17554 = vmatpush1.bf16.msra.mxu0 %v22404_v40  ;;  %17585 = vmatprep.mubr.bf16.mxu0 %v15912_v60  ;;  %v22481_v40 = vld [vmem:[#allocation13 + $0x394] ss:$8 sps:$4 sm:$0xff]   ;;  %v22482_v60 = vld [vmem:[#allocation13 + $0x3a0] ss:$8 sps:$4 sm:$0xff]  }
 0x9c9   :  { %17555 = vmatprep.subr.bf16.mxu0 %v22409_v15  ;;  %v22484_v15 = vld [vmem:[#allocation13 + $0x3a4] ss:$8 sps:$4 sm:$0xff]  }
 0x9cc   :  { %17556 = vmatpush1.bf16.msra.mxu0 %v22407_v21  ;;  %v22487_v21 = vld [vmem:[#allocation13 + $0x3b4] ss:$8 sps:$4 sm:$0xff]  }
 0x9cd   :  { %17557 = vmatprep.subr.bf16.mxu0 %v22412_v33  ;;  %v22485_v33 = vld [vmem:[#allocation13 + $0x3b0] ss:$8 sps:$4 sm:$0xff]  }
 0x9d0   :  { %17558 = vmatpush1.bf16.msra.mxu0 %v22410_v31  ;;  %v22490_v31 = vld [vmem:[#allocation13 + $0x3c4] ss:$8 sps:$4 sm:$0xff]  }
 0x9d1   :  { %17559 = vmatprep.subr.bf16.mxu0 %v22415_v49  ;;  %v22488_v49 = vld [vmem:[#allocation13 + $0x3c0] ss:$8 sps:$4 sm:$0xff]  }
 0x9d4   :  { %17560 = vmatpush1.bf16.msra.mxu0 %v22413_v5  ;;  %v22493_v5 = vld [vmem:[#allocation13 + $0x3d4] ss:$8 sps:$4 sm:$0xff]  }
 0x9d5   :  { %17561 = vmatprep.subr.bf16.mxu0 %v22418_v41  ;;  %v22491_v41 = vld [vmem:[#allocation13 + $0x3d0] ss:$8 sps:$4 sm:$0xff]  }
 0x9d8   :  { %17562 = vmatpush1.bf16.msra.mxu0 %v22416_v18  ;;  %v22496_v18 = vld [vmem:[#allocation13 + $0x3e4] ss:$8 sps:$4 sm:$0xff]  }
 0x9d9   :  { %17563 = vmatprep.subr.bf16.mxu0 %v22421_v25  ;;  %v22494_v25 = vld [vmem:[#allocation13 + $0x3e0] ss:$8 sps:$4 sm:$0xff]  }
 0x9dc   :  { %17564 = vmatpush1.bf16.msra.mxu0 %v22419_v6  ;;  %v22499_v6 = vld [vmem:[#allocation13 + $0x3f4] ss:$8 sps:$4 sm:$0xff]  }
 0x9dd   :  { %17565 = vmatprep.subr.bf16.mxu0 %v22424_v62  ;;  %v22497_v62 = vld [vmem:[#allocation13 + $0x3f0] ss:$8 sps:$4 sm:$0xff]  }
 0x9e0   :  { %17566 = vmatpush1.bf16.msra.mxu0 %v22422_v27  ;;  %v22502_v27 = vld [vmem:[#allocation13 + $0x404] ss:$8 sps:$4 sm:$0xff]  }
 0x9e1   :  { %17567 = vmatprep.subr.bf16.mxu0 %v22427_v13  ;;  %v22500_v13 = vld [vmem:[#allocation13 + $0x400] ss:$8 sps:$4 sm:$0xff]  }
 0x9e4   :  { %17568 = vmatpush1.bf16.msra.mxu0 %v22425_v30  ;;  %v15913_v30 = vpack.c.bf16 %v25194_v4, %v25194_v4  ;;  %v22512_v4 = vld [vmem:[#allocation13 + $0x440] ss:$8 sps:$4 sm:$0xff]  }
 0x9e5   :  { %17569 = vmatprep.subr.bf16.mxu0 %v22430_v61  ;;  %v22505_v61 = vld [vmem:[#allocation13 + $0x414] ss:$8 sps:$4 sm:$0xff]  }
 0x9e8   :  { %17570 = vmatpush1.bf16.msra.mxu0 %v22428_v16  ;;  %v15916_v16 = vpack.c.bf16 %v25219_v56, %v25219_v56  ;;  %v22515_v56 = vld [vmem:[#allocation13 + $0x450] ss:$8 sps:$4 sm:$0xff]  }
 0x9e9   :  { %17571 = vmatprep.subr.bf16.mxu0 %v22433_v39  ;;  %v22503_v39 = vld [vmem:[#allocation13 + $0x410] ss:$8 sps:$4 sm:$0xff]  }
 0x9ec   :  { %17572 = vmatpush1.bf16.msra.mxu0 %v22431_v2  ;;  %v22508_v2 = vld [vmem:[#allocation13 + $0x424] ss:$8 sps:$4 sm:$0xff]  }
 0x9ed   :  { %17573 = vmatprep.subr.bf16.mxu0 %v22436_v52  ;;  %v22506_v52 = vld [vmem:[#allocation13 + $0x420] ss:$8 sps:$4 sm:$0xff]  }
 0x9f0   :  { %17574 = vmatpush1.bf16.msra.mxu0 %v22434_v0  ;;  %v22511_v0 = vld [vmem:[#allocation13 + $0x434] ss:$8 sps:$4 sm:$0xff]  }
 0x9f1   :  { %17575 = vmatprep.subr.bf16.mxu0 %v22439_v38  ;;  %v22509_v38 = vld [vmem:[#allocation13 + $0x430] ss:$8 sps:$4 sm:$0xff]  }
 0x9f4   :  { %17576 = vmatpush1.bf16.msra.mxu0 %v22437_v20  ;;  %v22514_v20 = vld [vmem:[#allocation13 + $0x444] ss:$8 sps:$4 sm:$0xff]  }
 0x9f5   :  { %17577 = vmatprep.subr.bf16.mxu0 %v22442_v37  ;;  %v22517_v37 = vld [vmem:[#allocation13 + $0x454] ss:$8 sps:$4 sm:$0xff]  }
 0x9f8   :  { %17578 = vmatpush1.bf16.msra.mxu0 %v22440_v44  ;;  %v22520_v44 = vld [vmem:[#allocation13 + $0x464] ss:$8 sps:$4 sm:$0xff]  }
 0x9f9   :  { %17579 = vmatprep.subr.bf16.mxu0 %v22445_v22  ;;  %v22518_v22 = vld [vmem:[#allocation13 + $0x460] ss:$8 sps:$4 sm:$0xff]  }
 0x9fc   :  { %17580 = vmatpush1.bf16.msra.mxu0 %v22443_v43  ;;  %v22523_v43 = vld [vmem:[#allocation13 + $0x474] ss:$8 sps:$4 sm:$0xff]  }
 0x9fd   :  { %17581 = vmatprep.subr.bf16.mxu0 %v22448_v1  ;;  %v22521_v1 = vld [vmem:[#allocation13 + $0x470] ss:$8 sps:$4 sm:$0xff]  }
 0xa00   :  { %17582 = vmatpush1.bf16.msra.mxu0 %v22446_v63  ;;  %v22526_v63 = vld [vmem:[#allocation13 + $0x484] ss:$8 sps:$4 sm:$0xff]  }
 0xa01   :  { %17583 = vmatprep.subr.bf16.mxu0 %v22451_v50  ;;  %v22524_v50 = vld [vmem:[#allocation13 + $0x480] ss:$8 sps:$4 sm:$0xff]  }
 0xa04   :  { %17584 = vmatpush1.bf16.msra.mxu0 %v22449_v48  ;;  %v22529_v48 = vld [vmem:[#allocation13 + $0x494] ss:$8 sps:$4 sm:$0xff]  }
 0xa05   :  { %17594 = vmatprep.subr.bf16.mxu0 %v22454_v42  ;;  %v22527_v42 = vld [vmem:[#allocation13 + $0x490] ss:$8 sps:$4 sm:$0xff]  }
 0xa07   :  { %17586 = vmatmul.mubr.bf16.vlgmr.msra.gmra.mrb[80].mxu0 %v15911_v19  ;;  %v22530_v19 = vld [vmem:[#allocation13 + $0x4a0] ss:$8 sps:$4 sm:$0xff]  }
 0xa08   :  { %17595 = vmatpush1.bf16.msra.mxu0 %v22452_v11  ;;  %17626 = vmatprep.mubr.bf16.mxu0 %v15914_v26  ;;  %v22532_v11 = vld [vmem:[#allocation13 + $0x4a4] ss:$8 sps:$4 sm:$0xff]   ;;  %v22533_v26 = vld [vmem:[#allocation13 + $0x4b0] ss:$8 sps:$4 sm:$0xff]  }
 0xa09   :  { %17596 = vmatprep.subr.bf16.mxu0 %v22457_v9  ;;  %v22535_v9 = vld [vmem:[#allocation13 + $0x4b4] ss:$8 sps:$4 sm:$0xff]  }
 0xa0c   :  { %17597 = vmatpush1.bf16.msra.mxu0 %v22455_v8  ;;  %v22538_v8 = vld [vmem:[#allocation13 + $0x4c4] ss:$8 sps:$4 sm:$0xff]  }
 0xa0d   :  { %17598 = vmatprep.subr.bf16.mxu0 %v22460_v46  ;;  %v22536_v46 = vld [vmem:[#allocation13 + $0x4c0] ss:$8 sps:$4 sm:$0xff]  }
 0xa10   :  { %17599 = vmatpush1.bf16.msra.mxu0 %v22458_v57  ;;  %v22541_v57 = vld [vmem:[#allocation13 + $0x4d4] ss:$8 sps:$4 sm:$0xff]  }
 0xa11   :  { %17600 = vmatprep.subr.bf16.mxu0 %v22463_v29  ;;  %v22539_v29 = vld [vmem:[#allocation13 + $0x4d0] ss:$8 sps:$4 sm:$0xff]  }
 0xa14   :  { %17601 = vmatpush1.bf16.msra.mxu0 %v22461_v7  ;;  %v22544_v7 = vld [vmem:[#allocation13 + $0x4e4] ss:$8 sps:$4 sm:$0xff]  }
 0xa15   :  { %17602 = vmatprep.subr.bf16.mxu0 %v22466_v23  ;;  %v22542_v23 = vld [vmem:[#allocation13 + $0x4e0] ss:$8 sps:$4 sm:$0xff]  }
 0xa18   :  { %17603 = vmatpush1.bf16.msra.mxu0 %v22464_v58  ;;  %v22547_v58 = vld [vmem:[#allocation13 + $0x4f4] ss:$8 sps:$4 sm:$0xff]  }
 0xa19   :  { %17604 = vmatprep.subr.bf16.mxu0 %v22469_v3  ;;  %v22545_v3 = vld [vmem:[#allocation13 + $0x4f0] ss:$8 sps:$4 sm:$0xff]  }
 0xa1c   :  { %17605 = vmatpush1.bf16.msra.mxu0 %v22467_v36  ;;  %v22550_v36 = vld [vmem:[#allocation13 + $0x504] ss:$8 sps:$4 sm:$0xff]  }
 0xa1d   :  { %17606 = vmatprep.subr.bf16.mxu0 %v22472_v45  ;;  %v22548_v45 = vld [vmem:[#allocation13 + $0x500] ss:$8 sps:$4 sm:$0xff]  }
 0xa20   :  { %17607 = vmatpush1.bf16.msra.mxu0 %v22470_v47  ;;  %v15915_v47 = vpack.c.bf16 %v25222_v35, %v25222_v35  ;;  %v22560_v35 = vld [vmem:[#allocation13 + $0x540] ss:$8 sps:$4 sm:$0xff]  }
 0xa21   :  { %17608 = vmatprep.subr.bf16.mxu0 %v22475_v54  ;;  %v22553_v54 = vld [vmem:[#allocation13 + $0x514] ss:$8 sps:$4 sm:$0xff]  }
 0xa24   :  { %17609 = vmatpush1.bf16.msra.mxu0 %v22473_v28  ;;  %v15918_v28 = vpack.c.bf16 %v25233_v51, %v25233_v51  ;;  %v22563_v51 = vld [vmem:[#allocation13 + $0x550] ss:$8 sps:$4 sm:$0xff]  }
 0xa25   :  { %17610 = vmatprep.subr.bf16.mxu0 %v22478_v32  ;;  %v22551_v32 = vld [vmem:[#allocation13 + $0x510] ss:$8 sps:$4 sm:$0xff]  }
 0xa28   :  { %17611 = vmatpush1.bf16.msra.mxu0 %v22476_v55  ;;  %v22556_v55 = vld [vmem:[#allocation13 + $0x524] ss:$8 sps:$4 sm:$0xff]  }
 0xa29   :  { %17612 = vmatprep.subr.bf16.mxu0 %v22481_v40  ;;  %v22554_v40 = vld [vmem:[#allocation13 + $0x520] ss:$8 sps:$4 sm:$0xff]  }
 0xa2c   :  { %17613 = vmatpush1.bf16.msra.mxu0 %v22479_v24  ;;  %v22559_v24 = vld [vmem:[#allocation13 + $0x534] ss:$8 sps:$4 sm:$0xff]  }
 0xa2d   :  { %17614 = vmatprep.subr.bf16.mxu0 %v22484_v15  ;;  %v22557_v15 = vld [vmem:[#allocation13 + $0x530] ss:$8 sps:$4 sm:$0xff]  }
 0xa30   :  { %17615 = vmatpush1.bf16.msra.mxu0 %v22482_v60  ;;  %v22562_v60 = vld [vmem:[#allocation13 + $0x544] ss:$8 sps:$4 sm:$0xff]  }
 0xa31   :  { %17616 = vmatprep.subr.bf16.mxu0 %v22487_v21  ;;  %v22565_v21 = vld [vmem:[#allocation13 + $0x554] ss:$8 sps:$4 sm:$0xff]  }
 0xa34   :  { %17617 = vmatpush1.bf16.msra.mxu0 %v22485_v33  ;;  %v22568_v33 = vld [vmem:[#allocation13 + $0x564] ss:$8 sps:$4 sm:$0xff]  }
 0xa35   :  { %17618 = vmatprep.subr.bf16.mxu0 %v22490_v31  ;;  %v22566_v31 = vld [vmem:[#allocation13 + $0x560] ss:$8 sps:$4 sm:$0xff]  }
 0xa38   :  { %17619 = vmatpush1.bf16.msra.mxu0 %v22488_v49  ;;  %v22571_v49 = vld [vmem:[#allocation13 + $0x574] ss:$8 sps:$4 sm:$0xff]  }
 0xa39   :  { %17620 = vmatprep.subr.bf16.mxu0 %v22493_v5  ;;  %v22569_v5 = vld [vmem:[#allocation13 + $0x570] ss:$8 sps:$4 sm:$0xff]  }
 0xa3c   :  { %17621 = vmatpush1.bf16.msra.mxu0 %v22491_v41  ;;  %v22574_v41 = vld [vmem:[#allocation13 + $0x584] ss:$8 sps:$4 sm:$0xff]  }
 0xa3d   :  { %17622 = vmatprep.subr.bf16.mxu0 %v22496_v18  ;;  %v22572_v18 = vld [vmem:[#allocation13 + $0x580] ss:$8 sps:$4 sm:$0xff]  }
 0xa40   :  { %17623 = vmatpush1.bf16.msra.mxu0 %v22494_v25  ;;  %v22577_v25 = vld [vmem:[#allocation13 + $0x594] ss:$8 sps:$4 sm:$0xff]  }
 0xa41   :  { %17624 = vmatprep.subr.bf16.mxu0 %v22499_v6  ;;  %v22575_v6 = vld [vmem:[#allocation13 + $0x590] ss:$8 sps:$4 sm:$0xff]  }
 0xa44   :  { %17625 = vmatpush1.bf16.msra.mxu0 %v22497_v62  ;;  %v22580_v62 = vld [vmem:[#allocation13 + $0x5a4] ss:$8 sps:$4 sm:$0xff]  }
 0xa45   :  { %17635 = vmatprep.subr.bf16.mxu0 %v22502_v27  ;;  %v22578_v27 = vld [vmem:[#allocation13 + $0x5a0] ss:$8 sps:$4 sm:$0xff]  }
 0xa47   :  { %17627 = vmatmul.mubr.bf16.vlgmr.msra.gmra.mrb[80].mxu0 %v15913_v30  ;;  %v22581_v30 = vld [vmem:[#allocation13 + $0x5b0] ss:$8 sps:$4 sm:$0xff]  }
 0xa48   :  { %17636 = vmatpush1.bf16.msra.mxu0 %v22500_v13  ;;  %17667 = vmatprep.mubr.bf16.mxu0 %v15916_v16  ;;  %v22583_v13 = vld [vmem:[#allocation13 + $0x5b4] ss:$8 sps:$4 sm:$0xff]   ;;  %v22584_v16 = vld [vmem:[#allocation13 + $0x5c0] ss:$8 sps:$4 sm:$0xff]  }
 0xa49   :  { %17637 = vmatprep.subr.bf16.mxu0 %v22505_v61  ;;  %v22586_v61 = vld [vmem:[#allocation13 + $0x5c4] ss:$8 sps:$4 sm:$0xff]  }
 0xa4c   :  { %17638 = vmatpush1.bf16.msra.mxu0 %v22503_v39  ;;  %v22589_v39 = vld [vmem:[#allocation13 + $0x5d4] ss:$8 sps:$4 sm:$0xff]  }
 0xa4d   :  { %17639 = vmatprep.subr.bf16.mxu0 %v22508_v2  ;;  %v22587_v2 = vld [vmem:[#allocation13 + $0x5d0] ss:$8 sps:$4 sm:$0xff]  }
 0xa50   :  { %17640 = vmatpush1.bf16.msra.mxu0 %v22506_v52  ;;  %v22592_v52 = vld [vmem:[#allocation13 + $0x5e4] ss:$8 sps:$4 sm:$0xff]  }
 0xa51   :  { %17641 = vmatprep.subr.bf16.mxu0 %v22511_v0  ;;  %v22590_v0 = vld [vmem:[#allocation13 + $0x5e0] ss:$8 sps:$4 sm:$0xff]  }
 0xa54   :  { %17642 = vmatpush1.bf16.msra.mxu0 %v22509_v38  ;;  %v22595_v38 = vld [vmem:[#allocation13 + $0x5f4] ss:$8 sps:$4 sm:$0xff]  }
 0xa55   :  { %17643 = vmatprep.subr.bf16.mxu0 %v22514_v20  ;;  %v22593_v20 = vld [vmem:[#allocation13 + $0x5f0] ss:$8 sps:$4 sm:$0xff]  }
 0xa58   :  { %17644 = vmatpush1.bf16.msra.mxu0 %v22512_v4  ;;  %v22598_v4 = vld [vmem:[#allocation13 + $0x604] ss:$8 sps:$4 sm:$0xff]  }
 0xa59   :  { %17645 = vmatprep.subr.bf16.mxu0 %v22517_v37  ;;  %v22596_v37 = vld [vmem:[#allocation13 + $0x600] ss:$8 sps:$4 sm:$0xff]  }
 0xa5c   :  { %17646 = vmatpush1.bf16.msra.mxu0 %v22515_v56  ;;  %v15917_v56 = vpack.c.bf16 %v25236_v17, %v25236_v17  ;;  %v22599_v17 = vld [vmem:[#allocation13 + $0x610] ss:$8 sps:$4 sm:$0xff]  }
 0xa5d   :  { %17647 = vmatprep.subr.bf16.mxu0 %v22520_v44  ;;  %v22601_v44 = vld [vmem:[#allocation13 + $0x614] ss:$8 sps:$4 sm:$0xff]  }
 0xa60   :  { %17648 = vmatpush1.bf16.msra.mxu0 %v22518_v22  ;;  %v15920_v22 = vpack.c.bf16 %v25227_v53, %v25227_v53  ;;  %v22695_v53 = vld [vmem:[%s25343_s7 + $0x8] sm:$0xff]  }
 0xa61   :  { %17649 = vmatprep.subr.bf16.mxu0 %v22523_v43  ;;  %v22692_v43 = vld [vmem:[%s25343_s7 + $0x40] sm:$0xff]  }
 0xa62   :  { %19584 = vmatprep.subr.bf16.mxu1 %v22692_v43  ;;  %v22673_v43 = vld [vmem:[#allocation13 + $0x794] ss:$8 sps:$4 sm:$0xff]  }
 0xa64   :  { %17650 = vmatpush1.bf16.msra.mxu0 %v22521_v1  ;;  %v22693_v1 = vld [vmem:[%s25343_s7] sm:$0xff]  }
 0xa65   :  { %17651 = vmatprep.subr.bf16.mxu0 %v22526_v63  ;;  %v22694_v63 = vld [vmem:[%s25343_s7 + $0x48] sm:$0xff]   ;;  %19585 = vmatpush3.bf16.msra.mxu1 %v22693_v1  ;;  %v22671_v1 = vld [vmem:[#allocation13 + $0x790] ss:$8 sps:$4 sm:$0xff]  }
 0xa66   :  { %19586 = vmatprep.subr.bf16.mxu1 %v22694_v63  ;;  %v22676_v63 = vld [vmem:[#allocation13 + $0x7a4] ss:$8 sps:$4 sm:$0xff]  }
 0xa68   :  { %17652 = vmatpush1.bf16.msra.mxu0 %v22524_v50  ;;  %v22604_v50 = vld [vmem:[#allocation13 + $0x624] ss:$8 sps:$4 sm:$0xff]  }
 0xa69   :  { %17653 = vmatprep.subr.bf16.mxu0 %v22529_v48  ;;  %v22696_v48 = vld [vmem:[%s25343_s7 + $0x50] sm:$0xff]   ;;  %19587 = vmatpush3.bf16.msra.mxu1 %v22695_v53 }
 0xa6a   :  { %19588 = vmatprep.subr.bf16.mxu1 %v22696_v48  ;;  %v22677_v53 = vld [vmem:[#allocation13 + $0x7b0] ss:$8 sps:$4 sm:$0xff]   ;;  %v22682_v48 = vld [vmem:[#allocation13 + $0x7c4] ss:$8 sps:$4 sm:$0xff]  }
 0xa6c   :  { %17654 = vmatpush1.bf16.msra.mxu0 %v22527_v42  ;;  %v22602_v42 = vld [vmem:[#allocation13 + $0x620] ss:$8 sps:$4 sm:$0xff]  }
 0xa6d   :  { %17655 = vmatprep.subr.bf16.mxu0 %v22532_v11  ;;  %v22607_v11 = vld [vmem:[#allocation13 + $0x634] ss:$8 sps:$4 sm:$0xff]  }
 0xa70   :  { %17656 = vmatpush1.bf16.msra.mxu0 %v22530_v19  ;;  %v22697_v19 = vld [vmem:[%s25343_s7 + $0x10] sm:$0xff]  }
 0xa71   :  { %17657 = vmatprep.subr.bf16.mxu0 %v22535_v9  ;;  %v22698_v9 = vld [vmem:[%s25343_s7 + $0x58] sm:$0xff]   ;;  %19589 = vmatpush3.bf16.msra.mxu1 %v22697_v19 }
 0xa72   :  { %19590 = vmatprep.subr.bf16.mxu1 %v22698_v9  ;;  %v22683_v19 = vld [vmem:[#allocation13 + $0x7d0] ss:$8 sps:$4 sm:$0xff]   ;;  %v22688_v9 = vld [vmem:[#allocation13 + $0x7e4] ss:$8 sps:$4 sm:$0xff]  }
 0xa74   :  { %17658 = vmatpush1.bf16.msra.mxu0 %v22533_v26  ;;  %v22605_v26 = vld [vmem:[#allocation13 + $0x630] ss:$8 sps:$4 sm:$0xff]  }
 0xa75   :  { %17659 = vmatprep.subr.bf16.mxu0 %v22538_v8  ;;  %v22610_v8 = vld [vmem:[#allocation13 + $0x644] ss:$8 sps:$4 sm:$0xff]  }
 0xa78   :  { %17660 = vmatpush1.bf16.msra.mxu0 %v22536_v46  ;;  %v22699_v46 = vld [vmem:[%s25343_s7 + $0x18] sm:$0xff]  }
 0xa79   :  { %17661 = vmatprep.subr.bf16.mxu0 %v22541_v57  ;;  %v22700_v57 = vld [vmem:[%s25343_s7 + $0x60] sm:$0xff]   ;;  %19591 = vmatpush3.bf16.msra.mxu1 %v22699_v46  ;;  %v22689_v46 = vld [vmem:[#allocation13 + $0x7f0] ss:$8 sps:$4 sm:$0xff]  }
 0xa7a   :  { %19592 = vmatprep.subr.bf16.mxu1 %v22700_v57  ;;  %v15921_v57 = vpack.c.bf16 %v25246_v59, %v25246_v59  ;;  %v16179_v59 = vld [vmem:[#allocation15] sm:$0x3] }
 0xa7c   :  { %17662 = vmatpush1.bf16.msra.mxu0 %v22539_v29  ;;  %v22608_v29 = vld [vmem:[#allocation13 + $0x640] ss:$8 sps:$4 sm:$0xff]  }
 0xa7d   :  { %17663 = vmatprep.subr.bf16.mxu0 %v22544_v7  ;;  %v22613_v7 = vld [vmem:[#allocation13 + $0x654] ss:$8 sps:$4 sm:$0xff]  }
 0xa80   :  { %17664 = vmatpush1.bf16.msra.mxu0 %v22542_v23  ;;  %v22701_v23 = vld [vmem:[%s25343_s7 + $0x20] sm:$0xff]  }
 0xa81   :  { %17665 = vmatprep.subr.bf16.mxu0 %v22547_v58  ;;  %v22702_v58 = vld [vmem:[%s25343_s7 + $0x68] sm:$0xff]   ;;  %19593 = vmatpush3.bf16.msra.mxu1 %v22701_v23  ;;  %v22706_v23 = vld [vmem:[%s25343_s7 + $0x78] sm:$0xff]  }
 0xa82   :  { %19594 = vmatprep.subr.bf16.mxu1 %v22702_v58  ;;  %v22707_v58 = vld [vmem:[%s25343_s7 + $0x38] sm:$0xff]  }
 0xa84   :  { %17666 = vmatpush1.bf16.msra.mxu0 %v22545_v3  ;;  %v22611_v3 = vld [vmem:[#allocation13 + $0x650] ss:$8 sps:$4 sm:$0xff]  }
 0xa85   :  { %17676 = vmatprep.subr.bf16.mxu0 %v22550_v36  ;;  %v22616_v36 = vld [vmem:[#allocation13 + $0x664] ss:$8 sps:$4 sm:$0xff]  }
 0xa87   :  { %17668 = vmatmul.mubr.bf16.vlgmr.msra.gmra.mrb[80].mxu0 %v15915_v47  ;;  %v22614_v47 = vld [vmem:[#allocation13 + $0x660] ss:$8 sps:$4 sm:$0xff]  }
 0xa88   :  { %17677 = vmatpush1.bf16.msra.mxu0 %v22548_v45  ;;  %17708 = vmatprep.mubr.bf16.mxu0 %v15918_v28  ;;  %v22703_v45 = vld [vmem:[%s25343_s7 + $0x28] sm:$0xff]   ;;  %v22617_v28 = vld [vmem:[#allocation13 + $0x670] ss:$8 sps:$4 sm:$0xff]  }
 0xa89   :  { %17678 = vmatprep.subr.bf16.mxu0 %v22553_v54  ;;  %v22619_v54 = vld [vmem:[#allocation13 + $0x674] ss:$8 sps:$4 sm:$0xff]   ;;  %19595 = vmatpush3.bf16.msra.mxu1 %v22703_v45 }
 0xa8c   :  { %17679 = vmatpush1.bf16.msra.mxu0 %v22551_v32  ;;  %v22622_v32 = vld [vmem:[#allocation13 + $0x684] ss:$8 sps:$4 sm:$0xff]  }
 0xa8d   :  { %17680 = vmatprep.subr.bf16.mxu0 %v22556_v55  ;;  %v22620_v55 = vld [vmem:[#allocation13 + $0x680] ss:$8 sps:$4 sm:$0xff]  }
 0xa90   :  { %17681 = vmatpush1.bf16.msra.mxu0 %v22554_v40  ;;  %v22625_v40 = vld [vmem:[#allocation13 + $0x694] ss:$8 sps:$4 sm:$0xff]  }
 0xa91   :  { %17682 = vmatprep.subr.bf16.mxu0 %v22559_v24  ;;  %v22623_v24 = vld [vmem:[#allocation13 + $0x690] ss:$8 sps:$4 sm:$0xff]  }
 0xa94   :  { %17683 = vmatpush1.bf16.msra.mxu0 %v22557_v15  ;;  %v22628_v15 = vld [vmem:[#allocation13 + $0x6a4] ss:$8 sps:$4 sm:$0xff]  }
 0xa95   :  { %17684 = vmatprep.subr.bf16.mxu0 %v22562_v60  ;;  %v22626_v60 = vld [vmem:[#allocation13 + $0x6a0] ss:$8 sps:$4 sm:$0xff]  }
 0xa98   :  { %17685 = vmatpush1.bf16.msra.mxu0 %v22560_v35  ;;  %v22631_v35 = vld [vmem:[#allocation13 + $0x6b4] ss:$8 sps:$4 sm:$0xff]  }
 0xa99   :  { %17686 = vmatprep.subr.bf16.mxu0 %v22565_v21  ;;  %v22629_v21 = vld [vmem:[#allocation13 + $0x6b0] ss:$8 sps:$4 sm:$0xff]  }
 0xa9c   :  { %17687 = vmatpush1.bf16.msra.mxu0 %v22563_v51  ;;  %v22634_v51 = vld [vmem:[#allocation13 + $0x6c4] ss:$8 sps:$4 sm:$0xff]  }
 0xa9d   :  { %17688 = vmatprep.subr.bf16.mxu0 %v22568_v33  ;;  %v22632_v33 = vld [vmem:[#allocation13 + $0x6c0] ss:$8 sps:$4 sm:$0xff]  }
 0xaa0   :  { %17689 = vmatpush1.bf16.msra.mxu0 %v22566_v31  ;;  %v22637_v31 = vld [vmem:[#allocation13 + $0x6d4] ss:$8 sps:$4 sm:$0xff]  }
 0xaa1   :  { %17690 = vmatprep.subr.bf16.mxu0 %v22571_v49  ;;  %v22635_v49 = vld [vmem:[#allocation13 + $0x6d0] ss:$8 sps:$4 sm:$0xff]  }
 0xaa4   :  { %17691 = vmatpush1.bf16.msra.mxu0 %v22569_v5  ;;  %v22640_v5 = vld [vmem:[#allocation13 + $0x6e4] ss:$8 sps:$4 sm:$0xff]  }
 0xaa5   :  { %17692 = vmatprep.subr.bf16.mxu0 %v22574_v41  ;;  %v22638_v41 = vld [vmem:[#allocation13 + $0x6e0] ss:$8 sps:$4 sm:$0xff]  }
 0xaa8   :  { %17693 = vmatpush1.bf16.msra.mxu0 %v22572_v18  ;;  %v22643_v18 = vld [vmem:[#allocation13 + $0x6f4] ss:$8 sps:$4 sm:$0xff]  }
 0xaa9   :  { %17694 = vmatprep.subr.bf16.mxu0 %v22577_v25  ;;  %v22641_v25 = vld [vmem:[#allocation13 + $0x6f0] ss:$8 sps:$4 sm:$0xff]  }
 0xaac   :  { %17695 = vmatpush1.bf16.msra.mxu0 %v22575_v6  ;;  %v22646_v6 = vld [vmem:[#allocation13 + $0x704] ss:$8 sps:$4 sm:$0xff]  }
 0xaad   :  { %17696 = vmatprep.subr.bf16.mxu0 %v22580_v62  ;;  %v22644_v62 = vld [vmem:[#allocation13 + $0x700] ss:$8 sps:$4 sm:$0xff]  }
 0xab0   :  { %17697 = vmatpush1.bf16.msra.mxu0 %v22578_v27  ;;  %v15919_v27 = vpack.c.bf16 %v25230_v12, %v25230_v12  ;;  %v22656_v12 = vld [vmem:[#allocation13 + $0x740] ss:$8 sps:$4 sm:$0xff]  }
 0xab1   :  { %17698 = vmatprep.subr.bf16.mxu0 %v22583_v13  ;;  %v22649_v13 = vld [vmem:[#allocation13 + $0x714] ss:$8 sps:$4 sm:$0xff]  }
 0xab4   :  { %17699 = vmatpush1.bf16.msra.mxu0 %v22581_v30  ;;  %v15922_v30 = vpack.c.bf16 %v25243_v14, %v25243_v14  ;;  %v22659_v14 = vld [vmem:[#allocation13 + $0x750] ss:$8 sps:$4 sm:$0xff]  }
 0xab5   :  { %17700 = vmatprep.subr.bf16.mxu0 %v22586_v61  ;;  %v22647_v61 = vld [vmem:[#allocation13 + $0x710] ss:$8 sps:$4 sm:$0xff]  }
 0xab8   :  { %17701 = vmatpush1.bf16.msra.mxu0 %v22584_v16  ;;  %v22652_v16 = vld [vmem:[#allocation13 + $0x724] ss:$8 sps:$4 sm:$0xff]  }
 0xab9   :  { %17702 = vmatprep.subr.bf16.mxu0 %v22589_v39  ;;  %v22650_v39 = vld [vmem:[#allocation13 + $0x720] ss:$8 sps:$4 sm:$0xff]  }
 0xabc   :  { %17703 = vmatpush1.bf16.msra.mxu0 %v22587_v2  ;;  %v22655_v2 = vld [vmem:[#allocation13 + $0x734] ss:$8 sps:$4 sm:$0xff]  }
 0xabd   :  { %17704 = vmatprep.subr.bf16.mxu0 %v22592_v52  ;;  %v22653_v52 = vld [vmem:[#allocation13 + $0x730] ss:$8 sps:$4 sm:$0xff]  }
 0xac0   :  { %17705 = vmatpush1.bf16.msra.mxu0 %v22590_v0  ;;  %v22658_v0 = vld [vmem:[#allocation13 + $0x744] ss:$8 sps:$4 sm:$0xff]  }
 0xac1   :  { %17706 = vmatprep.subr.bf16.mxu0 %v22595_v38  ;;  %v22661_v38 = vld [vmem:[#allocation13 + $0x754] ss:$8 sps:$4 sm:$0xff]  }
 0xac4   :  { %17707 = vmatpush1.bf16.msra.mxu0 %v22593_v20  ;;  %v22664_v20 = vld [vmem:[#allocation13 + $0x764] ss:$8 sps:$4 sm:$0xff]  }
 0xac5   :  { %17717 = vmatprep.subr.bf16.mxu0 %v22598_v4  ;;  %v22662_v4 = vld [vmem:[#allocation13 + $0x760] ss:$8 sps:$4 sm:$0xff]  }
 0xac7   :  { %17709 = vmatmul.mubr.bf16.vlgmr.msra.gmra.mrb[80].mxu0 %v15917_v56  ;;  %v22665_v56 = vld [vmem:[#allocation13 + $0x770] ss:$8 sps:$4 sm:$0xff]  }
 0xac8   :  { %17718 = vmatpush1.bf16.msra.mxu0 %v22596_v37  ;;  %17749 = vmatprep.mubr.bf16.mxu0 %v15920_v22  ;;  %v22667_v37 = vld [vmem:[#allocation13 + $0x774] ss:$8 sps:$4 sm:$0xff]   ;;  %v22668_v22 = vld [vmem:[#allocation13 + $0x780] ss:$8 sps:$4 sm:$0xff]  }
 0xac9   :  { %17719 = vmatprep.subr.bf16.mxu0 %v22601_v44  ;;  %v22670_v44 = vld [vmem:[#allocation13 + $0x784] ss:$8 sps:$4 sm:$0xff]  }
 0xacc   :  { %17720 = vmatpush1.bf16.msra.mxu0 %v22599_v17  ;;  %v22674_v17 = vld [vmem:[#allocation13 + $0x7a0] ss:$8 sps:$4 sm:$0xff]  }
 0xacd   :  { %17721 = vmatprep.subr.bf16.mxu0 %v22604_v50  ;;  %v22679_v50 = vld [vmem:[#allocation13 + $0x7b4] ss:$8 sps:$4 sm:$0xff]  }
 0xad0   :  { %17722 = vmatpush1.bf16.msra.mxu0 %v22602_v42  ;;  %v22680_v42 = vld [vmem:[#allocation13 + $0x7c0] ss:$8 sps:$4 sm:$0xff]  }
 0xad1   :  { %17723 = vmatprep.subr.bf16.mxu0 %v22607_v11  ;;  %v22685_v11 = vld [vmem:[#allocation13 + $0x7d4] ss:$8 sps:$4 sm:$0xff]  }
 0xad4   :  { %17724 = vmatpush1.bf16.msra.mxu0 %v22605_v26  ;;  %v22686_v26 = vld [vmem:[#allocation13 + $0x7e0] ss:$8 sps:$4 sm:$0xff]  }
 0xad5   :  { %17725 = vmatprep.subr.bf16.mxu0 %v22610_v8  ;;  %v22691_v8 = vld [vmem:[#allocation13 + $0x7f4] ss:$8 sps:$4 sm:$0xff]  }
 0xad8   :  { %17726 = vmatpush1.bf16.msra.mxu0 %v22608_v29  ;;  %v22704_v29 = vld [vmem:[%s25343_s7 + $0x70] sm:$0xff]  }
 0xad9   :  { %17727 = vmatprep.subr.bf16.mxu0 %v22613_v7  ;;  %v22705_v7 = vld [vmem:[%s25343_s7 + $0x30] sm:$0xff]   ;;  %19596 = vmatprep.subr.bf16.mxu1 %v22704_v29  ;;  %s22939_s7 = smov [#allocation18]  }
 0xada   :  { %19597 = vmatpush3.bf16.msra.mxu1 %v22705_v7  ;;  %s17986_s13 = sshll.u32 %s22939_s7, 4  ;;  %s17987_s13 = int_to_ptr.vmem [resolvable:$true] %s17986_s13 }
 0xadb   :  { %19598 = vmatprep.subr.bf16.mxu1 %v22706_v23  ;;  %s22889_s5 = scalar_lea.vmem %s17987_s13, 32  ;;  %p22894_p9 = scmp.lt.s32.totalorder %s17987_s13, %s17987_s13 }
 0xadc   :  { %17728 = vmatpush1.bf16.msra.mxu0 %v22611_v3  ;;  %v16184_v3 = vrot.slane %v16179_v59, %v24041_v10  ;;  %p22890_p8 = scmp.ne.s32.totalorder %s17987_s13, %s22889_s5  ;;  %p22895_p10 = scmp.lt.s32.totalorder %s22889_s5, %s22889_s5 }
 0xadd   :  { %17729 = vmatprep.subr.bf16.mxu0 %v22616_v36  ;;  %v16188_v36 = vrot.slane %v16179_v59, %v25692_v34 }
 0xade   :  { %19599 = vmatpush3.bf16.msra.mxu1 %v22707_v58  ;;  %p22896_p11 = por %p22895_p10, %p22894_p9 }
 0xae0   :  { %17730 = vmatpush1.bf16.msra.mxu0 %v22614_v47  ;;  %p22897_p12 = pnand %p22896_p11, %p22890_p8 }
 0xae1   :  { %17731 = vmatprep.subr.bf16.mxu0 %v22619_v54 }
 0xae4   :  { %17732 = vmatpush1.bf16.msra.mxu0 %v22617_v28 }
 0xae5   :  { %17733 = vmatprep.subr.bf16.mxu0 %v22622_v32 }
 0xae8   :  { %17734 = vmatpush1.bf16.msra.mxu0 %v22620_v55 }
 0xae9   :  { %17735 = vmatprep.subr.bf16.mxu0 %v22625_v40 }
 0xaec   :  { %17736 = vmatpush1.bf16.msra.mxu0 %v22623_v24 }
 0xaed   :  { %17737 = vmatprep.subr.bf16.mxu0 %v22628_v15 }
 0xaf0   :  { %17738 = vmatpush1.bf16.msra.mxu0 %v22626_v60 }
 0xaf1   :  { %17739 = vmatprep.subr.bf16.mxu0 %v22631_v35 }
 0xaf4   :  { %17740 = vmatpush1.bf16.msra.mxu0 %v22629_v21  ;;  %v19567_v21 = vld [vmem:[#allocation16] ss:$0 sm:$0xff] }
 0xaf5   :  { %17741 = vmatprep.subr.bf16.mxu0 %v22634_v51 }
 0xaf8   :  { %17742 = vmatpush1.bf16.msra.mxu0 %v22632_v33 }
 0xaf9   :  { %17743 = vmatprep.subr.bf16.mxu0 %v22637_v31 }
 0xafc   :  { %17744 = vmatpush1.bf16.msra.mxu0 %v22635_v49 }
 0xafd   :  { %17745 = vmatprep.subr.bf16.mxu0 %v22640_v5 }
 0xb00   :  { %17746 = vmatpush1.bf16.msra.mxu0 %v22638_v41 }
 0xb01   :  { %17747 = vmatprep.subr.bf16.mxu0 %v22643_v18 }
 0xb04   :  { %17748 = vmatpush1.bf16.msra.mxu0 %v22641_v25 }
 0xb05   :  { %17758 = vmatprep.subr.bf16.mxu0 %v22646_v6 }
 0xb07   :  { %17750 = vmatmul.mubr.bf16.vlgmr.msra.gmra.mrb[80].mxu0 %v15919_v27 }
 0xb08   :  { %17759 = vmatpush1.bf16.msra.mxu0 %v22644_v62  ;;  %17790 = vmatprep.mubr.bf16.mxu0 %v15922_v30 }
 0xb09   :  { %17760 = vmatprep.subr.bf16.mxu0 %v22649_v13 }
 0xb0c   :  { %17761 = vmatpush1.bf16.msra.mxu0 %v22647_v61 }
 0xb0d   :  { %17762 = vmatprep.subr.bf16.mxu0 %v22652_v16 }
 0xb10   :  { %17763 = vmatpush1.bf16.msra.mxu0 %v22650_v39 }
 0xb11   :  { %17764 = vmatprep.subr.bf16.mxu0 %v22655_v2 }
 0xb14   :  { %17765 = vmatpush1.bf16.msra.mxu0 %v22653_v52 }
 0xb15   :  { %17766 = vmatprep.subr.bf16.mxu0 %v22658_v0 }
 0xb18   :  { %17767 = vmatpush1.bf16.msra.mxu0 %v22656_v12 }
 0xb19   :  { %17768 = vmatprep.subr.bf16.mxu0 %v22661_v38 }
 0xb1c   :  { %17769 = vmatpush1.bf16.msra.mxu0 %v22659_v14 }
 0xb1d   :  { %17770 = vmatprep.subr.bf16.mxu0 %v22664_v20 }
 0xb20   :  { %17771 = vmatpush1.bf16.msra.mxu0 %v22662_v4 }
 0xb21   :  { %17772 = vmatprep.subr.bf16.mxu0 %v22667_v37 }
 0xb24   :  { %17773 = vmatpush1.bf16.msra.mxu0 %v22665_v56 }
 0xb25   :  { %17774 = vmatprep.subr.bf16.mxu0 %v22670_v44 }
 0xb28   :  { %17775 = vmatpush1.bf16.msra.mxu0 %v22668_v22 }
 0xb29   :  { %17776 = vmatprep.subr.bf16.mxu0 %v22673_v43 }
 0xb2c   :  { %17777 = vmatpush1.bf16.msra.mxu0 %v22671_v1 }
 0xb2d   :  { %17778 = vmatprep.subr.bf16.mxu0 %v22676_v63 }
 0xb30   :  { %17779 = vmatpush1.bf16.msra.mxu0 %v22674_v17 }
 0xb31   :  { %17780 = vmatprep.subr.bf16.mxu0 %v22679_v50 }
 0xb34   :  { %17781 = vmatpush1.bf16.msra.mxu0 %v22677_v53 }
 0xb35   :  { %17782 = vmatprep.subr.bf16.mxu0 %v22682_v48 }
 0xb38   :  { %17783 = vmatpush1.bf16.msra.mxu0 %v22680_v42 }
 0xb39   :  { %17784 = vmatprep.subr.bf16.mxu0 %v22685_v11 }
 0xb3c   :  { %17785 = vmatpush1.bf16.msra.mxu0 %v22683_v19 }
 0xb3d   :  { %17786 = vmatprep.subr.bf16.mxu0 %v22688_v9 }
 0xb40   :  { %17787 = vmatpush1.bf16.msra.mxu0 %v22686_v26 }
 0xb41   :  { %17788 = vmatprep.subr.bf16.mxu0 %v22691_v8 }
 0xb44   :  { %17789 = vmatpush1.bf16.msra.mxu0 %v22689_v46 }
 0xb47   :  { %17791 = vmatmul.mubr.bf16.vlgmr.msra.gmra.mrb[80].mxu0 %v15921_v57 }
 0xc1a   :  { %v17792_v45 = vpop.f32.mrb[80].mxu0 }
 0xc1b   :  { %v19670_v47 = vadd.f32 %v17792_v45, %v16184_v3  ;;  %v17794_v54 = vpop.f32.mrb[81].mxu0 }
 0xc1c   :  { %v19671_v28 = vadd.f32 %v17794_v54, %v16188_v36  ;;  %v17796_v32 = vpop.f32.mrb[82].mxu0 }
 0xc1d   :  { %v17799_v55 = vmax.f32 %v19670_v47, 0.0  ;;  %v17797_v40 = vpop.f32.mrb[83].mxu0 }
 0xc1e   :  { %v17800_v24 = vmax.f32 %v19671_v28, 0.0 }
 0xc1f   :  { %v17801_v60 = vpack.c.bf16 %v17799_v55, %v17799_v55 }
 0xc20   :  { %v17802_v15 = vpack.c.bf16 %v17800_v24, %v17800_v24 }
 0xc22   :  { %17970 = vmatprep.mubr.bf16.mxu1 %v17802_v15 }
 0xc23   :  { %17971 = vmatmul.mubr.bf16.vlgmr.msra.gmra.mrb[144].mxu1 %v17801_v60 }
 0xcf6   :  { %v19600_v35 = vpop.f32.mrb[144].mxu1 }
 0xcf7   :  { %v19601_v51 = vpop.f32.mrb[145].mxu1 }
 0xcf8   :  { %v19602_v10 = vadd.f32 %v19601_v51, %v19600_v35  ;;  %v19603_v33 = vpop.f32.mrb[146].mxu1 }
 0xcf9   :  { %v19604_v34 = vpop.f32.mrb[147].mxu1 }
 0xcfa   :  { %v17973_v31 = vadd.f32 %v19602_v10, %v19567_v21 }
 0xcfc   :  { %17979 = vst.msk [vmem:[#allocation18] sm:$0x3] %vm17978_vm10, %v17973_v31 }
 0xcfd   :  { %22900 = shalt.err (!%p22897_p12)
}
 0xcfe   :  { %s22901_s17 = scalar_lea.hbm %s25345_s9, 32 }
 0xcff   :  { %p22902_p13 = scmp.ne.s32.totalorder %s25345_s9, %s22901_s17  ;;  %p22905_p0 = scmp.lt.u32.totalorder %s22901_s17, %s25345_s9 }
 0xd01   :  { %p22907_p1 = pnand %p22905_p0, %p22902_p13 }
 0xd03   :  { %22910 = shalt.err (!%p22907_p1)
}
 0xd04   :  { %17989 = dma.vmem_to_hbm [thread:$0]  %s17987_s13, 32, %s25345_s9, [#allocation6]  }
 0xd05   :  { %22921 = dma.done.wait [#allocation6], 32  }
 0xd06   :  { %22922 = vsyncadd [#allocation6], 4294967264 }
 0xd07   :  { %17993 = vsyncpa [#allocation5], 1 }
 0xd08   :  { %17994 = vsyncpa [#allocation8], 1 }
 0xd09   :  { %17995 = vsyncpa [#allocation11], 1 }
 0xd0a   :  { %17996 = vsyncpa [#allocation14], 1 }
 0xd0b   :  { %17997 = vsyncpa [#allocation17], 1 }
 0xd0c   :  { %17998 = vsyncpa [#allocation6], 1 }

</bundles_post_ra>
